<compile_context>
chip_gen: v5e
topology: v5e:2x2
jax: 0.10.0
libtpu: 0.0.40
codegen_flags: <defaults>
</compile_context>

<pallas_src>
import functools

import jax
import jax.numpy as jnp
from jax.experimental import pallas as pl
from jax.experimental.pallas import tpu as pltpu


def _round_up(n, m):
    return ((n + m - 1) // m) * m


def _mlp_kernel(x_ref, wg_ref, wu_ref, wd_ref, o_ref, acc_ref):
    # x_ref:   (tm, Hp)      token tile (resident across the k/reduction axis)
    # wg_ref:  (Hp, ti)      gate-proj weight tile for I-chunk k
    # wu_ref:  (Hp, ti)      up-proj weight tile for I-chunk k
    # wd_ref:  (ti, Hp)      down-proj weight tile for I-chunk k
    # o_ref:   (tm, Hp)      output tile (written on last k)
    # acc_ref: (tm, Hp) f32  partial-sum accumulator
    k = pl.program_id(1)

    @pl.when(k == 0)
    def _():
        acc_ref[...] = jnp.zeros_like(acc_ref)

    x = x_ref[...]

    # gate / up projections with a shared LHS; accumulate in f32 on the MXU.
    g = jnp.dot(x, wg_ref[...], preferred_element_type=jnp.float32)
    u = jnp.dot(x, wu_ref[...], preferred_element_type=jnp.float32)

    # SiLU(g) * u in f32 (sigmoid goes to the EUP slot, mul to the VPU).
    h = (g * jax.nn.sigmoid(g)) * u

    # Partial down projection, accumulated in f32 across I-tiles.
    acc_ref[...] += jnp.dot(h.astype(wd_ref.dtype), wd_ref[...],
                            preferred_element_type=jnp.float32)

    @pl.when(k == pl.num_programs(1) - 1)
    def _():
        o_ref[...] = acc_ref[...].astype(o_ref.dtype)


@functools.partial(jax.jit, static_argnames=("tm", "ti"))
def deepseek_mlp(x, wg, wu, wd, *, tm=256, ti=512):
    """x: (B, S, H). wg/wu: (H, I), wd: (I, H) (torch Linear.weight transposed).

    Returns (B, S, H) in x.dtype. All matmuls accumulate in f32.
    """
    B, S, H = x.shape
    I = wg.shape[1]
    T = B * S
    dtype = x.dtype

    # --- padding / tile clamping (lane-dense output, no divisibility asserts) ---
    Hp = _round_up(H, 128)                    # lane axis: multiple of 128
    tm_eff = min(tm, _round_up(T, 8))         # sublane axis: multiple of 8
    Tp = _round_up(T, tm_eff)
    ti_eff = min(ti, _round_up(I, 128))
    Ip = _round_up(I, ti_eff)
    nk = Ip // ti_eff

    x2d = jnp.pad(x.reshape(T, H), ((0, Tp - T), (0, Hp - H)))
    wg_p = jnp.pad(wg, ((0, Hp - H), (0, Ip - I)))
    wu_p = jnp.pad(wu, ((0, Hp - H), (0, Ip - I)))
    wd_p = jnp.pad(wd, ((0, Ip - I), (0, Hp - H)))

    # --- scoped VMEM budget: double-buffered streamed tiles + scratch ---
    itemsize = jnp.dtype(dtype).itemsize
    vmem_bytes = (
        2 * tm_eff * Hp * itemsize            # x tile (double buffered)
        + 2 * Hp * ti_eff * itemsize          # gate weight tile
        + 2 * Hp * ti_eff * itemsize          # up weight tile
        + 2 * ti_eff * Hp * itemsize          # down weight tile
        + 2 * tm_eff * Hp * itemsize          # output tile
        + tm_eff * Hp * 4                     # f32 accumulator scratch
        + 3 * tm_eff * ti_eff * 4             # f32 g / u / h activations
    )
    vmem_limit = int(min(max(2 * vmem_bytes, 32 << 20), 64 << 20))

    out2d = pl.pallas_call(
        _mlp_kernel,
        out_shape=jax.ShapeDtypeStruct((Tp, Hp), dtype),
        grid_spec=pltpu.PrefetchScalarGridSpec(
            num_scalar_prefetch=0,
            grid=(Tp // tm_eff, nk),
            in_specs=[
                pl.BlockSpec((tm_eff, Hp), lambda i, k: (i, 0)),      # x tile
                pl.BlockSpec((Hp, ti_eff), lambda i, k: (0, k)),      # gate
                pl.BlockSpec((Hp, ti_eff), lambda i, k: (0, k)),      # up
                pl.BlockSpec((ti_eff, Hp), lambda i, k: (k, 0)),      # down
            ],
            out_specs=pl.BlockSpec((tm_eff, Hp), lambda i, k: (i, 0)),
            scratch_shapes=[pltpu.VMEM((tm_eff, Hp), jnp.float32)],
        ),
        compiler_params=pltpu.CompilerParams(
            dimension_semantics=("parallel", "arbitrary"),
            vmem_limit_bytes=vmem_limit,
        ),
    )(x2d, wg_p, wu_p, wd_p)

    return out2d[:T, :H].reshape(B, S, H)


def _reference_mlp(x, wg, wu, wd):
    g = x @ wg
    u = x @ wu
    return (jax.nn.silu(g) * u) @ wd


if __name__ == "__main__":
    # Small shapes consistent with the module's config:
    # hidden_size=576, intermediate_size=4*576 (576 is NOT a multiple of 128,
    # so this exercises the lane-padding path; I=2304 exercises nk=5 reduction).
    B, S = 2, 8          # batch, sequence
    H = 576              # hidden_size
    I = 4 * H            # intermediate_size

    key = jax.random.PRNGKey(0)
    kx, kg, ku, kd = jax.random.split(key, 4)

    # Deterministic init, mimicking nn.Linear default U(-1/sqrt(fan_in), ...).
    # Stored as (in, out) = transpose of torch Linear.weight.
    wg = jax.random.uniform(kg, (H, I), jnp.float32, -1.0, 1.0) / jnp.sqrt(H)
    wu = jax.random.uniform(ku, (H, I), jnp.float32, -1.0, 1.0) / jnp.sqrt(H)
    wd = jax.random.uniform(kd, (I, H), jnp.float32, -1.0, 1.0) / jnp.sqrt(I)
    x = jax.random.normal(kx, (B, S, H), jnp.float32)

    ref = _reference_mlp(x.reshape(B * S, H), wg, wu, wd).reshape(B, S, H)

    # f32 path (T=16 < tm -> single token tile, nk=5 reduction steps).
    out = jax.block_until_ready(deepseek_mlp(x, wg, wu, wd))
    assert out.shape == (B, S, H)
    assert jnp.allclose(out, ref, atol=2e-4, rtol=2e-4), "f32 mismatch vs reference"

    # bf16 path (what you'd run at real sizes): bf16 weights/activations,
    # f32 accumulation inside the kernel.
    bf = jnp.bfloat16
    out_bf = jax.block_until_ready(
        deepseek_mlp(x.astype(bf), wg.astype(bf), wu.astype(bf), wd.astype(bf)))
    assert out_bf.shape == (B, S, H)
    assert jnp.allclose(out_bf.astype(jnp.float32), ref, atol=1e-1, rtol=1e-1), \
        "bf16 mismatch vs reference"

    print("KERNEL_OK")
</pallas_src>

<mosaic_0001>
module attributes {stable_mosaic.version = 11 : i64} {
  func.func @_mlp_kernel(%arg0: i32, %arg1: i32, %arg2: memref<16x640xf32, #tpu.memory_space<vmem>>, %arg3: memref<640x512xf32, #tpu.memory_space<vmem>>, %arg4: memref<640x512xf32, #tpu.memory_space<vmem>>, %arg5: memref<512x640xf32, #tpu.memory_space<vmem>>, %arg6: memref<16x640xf32, #tpu.memory_space<vmem>>, %arg7: memref<16x640xf32, #tpu.memory_space<vmem>>) attributes {dimension_semantics = [#tpu.dimension_semantics<parallel>, #tpu.dimension_semantics<arbitrary>], iteration_bounds = array<i64: 1, 5>, scalar_prefetch = 0 : i64, scratch_operands = 1 : i64, tpu.core_type = #tpu.core_type<tc>, window_params = [{transform_indices = @transform_0, window_bounds = array<i64: 16, 640>}, {transform_indices = @transform_1, window_bounds = array<i64: 640, 512>}, {transform_indices = @transform_2, window_bounds = array<i64: 640, 512>}, {transform_indices = @transform_3, window_bounds = array<i64: 512, 640>}, {transform_indices = @transform_4, window_bounds = array<i64: 16, 640>}]} {
    %c0_i32 = arith.constant 0 : i32
    %0 = arith.cmpi eq, %arg1, %c0_i32 : i32
    %1 = arith.extui %0 : i1 to i32
    %c0_i32_0 = arith.constant 0 : i32
    %2 = arith.cmpi ne, %1, %c0_i32_0 : i32
    scf.if %2 {
      %cst_16 = arith.constant 0.000000e+00 : f32
      %23 = vector.broadcast %cst_16 : f32 to vector<16x640xf32>
      %c0_17 = arith.constant 0 : index
      %c0_18 = arith.constant 0 : index
      %24 = vector.load %arg7[%c0_17, %c0_18] : memref<16x640xf32, #tpu.memory_space<vmem>>, vector<16x640xf32>
      tpu.vector_store %arg7[%c0_17, %c0_18], %23 {strides = array<i32>} : memref<16x640xf32, #tpu.memory_space<vmem>>, vector<16x640xf32>,
    } else {
    }
    %c0 = arith.constant 0 : index
    %c0_1 = arith.constant 0 : index
    %3 = vector.load %arg2[%c0, %c0_1] : memref<16x640xf32, #tpu.memory_space<vmem>>, vector<16x640xf32>
    %c0_2 = arith.constant 0 : index
    %c0_3 = arith.constant 0 : index
    %4 = vector.load %arg3[%c0_2, %c0_3] : memref<640x512xf32, #tpu.memory_space<vmem>>, vector<640x512xf32>
    %cst = arith.constant dense<0.000000e+00> : vector<16x512xf32>
    %5 = tpu.matmul %3, %4, %cst {dimension_numbers = #tpu.dot_dimension_numbers<[1], [0], [0], [1], [0, 0, 1, 1], [], []>} : vector<16x640xf32>, vector<640x512xf32>, vector<16x512xf32> -> vector<16x512xf32>
    %c0_4 = arith.constant 0 : index
    %c0_5 = arith.constant 0 : index
    %6 = vector.load %arg4[%c0_4, %c0_5] : memref<640x512xf32, #tpu.memory_space<vmem>>, vector<640x512xf32>
    %cst_6 = arith.constant dense<0.000000e+00> : vector<16x512xf32>
    %7 = tpu.matmul %3, %6, %cst_6 {dimension_numbers = #tpu.dot_dimension_numbers<[1], [0], [0], [1], [0, 0, 1, 1], [], []>} : vector<16x640xf32>, vector<640x512xf32>, vector<16x512xf32> -> vector<16x512xf32>
    %8 = arith.negf %5 : vector<16x512xf32>
    %9 = math.exp %8 : vector<16x512xf32>
    %cst_7 = arith.constant 1.000000e+00 : f32
    %10 = vector.broadcast %cst_7 : f32 to vector<16x512xf32>
    %11 = arith.addf %10, %9 : vector<16x512xf32>
    %12 = arith.divf %10, %11 : vector<16x512xf32>
    %13 = arith.mulf %5, %12 : vector<16x512xf32>
    %14 = arith.mulf %13, %7 : vector<16x512xf32>
    %c0_8 = arith.constant 0 : index
    %c0_9 = arith.constant 0 : index
    %15 = vector.load %arg7[%c0_8, %c0_9] : memref<16x640xf32, #tpu.memory_space<vmem>>, vector<16x640xf32>
    %c0_10 = arith.constant 0 : index
    %c0_11 = arith.constant 0 : index
    %16 = vector.load %arg5[%c0_10, %c0_11] : memref<512x640xf32, #tpu.memory_space<vmem>>, vector<512x640xf32>
    %cst_12 = arith.constant dense<0.000000e+00> : vector<16x640xf32>
    %17 = tpu.matmul %14, %16, %cst_12 {dimension_numbers = #tpu.dot_dimension_numbers<[1], [0], [0], [1], [0, 0, 1, 1], [], []>} : vector<16x512xf32>, vector<512x640xf32>, vector<16x640xf32> -> vector<16x640xf32>
    %18 = arith.addf %15, %17 : vector<16x640xf32>
    %c0_13 = arith.constant 0 : index
    %c0_14 = arith.constant 0 : index
    %19 = vector.load %arg7[%c0_13, %c0_14] : memref<16x640xf32, #tpu.memory_space<vmem>>, vector<16x640xf32>
    tpu.vector_store %arg7[%c0_13, %c0_14], %18 {strides = array<i32>} : memref<16x640xf32, #tpu.memory_space<vmem>>, vector<16x640xf32>,
    %c4_i32 = arith.constant 4 : i32
    %20 = arith.cmpi eq, %arg1, %c4_i32 : i32
    %21 = arith.extui %20 : i1 to i32
    %c0_i32_15 = arith.constant 0 : i32
    %22 = arith.cmpi ne, %21, %c0_i32_15 : i32
    scf.if %22 {
      %c0_16 = arith.constant 0 : index
      %c0_17 = arith.constant 0 : index
      %23 = vector.load %arg7[%c0_16, %c0_17] : memref<16x640xf32, #tpu.memory_space<vmem>>, vector<16x640xf32>
      %c0_18 = arith.constant 0 : index
      %c0_19 = arith.constant 0 : index
      %24 = vector.load %arg6[%c0_18, %c0_19] : memref<16x640xf32, #tpu.memory_space<vmem>>, vector<16x640xf32>
      tpu.vector_store %arg6[%c0_18, %c0_19], %23 {strides = array<i32>} : memref<16x640xf32, #tpu.memory_space<vmem>>, vector<16x640xf32>,
    } else {
    }
    return
  }
  func.func @transform_0(%arg0: i32, %arg1: i32) -> (i32, i32) {
    %c0_i32 = arith.constant 0 : i32
    %c0_i32_0 = arith.constant 0 : i32
    return %arg0, %c0_i32 : i32, i32
  }
  func.func @transform_1(%arg0: i32, %arg1: i32) -> (i32, i32) {
    %c0_i32 = arith.constant 0 : i32
    %c0_i32_0 = arith.constant 0 : i32
    return %c0_i32, %arg1 : i32, i32
  }
  func.func @transform_2(%arg0: i32, %arg1: i32) -> (i32, i32) {
    %c0_i32 = arith.constant 0 : i32
    %c0_i32_0 = arith.constant 0 : i32
    return %c0_i32, %arg1 : i32, i32
  }
  func.func @transform_3(%arg0: i32, %arg1: i32) -> (i32, i32) {
    %c0_i32 = arith.constant 0 : i32
    %c0_i32_0 = arith.constant 0 : i32
    return %arg1, %c0_i32 : i32, i32
  }
  func.func @transform_4(%arg0: i32, %arg1: i32) -> (i32, i32) {
    %c0_i32 = arith.constant 0 : i32
    %c0_i32_0 = arith.constant 0 : i32
    return %arg0, %c0_i32 : i32, i32
  }
}

</mosaic_0001>

<bundles_post_ra>
// kernel: deepseek_mlp.1
= control target key start
LH: loop header
LB: loop body
LE: loop exit
PB: predicated region body
PF: predicated region fallthrough
CT: control target
= control target key end

     0   :  { %s4484_s15 = smov 0   ;;  %s4486_s16 = smov 0   ;;  %s7378_s0 = inlined_call_operand.vmem [shape: f32[16,640], index: 0, kind: input, shape index: {}]   ;;  %s7379_s1 = inlined_call_operand.vmem [shape: f32[640,2560], index: 1, kind: input, shape index: {}]   ;;  %s7380_s2 = inlined_call_operand.vmem [shape: f32[640,2560], index: 2, kind: input, shape index: {}]   ;;  %s7381_s3 = inlined_call_operand.vmem [shape: f32[2560,640], index: 3, kind: input, shape index: {}]   ;;  %s7382_s4 = inlined_call_operand.vmem [shape: f32[16,640], index: 4, kind: output, shape index: {}]  }
   0x1   :  { %s4488_s17 = smov 0   ;;  %s4490_s18 = smov 0  }
   0x2   :  { %s4492_s19 = smov 0  }
   0x3 LB: > { %s23_s20 = sadd.s32 1, %s4452_s18  ;;  %p66_p1 = scmp.ne.s32.totalorder %s4444_s16, %s4440_s15  ;;  %s4456_s19 = sphi %s4492_s19, %s14_s19   ;;  %s4452_s18 = sphi %s4490_s18, %s7403_s18   ;;  %s4448_s17 = sphi %s4488_s17, %s7402_s17   ;;  %s4444_s16 = sphi %s4486_s16, %s7401_s16   ;;  %s4440_s15 = sphi %s4484_s15, %s7400_s15  }
   0x4   : > { %p24_p0 = scmp.ge.s32.totalorder %s23_s20, 5  ;;  %p67_p2 = scmp.eq.s32.totalorder %s4456_s19, 0 }
   0x5   : > { %s59_s23 = sadd.s32 1, %s4444_s16  ;;  %p4305_p5 = scmp.ge.s32.totalorder %s4456_s19, 5 }
   0x6   : > { %s7405_s20 = smov (%p24_p0, %s23_s20), 0  ;;  %p4515_p3 = por %p67_p2, %p66_p1 }
   0x7   : > { %s56_s22 = ssub.s32 %s4452_s18, %s7405_s20  ;;  %180 = sbr.rel (%p4305_p5) target bundleno = 660 (0x294), region = 20 }
   0x8   : > { %p57_p4 = scmp.eq.s32.totalorder %s56_s22, 0 }
   0xa   : > { %s4523_s24 = scalar_select %p57_p4, %s4444_s16, %s59_s23  }
   0xc   : > { %183 = sbr.rel (!%p4515_p3) target bundleno = 336 (0x150), region = 24  ;;  %s185_s25 = sand.u32 (%p4515_p3), 1, %s4444_s16  }
   0xd   : > { %s4327_s26 = sshll.u32 (%p4515_p3), %s4452_s18, 5  ;;  %s4329_s27 = smul.u32 (%p4515_p3), 2560, %s185_s25 }
   0xe   : > { %s4533_s30 = scalar_lea.vmem (%p4515_p3), %s7379_s1, %s4327_s26 }
   0xf   : > { %v203_v0 = vld [vmem:[%s4533_s30] sm:$0xff] (%p4515_p3)  ;;  %v205_v1 = vld [vmem:[%s4533_s30 + $0x8] sm:$0xff] (%p4515_p3)  ;;  %v207_v2 = vld [vmem:[%s4533_s30 + $0x10] sm:$0xff] (%p4515_p3)  ;;  %s4538_s5 = scalar_lea.vmem (%p4515_p3), [#allocation3], %s4329_s27 }
  0x10   : > { %204 = vst [vmem:[%s4538_s5] sm:$0xff] (%p4515_p3), %v203_v0  ;;  %v209_v3 = vld [vmem:[%s4533_s30 + $0x18] sm:$0xff] (%p4515_p3)  ;;  %v211_v4 = vld [vmem:[%s4533_s30 + $0xa0] sm:$0xff] (%p4515_p3)  ;;  %v213_v5 = vld [vmem:[%s4533_s30 + $0xa8] sm:$0xff] (%p4515_p3) }
  0x11   : > { %206 = vst [vmem:[%s4538_s5 + $0x8] sm:$0xff] %v205_v1  ;;  %v215_v6 = vld [vmem:[%s4533_s30 + $0xb0] sm:$0xff]  ;;  %v217_v7 = vld [vmem:[%s4533_s30 + $0xb8] sm:$0xff]  ;;  %v219_v8 = vld [vmem:[%s4533_s30 + $0x140] sm:$0xff] }
  0x12   : > { %208 = vst [vmem:[%s4538_s5 + $0x10] sm:$0xff] %v207_v2  ;;  %v221_v9 = vld [vmem:[%s4533_s30 + $0x148] sm:$0xff]  ;;  %v223_v10 = vld [vmem:[%s4533_s30 + $0x150] sm:$0xff]  ;;  %v225_v11 = vld [vmem:[%s4533_s30 + $0x158] sm:$0xff] }
  0x13   : > { %210 = vst [vmem:[%s4538_s5 + $0x18] sm:$0xff] %v209_v3  ;;  %v227_v12 = vld [vmem:[%s4533_s30 + $0x1e0] sm:$0xff]  ;;  %v229_v13 = vld [vmem:[%s4533_s30 + $0x1e8] sm:$0xff]  ;;  %v231_v14 = vld [vmem:[%s4533_s30 + $0x1f0] sm:$0xff] }
  0x14   : > { %212 = vst [vmem:[%s4538_s5 + $0x20] sm:$0xff] %v211_v4  ;;  %v233_v15 = vld [vmem:[%s4533_s30 + $0x1f8] sm:$0xff]  ;;  %v235_v16 = vld [vmem:[%s4533_s30 + $0x280] sm:$0xff]  ;;  %v237_v17 = vld [vmem:[%s4533_s30 + $0x288] sm:$0xff] }
  0x15   : > { %214 = vst [vmem:[%s4538_s5 + $0x28] sm:$0xff] %v213_v5  ;;  %v239_v18 = vld [vmem:[%s4533_s30 + $0x290] sm:$0xff]  ;;  %v241_v19 = vld [vmem:[%s4533_s30 + $0x298] sm:$0xff]  ;;  %v243_v20 = vld [vmem:[%s4533_s30 + $0x320] sm:$0xff] }
  0x16   : > { %216 = vst [vmem:[%s4538_s5 + $0x30] sm:$0xff] %v215_v6  ;;  %v245_v21 = vld [vmem:[%s4533_s30 + $0x328] sm:$0xff]  ;;  %v247_v22 = vld [vmem:[%s4533_s30 + $0x330] sm:$0xff]  ;;  %v249_v23 = vld [vmem:[%s4533_s30 + $0x338] sm:$0xff] }
  0x17   : > { %218 = vst [vmem:[%s4538_s5 + $0x38] sm:$0xff] %v217_v7  ;;  %v251_v24 = vld [vmem:[%s4533_s30 + $0x3c0] sm:$0xff]  ;;  %v253_v25 = vld [vmem:[%s4533_s30 + $0x3c8] sm:$0xff]  ;;  %v255_v26 = vld [vmem:[%s4533_s30 + $0x3d0] sm:$0xff] }
  0x18   : > { %220 = vst [vmem:[%s4538_s5 + $0x40] sm:$0xff] %v219_v8  ;;  %v257_v27 = vld [vmem:[%s4533_s30 + $0x3d8] sm:$0xff]  ;;  %v259_v28 = vld [vmem:[%s4533_s30 + $0x460] sm:$0xff]  ;;  %v261_v29 = vld [vmem:[%s4533_s30 + $0x468] sm:$0xff] }
  0x19   : > { %222 = vst [vmem:[%s4538_s5 + $0x48] sm:$0xff] %v221_v9  ;;  %v263_v30 = vld [vmem:[%s4533_s30 + $0x470] sm:$0xff]  ;;  %v265_v31 = vld [vmem:[%s4533_s30 + $0x478] sm:$0xff]  ;;  %v267_v32 = vld [vmem:[%s4533_s30 + $0x500] sm:$0xff] }
  0x1a   : > { %224 = vst [vmem:[%s4538_s5 + $0x50] sm:$0xff] %v223_v10  ;;  %v269_v33 = vld [vmem:[%s4533_s30 + $0x508] sm:$0xff]  ;;  %v271_v34 = vld [vmem:[%s4533_s30 + $0x510] sm:$0xff]  ;;  %v273_v35 = vld [vmem:[%s4533_s30 + $0x518] sm:$0xff] }
  0x1b   : > { %226 = vst [vmem:[%s4538_s5 + $0x58] sm:$0xff] %v225_v11  ;;  %v275_v36 = vld [vmem:[%s4533_s30 + $0x5a0] sm:$0xff]  ;;  %v277_v37 = vld [vmem:[%s4533_s30 + $0x5a8] sm:$0xff]  ;;  %v279_v38 = vld [vmem:[%s4533_s30 + $0x5b0] sm:$0xff] }
  0x1c   : > { %228 = vst [vmem:[%s4538_s5 + $0x60] sm:$0xff] %v227_v12  ;;  %v281_v39 = vld [vmem:[%s4533_s30 + $0x5b8] sm:$0xff]  ;;  %v283_v40 = vld [vmem:[%s4533_s30 + $0x640] sm:$0xff]  ;;  %v285_v41 = vld [vmem:[%s4533_s30 + $0x648] sm:$0xff] }
  0x1d   : > { %230 = vst [vmem:[%s4538_s5 + $0x68] sm:$0xff] %v229_v13  ;;  %v287_v42 = vld [vmem:[%s4533_s30 + $0x650] sm:$0xff]  ;;  %v289_v43 = vld [vmem:[%s4533_s30 + $0x658] sm:$0xff]  ;;  %v291_v44 = vld [vmem:[%s4533_s30 + $0x6e0] sm:$0xff] }
  0x1e   : > { %232 = vst [vmem:[%s4538_s5 + $0x70] sm:$0xff] %v231_v14  ;;  %v293_v45 = vld [vmem:[%s4533_s30 + $0x6e8] sm:$0xff]  ;;  %v295_v46 = vld [vmem:[%s4533_s30 + $0x6f0] sm:$0xff]  ;;  %v297_v47 = vld [vmem:[%s4533_s30 + $0x6f8] sm:$0xff] }
  0x1f   : > { %234 = vst [vmem:[%s4538_s5 + $0x78] sm:$0xff] %v233_v15  ;;  %v299_v48 = vld [vmem:[%s4533_s30 + $0x780] sm:$0xff]  ;;  %v301_v49 = vld [vmem:[%s4533_s30 + $0x788] sm:$0xff]  ;;  %v303_v50 = vld [vmem:[%s4533_s30 + $0x790] sm:$0xff] }
  0x20   : > { %236 = vst [vmem:[%s4538_s5 + $0x80] sm:$0xff] %v235_v16  ;;  %v305_v51 = vld [vmem:[%s4533_s30 + $0x798] sm:$0xff]  ;;  %v307_v52 = vld [vmem:[%s4533_s30 + $0x820] sm:$0xff]  ;;  %v309_v53 = vld [vmem:[%s4533_s30 + $0x828] sm:$0xff] }
  0x21   : > { %238 = vst [vmem:[%s4538_s5 + $0x88] sm:$0xff] %v237_v17  ;;  %v311_v54 = vld [vmem:[%s4533_s30 + $0x830] sm:$0xff]  ;;  %v313_v55 = vld [vmem:[%s4533_s30 + $0x838] sm:$0xff]  ;;  %v315_v56 = vld [vmem:[%s4533_s30 + $0x8c0] sm:$0xff] }
  0x22   : > { %240 = vst [vmem:[%s4538_s5 + $0x90] sm:$0xff] %v239_v18  ;;  %v317_v57 = vld [vmem:[%s4533_s30 + $0x8c8] sm:$0xff]  ;;  %v319_v58 = vld [vmem:[%s4533_s30 + $0x8d0] sm:$0xff]  ;;  %v321_v59 = vld [vmem:[%s4533_s30 + $0x8d8] sm:$0xff] }
  0x23   : > { %242 = vst [vmem:[%s4538_s5 + $0x98] sm:$0xff] %v241_v19  ;;  %v323_v60 = vld [vmem:[%s4533_s30 + $0x960] sm:$0xff]  ;;  %v325_v61 = vld [vmem:[%s4533_s30 + $0x968] sm:$0xff]  ;;  %v327_v62 = vld [vmem:[%s4533_s30 + $0x970] sm:$0xff] }
  0x24   : > { %244 = vst [vmem:[%s4538_s5 + $0xa0] sm:$0xff] %v243_v20  ;;  %v329_v63 = vld [vmem:[%s4533_s30 + $0x978] sm:$0xff]  ;;  %v331_v0 = vld [vmem:[%s4533_s30 + $0xa00] sm:$0xff]  ;;  %v333_v1 = vld [vmem:[%s4533_s30 + $0xa08] sm:$0xff] }
  0x25   : > { %246 = vst [vmem:[%s4538_s5 + $0xa8] sm:$0xff] %v245_v21  ;;  %v335_v2 = vld [vmem:[%s4533_s30 + $0xa10] sm:$0xff]  ;;  %v337_v3 = vld [vmem:[%s4533_s30 + $0xa18] sm:$0xff]  ;;  %v339_v4 = vld [vmem:[%s4533_s30 + $0xaa0] sm:$0xff] }
  0x26   : > { %248 = vst [vmem:[%s4538_s5 + $0xb0] sm:$0xff] %v247_v22  ;;  %v341_v5 = vld [vmem:[%s4533_s30 + $0xaa8] sm:$0xff]  ;;  %v343_v6 = vld [vmem:[%s4533_s30 + $0xab0] sm:$0xff]  ;;  %v345_v7 = vld [vmem:[%s4533_s30 + $0xab8] sm:$0xff] }
  0x27   : > { %250 = vst [vmem:[%s4538_s5 + $0xb8] sm:$0xff] %v249_v23  ;;  %v347_v8 = vld [vmem:[%s4533_s30 + $0xb40] sm:$0xff]  ;;  %v349_v9 = vld [vmem:[%s4533_s30 + $0xb48] sm:$0xff]  ;;  %v351_v10 = vld [vmem:[%s4533_s30 + $0xb50] sm:$0xff] }
  0x28   : > { %252 = vst [vmem:[%s4538_s5 + $0xc0] sm:$0xff] %v251_v24  ;;  %v353_v11 = vld [vmem:[%s4533_s30 + $0xb58] sm:$0xff]  ;;  %v355_v12 = vld [vmem:[%s4533_s30 + $0xbe0] sm:$0xff]  ;;  %v357_v13 = vld [vmem:[%s4533_s30 + $0xbe8] sm:$0xff] }
  0x29   : > { %254 = vst [vmem:[%s4538_s5 + $0xc8] sm:$0xff] %v253_v25  ;;  %v359_v14 = vld [vmem:[%s4533_s30 + $0xbf0] sm:$0xff]  ;;  %v361_v15 = vld [vmem:[%s4533_s30 + $0xbf8] sm:$0xff]  ;;  %v363_v16 = vld [vmem:[%s4533_s30 + $0xc80] sm:$0xff] }
  0x2a   : > { %256 = vst [vmem:[%s4538_s5 + $0xd0] sm:$0xff] %v255_v26  ;;  %v365_v17 = vld [vmem:[%s4533_s30 + $0xc88] sm:$0xff]  ;;  %v367_v18 = vld [vmem:[%s4533_s30 + $0xc90] sm:$0xff]  ;;  %v369_v19 = vld [vmem:[%s4533_s30 + $0xc98] sm:$0xff] }
  0x2b   : > { %258 = vst [vmem:[%s4538_s5 + $0xd8] sm:$0xff] %v257_v27  ;;  %v371_v20 = vld [vmem:[%s4533_s30 + $0xd20] sm:$0xff]  ;;  %v373_v21 = vld [vmem:[%s4533_s30 + $0xd28] sm:$0xff]  ;;  %v375_v22 = vld [vmem:[%s4533_s30 + $0xd30] sm:$0xff] }
  0x2c   : > { %260 = vst [vmem:[%s4538_s5 + $0xe0] sm:$0xff] %v259_v28  ;;  %v377_v23 = vld [vmem:[%s4533_s30 + $0xd38] sm:$0xff]  ;;  %v379_v24 = vld [vmem:[%s4533_s30 + $0xdc0] sm:$0xff]  ;;  %v381_v25 = vld [vmem:[%s4533_s30 + $0xdc8] sm:$0xff] }
  0x2d   : > { %262 = vst [vmem:[%s4538_s5 + $0xe8] sm:$0xff] %v261_v29  ;;  %v383_v26 = vld [vmem:[%s4533_s30 + $0xdd0] sm:$0xff]  ;;  %v385_v27 = vld [vmem:[%s4533_s30 + $0xdd8] sm:$0xff]  ;;  %v387_v28 = vld [vmem:[%s4533_s30 + $0xe60] sm:$0xff] }
  0x2e   : > { %264 = vst [vmem:[%s4538_s5 + $0xf0] sm:$0xff] %v263_v30  ;;  %v389_v29 = vld [vmem:[%s4533_s30 + $0xe68] sm:$0xff]  ;;  %v391_v30 = vld [vmem:[%s4533_s30 + $0xe70] sm:$0xff] }
  0x2f   : > { %266 = vst [vmem:[%s4538_s5 + $0xf8] sm:$0xff] %v265_v31  ;;  %v393_v31 = vld [vmem:[%s4533_s30 + $0xe78] sm:$0xff] }
  0x30   : > { %268 = vst [vmem:[%s4538_s5 + $0x100] sm:$0xff] %v267_v32  ;;  %v395_v32 = vld [vmem:[%s4533_s30 + $0xf00] sm:$0xff] }
  0x31   : > { %270 = vst [vmem:[%s4538_s5 + $0x108] sm:$0xff] %v269_v33  ;;  %v397_v33 = vld [vmem:[%s4533_s30 + $0xf08] sm:$0xff] }
  0x32   : > { %272 = vst [vmem:[%s4538_s5 + $0x110] sm:$0xff] %v271_v34  ;;  %v399_v34 = vld [vmem:[%s4533_s30 + $0xf10] sm:$0xff] }
  0x33   : > { %274 = vst [vmem:[%s4538_s5 + $0x118] sm:$0xff] %v273_v35  ;;  %v401_v35 = vld [vmem:[%s4533_s30 + $0xf18] sm:$0xff] }
  0x34   : > { %276 = vst [vmem:[%s4538_s5 + $0x120] sm:$0xff] %v275_v36  ;;  %v403_v36 = vld [vmem:[%s4533_s30 + $0xfa0] sm:$0xff] }
  0x35   : > { %278 = vst [vmem:[%s4538_s5 + $0x128] sm:$0xff] %v277_v37  ;;  %v405_v37 = vld [vmem:[%s4533_s30 + $0xfa8] sm:$0xff] }
  0x36   : > { %280 = vst [vmem:[%s4538_s5 + $0x130] sm:$0xff] %v279_v38  ;;  %v407_v38 = vld [vmem:[%s4533_s30 + $0xfb0] sm:$0xff] }
  0x37   : > { %282 = vst [vmem:[%s4538_s5 + $0x138] sm:$0xff] %v281_v39  ;;  %v409_v39 = vld [vmem:[%s4533_s30 + $0xfb8] sm:$0xff] }
  0x38   : > { %284 = vst [vmem:[%s4538_s5 + $0x140] sm:$0xff] %v283_v40  ;;  %v411_v40 = vld [vmem:[%s4533_s30 + $0x1040] sm:$0xff] }
  0x39   : > { %286 = vst [vmem:[%s4538_s5 + $0x148] sm:$0xff] %v285_v41  ;;  %v413_v41 = vld [vmem:[%s4533_s30 + $0x1048] sm:$0xff] }
  0x3a   : > { %288 = vst [vmem:[%s4538_s5 + $0x150] sm:$0xff] %v287_v42  ;;  %v415_v42 = vld [vmem:[%s4533_s30 + $0x1050] sm:$0xff] }
  0x3b   : > { %290 = vst [vmem:[%s4538_s5 + $0x158] sm:$0xff] %v289_v43  ;;  %v417_v43 = vld [vmem:[%s4533_s30 + $0x1058] sm:$0xff] }
  0x3c   : > { %292 = vst [vmem:[%s4538_s5 + $0x160] sm:$0xff] %v291_v44  ;;  %v419_v44 = vld [vmem:[%s4533_s30 + $0x10e0] sm:$0xff] }
  0x3d   : > { %294 = vst [vmem:[%s4538_s5 + $0x168] sm:$0xff] %v293_v45  ;;  %v421_v45 = vld [vmem:[%s4533_s30 + $0x10e8] sm:$0xff] }
  0x3e   : > { %296 = vst [vmem:[%s4538_s5 + $0x170] sm:$0xff] %v295_v46  ;;  %v423_v46 = vld [vmem:[%s4533_s30 + $0x10f0] sm:$0xff] }
  0x3f   : > { %298 = vst [vmem:[%s4538_s5 + $0x178] sm:$0xff] %v297_v47  ;;  %v425_v47 = vld [vmem:[%s4533_s30 + $0x10f8] sm:$0xff] }
  0x40   : > { %300 = vst [vmem:[%s4538_s5 + $0x180] sm:$0xff] %v299_v48  ;;  %v427_v48 = vld [vmem:[%s4533_s30 + $0x1180] sm:$0xff] }
  0x41   : > { %302 = vst [vmem:[%s4538_s5 + $0x188] sm:$0xff] %v301_v49  ;;  %v429_v49 = vld [vmem:[%s4533_s30 + $0x1188] sm:$0xff] }
  0x42   : > { %304 = vst [vmem:[%s4538_s5 + $0x190] sm:$0xff] %v303_v50  ;;  %v431_v50 = vld [vmem:[%s4533_s30 + $0x1190] sm:$0xff] }
  0x43   : > { %306 = vst [vmem:[%s4538_s5 + $0x198] sm:$0xff] %v305_v51  ;;  %v433_v51 = vld [vmem:[%s4533_s30 + $0x1198] sm:$0xff] }
  0x44   : > { %308 = vst [vmem:[%s4538_s5 + $0x1a0] sm:$0xff] %v307_v52  ;;  %v435_v52 = vld [vmem:[%s4533_s30 + $0x1220] sm:$0xff] }
  0x45   : > { %310 = vst [vmem:[%s4538_s5 + $0x1a8] sm:$0xff] %v309_v53  ;;  %v437_v53 = vld [vmem:[%s4533_s30 + $0x1228] sm:$0xff] }
  0x46   : > { %312 = vst [vmem:[%s4538_s5 + $0x1b0] sm:$0xff] %v311_v54  ;;  %v439_v54 = vld [vmem:[%s4533_s30 + $0x1230] sm:$0xff] }
  0x47   : > { %314 = vst [vmem:[%s4538_s5 + $0x1b8] sm:$0xff] %v313_v55  ;;  %v441_v55 = vld [vmem:[%s4533_s30 + $0x1238] sm:$0xff] }
  0x48   : > { %316 = vst [vmem:[%s4538_s5 + $0x1c0] sm:$0xff] %v315_v56  ;;  %v443_v56 = vld [vmem:[%s4533_s30 + $0x12c0] sm:$0xff] }
  0x49   : > { %318 = vst [vmem:[%s4538_s5 + $0x1c8] sm:$0xff] %v317_v57  ;;  %v445_v57 = vld [vmem:[%s4533_s30 + $0x12c8] sm:$0xff] }
  0x4a   : > { %320 = vst [vmem:[%s4538_s5 + $0x1d0] sm:$0xff] %v319_v58  ;;  %v447_v58 = vld [vmem:[%s4533_s30 + $0x12d0] sm:$0xff] }
  0x4b   : > { %322 = vst [vmem:[%s4538_s5 + $0x1d8] sm:$0xff] %v321_v59  ;;  %v449_v59 = vld [vmem:[%s4533_s30 + $0x12d8] sm:$0xff] }
  0x4c   : > { %324 = vst [vmem:[%s4538_s5 + $0x1e0] sm:$0xff] %v323_v60  ;;  %v451_v60 = vld [vmem:[%s4533_s30 + $0x1360] sm:$0xff] }
  0x4d   : > { %326 = vst [vmem:[%s4538_s5 + $0x1e8] sm:$0xff] %v325_v61  ;;  %v453_v61 = vld [vmem:[%s4533_s30 + $0x1368] sm:$0xff] }
  0x4e   : > { %328 = vst [vmem:[%s4538_s5 + $0x1f0] sm:$0xff] %v327_v62  ;;  %v455_v62 = vld [vmem:[%s4533_s30 + $0x1370] sm:$0xff] }
  0x4f   : > { %330 = vst [vmem:[%s4538_s5 + $0x1f8] sm:$0xff] %v329_v63  ;;  %v457_v63 = vld [vmem:[%s4533_s30 + $0x1378] sm:$0xff] }
  0x50   : > { %332 = vst [vmem:[%s4538_s5 + $0x200] sm:$0xff] %v331_v0  ;;  %v459_v0 = vld [vmem:[%s4533_s30 + $0x1400] sm:$0xff] }
  0x51   : > { %334 = vst [vmem:[%s4538_s5 + $0x208] sm:$0xff] %v333_v1  ;;  %v461_v1 = vld [vmem:[%s4533_s30 + $0x1408] sm:$0xff] }
  0x52   : > { %336 = vst [vmem:[%s4538_s5 + $0x210] sm:$0xff] %v335_v2  ;;  %v463_v2 = vld [vmem:[%s4533_s30 + $0x1410] sm:$0xff] }
  0x53   : > { %338 = vst [vmem:[%s4538_s5 + $0x218] sm:$0xff] %v337_v3  ;;  %v465_v3 = vld [vmem:[%s4533_s30 + $0x1418] sm:$0xff] }
  0x54   : > { %340 = vst [vmem:[%s4538_s5 + $0x220] sm:$0xff] %v339_v4  ;;  %v467_v4 = vld [vmem:[%s4533_s30 + $0x14a0] sm:$0xff] }
  0x55   : > { %342 = vst [vmem:[%s4538_s5 + $0x228] sm:$0xff] %v341_v5  ;;  %v469_v5 = vld [vmem:[%s4533_s30 + $0x14a8] sm:$0xff] }
  0x56   : > { %344 = vst [vmem:[%s4538_s5 + $0x230] sm:$0xff] %v343_v6  ;;  %v471_v6 = vld [vmem:[%s4533_s30 + $0x14b0] sm:$0xff] }
  0x57   : > { %346 = vst [vmem:[%s4538_s5 + $0x238] sm:$0xff] %v345_v7  ;;  %v473_v7 = vld [vmem:[%s4533_s30 + $0x14b8] sm:$0xff] }
  0x58   : > { %348 = vst [vmem:[%s4538_s5 + $0x240] sm:$0xff] %v347_v8  ;;  %v475_v8 = vld [vmem:[%s4533_s30 + $0x1540] sm:$0xff] }
  0x59   : > { %350 = vst [vmem:[%s4538_s5 + $0x248] sm:$0xff] %v349_v9  ;;  %v477_v9 = vld [vmem:[%s4533_s30 + $0x1548] sm:$0xff] }
  0x5a   : > { %352 = vst [vmem:[%s4538_s5 + $0x250] sm:$0xff] %v351_v10  ;;  %v479_v10 = vld [vmem:[%s4533_s30 + $0x1550] sm:$0xff] }
  0x5b   : > { %354 = vst [vmem:[%s4538_s5 + $0x258] sm:$0xff] %v353_v11  ;;  %v481_v11 = vld [vmem:[%s4533_s30 + $0x1558] sm:$0xff] }
  0x5c   : > { %356 = vst [vmem:[%s4538_s5 + $0x260] sm:$0xff] %v355_v12  ;;  %v483_v12 = vld [vmem:[%s4533_s30 + $0x15e0] sm:$0xff] }
  0x5d   : > { %358 = vst [vmem:[%s4538_s5 + $0x268] sm:$0xff] %v357_v13  ;;  %v485_v13 = vld [vmem:[%s4533_s30 + $0x15e8] sm:$0xff] }
  0x5e   : > { %360 = vst [vmem:[%s4538_s5 + $0x270] sm:$0xff] %v359_v14  ;;  %v487_v14 = vld [vmem:[%s4533_s30 + $0x15f0] sm:$0xff] }
  0x5f   : > { %362 = vst [vmem:[%s4538_s5 + $0x278] sm:$0xff] %v361_v15  ;;  %v489_v15 = vld [vmem:[%s4533_s30 + $0x15f8] sm:$0xff] }
  0x60   : > { %364 = vst [vmem:[%s4538_s5 + $0x280] sm:$0xff] %v363_v16  ;;  %v491_v16 = vld [vmem:[%s4533_s30 + $0x1680] sm:$0xff] }
  0x61   : > { %366 = vst [vmem:[%s4538_s5 + $0x288] sm:$0xff] %v365_v17  ;;  %v493_v17 = vld [vmem:[%s4533_s30 + $0x1688] sm:$0xff] }
  0x62   : > { %368 = vst [vmem:[%s4538_s5 + $0x290] sm:$0xff] %v367_v18  ;;  %v495_v18 = vld [vmem:[%s4533_s30 + $0x1690] sm:$0xff] }
  0x63   : > { %370 = vst [vmem:[%s4538_s5 + $0x298] sm:$0xff] %v369_v19  ;;  %v497_v19 = vld [vmem:[%s4533_s30 + $0x1698] sm:$0xff] }
  0x64   : > { %372 = vst [vmem:[%s4538_s5 + $0x2a0] sm:$0xff] %v371_v20  ;;  %v499_v20 = vld [vmem:[%s4533_s30 + $0x1720] sm:$0xff] }
  0x65   : > { %374 = vst [vmem:[%s4538_s5 + $0x2a8] sm:$0xff] %v373_v21  ;;  %v501_v21 = vld [vmem:[%s4533_s30 + $0x1728] sm:$0xff] }
  0x66   : > { %376 = vst [vmem:[%s4538_s5 + $0x2b0] sm:$0xff] %v375_v22  ;;  %v503_v22 = vld [vmem:[%s4533_s30 + $0x1730] sm:$0xff] }
  0x67   : > { %378 = vst [vmem:[%s4538_s5 + $0x2b8] sm:$0xff] %v377_v23  ;;  %v505_v23 = vld [vmem:[%s4533_s30 + $0x1738] sm:$0xff] }
  0x68   : > { %380 = vst [vmem:[%s4538_s5 + $0x2c0] sm:$0xff] %v379_v24  ;;  %v507_v24 = vld [vmem:[%s4533_s30 + $0x17c0] sm:$0xff] }
  0x69   : > { %382 = vst [vmem:[%s4538_s5 + $0x2c8] sm:$0xff] %v381_v25  ;;  %v509_v25 = vld [vmem:[%s4533_s30 + $0x17c8] sm:$0xff] }
  0x6a   : > { %384 = vst [vmem:[%s4538_s5 + $0x2d0] sm:$0xff] %v383_v26  ;;  %v511_v26 = vld [vmem:[%s4533_s30 + $0x17d0] sm:$0xff] }
  0x6b   : > { %386 = vst [vmem:[%s4538_s5 + $0x2d8] sm:$0xff] %v385_v27  ;;  %v513_v27 = vld [vmem:[%s4533_s30 + $0x17d8] sm:$0xff] }
  0x6c   : > { %388 = vst [vmem:[%s4538_s5 + $0x2e0] sm:$0xff] %v387_v28  ;;  %v515_v28 = vld [vmem:[%s4533_s30 + $0x1860] sm:$0xff] }
  0x6d   : > { %390 = vst [vmem:[%s4538_s5 + $0x2e8] sm:$0xff] %v389_v29  ;;  %v517_v29 = vld [vmem:[%s4533_s30 + $0x1868] sm:$0xff] }
  0x6e   : > { %392 = vst [vmem:[%s4538_s5 + $0x2f0] sm:$0xff] %v391_v30  ;;  %v519_v30 = vld [vmem:[%s4533_s30 + $0x1870] sm:$0xff] }
  0x6f   : > { %394 = vst [vmem:[%s4538_s5 + $0x2f8] sm:$0xff] %v393_v31  ;;  %v521_v31 = vld [vmem:[%s4533_s30 + $0x1878] sm:$0xff] }
  0x70   : > { %396 = vst [vmem:[%s4538_s5 + $0x300] sm:$0xff] %v395_v32  ;;  %v523_v32 = vld [vmem:[%s4533_s30 + $0x1900] sm:$0xff] }
  0x71   : > { %398 = vst [vmem:[%s4538_s5 + $0x308] sm:$0xff] %v397_v33  ;;  %v525_v33 = vld [vmem:[%s4533_s30 + $0x1908] sm:$0xff] }
  0x72   : > { %400 = vst [vmem:[%s4538_s5 + $0x310] sm:$0xff] %v399_v34  ;;  %v527_v34 = vld [vmem:[%s4533_s30 + $0x1910] sm:$0xff] }
  0x73   : > { %402 = vst [vmem:[%s4538_s5 + $0x318] sm:$0xff] %v401_v35  ;;  %v529_v35 = vld [vmem:[%s4533_s30 + $0x1918] sm:$0xff] }
  0x74   : > { %404 = vst [vmem:[%s4538_s5 + $0x320] sm:$0xff] %v403_v36  ;;  %v531_v36 = vld [vmem:[%s4533_s30 + $0x19a0] sm:$0xff] }
  0x75   : > { %406 = vst [vmem:[%s4538_s5 + $0x328] sm:$0xff] %v405_v37  ;;  %v533_v37 = vld [vmem:[%s4533_s30 + $0x19a8] sm:$0xff] }
  0x76   : > { %408 = vst [vmem:[%s4538_s5 + $0x330] sm:$0xff] %v407_v38  ;;  %v535_v38 = vld [vmem:[%s4533_s30 + $0x19b0] sm:$0xff] }
  0x77   : > { %410 = vst [vmem:[%s4538_s5 + $0x338] sm:$0xff] %v409_v39  ;;  %v537_v39 = vld [vmem:[%s4533_s30 + $0x19b8] sm:$0xff] }
  0x78   : > { %412 = vst [vmem:[%s4538_s5 + $0x340] sm:$0xff] %v411_v40  ;;  %v539_v40 = vld [vmem:[%s4533_s30 + $0x1a40] sm:$0xff] }
  0x79   : > { %414 = vst [vmem:[%s4538_s5 + $0x348] sm:$0xff] %v413_v41  ;;  %v541_v41 = vld [vmem:[%s4533_s30 + $0x1a48] sm:$0xff] }
  0x7a   : > { %416 = vst [vmem:[%s4538_s5 + $0x350] sm:$0xff] %v415_v42  ;;  %v543_v42 = vld [vmem:[%s4533_s30 + $0x1a50] sm:$0xff] }
  0x7b   : > { %418 = vst [vmem:[%s4538_s5 + $0x358] sm:$0xff] %v417_v43  ;;  %v545_v43 = vld [vmem:[%s4533_s30 + $0x1a58] sm:$0xff] }
  0x7c   : > { %420 = vst [vmem:[%s4538_s5 + $0x360] sm:$0xff] %v419_v44  ;;  %v547_v44 = vld [vmem:[%s4533_s30 + $0x1ae0] sm:$0xff] }
  0x7d   : > { %422 = vst [vmem:[%s4538_s5 + $0x368] sm:$0xff] %v421_v45  ;;  %v549_v45 = vld [vmem:[%s4533_s30 + $0x1ae8] sm:$0xff] }
  0x7e   : > { %424 = vst [vmem:[%s4538_s5 + $0x370] sm:$0xff] %v423_v46  ;;  %v551_v46 = vld [vmem:[%s4533_s30 + $0x1af0] sm:$0xff] }
  0x7f   : > { %426 = vst [vmem:[%s4538_s5 + $0x378] sm:$0xff] %v425_v47  ;;  %v553_v47 = vld [vmem:[%s4533_s30 + $0x1af8] sm:$0xff] }
  0x80   : > { %428 = vst [vmem:[%s4538_s5 + $0x380] sm:$0xff] %v427_v48  ;;  %v555_v48 = vld [vmem:[%s4533_s30 + $0x1b80] sm:$0xff] }
  0x81   : > { %430 = vst [vmem:[%s4538_s5 + $0x388] sm:$0xff] %v429_v49  ;;  %v557_v49 = vld [vmem:[%s4533_s30 + $0x1b88] sm:$0xff] }
  0x82   : > { %432 = vst [vmem:[%s4538_s5 + $0x390] sm:$0xff] %v431_v50  ;;  %v559_v50 = vld [vmem:[%s4533_s30 + $0x1b90] sm:$0xff] }
  0x83   : > { %434 = vst [vmem:[%s4538_s5 + $0x398] sm:$0xff] %v433_v51  ;;  %v561_v51 = vld [vmem:[%s4533_s30 + $0x1b98] sm:$0xff] }
  0x84   : > { %436 = vst [vmem:[%s4538_s5 + $0x3a0] sm:$0xff] %v435_v52  ;;  %v563_v52 = vld [vmem:[%s4533_s30 + $0x1c20] sm:$0xff] }
  0x85   : > { %438 = vst [vmem:[%s4538_s5 + $0x3a8] sm:$0xff] %v437_v53  ;;  %v565_v53 = vld [vmem:[%s4533_s30 + $0x1c28] sm:$0xff] }
  0x86   : > { %440 = vst [vmem:[%s4538_s5 + $0x3b0] sm:$0xff] %v439_v54  ;;  %v567_v54 = vld [vmem:[%s4533_s30 + $0x1c30] sm:$0xff] }
  0x87   : > { %442 = vst [vmem:[%s4538_s5 + $0x3b8] sm:$0xff] %v441_v55  ;;  %v569_v55 = vld [vmem:[%s4533_s30 + $0x1c38] sm:$0xff] }
  0x88   : > { %444 = vst [vmem:[%s4538_s5 + $0x3c0] sm:$0xff] %v443_v56  ;;  %v571_v56 = vld [vmem:[%s4533_s30 + $0x1cc0] sm:$0xff] }
  0x89   : > { %446 = vst [vmem:[%s4538_s5 + $0x3c8] sm:$0xff] %v445_v57  ;;  %v573_v57 = vld [vmem:[%s4533_s30 + $0x1cc8] sm:$0xff] }
  0x8a   : > { %448 = vst [vmem:[%s4538_s5 + $0x3d0] sm:$0xff] %v447_v58  ;;  %v575_v58 = vld [vmem:[%s4533_s30 + $0x1cd0] sm:$0xff] }
  0x8b   : > { %450 = vst [vmem:[%s4538_s5 + $0x3d8] sm:$0xff] %v449_v59  ;;  %v577_v59 = vld [vmem:[%s4533_s30 + $0x1cd8] sm:$0xff] }
  0x8c   : > { %452 = vst [vmem:[%s4538_s5 + $0x3e0] sm:$0xff] %v451_v60  ;;  %v579_v60 = vld [vmem:[%s4533_s30 + $0x1d60] sm:$0xff] }
  0x8d   : > { %454 = vst [vmem:[%s4538_s5 + $0x3e8] sm:$0xff] %v453_v61  ;;  %v581_v61 = vld [vmem:[%s4533_s30 + $0x1d68] sm:$0xff] }
  0x8e   : > { %456 = vst [vmem:[%s4538_s5 + $0x3f0] sm:$0xff] %v455_v62  ;;  %v583_v62 = vld [vmem:[%s4533_s30 + $0x1d70] sm:$0xff] }
  0x8f   : > { %458 = vst [vmem:[%s4538_s5 + $0x3f8] sm:$0xff] %v457_v63  ;;  %v585_v63 = vld [vmem:[%s4533_s30 + $0x1d78] sm:$0xff] }
  0x90   : > { %460 = vst [vmem:[%s4538_s5 + $0x400] sm:$0xff] %v459_v0  ;;  %v587_v0 = vld [vmem:[%s4533_s30 + $0x1e00] sm:$0xff] }
  0x91   : > { %462 = vst [vmem:[%s4538_s5 + $0x408] sm:$0xff] %v461_v1  ;;  %v589_v1 = vld [vmem:[%s4533_s30 + $0x1e08] sm:$0xff] }
  0x92   : > { %464 = vst [vmem:[%s4538_s5 + $0x410] sm:$0xff] %v463_v2  ;;  %v591_v2 = vld [vmem:[%s4533_s30 + $0x1e10] sm:$0xff] }
  0x93   : > { %466 = vst [vmem:[%s4538_s5 + $0x418] sm:$0xff] %v465_v3  ;;  %v593_v3 = vld [vmem:[%s4533_s30 + $0x1e18] sm:$0xff] }
  0x94   : > { %468 = vst [vmem:[%s4538_s5 + $0x420] sm:$0xff] %v467_v4  ;;  %v595_v4 = vld [vmem:[%s4533_s30 + $0x1ea0] sm:$0xff] }
  0x95   : > { %470 = vst [vmem:[%s4538_s5 + $0x428] sm:$0xff] %v469_v5  ;;  %v597_v5 = vld [vmem:[%s4533_s30 + $0x1ea8] sm:$0xff] }
  0x96   : > { %472 = vst [vmem:[%s4538_s5 + $0x430] sm:$0xff] %v471_v6  ;;  %v599_v6 = vld [vmem:[%s4533_s30 + $0x1eb0] sm:$0xff] }
  0x97   : > { %474 = vst [vmem:[%s4538_s5 + $0x438] sm:$0xff] %v473_v7  ;;  %v601_v7 = vld [vmem:[%s4533_s30 + $0x1eb8] sm:$0xff] }
  0x98   : > { %476 = vst [vmem:[%s4538_s5 + $0x440] sm:$0xff] %v475_v8  ;;  %v603_v8 = vld [vmem:[%s4533_s30 + $0x1f40] sm:$0xff] }
  0x99   : > { %478 = vst [vmem:[%s4538_s5 + $0x448] sm:$0xff] %v477_v9  ;;  %v605_v9 = vld [vmem:[%s4533_s30 + $0x1f48] sm:$0xff] }
  0x9a   : > { %480 = vst [vmem:[%s4538_s5 + $0x450] sm:$0xff] %v479_v10  ;;  %v607_v10 = vld [vmem:[%s4533_s30 + $0x1f50] sm:$0xff] }
  0x9b   : > { %482 = vst [vmem:[%s4538_s5 + $0x458] sm:$0xff] %v481_v11  ;;  %v609_v11 = vld [vmem:[%s4533_s30 + $0x1f58] sm:$0xff] }
  0x9c   : > { %484 = vst [vmem:[%s4538_s5 + $0x460] sm:$0xff] %v483_v12  ;;  %v611_v12 = vld [vmem:[%s4533_s30 + $0x1fe0] sm:$0xff] }
  0x9d   : > { %486 = vst [vmem:[%s4538_s5 + $0x468] sm:$0xff] %v485_v13  ;;  %v613_v13 = vld [vmem:[%s4533_s30 + $0x1fe8] sm:$0xff] }
  0x9e   : > { %488 = vst [vmem:[%s4538_s5 + $0x470] sm:$0xff] %v487_v14  ;;  %v615_v14 = vld [vmem:[%s4533_s30 + $0x1ff0] sm:$0xff] }
  0x9f   : > { %490 = vst [vmem:[%s4538_s5 + $0x478] sm:$0xff] %v489_v15  ;;  %v617_v15 = vld [vmem:[%s4533_s30 + $0x1ff8] sm:$0xff] }
  0xa0   : > { %492 = vst [vmem:[%s4538_s5 + $0x480] sm:$0xff] %v491_v16  ;;  %v619_v16 = vld [vmem:[%s4533_s30 + $0x2080] sm:$0xff] }
  0xa1   : > { %494 = vst [vmem:[%s4538_s5 + $0x488] sm:$0xff] %v493_v17  ;;  %v621_v17 = vld [vmem:[%s4533_s30 + $0x2088] sm:$0xff] }
  0xa2   : > { %496 = vst [vmem:[%s4538_s5 + $0x490] sm:$0xff] %v495_v18  ;;  %v623_v18 = vld [vmem:[%s4533_s30 + $0x2090] sm:$0xff] }
  0xa3   : > { %498 = vst [vmem:[%s4538_s5 + $0x498] sm:$0xff] %v497_v19  ;;  %v625_v19 = vld [vmem:[%s4533_s30 + $0x2098] sm:$0xff] }
  0xa4   : > { %500 = vst [vmem:[%s4538_s5 + $0x4a0] sm:$0xff] %v499_v20  ;;  %v627_v20 = vld [vmem:[%s4533_s30 + $0x2120] sm:$0xff] }
  0xa5   : > { %502 = vst [vmem:[%s4538_s5 + $0x4a8] sm:$0xff] %v501_v21  ;;  %v629_v21 = vld [vmem:[%s4533_s30 + $0x2128] sm:$0xff] }
  0xa6   : > { %504 = vst [vmem:[%s4538_s5 + $0x4b0] sm:$0xff] %v503_v22  ;;  %v631_v22 = vld [vmem:[%s4533_s30 + $0x2130] sm:$0xff] }
  0xa7   : > { %506 = vst [vmem:[%s4538_s5 + $0x4b8] sm:$0xff] %v505_v23  ;;  %v633_v23 = vld [vmem:[%s4533_s30 + $0x2138] sm:$0xff] }
  0xa8   : > { %508 = vst [vmem:[%s4538_s5 + $0x4c0] sm:$0xff] %v507_v24  ;;  %v635_v24 = vld [vmem:[%s4533_s30 + $0x21c0] sm:$0xff] }
  0xa9   : > { %510 = vst [vmem:[%s4538_s5 + $0x4c8] sm:$0xff] %v509_v25  ;;  %v637_v25 = vld [vmem:[%s4533_s30 + $0x21c8] sm:$0xff] }
  0xaa   : > { %512 = vst [vmem:[%s4538_s5 + $0x4d0] sm:$0xff] %v511_v26  ;;  %v639_v26 = vld [vmem:[%s4533_s30 + $0x21d0] sm:$0xff] }
  0xab   : > { %514 = vst [vmem:[%s4538_s5 + $0x4d8] sm:$0xff] %v513_v27  ;;  %v641_v27 = vld [vmem:[%s4533_s30 + $0x21d8] sm:$0xff] }
  0xac   : > { %516 = vst [vmem:[%s4538_s5 + $0x4e0] sm:$0xff] %v515_v28  ;;  %v643_v28 = vld [vmem:[%s4533_s30 + $0x2260] sm:$0xff] }
  0xad   : > { %518 = vst [vmem:[%s4538_s5 + $0x4e8] sm:$0xff] %v517_v29  ;;  %v645_v29 = vld [vmem:[%s4533_s30 + $0x2268] sm:$0xff] }
  0xae   : > { %520 = vst [vmem:[%s4538_s5 + $0x4f0] sm:$0xff] %v519_v30  ;;  %v647_v30 = vld [vmem:[%s4533_s30 + $0x2270] sm:$0xff] }
  0xaf   : > { %522 = vst [vmem:[%s4538_s5 + $0x4f8] sm:$0xff] %v521_v31  ;;  %v649_v31 = vld [vmem:[%s4533_s30 + $0x2278] sm:$0xff] }
  0xb0   : > { %524 = vst [vmem:[%s4538_s5 + $0x500] sm:$0xff] %v523_v32  ;;  %v651_v32 = vld [vmem:[%s4533_s30 + $0x2300] sm:$0xff] }
  0xb1   : > { %526 = vst [vmem:[%s4538_s5 + $0x508] sm:$0xff] %v525_v33  ;;  %v653_v33 = vld [vmem:[%s4533_s30 + $0x2308] sm:$0xff] }
  0xb2   : > { %528 = vst [vmem:[%s4538_s5 + $0x510] sm:$0xff] %v527_v34  ;;  %v655_v34 = vld [vmem:[%s4533_s30 + $0x2310] sm:$0xff] }
  0xb3   : > { %530 = vst [vmem:[%s4538_s5 + $0x518] sm:$0xff] %v529_v35  ;;  %v657_v35 = vld [vmem:[%s4533_s30 + $0x2318] sm:$0xff] }
  0xb4   : > { %532 = vst [vmem:[%s4538_s5 + $0x520] sm:$0xff] %v531_v36  ;;  %v659_v36 = vld [vmem:[%s4533_s30 + $0x23a0] sm:$0xff] }
  0xb5   : > { %534 = vst [vmem:[%s4538_s5 + $0x528] sm:$0xff] %v533_v37  ;;  %v661_v37 = vld [vmem:[%s4533_s30 + $0x23a8] sm:$0xff] }
  0xb6   : > { %536 = vst [vmem:[%s4538_s5 + $0x530] sm:$0xff] %v535_v38  ;;  %v663_v38 = vld [vmem:[%s4533_s30 + $0x23b0] sm:$0xff] }
  0xb7   : > { %538 = vst [vmem:[%s4538_s5 + $0x538] sm:$0xff] %v537_v39  ;;  %v665_v39 = vld [vmem:[%s4533_s30 + $0x23b8] sm:$0xff] }
  0xb8   : > { %540 = vst [vmem:[%s4538_s5 + $0x540] sm:$0xff] %v539_v40  ;;  %v667_v40 = vld [vmem:[%s4533_s30 + $0x2440] sm:$0xff] }
  0xb9   : > { %542 = vst [vmem:[%s4538_s5 + $0x548] sm:$0xff] %v541_v41  ;;  %v669_v41 = vld [vmem:[%s4533_s30 + $0x2448] sm:$0xff] }
  0xba   : > { %544 = vst [vmem:[%s4538_s5 + $0x550] sm:$0xff] %v543_v42  ;;  %v671_v42 = vld [vmem:[%s4533_s30 + $0x2450] sm:$0xff] }
  0xbb   : > { %546 = vst [vmem:[%s4538_s5 + $0x558] sm:$0xff] %v545_v43  ;;  %v673_v43 = vld [vmem:[%s4533_s30 + $0x2458] sm:$0xff] }
  0xbc   : > { %548 = vst [vmem:[%s4538_s5 + $0x560] sm:$0xff] %v547_v44  ;;  %v675_v44 = vld [vmem:[%s4533_s30 + $0x24e0] sm:$0xff] }
  0xbd   : > { %550 = vst [vmem:[%s4538_s5 + $0x568] sm:$0xff] %v549_v45  ;;  %v677_v45 = vld [vmem:[%s4533_s30 + $0x24e8] sm:$0xff] }
  0xbe   : > { %552 = vst [vmem:[%s4538_s5 + $0x570] sm:$0xff] %v551_v46  ;;  %v679_v46 = vld [vmem:[%s4533_s30 + $0x24f0] sm:$0xff] }
  0xbf   : > { %554 = vst [vmem:[%s4538_s5 + $0x578] sm:$0xff] %v553_v47  ;;  %v681_v47 = vld [vmem:[%s4533_s30 + $0x24f8] sm:$0xff] }
  0xc0   : > { %556 = vst [vmem:[%s4538_s5 + $0x580] sm:$0xff] %v555_v48  ;;  %v683_v48 = vld [vmem:[%s4533_s30 + $0x2580] sm:$0xff] }
  0xc1   : > { %558 = vst [vmem:[%s4538_s5 + $0x588] sm:$0xff] %v557_v49  ;;  %v685_v49 = vld [vmem:[%s4533_s30 + $0x2588] sm:$0xff] }
  0xc2   : > { %560 = vst [vmem:[%s4538_s5 + $0x590] sm:$0xff] %v559_v50  ;;  %v687_v50 = vld [vmem:[%s4533_s30 + $0x2590] sm:$0xff] }
  0xc3   : > { %562 = vst [vmem:[%s4538_s5 + $0x598] sm:$0xff] %v561_v51  ;;  %v689_v51 = vld [vmem:[%s4533_s30 + $0x2598] sm:$0xff] }
  0xc4   : > { %564 = vst [vmem:[%s4538_s5 + $0x5a0] sm:$0xff] %v563_v52  ;;  %v691_v52 = vld [vmem:[%s4533_s30 + $0x2620] sm:$0xff] }
  0xc5   : > { %566 = vst [vmem:[%s4538_s5 + $0x5a8] sm:$0xff] %v565_v53  ;;  %v693_v53 = vld [vmem:[%s4533_s30 + $0x2628] sm:$0xff] }
  0xc6   : > { %568 = vst [vmem:[%s4538_s5 + $0x5b0] sm:$0xff] %v567_v54  ;;  %v695_v54 = vld [vmem:[%s4533_s30 + $0x2630] sm:$0xff] }
  0xc7   : > { %570 = vst [vmem:[%s4538_s5 + $0x5b8] sm:$0xff] %v569_v55  ;;  %v697_v55 = vld [vmem:[%s4533_s30 + $0x2638] sm:$0xff] }
  0xc8   : > { %572 = vst [vmem:[%s4538_s5 + $0x5c0] sm:$0xff] %v571_v56  ;;  %v699_v56 = vld [vmem:[%s4533_s30 + $0x26c0] sm:$0xff] }
  0xc9   : > { %574 = vst [vmem:[%s4538_s5 + $0x5c8] sm:$0xff] %v573_v57  ;;  %v701_v57 = vld [vmem:[%s4533_s30 + $0x26c8] sm:$0xff] }
  0xca   : > { %576 = vst [vmem:[%s4538_s5 + $0x5d0] sm:$0xff] %v575_v58  ;;  %v703_v58 = vld [vmem:[%s4533_s30 + $0x26d0] sm:$0xff] }
  0xcb   : > { %578 = vst [vmem:[%s4538_s5 + $0x5d8] sm:$0xff] %v577_v59  ;;  %v705_v59 = vld [vmem:[%s4533_s30 + $0x26d8] sm:$0xff] }
  0xcc   : > { %580 = vst [vmem:[%s4538_s5 + $0x5e0] sm:$0xff] %v579_v60  ;;  %v707_v60 = vld [vmem:[%s4533_s30 + $0x2760] sm:$0xff] }
  0xcd   : > { %582 = vst [vmem:[%s4538_s5 + $0x5e8] sm:$0xff] %v581_v61  ;;  %v709_v61 = vld [vmem:[%s4533_s30 + $0x2768] sm:$0xff] }
  0xce   : > { %584 = vst [vmem:[%s4538_s5 + $0x5f0] sm:$0xff] %v583_v62  ;;  %v711_v62 = vld [vmem:[%s4533_s30 + $0x2770] sm:$0xff] }
  0xcf   : > { %586 = vst [vmem:[%s4538_s5 + $0x5f8] sm:$0xff] %v585_v63  ;;  %v713_v63 = vld [vmem:[%s4533_s30 + $0x2778] sm:$0xff] }
  0xd0   : > { %588 = vst [vmem:[%s4538_s5 + $0x600] sm:$0xff] %v587_v0  ;;  %v715_v0 = vld [vmem:[%s4533_s30 + $0x2800] sm:$0xff] }
  0xd1   : > { %590 = vst [vmem:[%s4538_s5 + $0x608] sm:$0xff] %v589_v1  ;;  %v717_v1 = vld [vmem:[%s4533_s30 + $0x2808] sm:$0xff] }
  0xd2   : > { %592 = vst [vmem:[%s4538_s5 + $0x610] sm:$0xff] %v591_v2  ;;  %v719_v2 = vld [vmem:[%s4533_s30 + $0x2810] sm:$0xff] }
  0xd3   : > { %594 = vst [vmem:[%s4538_s5 + $0x618] sm:$0xff] %v593_v3  ;;  %v721_v3 = vld [vmem:[%s4533_s30 + $0x2818] sm:$0xff] }
  0xd4   : > { %596 = vst [vmem:[%s4538_s5 + $0x620] sm:$0xff] %v595_v4  ;;  %v723_v4 = vld [vmem:[%s4533_s30 + $0x28a0] sm:$0xff] }
  0xd5   : > { %598 = vst [vmem:[%s4538_s5 + $0x628] sm:$0xff] %v597_v5  ;;  %v725_v5 = vld [vmem:[%s4533_s30 + $0x28a8] sm:$0xff] }
  0xd6   : > { %600 = vst [vmem:[%s4538_s5 + $0x630] sm:$0xff] %v599_v6  ;;  %v727_v6 = vld [vmem:[%s4533_s30 + $0x28b0] sm:$0xff] }
  0xd7   : > { %602 = vst [vmem:[%s4538_s5 + $0x638] sm:$0xff] %v601_v7  ;;  %v729_v7 = vld [vmem:[%s4533_s30 + $0x28b8] sm:$0xff] }
  0xd8   : > { %604 = vst [vmem:[%s4538_s5 + $0x640] sm:$0xff] %v603_v8  ;;  %v731_v8 = vld [vmem:[%s4533_s30 + $0x2940] sm:$0xff] }
  0xd9   : > { %606 = vst [vmem:[%s4538_s5 + $0x648] sm:$0xff] %v605_v9  ;;  %v733_v9 = vld [vmem:[%s4533_s30 + $0x2948] sm:$0xff] }
  0xda   : > { %608 = vst [vmem:[%s4538_s5 + $0x650] sm:$0xff] %v607_v10  ;;  %v735_v10 = vld [vmem:[%s4533_s30 + $0x2950] sm:$0xff] }
  0xdb   : > { %610 = vst [vmem:[%s4538_s5 + $0x658] sm:$0xff] %v609_v11  ;;  %v737_v11 = vld [vmem:[%s4533_s30 + $0x2958] sm:$0xff] }
  0xdc   : > { %612 = vst [vmem:[%s4538_s5 + $0x660] sm:$0xff] %v611_v12  ;;  %v739_v12 = vld [vmem:[%s4533_s30 + $0x29e0] sm:$0xff] }
  0xdd   : > { %614 = vst [vmem:[%s4538_s5 + $0x668] sm:$0xff] %v613_v13  ;;  %v741_v13 = vld [vmem:[%s4533_s30 + $0x29e8] sm:$0xff] }
  0xde   : > { %616 = vst [vmem:[%s4538_s5 + $0x670] sm:$0xff] %v615_v14  ;;  %v743_v14 = vld [vmem:[%s4533_s30 + $0x29f0] sm:$0xff] }
  0xdf   : > { %618 = vst [vmem:[%s4538_s5 + $0x678] sm:$0xff] %v617_v15  ;;  %v745_v15 = vld [vmem:[%s4533_s30 + $0x29f8] sm:$0xff] }
  0xe0   : > { %620 = vst [vmem:[%s4538_s5 + $0x680] sm:$0xff] %v619_v16  ;;  %v747_v16 = vld [vmem:[%s4533_s30 + $0x2a80] sm:$0xff] }
  0xe1   : > { %622 = vst [vmem:[%s4538_s5 + $0x688] sm:$0xff] %v621_v17  ;;  %v749_v17 = vld [vmem:[%s4533_s30 + $0x2a88] sm:$0xff] }
  0xe2   : > { %624 = vst [vmem:[%s4538_s5 + $0x690] sm:$0xff] %v623_v18  ;;  %v751_v18 = vld [vmem:[%s4533_s30 + $0x2a90] sm:$0xff] }
  0xe3   : > { %626 = vst [vmem:[%s4538_s5 + $0x698] sm:$0xff] %v625_v19  ;;  %v753_v19 = vld [vmem:[%s4533_s30 + $0x2a98] sm:$0xff] }
  0xe4   : > { %628 = vst [vmem:[%s4538_s5 + $0x6a0] sm:$0xff] %v627_v20  ;;  %v755_v20 = vld [vmem:[%s4533_s30 + $0x2b20] sm:$0xff] }
  0xe5   : > { %630 = vst [vmem:[%s4538_s5 + $0x6a8] sm:$0xff] %v629_v21  ;;  %v757_v21 = vld [vmem:[%s4533_s30 + $0x2b28] sm:$0xff] }
  0xe6   : > { %632 = vst [vmem:[%s4538_s5 + $0x6b0] sm:$0xff] %v631_v22  ;;  %v759_v22 = vld [vmem:[%s4533_s30 + $0x2b30] sm:$0xff] }
  0xe7   : > { %634 = vst [vmem:[%s4538_s5 + $0x6b8] sm:$0xff] %v633_v23  ;;  %v761_v23 = vld [vmem:[%s4533_s30 + $0x2b38] sm:$0xff] }
  0xe8   : > { %636 = vst [vmem:[%s4538_s5 + $0x6c0] sm:$0xff] %v635_v24  ;;  %v763_v24 = vld [vmem:[%s4533_s30 + $0x2bc0] sm:$0xff] }
  0xe9   : > { %638 = vst [vmem:[%s4538_s5 + $0x6c8] sm:$0xff] %v637_v25  ;;  %v765_v25 = vld [vmem:[%s4533_s30 + $0x2bc8] sm:$0xff] }
  0xea   : > { %640 = vst [vmem:[%s4538_s5 + $0x6d0] sm:$0xff] %v639_v26  ;;  %v767_v26 = vld [vmem:[%s4533_s30 + $0x2bd0] sm:$0xff] }
  0xeb   : > { %642 = vst [vmem:[%s4538_s5 + $0x6d8] sm:$0xff] %v641_v27  ;;  %v769_v27 = vld [vmem:[%s4533_s30 + $0x2bd8] sm:$0xff] }
  0xec   : > { %644 = vst [vmem:[%s4538_s5 + $0x6e0] sm:$0xff] %v643_v28  ;;  %v771_v28 = vld [vmem:[%s4533_s30 + $0x2c60] sm:$0xff] }
  0xed   : > { %646 = vst [vmem:[%s4538_s5 + $0x6e8] sm:$0xff] %v645_v29  ;;  %v773_v29 = vld [vmem:[%s4533_s30 + $0x2c68] sm:$0xff] }
  0xee   : > { %648 = vst [vmem:[%s4538_s5 + $0x6f0] sm:$0xff] %v647_v30  ;;  %v775_v30 = vld [vmem:[%s4533_s30 + $0x2c70] sm:$0xff] }
  0xef   : > { %650 = vst [vmem:[%s4538_s5 + $0x6f8] sm:$0xff] %v649_v31  ;;  %v777_v31 = vld [vmem:[%s4533_s30 + $0x2c78] sm:$0xff] }
  0xf0   : > { %652 = vst [vmem:[%s4538_s5 + $0x700] sm:$0xff] %v651_v32  ;;  %v779_v32 = vld [vmem:[%s4533_s30 + $0x2d00] sm:$0xff] }
  0xf1   : > { %654 = vst [vmem:[%s4538_s5 + $0x708] sm:$0xff] %v653_v33  ;;  %v781_v33 = vld [vmem:[%s4533_s30 + $0x2d08] sm:$0xff] }
  0xf2   : > { %656 = vst [vmem:[%s4538_s5 + $0x710] sm:$0xff] %v655_v34  ;;  %v783_v34 = vld [vmem:[%s4533_s30 + $0x2d10] sm:$0xff] }
  0xf3   : > { %658 = vst [vmem:[%s4538_s5 + $0x718] sm:$0xff] %v657_v35  ;;  %v785_v35 = vld [vmem:[%s4533_s30 + $0x2d18] sm:$0xff] }
  0xf4   : > { %660 = vst [vmem:[%s4538_s5 + $0x720] sm:$0xff] %v659_v36  ;;  %v787_v36 = vld [vmem:[%s4533_s30 + $0x2da0] sm:$0xff] }
  0xf5   : > { %662 = vst [vmem:[%s4538_s5 + $0x728] sm:$0xff] %v661_v37  ;;  %v789_v37 = vld [vmem:[%s4533_s30 + $0x2da8] sm:$0xff] }
  0xf6   : > { %664 = vst [vmem:[%s4538_s5 + $0x730] sm:$0xff] %v663_v38  ;;  %v791_v38 = vld [vmem:[%s4533_s30 + $0x2db0] sm:$0xff] }
  0xf7   : > { %666 = vst [vmem:[%s4538_s5 + $0x738] sm:$0xff] %v665_v39  ;;  %v793_v39 = vld [vmem:[%s4533_s30 + $0x2db8] sm:$0xff] }
  0xf8   : > { %668 = vst [vmem:[%s4538_s5 + $0x740] sm:$0xff] %v667_v40  ;;  %v795_v40 = vld [vmem:[%s4533_s30 + $0x2e40] sm:$0xff] }
  0xf9   : > { %670 = vst [vmem:[%s4538_s5 + $0x748] sm:$0xff] %v669_v41  ;;  %v797_v41 = vld [vmem:[%s4533_s30 + $0x2e48] sm:$0xff] }
  0xfa   : > { %672 = vst [vmem:[%s4538_s5 + $0x750] sm:$0xff] %v671_v42  ;;  %v799_v42 = vld [vmem:[%s4533_s30 + $0x2e50] sm:$0xff] }
  0xfb   : > { %674 = vst [vmem:[%s4538_s5 + $0x758] sm:$0xff] %v673_v43  ;;  %v801_v43 = vld [vmem:[%s4533_s30 + $0x2e58] sm:$0xff] }
  0xfc   : > { %676 = vst [vmem:[%s4538_s5 + $0x760] sm:$0xff] %v675_v44  ;;  %v803_v44 = vld [vmem:[%s4533_s30 + $0x2ee0] sm:$0xff] }
  0xfd   : > { %678 = vst [vmem:[%s4538_s5 + $0x768] sm:$0xff] %v677_v45  ;;  %v805_v45 = vld [vmem:[%s4533_s30 + $0x2ee8] sm:$0xff] }
  0xfe   : > { %680 = vst [vmem:[%s4538_s5 + $0x770] sm:$0xff] %v679_v46  ;;  %v807_v46 = vld [vmem:[%s4533_s30 + $0x2ef0] sm:$0xff] }
  0xff   : > { %682 = vst [vmem:[%s4538_s5 + $0x778] sm:$0xff] %v681_v47  ;;  %v809_v47 = vld [vmem:[%s4533_s30 + $0x2ef8] sm:$0xff] }
 0x100   : > { %684 = vst [vmem:[%s4538_s5 + $0x780] sm:$0xff] %v683_v48  ;;  %v811_v48 = vld [vmem:[%s4533_s30 + $0x2f80] sm:$0xff] }
 0x101   : > { %686 = vst [vmem:[%s4538_s5 + $0x788] sm:$0xff] %v685_v49  ;;  %v813_v49 = vld [vmem:[%s4533_s30 + $0x2f88] sm:$0xff] }
 0x102   : > { %688 = vst [vmem:[%s4538_s5 + $0x790] sm:$0xff] %v687_v50  ;;  %v815_v50 = vld [vmem:[%s4533_s30 + $0x2f90] sm:$0xff] }
 0x103   : > { %690 = vst [vmem:[%s4538_s5 + $0x798] sm:$0xff] %v689_v51  ;;  %v817_v51 = vld [vmem:[%s4533_s30 + $0x2f98] sm:$0xff] }
 0x104   : > { %692 = vst [vmem:[%s4538_s5 + $0x7a0] sm:$0xff] %v691_v52  ;;  %v819_v52 = vld [vmem:[%s4533_s30 + $0x3020] sm:$0xff] }
 0x105   : > { %694 = vst [vmem:[%s4538_s5 + $0x7a8] sm:$0xff] %v693_v53  ;;  %v821_v53 = vld [vmem:[%s4533_s30 + $0x3028] sm:$0xff] }
 0x106   : > { %696 = vst [vmem:[%s4538_s5 + $0x7b0] sm:$0xff] %v695_v54  ;;  %v823_v54 = vld [vmem:[%s4533_s30 + $0x3030] sm:$0xff] }
 0x107   : > { %698 = vst [vmem:[%s4538_s5 + $0x7b8] sm:$0xff] %v697_v55  ;;  %v825_v55 = vld [vmem:[%s4533_s30 + $0x3038] sm:$0xff] }
 0x108   : > { %700 = vst [vmem:[%s4538_s5 + $0x7c0] sm:$0xff] %v699_v56  ;;  %v827_v56 = vld [vmem:[%s4533_s30 + $0x30c0] sm:$0xff] }
 0x109   : > { %702 = vst [vmem:[%s4538_s5 + $0x7c8] sm:$0xff] %v701_v57  ;;  %v829_v57 = vld [vmem:[%s4533_s30 + $0x30c8] sm:$0xff] }
 0x10a   : > { %704 = vst [vmem:[%s4538_s5 + $0x7d0] sm:$0xff] %v703_v58  ;;  %v831_v58 = vld [vmem:[%s4533_s30 + $0x30d0] sm:$0xff] }
 0x10b   : > { %706 = vst [vmem:[%s4538_s5 + $0x7d8] sm:$0xff] %v705_v59  ;;  %v833_v59 = vld [vmem:[%s4533_s30 + $0x30d8] sm:$0xff] }
 0x10c   : > { %708 = vst [vmem:[%s4538_s5 + $0x7e0] sm:$0xff] %v707_v60  ;;  %v835_v60 = vld [vmem:[%s4533_s30 + $0x3160] sm:$0xff] }
 0x10d   : > { %710 = vst [vmem:[%s4538_s5 + $0x7e8] sm:$0xff] %v709_v61  ;;  %v837_v61 = vld [vmem:[%s4533_s30 + $0x3168] sm:$0xff] }
 0x10e   : > { %712 = vst [vmem:[%s4538_s5 + $0x7f0] sm:$0xff] %v711_v62  ;;  %v839_v62 = vld [vmem:[%s4533_s30 + $0x3170] sm:$0xff] }
 0x10f   : > { %714 = vst [vmem:[%s4538_s5 + $0x7f8] sm:$0xff] %v713_v63  ;;  %v841_v63 = vld [vmem:[%s4533_s30 + $0x3178] sm:$0xff] }
 0x110   : > { %716 = vst [vmem:[%s4538_s5 + $0x800] sm:$0xff] %v715_v0 }
 0x111   : > { %718 = vst [vmem:[%s4538_s5 + $0x808] sm:$0xff] %v717_v1 }
 0x112   : > { %720 = vst [vmem:[%s4538_s5 + $0x810] sm:$0xff] %v719_v2 }
 0x113   : > { %722 = vst [vmem:[%s4538_s5 + $0x818] sm:$0xff] %v721_v3 }
 0x114   : > { %724 = vst [vmem:[%s4538_s5 + $0x820] sm:$0xff] %v723_v4 }
 0x115   : > { %726 = vst [vmem:[%s4538_s5 + $0x828] sm:$0xff] %v725_v5 }
 0x116   : > { %728 = vst [vmem:[%s4538_s5 + $0x830] sm:$0xff] %v727_v6 }
 0x117   : > { %730 = vst [vmem:[%s4538_s5 + $0x838] sm:$0xff] %v729_v7 }
 0x118   : > { %732 = vst [vmem:[%s4538_s5 + $0x840] sm:$0xff] %v731_v8 }
 0x119   : > { %734 = vst [vmem:[%s4538_s5 + $0x848] sm:$0xff] %v733_v9 }
 0x11a   : > { %736 = vst [vmem:[%s4538_s5 + $0x850] sm:$0xff] %v735_v10 }
 0x11b   : > { %738 = vst [vmem:[%s4538_s5 + $0x858] sm:$0xff] %v737_v11 }
 0x11c   : > { %740 = vst [vmem:[%s4538_s5 + $0x860] sm:$0xff] %v739_v12 }
 0x11d   : > { %742 = vst [vmem:[%s4538_s5 + $0x868] sm:$0xff] %v741_v13 }
 0x11e   : > { %744 = vst [vmem:[%s4538_s5 + $0x870] sm:$0xff] %v743_v14 }
 0x11f   : > { %746 = vst [vmem:[%s4538_s5 + $0x878] sm:$0xff] %v745_v15 }
 0x120   : > { %748 = vst [vmem:[%s4538_s5 + $0x880] sm:$0xff] %v747_v16 }
 0x121   : > { %750 = vst [vmem:[%s4538_s5 + $0x888] sm:$0xff] %v749_v17 }
 0x122   : > { %752 = vst [vmem:[%s4538_s5 + $0x890] sm:$0xff] %v751_v18 }
 0x123   : > { %754 = vst [vmem:[%s4538_s5 + $0x898] sm:$0xff] %v753_v19 }
 0x124   : > { %756 = vst [vmem:[%s4538_s5 + $0x8a0] sm:$0xff] %v755_v20 }
 0x125   : > { %758 = vst [vmem:[%s4538_s5 + $0x8a8] sm:$0xff] %v757_v21 }
 0x126   : > { %760 = vst [vmem:[%s4538_s5 + $0x8b0] sm:$0xff] %v759_v22 }
 0x127   : > { %762 = vst [vmem:[%s4538_s5 + $0x8b8] sm:$0xff] %v761_v23 }
 0x128   : > { %764 = vst [vmem:[%s4538_s5 + $0x8c0] sm:$0xff] %v763_v24 }
 0x129   : > { %766 = vst [vmem:[%s4538_s5 + $0x8c8] sm:$0xff] %v765_v25 }
 0x12a   : > { %768 = vst [vmem:[%s4538_s5 + $0x8d0] sm:$0xff] %v767_v26 }
 0x12b   : > { %770 = vst [vmem:[%s4538_s5 + $0x8d8] sm:$0xff] %v769_v27 }
 0x12c   : > { %772 = vst [vmem:[%s4538_s5 + $0x8e0] sm:$0xff] %v771_v28 }
 0x12d   : > { %774 = vst [vmem:[%s4538_s5 + $0x8e8] sm:$0xff] %v773_v29 }
 0x12e   : > { %776 = vst [vmem:[%s4538_s5 + $0x8f0] sm:$0xff] %v775_v30 }
 0x12f   : > { %778 = vst [vmem:[%s4538_s5 + $0x8f8] sm:$0xff] %v777_v31 }
 0x130   : > { %780 = vst [vmem:[%s4538_s5 + $0x900] sm:$0xff] %v779_v32 }
 0x131   : > { %782 = vst [vmem:[%s4538_s5 + $0x908] sm:$0xff] %v781_v33 }
 0x132   : > { %784 = vst [vmem:[%s4538_s5 + $0x910] sm:$0xff] %v783_v34 }
 0x133   : > { %786 = vst [vmem:[%s4538_s5 + $0x918] sm:$0xff] %v785_v35 }
 0x134   : > { %788 = vst [vmem:[%s4538_s5 + $0x920] sm:$0xff] %v787_v36 }
 0x135   : > { %790 = vst [vmem:[%s4538_s5 + $0x928] sm:$0xff] %v789_v37 }
 0x136   : > { %792 = vst [vmem:[%s4538_s5 + $0x930] sm:$0xff] %v791_v38 }
 0x137   : > { %794 = vst [vmem:[%s4538_s5 + $0x938] sm:$0xff] %v793_v39 }
 0x138   : > { %796 = vst [vmem:[%s4538_s5 + $0x940] sm:$0xff] %v795_v40 }
 0x139   : > { %798 = vst [vmem:[%s4538_s5 + $0x948] sm:$0xff] %v797_v41 }
 0x13a   : > { %800 = vst [vmem:[%s4538_s5 + $0x950] sm:$0xff] %v799_v42 }
 0x13b   : > { %802 = vst [vmem:[%s4538_s5 + $0x958] sm:$0xff] %v801_v43 }
 0x13c   : > { %804 = vst [vmem:[%s4538_s5 + $0x960] sm:$0xff] %v803_v44 }
 0x13d   : > { %806 = vst [vmem:[%s4538_s5 + $0x968] sm:$0xff] %v805_v45 }
 0x13e   : > { %808 = vst [vmem:[%s4538_s5 + $0x970] sm:$0xff] %v807_v46 }
 0x13f   : > { %810 = vst [vmem:[%s4538_s5 + $0x978] sm:$0xff] %v809_v47 }
 0x140   : > { %812 = vst [vmem:[%s4538_s5 + $0x980] sm:$0xff] %v811_v48 }
 0x141   : > { %814 = vst [vmem:[%s4538_s5 + $0x988] sm:$0xff] %v813_v49 }
 0x142   : > { %816 = vst [vmem:[%s4538_s5 + $0x990] sm:$0xff] %v815_v50 }
 0x143   : > { %818 = vst [vmem:[%s4538_s5 + $0x998] sm:$0xff] %v817_v51 }
 0x144   : > { %820 = vst [vmem:[%s4538_s5 + $0x9a0] sm:$0xff] %v819_v52 }
 0x145   : > { %822 = vst [vmem:[%s4538_s5 + $0x9a8] sm:$0xff] %v821_v53 }
 0x146   : > { %824 = vst [vmem:[%s4538_s5 + $0x9b0] sm:$0xff] %v823_v54 }
 0x147   : > { %826 = vst [vmem:[%s4538_s5 + $0x9b8] sm:$0xff] %v825_v55 }
 0x148   : > { %828 = vst [vmem:[%s4538_s5 + $0x9c0] sm:$0xff] %v827_v56 }
 0x149   : > { %830 = vst [vmem:[%s4538_s5 + $0x9c8] sm:$0xff] %v829_v57 }
 0x14a   : > { %832 = vst [vmem:[%s4538_s5 + $0x9d0] sm:$0xff] %v831_v58 }
 0x14b   : > { %834 = vst [vmem:[%s4538_s5 + $0x9d8] sm:$0xff] %v833_v59 }
 0x14c   : > { %836 = vst [vmem:[%s4538_s5 + $0x9e0] sm:$0xff] %v835_v60 }
 0x14d   : > { %838 = vst [vmem:[%s4538_s5 + $0x9e8] sm:$0xff] %v837_v61 }
 0x14e   : > { %840 = vst [vmem:[%s4538_s5 + $0x9f0] sm:$0xff] %v839_v62 }
 0x14f   : > { %842 = vst [vmem:[%s4538_s5 + $0x9f8] sm:$0xff] %v841_v63 }
 0x150 PF: > { %848 = sbr.rel (!%p4515_p3) target bundleno = 660 (0x294), region = 47  ;;  %s850_s6 = sand.u32 (%p4515_p3), 1, %s4444_s16  }
 0x151   : > { %s4328_s7 = sshll.u32 (%p4515_p3), %s4452_s18, 5  ;;  %s4330_s8 = smul.u32 (%p4515_p3), 2560, %s850_s6 }
 0x152   : > { %s5184_s11 = scalar_lea.vmem (%p4515_p3), %s7380_s2, %s4328_s7 }
 0x153   : > { %v868_v0 = vld [vmem:[%s5184_s11] sm:$0xff] (%p4515_p3)  ;;  %v870_v1 = vld [vmem:[%s5184_s11 + $0x8] sm:$0xff] (%p4515_p3)  ;;  %v872_v2 = vld [vmem:[%s5184_s11 + $0x10] sm:$0xff] (%p4515_p3)  ;;  %s5189_s12 = scalar_lea.vmem (%p4515_p3), [#allocation4], %s4330_s8 }
 0x154   : > { %869 = vst [vmem:[%s5189_s12] sm:$0xff] (%p4515_p3), %v868_v0  ;;  %v874_v3 = vld [vmem:[%s5184_s11 + $0x18] sm:$0xff] (%p4515_p3)  ;;  %v876_v4 = vld [vmem:[%s5184_s11 + $0xa0] sm:$0xff] (%p4515_p3)  ;;  %v878_v5 = vld [vmem:[%s5184_s11 + $0xa8] sm:$0xff] (%p4515_p3) }
 0x155   : > { %871 = vst [vmem:[%s5189_s12 + $0x8] sm:$0xff] %v870_v1  ;;  %v880_v6 = vld [vmem:[%s5184_s11 + $0xb0] sm:$0xff]  ;;  %v882_v7 = vld [vmem:[%s5184_s11 + $0xb8] sm:$0xff]  ;;  %v884_v8 = vld [vmem:[%s5184_s11 + $0x140] sm:$0xff] }
 0x156   : > { %873 = vst [vmem:[%s5189_s12 + $0x10] sm:$0xff] %v872_v2  ;;  %v886_v9 = vld [vmem:[%s5184_s11 + $0x148] sm:$0xff]  ;;  %v888_v10 = vld [vmem:[%s5184_s11 + $0x150] sm:$0xff]  ;;  %v890_v11 = vld [vmem:[%s5184_s11 + $0x158] sm:$0xff] }
 0x157   : > { %875 = vst [vmem:[%s5189_s12 + $0x18] sm:$0xff] %v874_v3  ;;  %v892_v12 = vld [vmem:[%s5184_s11 + $0x1e0] sm:$0xff]  ;;  %v894_v13 = vld [vmem:[%s5184_s11 + $0x1e8] sm:$0xff]  ;;  %v896_v14 = vld [vmem:[%s5184_s11 + $0x1f0] sm:$0xff] }
 0x158   : > { %877 = vst [vmem:[%s5189_s12 + $0x20] sm:$0xff] %v876_v4  ;;  %v898_v15 = vld [vmem:[%s5184_s11 + $0x1f8] sm:$0xff]  ;;  %v900_v16 = vld [vmem:[%s5184_s11 + $0x280] sm:$0xff]  ;;  %v902_v17 = vld [vmem:[%s5184_s11 + $0x288] sm:$0xff] }
 0x159   : > { %879 = vst [vmem:[%s5189_s12 + $0x28] sm:$0xff] %v878_v5  ;;  %v904_v18 = vld [vmem:[%s5184_s11 + $0x290] sm:$0xff]  ;;  %v906_v19 = vld [vmem:[%s5184_s11 + $0x298] sm:$0xff]  ;;  %v908_v20 = vld [vmem:[%s5184_s11 + $0x320] sm:$0xff] }
 0x15a   : > { %881 = vst [vmem:[%s5189_s12 + $0x30] sm:$0xff] %v880_v6  ;;  %v910_v21 = vld [vmem:[%s5184_s11 + $0x328] sm:$0xff]  ;;  %v912_v22 = vld [vmem:[%s5184_s11 + $0x330] sm:$0xff]  ;;  %v914_v23 = vld [vmem:[%s5184_s11 + $0x338] sm:$0xff] }
 0x15b   : > { %883 = vst [vmem:[%s5189_s12 + $0x38] sm:$0xff] %v882_v7  ;;  %v916_v24 = vld [vmem:[%s5184_s11 + $0x3c0] sm:$0xff]  ;;  %v918_v25 = vld [vmem:[%s5184_s11 + $0x3c8] sm:$0xff]  ;;  %v920_v26 = vld [vmem:[%s5184_s11 + $0x3d0] sm:$0xff] }
 0x15c   : > { %885 = vst [vmem:[%s5189_s12 + $0x40] sm:$0xff] %v884_v8  ;;  %v922_v27 = vld [vmem:[%s5184_s11 + $0x3d8] sm:$0xff]  ;;  %v924_v28 = vld [vmem:[%s5184_s11 + $0x460] sm:$0xff]  ;;  %v926_v29 = vld [vmem:[%s5184_s11 + $0x468] sm:$0xff] }
 0x15d   : > { %887 = vst [vmem:[%s5189_s12 + $0x48] sm:$0xff] %v886_v9  ;;  %v928_v30 = vld [vmem:[%s5184_s11 + $0x470] sm:$0xff]  ;;  %v930_v31 = vld [vmem:[%s5184_s11 + $0x478] sm:$0xff]  ;;  %v932_v32 = vld [vmem:[%s5184_s11 + $0x500] sm:$0xff] }
 0x15e   : > { %889 = vst [vmem:[%s5189_s12 + $0x50] sm:$0xff] %v888_v10  ;;  %v934_v33 = vld [vmem:[%s5184_s11 + $0x508] sm:$0xff]  ;;  %v936_v34 = vld [vmem:[%s5184_s11 + $0x510] sm:$0xff]  ;;  %v938_v35 = vld [vmem:[%s5184_s11 + $0x518] sm:$0xff] }
 0x15f   : > { %891 = vst [vmem:[%s5189_s12 + $0x58] sm:$0xff] %v890_v11  ;;  %v940_v36 = vld [vmem:[%s5184_s11 + $0x5a0] sm:$0xff]  ;;  %v942_v37 = vld [vmem:[%s5184_s11 + $0x5a8] sm:$0xff]  ;;  %v944_v38 = vld [vmem:[%s5184_s11 + $0x5b0] sm:$0xff] }
 0x160   : > { %893 = vst [vmem:[%s5189_s12 + $0x60] sm:$0xff] %v892_v12  ;;  %v946_v39 = vld [vmem:[%s5184_s11 + $0x5b8] sm:$0xff]  ;;  %v948_v40 = vld [vmem:[%s5184_s11 + $0x640] sm:$0xff]  ;;  %v950_v41 = vld [vmem:[%s5184_s11 + $0x648] sm:$0xff] }
 0x161   : > { %895 = vst [vmem:[%s5189_s12 + $0x68] sm:$0xff] %v894_v13  ;;  %v952_v42 = vld [vmem:[%s5184_s11 + $0x650] sm:$0xff]  ;;  %v954_v43 = vld [vmem:[%s5184_s11 + $0x658] sm:$0xff]  ;;  %v956_v44 = vld [vmem:[%s5184_s11 + $0x6e0] sm:$0xff] }
 0x162   : > { %897 = vst [vmem:[%s5189_s12 + $0x70] sm:$0xff] %v896_v14  ;;  %v958_v45 = vld [vmem:[%s5184_s11 + $0x6e8] sm:$0xff]  ;;  %v960_v46 = vld [vmem:[%s5184_s11 + $0x6f0] sm:$0xff]  ;;  %v962_v47 = vld [vmem:[%s5184_s11 + $0x6f8] sm:$0xff] }
 0x163   : > { %899 = vst [vmem:[%s5189_s12 + $0x78] sm:$0xff] %v898_v15  ;;  %v964_v48 = vld [vmem:[%s5184_s11 + $0x780] sm:$0xff]  ;;  %v966_v49 = vld [vmem:[%s5184_s11 + $0x788] sm:$0xff]  ;;  %v968_v50 = vld [vmem:[%s5184_s11 + $0x790] sm:$0xff] }
 0x164   : > { %901 = vst [vmem:[%s5189_s12 + $0x80] sm:$0xff] %v900_v16  ;;  %v970_v51 = vld [vmem:[%s5184_s11 + $0x798] sm:$0xff]  ;;  %v972_v52 = vld [vmem:[%s5184_s11 + $0x820] sm:$0xff]  ;;  %v974_v53 = vld [vmem:[%s5184_s11 + $0x828] sm:$0xff] }
 0x165   : > { %903 = vst [vmem:[%s5189_s12 + $0x88] sm:$0xff] %v902_v17  ;;  %v976_v54 = vld [vmem:[%s5184_s11 + $0x830] sm:$0xff]  ;;  %v978_v55 = vld [vmem:[%s5184_s11 + $0x838] sm:$0xff]  ;;  %v980_v56 = vld [vmem:[%s5184_s11 + $0x8c0] sm:$0xff] }
 0x166   : > { %905 = vst [vmem:[%s5189_s12 + $0x90] sm:$0xff] %v904_v18  ;;  %v982_v57 = vld [vmem:[%s5184_s11 + $0x8c8] sm:$0xff]  ;;  %v984_v58 = vld [vmem:[%s5184_s11 + $0x8d0] sm:$0xff]  ;;  %v986_v59 = vld [vmem:[%s5184_s11 + $0x8d8] sm:$0xff] }
 0x167   : > { %907 = vst [vmem:[%s5189_s12 + $0x98] sm:$0xff] %v906_v19  ;;  %v988_v60 = vld [vmem:[%s5184_s11 + $0x960] sm:$0xff]  ;;  %v990_v61 = vld [vmem:[%s5184_s11 + $0x968] sm:$0xff]  ;;  %v992_v62 = vld [vmem:[%s5184_s11 + $0x970] sm:$0xff] }
 0x168   : > { %909 = vst [vmem:[%s5189_s12 + $0xa0] sm:$0xff] %v908_v20  ;;  %v994_v63 = vld [vmem:[%s5184_s11 + $0x978] sm:$0xff]  ;;  %v996_v0 = vld [vmem:[%s5184_s11 + $0xa00] sm:$0xff]  ;;  %v998_v1 = vld [vmem:[%s5184_s11 + $0xa08] sm:$0xff] }
 0x169   : > { %911 = vst [vmem:[%s5189_s12 + $0xa8] sm:$0xff] %v910_v21  ;;  %v1000_v2 = vld [vmem:[%s5184_s11 + $0xa10] sm:$0xff]  ;;  %v1002_v3 = vld [vmem:[%s5184_s11 + $0xa18] sm:$0xff]  ;;  %v1004_v4 = vld [vmem:[%s5184_s11 + $0xaa0] sm:$0xff] }
 0x16a   : > { %913 = vst [vmem:[%s5189_s12 + $0xb0] sm:$0xff] %v912_v22  ;;  %v1006_v5 = vld [vmem:[%s5184_s11 + $0xaa8] sm:$0xff]  ;;  %v1008_v6 = vld [vmem:[%s5184_s11 + $0xab0] sm:$0xff]  ;;  %v1010_v7 = vld [vmem:[%s5184_s11 + $0xab8] sm:$0xff] }
 0x16b   : > { %915 = vst [vmem:[%s5189_s12 + $0xb8] sm:$0xff] %v914_v23  ;;  %v1012_v8 = vld [vmem:[%s5184_s11 + $0xb40] sm:$0xff]  ;;  %v1014_v9 = vld [vmem:[%s5184_s11 + $0xb48] sm:$0xff]  ;;  %v1016_v10 = vld [vmem:[%s5184_s11 + $0xb50] sm:$0xff] }
 0x16c   : > { %917 = vst [vmem:[%s5189_s12 + $0xc0] sm:$0xff] %v916_v24  ;;  %v1018_v11 = vld [vmem:[%s5184_s11 + $0xb58] sm:$0xff]  ;;  %v1020_v12 = vld [vmem:[%s5184_s11 + $0xbe0] sm:$0xff]  ;;  %v1022_v13 = vld [vmem:[%s5184_s11 + $0xbe8] sm:$0xff] }
 0x16d   : > { %919 = vst [vmem:[%s5189_s12 + $0xc8] sm:$0xff] %v918_v25  ;;  %v1024_v14 = vld [vmem:[%s5184_s11 + $0xbf0] sm:$0xff]  ;;  %v1026_v15 = vld [vmem:[%s5184_s11 + $0xbf8] sm:$0xff]  ;;  %v1028_v16 = vld [vmem:[%s5184_s11 + $0xc80] sm:$0xff] }
 0x16e   : > { %921 = vst [vmem:[%s5189_s12 + $0xd0] sm:$0xff] %v920_v26  ;;  %v1030_v17 = vld [vmem:[%s5184_s11 + $0xc88] sm:$0xff]  ;;  %v1032_v18 = vld [vmem:[%s5184_s11 + $0xc90] sm:$0xff]  ;;  %v1034_v19 = vld [vmem:[%s5184_s11 + $0xc98] sm:$0xff] }
 0x16f   : > { %923 = vst [vmem:[%s5189_s12 + $0xd8] sm:$0xff] %v922_v27  ;;  %v1036_v20 = vld [vmem:[%s5184_s11 + $0xd20] sm:$0xff]  ;;  %v1038_v21 = vld [vmem:[%s5184_s11 + $0xd28] sm:$0xff]  ;;  %v1040_v22 = vld [vmem:[%s5184_s11 + $0xd30] sm:$0xff] }
 0x170   : > { %925 = vst [vmem:[%s5189_s12 + $0xe0] sm:$0xff] %v924_v28  ;;  %v1042_v23 = vld [vmem:[%s5184_s11 + $0xd38] sm:$0xff]  ;;  %v1044_v24 = vld [vmem:[%s5184_s11 + $0xdc0] sm:$0xff]  ;;  %v1046_v25 = vld [vmem:[%s5184_s11 + $0xdc8] sm:$0xff] }
 0x171   : > { %927 = vst [vmem:[%s5189_s12 + $0xe8] sm:$0xff] %v926_v29  ;;  %v1048_v26 = vld [vmem:[%s5184_s11 + $0xdd0] sm:$0xff]  ;;  %v1050_v27 = vld [vmem:[%s5184_s11 + $0xdd8] sm:$0xff]  ;;  %v1052_v28 = vld [vmem:[%s5184_s11 + $0xe60] sm:$0xff] }
 0x172   : > { %929 = vst [vmem:[%s5189_s12 + $0xf0] sm:$0xff] %v928_v30  ;;  %v1054_v29 = vld [vmem:[%s5184_s11 + $0xe68] sm:$0xff]  ;;  %v1056_v30 = vld [vmem:[%s5184_s11 + $0xe70] sm:$0xff] }
 0x173   : > { %931 = vst [vmem:[%s5189_s12 + $0xf8] sm:$0xff] %v930_v31  ;;  %v1058_v31 = vld [vmem:[%s5184_s11 + $0xe78] sm:$0xff] }
 0x174   : > { %933 = vst [vmem:[%s5189_s12 + $0x100] sm:$0xff] %v932_v32  ;;  %v1060_v32 = vld [vmem:[%s5184_s11 + $0xf00] sm:$0xff] }
 0x175   : > { %935 = vst [vmem:[%s5189_s12 + $0x108] sm:$0xff] %v934_v33  ;;  %v1062_v33 = vld [vmem:[%s5184_s11 + $0xf08] sm:$0xff] }
 0x176   : > { %937 = vst [vmem:[%s5189_s12 + $0x110] sm:$0xff] %v936_v34  ;;  %v1064_v34 = vld [vmem:[%s5184_s11 + $0xf10] sm:$0xff] }
 0x177   : > { %939 = vst [vmem:[%s5189_s12 + $0x118] sm:$0xff] %v938_v35  ;;  %v1066_v35 = vld [vmem:[%s5184_s11 + $0xf18] sm:$0xff] }
 0x178   : > { %941 = vst [vmem:[%s5189_s12 + $0x120] sm:$0xff] %v940_v36  ;;  %v1068_v36 = vld [vmem:[%s5184_s11 + $0xfa0] sm:$0xff] }
 0x179   : > { %943 = vst [vmem:[%s5189_s12 + $0x128] sm:$0xff] %v942_v37  ;;  %v1070_v37 = vld [vmem:[%s5184_s11 + $0xfa8] sm:$0xff] }
 0x17a   : > { %945 = vst [vmem:[%s5189_s12 + $0x130] sm:$0xff] %v944_v38  ;;  %v1072_v38 = vld [vmem:[%s5184_s11 + $0xfb0] sm:$0xff] }
 0x17b   : > { %947 = vst [vmem:[%s5189_s12 + $0x138] sm:$0xff] %v946_v39  ;;  %v1074_v39 = vld [vmem:[%s5184_s11 + $0xfb8] sm:$0xff] }
 0x17c   : > { %949 = vst [vmem:[%s5189_s12 + $0x140] sm:$0xff] %v948_v40  ;;  %v1076_v40 = vld [vmem:[%s5184_s11 + $0x1040] sm:$0xff] }
 0x17d   : > { %951 = vst [vmem:[%s5189_s12 + $0x148] sm:$0xff] %v950_v41  ;;  %v1078_v41 = vld [vmem:[%s5184_s11 + $0x1048] sm:$0xff] }
 0x17e   : > { %953 = vst [vmem:[%s5189_s12 + $0x150] sm:$0xff] %v952_v42  ;;  %v1080_v42 = vld [vmem:[%s5184_s11 + $0x1050] sm:$0xff] }
 0x17f   : > { %955 = vst [vmem:[%s5189_s12 + $0x158] sm:$0xff] %v954_v43  ;;  %v1082_v43 = vld [vmem:[%s5184_s11 + $0x1058] sm:$0xff] }
 0x180   : > { %957 = vst [vmem:[%s5189_s12 + $0x160] sm:$0xff] %v956_v44  ;;  %v1084_v44 = vld [vmem:[%s5184_s11 + $0x10e0] sm:$0xff] }
 0x181   : > { %959 = vst [vmem:[%s5189_s12 + $0x168] sm:$0xff] %v958_v45  ;;  %v1086_v45 = vld [vmem:[%s5184_s11 + $0x10e8] sm:$0xff] }
 0x182   : > { %961 = vst [vmem:[%s5189_s12 + $0x170] sm:$0xff] %v960_v46  ;;  %v1088_v46 = vld [vmem:[%s5184_s11 + $0x10f0] sm:$0xff] }
 0x183   : > { %963 = vst [vmem:[%s5189_s12 + $0x178] sm:$0xff] %v962_v47  ;;  %v1090_v47 = vld [vmem:[%s5184_s11 + $0x10f8] sm:$0xff] }
 0x184   : > { %965 = vst [vmem:[%s5189_s12 + $0x180] sm:$0xff] %v964_v48  ;;  %v1092_v48 = vld [vmem:[%s5184_s11 + $0x1180] sm:$0xff] }
 0x185   : > { %967 = vst [vmem:[%s5189_s12 + $0x188] sm:$0xff] %v966_v49  ;;  %v1094_v49 = vld [vmem:[%s5184_s11 + $0x1188] sm:$0xff] }
 0x186   : > { %969 = vst [vmem:[%s5189_s12 + $0x190] sm:$0xff] %v968_v50  ;;  %v1096_v50 = vld [vmem:[%s5184_s11 + $0x1190] sm:$0xff] }
 0x187   : > { %971 = vst [vmem:[%s5189_s12 + $0x198] sm:$0xff] %v970_v51  ;;  %v1098_v51 = vld [vmem:[%s5184_s11 + $0x1198] sm:$0xff] }
 0x188   : > { %973 = vst [vmem:[%s5189_s12 + $0x1a0] sm:$0xff] %v972_v52  ;;  %v1100_v52 = vld [vmem:[%s5184_s11 + $0x1220] sm:$0xff] }
 0x189   : > { %975 = vst [vmem:[%s5189_s12 + $0x1a8] sm:$0xff] %v974_v53  ;;  %v1102_v53 = vld [vmem:[%s5184_s11 + $0x1228] sm:$0xff] }
 0x18a   : > { %977 = vst [vmem:[%s5189_s12 + $0x1b0] sm:$0xff] %v976_v54  ;;  %v1104_v54 = vld [vmem:[%s5184_s11 + $0x1230] sm:$0xff] }
 0x18b   : > { %979 = vst [vmem:[%s5189_s12 + $0x1b8] sm:$0xff] %v978_v55  ;;  %v1106_v55 = vld [vmem:[%s5184_s11 + $0x1238] sm:$0xff] }
 0x18c   : > { %981 = vst [vmem:[%s5189_s12 + $0x1c0] sm:$0xff] %v980_v56  ;;  %v1108_v56 = vld [vmem:[%s5184_s11 + $0x12c0] sm:$0xff] }
 0x18d   : > { %983 = vst [vmem:[%s5189_s12 + $0x1c8] sm:$0xff] %v982_v57  ;;  %v1110_v57 = vld [vmem:[%s5184_s11 + $0x12c8] sm:$0xff] }
 0x18e   : > { %985 = vst [vmem:[%s5189_s12 + $0x1d0] sm:$0xff] %v984_v58  ;;  %v1112_v58 = vld [vmem:[%s5184_s11 + $0x12d0] sm:$0xff] }
 0x18f   : > { %987 = vst [vmem:[%s5189_s12 + $0x1d8] sm:$0xff] %v986_v59  ;;  %v1114_v59 = vld [vmem:[%s5184_s11 + $0x12d8] sm:$0xff] }
 0x190   : > { %989 = vst [vmem:[%s5189_s12 + $0x1e0] sm:$0xff] %v988_v60  ;;  %v1116_v60 = vld [vmem:[%s5184_s11 + $0x1360] sm:$0xff] }
 0x191   : > { %991 = vst [vmem:[%s5189_s12 + $0x1e8] sm:$0xff] %v990_v61  ;;  %v1118_v61 = vld [vmem:[%s5184_s11 + $0x1368] sm:$0xff] }
 0x192   : > { %993 = vst [vmem:[%s5189_s12 + $0x1f0] sm:$0xff] %v992_v62  ;;  %v1120_v62 = vld [vmem:[%s5184_s11 + $0x1370] sm:$0xff] }
 0x193   : > { %995 = vst [vmem:[%s5189_s12 + $0x1f8] sm:$0xff] %v994_v63  ;;  %v1122_v63 = vld [vmem:[%s5184_s11 + $0x1378] sm:$0xff] }
 0x194   : > { %997 = vst [vmem:[%s5189_s12 + $0x200] sm:$0xff] %v996_v0  ;;  %v1124_v0 = vld [vmem:[%s5184_s11 + $0x1400] sm:$0xff] }
 0x195   : > { %999 = vst [vmem:[%s5189_s12 + $0x208] sm:$0xff] %v998_v1  ;;  %v1126_v1 = vld [vmem:[%s5184_s11 + $0x1408] sm:$0xff] }
 0x196   : > { %1001 = vst [vmem:[%s5189_s12 + $0x210] sm:$0xff] %v1000_v2  ;;  %v1128_v2 = vld [vmem:[%s5184_s11 + $0x1410] sm:$0xff] }
 0x197   : > { %1003 = vst [vmem:[%s5189_s12 + $0x218] sm:$0xff] %v1002_v3  ;;  %v1130_v3 = vld [vmem:[%s5184_s11 + $0x1418] sm:$0xff] }
 0x198   : > { %1005 = vst [vmem:[%s5189_s12 + $0x220] sm:$0xff] %v1004_v4  ;;  %v1132_v4 = vld [vmem:[%s5184_s11 + $0x14a0] sm:$0xff] }
 0x199   : > { %1007 = vst [vmem:[%s5189_s12 + $0x228] sm:$0xff] %v1006_v5  ;;  %v1134_v5 = vld [vmem:[%s5184_s11 + $0x14a8] sm:$0xff] }
 0x19a   : > { %1009 = vst [vmem:[%s5189_s12 + $0x230] sm:$0xff] %v1008_v6  ;;  %v1136_v6 = vld [vmem:[%s5184_s11 + $0x14b0] sm:$0xff] }
 0x19b   : > { %1011 = vst [vmem:[%s5189_s12 + $0x238] sm:$0xff] %v1010_v7  ;;  %v1138_v7 = vld [vmem:[%s5184_s11 + $0x14b8] sm:$0xff] }
 0x19c   : > { %1013 = vst [vmem:[%s5189_s12 + $0x240] sm:$0xff] %v1012_v8  ;;  %v1140_v8 = vld [vmem:[%s5184_s11 + $0x1540] sm:$0xff] }
 0x19d   : > { %1015 = vst [vmem:[%s5189_s12 + $0x248] sm:$0xff] %v1014_v9  ;;  %v1142_v9 = vld [vmem:[%s5184_s11 + $0x1548] sm:$0xff] }
 0x19e   : > { %1017 = vst [vmem:[%s5189_s12 + $0x250] sm:$0xff] %v1016_v10  ;;  %v1144_v10 = vld [vmem:[%s5184_s11 + $0x1550] sm:$0xff] }
 0x19f   : > { %1019 = vst [vmem:[%s5189_s12 + $0x258] sm:$0xff] %v1018_v11  ;;  %v1146_v11 = vld [vmem:[%s5184_s11 + $0x1558] sm:$0xff] }
 0x1a0   : > { %1021 = vst [vmem:[%s5189_s12 + $0x260] sm:$0xff] %v1020_v12  ;;  %v1148_v12 = vld [vmem:[%s5184_s11 + $0x15e0] sm:$0xff] }
 0x1a1   : > { %1023 = vst [vmem:[%s5189_s12 + $0x268] sm:$0xff] %v1022_v13  ;;  %v1150_v13 = vld [vmem:[%s5184_s11 + $0x15e8] sm:$0xff] }
 0x1a2   : > { %1025 = vst [vmem:[%s5189_s12 + $0x270] sm:$0xff] %v1024_v14  ;;  %v1152_v14 = vld [vmem:[%s5184_s11 + $0x15f0] sm:$0xff] }
 0x1a3   : > { %1027 = vst [vmem:[%s5189_s12 + $0x278] sm:$0xff] %v1026_v15  ;;  %v1154_v15 = vld [vmem:[%s5184_s11 + $0x15f8] sm:$0xff] }
 0x1a4   : > { %1029 = vst [vmem:[%s5189_s12 + $0x280] sm:$0xff] %v1028_v16  ;;  %v1156_v16 = vld [vmem:[%s5184_s11 + $0x1680] sm:$0xff] }
 0x1a5   : > { %1031 = vst [vmem:[%s5189_s12 + $0x288] sm:$0xff] %v1030_v17  ;;  %v1158_v17 = vld [vmem:[%s5184_s11 + $0x1688] sm:$0xff] }
 0x1a6   : > { %1033 = vst [vmem:[%s5189_s12 + $0x290] sm:$0xff] %v1032_v18  ;;  %v1160_v18 = vld [vmem:[%s5184_s11 + $0x1690] sm:$0xff] }
 0x1a7   : > { %1035 = vst [vmem:[%s5189_s12 + $0x298] sm:$0xff] %v1034_v19  ;;  %v1162_v19 = vld [vmem:[%s5184_s11 + $0x1698] sm:$0xff] }
 0x1a8   : > { %1037 = vst [vmem:[%s5189_s12 + $0x2a0] sm:$0xff] %v1036_v20  ;;  %v1164_v20 = vld [vmem:[%s5184_s11 + $0x1720] sm:$0xff] }
 0x1a9   : > { %1039 = vst [vmem:[%s5189_s12 + $0x2a8] sm:$0xff] %v1038_v21  ;;  %v1166_v21 = vld [vmem:[%s5184_s11 + $0x1728] sm:$0xff] }
 0x1aa   : > { %1041 = vst [vmem:[%s5189_s12 + $0x2b0] sm:$0xff] %v1040_v22  ;;  %v1168_v22 = vld [vmem:[%s5184_s11 + $0x1730] sm:$0xff] }
 0x1ab   : > { %1043 = vst [vmem:[%s5189_s12 + $0x2b8] sm:$0xff] %v1042_v23  ;;  %v1170_v23 = vld [vmem:[%s5184_s11 + $0x1738] sm:$0xff] }
 0x1ac   : > { %1045 = vst [vmem:[%s5189_s12 + $0x2c0] sm:$0xff] %v1044_v24  ;;  %v1172_v24 = vld [vmem:[%s5184_s11 + $0x17c0] sm:$0xff] }
 0x1ad   : > { %1047 = vst [vmem:[%s5189_s12 + $0x2c8] sm:$0xff] %v1046_v25  ;;  %v1174_v25 = vld [vmem:[%s5184_s11 + $0x17c8] sm:$0xff] }
 0x1ae   : > { %1049 = vst [vmem:[%s5189_s12 + $0x2d0] sm:$0xff] %v1048_v26  ;;  %v1176_v26 = vld [vmem:[%s5184_s11 + $0x17d0] sm:$0xff] }
 0x1af   : > { %1051 = vst [vmem:[%s5189_s12 + $0x2d8] sm:$0xff] %v1050_v27  ;;  %v1178_v27 = vld [vmem:[%s5184_s11 + $0x17d8] sm:$0xff] }
 0x1b0   : > { %1053 = vst [vmem:[%s5189_s12 + $0x2e0] sm:$0xff] %v1052_v28  ;;  %v1180_v28 = vld [vmem:[%s5184_s11 + $0x1860] sm:$0xff] }
 0x1b1   : > { %1055 = vst [vmem:[%s5189_s12 + $0x2e8] sm:$0xff] %v1054_v29  ;;  %v1182_v29 = vld [vmem:[%s5184_s11 + $0x1868] sm:$0xff] }
 0x1b2   : > { %1057 = vst [vmem:[%s5189_s12 + $0x2f0] sm:$0xff] %v1056_v30  ;;  %v1184_v30 = vld [vmem:[%s5184_s11 + $0x1870] sm:$0xff] }
 0x1b3   : > { %1059 = vst [vmem:[%s5189_s12 + $0x2f8] sm:$0xff] %v1058_v31  ;;  %v1186_v31 = vld [vmem:[%s5184_s11 + $0x1878] sm:$0xff] }
 0x1b4   : > { %1061 = vst [vmem:[%s5189_s12 + $0x300] sm:$0xff] %v1060_v32  ;;  %v1188_v32 = vld [vmem:[%s5184_s11 + $0x1900] sm:$0xff] }
 0x1b5   : > { %1063 = vst [vmem:[%s5189_s12 + $0x308] sm:$0xff] %v1062_v33  ;;  %v1190_v33 = vld [vmem:[%s5184_s11 + $0x1908] sm:$0xff] }
 0x1b6   : > { %1065 = vst [vmem:[%s5189_s12 + $0x310] sm:$0xff] %v1064_v34  ;;  %v1192_v34 = vld [vmem:[%s5184_s11 + $0x1910] sm:$0xff] }
 0x1b7   : > { %1067 = vst [vmem:[%s5189_s12 + $0x318] sm:$0xff] %v1066_v35  ;;  %v1194_v35 = vld [vmem:[%s5184_s11 + $0x1918] sm:$0xff] }
 0x1b8   : > { %1069 = vst [vmem:[%s5189_s12 + $0x320] sm:$0xff] %v1068_v36  ;;  %v1196_v36 = vld [vmem:[%s5184_s11 + $0x19a0] sm:$0xff] }
 0x1b9   : > { %1071 = vst [vmem:[%s5189_s12 + $0x328] sm:$0xff] %v1070_v37  ;;  %v1198_v37 = vld [vmem:[%s5184_s11 + $0x19a8] sm:$0xff] }
 0x1ba   : > { %1073 = vst [vmem:[%s5189_s12 + $0x330] sm:$0xff] %v1072_v38  ;;  %v1200_v38 = vld [vmem:[%s5184_s11 + $0x19b0] sm:$0xff] }
 0x1bb   : > { %1075 = vst [vmem:[%s5189_s12 + $0x338] sm:$0xff] %v1074_v39  ;;  %v1202_v39 = vld [vmem:[%s5184_s11 + $0x19b8] sm:$0xff] }
 0x1bc   : > { %1077 = vst [vmem:[%s5189_s12 + $0x340] sm:$0xff] %v1076_v40  ;;  %v1204_v40 = vld [vmem:[%s5184_s11 + $0x1a40] sm:$0xff] }
 0x1bd   : > { %1079 = vst [vmem:[%s5189_s12 + $0x348] sm:$0xff] %v1078_v41  ;;  %v1206_v41 = vld [vmem:[%s5184_s11 + $0x1a48] sm:$0xff] }
 0x1be   : > { %1081 = vst [vmem:[%s5189_s12 + $0x350] sm:$0xff] %v1080_v42  ;;  %v1208_v42 = vld [vmem:[%s5184_s11 + $0x1a50] sm:$0xff] }
 0x1bf   : > { %1083 = vst [vmem:[%s5189_s12 + $0x358] sm:$0xff] %v1082_v43  ;;  %v1210_v43 = vld [vmem:[%s5184_s11 + $0x1a58] sm:$0xff] }
 0x1c0   : > { %1085 = vst [vmem:[%s5189_s12 + $0x360] sm:$0xff] %v1084_v44  ;;  %v1212_v44 = vld [vmem:[%s5184_s11 + $0x1ae0] sm:$0xff] }
 0x1c1   : > { %1087 = vst [vmem:[%s5189_s12 + $0x368] sm:$0xff] %v1086_v45  ;;  %v1214_v45 = vld [vmem:[%s5184_s11 + $0x1ae8] sm:$0xff] }
 0x1c2   : > { %1089 = vst [vmem:[%s5189_s12 + $0x370] sm:$0xff] %v1088_v46  ;;  %v1216_v46 = vld [vmem:[%s5184_s11 + $0x1af0] sm:$0xff] }
 0x1c3   : > { %1091 = vst [vmem:[%s5189_s12 + $0x378] sm:$0xff] %v1090_v47  ;;  %v1218_v47 = vld [vmem:[%s5184_s11 + $0x1af8] sm:$0xff] }
 0x1c4   : > { %1093 = vst [vmem:[%s5189_s12 + $0x380] sm:$0xff] %v1092_v48  ;;  %v1220_v48 = vld [vmem:[%s5184_s11 + $0x1b80] sm:$0xff] }
 0x1c5   : > { %1095 = vst [vmem:[%s5189_s12 + $0x388] sm:$0xff] %v1094_v49  ;;  %v1222_v49 = vld [vmem:[%s5184_s11 + $0x1b88] sm:$0xff] }
 0x1c6   : > { %1097 = vst [vmem:[%s5189_s12 + $0x390] sm:$0xff] %v1096_v50  ;;  %v1224_v50 = vld [vmem:[%s5184_s11 + $0x1b90] sm:$0xff] }
 0x1c7   : > { %1099 = vst [vmem:[%s5189_s12 + $0x398] sm:$0xff] %v1098_v51  ;;  %v1226_v51 = vld [vmem:[%s5184_s11 + $0x1b98] sm:$0xff] }
 0x1c8   : > { %1101 = vst [vmem:[%s5189_s12 + $0x3a0] sm:$0xff] %v1100_v52  ;;  %v1228_v52 = vld [vmem:[%s5184_s11 + $0x1c20] sm:$0xff] }
 0x1c9   : > { %1103 = vst [vmem:[%s5189_s12 + $0x3a8] sm:$0xff] %v1102_v53  ;;  %v1230_v53 = vld [vmem:[%s5184_s11 + $0x1c28] sm:$0xff] }
 0x1ca   : > { %1105 = vst [vmem:[%s5189_s12 + $0x3b0] sm:$0xff] %v1104_v54  ;;  %v1232_v54 = vld [vmem:[%s5184_s11 + $0x1c30] sm:$0xff] }
 0x1cb   : > { %1107 = vst [vmem:[%s5189_s12 + $0x3b8] sm:$0xff] %v1106_v55  ;;  %v1234_v55 = vld [vmem:[%s5184_s11 + $0x1c38] sm:$0xff] }
 0x1cc   : > { %1109 = vst [vmem:[%s5189_s12 + $0x3c0] sm:$0xff] %v1108_v56  ;;  %v1236_v56 = vld [vmem:[%s5184_s11 + $0x1cc0] sm:$0xff] }
 0x1cd   : > { %1111 = vst [vmem:[%s5189_s12 + $0x3c8] sm:$0xff] %v1110_v57  ;;  %v1238_v57 = vld [vmem:[%s5184_s11 + $0x1cc8] sm:$0xff] }
 0x1ce   : > { %1113 = vst [vmem:[%s5189_s12 + $0x3d0] sm:$0xff] %v1112_v58  ;;  %v1240_v58 = vld [vmem:[%s5184_s11 + $0x1cd0] sm:$0xff] }
 0x1cf   : > { %1115 = vst [vmem:[%s5189_s12 + $0x3d8] sm:$0xff] %v1114_v59  ;;  %v1242_v59 = vld [vmem:[%s5184_s11 + $0x1cd8] sm:$0xff] }
 0x1d0   : > { %1117 = vst [vmem:[%s5189_s12 + $0x3e0] sm:$0xff] %v1116_v60  ;;  %v1244_v60 = vld [vmem:[%s5184_s11 + $0x1d60] sm:$0xff] }
 0x1d1   : > { %1119 = vst [vmem:[%s5189_s12 + $0x3e8] sm:$0xff] %v1118_v61  ;;  %v1246_v61 = vld [vmem:[%s5184_s11 + $0x1d68] sm:$0xff] }
 0x1d2   : > { %1121 = vst [vmem:[%s5189_s12 + $0x3f0] sm:$0xff] %v1120_v62  ;;  %v1248_v62 = vld [vmem:[%s5184_s11 + $0x1d70] sm:$0xff] }
 0x1d3   : > { %1123 = vst [vmem:[%s5189_s12 + $0x3f8] sm:$0xff] %v1122_v63  ;;  %v1250_v63 = vld [vmem:[%s5184_s11 + $0x1d78] sm:$0xff] }
 0x1d4   : > { %1125 = vst [vmem:[%s5189_s12 + $0x400] sm:$0xff] %v1124_v0  ;;  %v1252_v0 = vld [vmem:[%s5184_s11 + $0x1e00] sm:$0xff] }
 0x1d5   : > { %1127 = vst [vmem:[%s5189_s12 + $0x408] sm:$0xff] %v1126_v1  ;;  %v1254_v1 = vld [vmem:[%s5184_s11 + $0x1e08] sm:$0xff] }
 0x1d6   : > { %1129 = vst [vmem:[%s5189_s12 + $0x410] sm:$0xff] %v1128_v2  ;;  %v1256_v2 = vld [vmem:[%s5184_s11 + $0x1e10] sm:$0xff] }
 0x1d7   : > { %1131 = vst [vmem:[%s5189_s12 + $0x418] sm:$0xff] %v1130_v3  ;;  %v1258_v3 = vld [vmem:[%s5184_s11 + $0x1e18] sm:$0xff] }
 0x1d8   : > { %1133 = vst [vmem:[%s5189_s12 + $0x420] sm:$0xff] %v1132_v4  ;;  %v1260_v4 = vld [vmem:[%s5184_s11 + $0x1ea0] sm:$0xff] }
 0x1d9   : > { %1135 = vst [vmem:[%s5189_s12 + $0x428] sm:$0xff] %v1134_v5  ;;  %v1262_v5 = vld [vmem:[%s5184_s11 + $0x1ea8] sm:$0xff] }
 0x1da   : > { %1137 = vst [vmem:[%s5189_s12 + $0x430] sm:$0xff] %v1136_v6  ;;  %v1264_v6 = vld [vmem:[%s5184_s11 + $0x1eb0] sm:$0xff] }
 0x1db   : > { %1139 = vst [vmem:[%s5189_s12 + $0x438] sm:$0xff] %v1138_v7  ;;  %v1266_v7 = vld [vmem:[%s5184_s11 + $0x1eb8] sm:$0xff] }
 0x1dc   : > { %1141 = vst [vmem:[%s5189_s12 + $0x440] sm:$0xff] %v1140_v8  ;;  %v1268_v8 = vld [vmem:[%s5184_s11 + $0x1f40] sm:$0xff] }
 0x1dd   : > { %1143 = vst [vmem:[%s5189_s12 + $0x448] sm:$0xff] %v1142_v9  ;;  %v1270_v9 = vld [vmem:[%s5184_s11 + $0x1f48] sm:$0xff] }
 0x1de   : > { %1145 = vst [vmem:[%s5189_s12 + $0x450] sm:$0xff] %v1144_v10  ;;  %v1272_v10 = vld [vmem:[%s5184_s11 + $0x1f50] sm:$0xff] }
 0x1df   : > { %1147 = vst [vmem:[%s5189_s12 + $0x458] sm:$0xff] %v1146_v11  ;;  %v1274_v11 = vld [vmem:[%s5184_s11 + $0x1f58] sm:$0xff] }
 0x1e0   : > { %1149 = vst [vmem:[%s5189_s12 + $0x460] sm:$0xff] %v1148_v12  ;;  %v1276_v12 = vld [vmem:[%s5184_s11 + $0x1fe0] sm:$0xff] }
 0x1e1   : > { %1151 = vst [vmem:[%s5189_s12 + $0x468] sm:$0xff] %v1150_v13  ;;  %v1278_v13 = vld [vmem:[%s5184_s11 + $0x1fe8] sm:$0xff] }
 0x1e2   : > { %1153 = vst [vmem:[%s5189_s12 + $0x470] sm:$0xff] %v1152_v14  ;;  %v1280_v14 = vld [vmem:[%s5184_s11 + $0x1ff0] sm:$0xff] }
 0x1e3   : > { %1155 = vst [vmem:[%s5189_s12 + $0x478] sm:$0xff] %v1154_v15  ;;  %v1282_v15 = vld [vmem:[%s5184_s11 + $0x1ff8] sm:$0xff] }
 0x1e4   : > { %1157 = vst [vmem:[%s5189_s12 + $0x480] sm:$0xff] %v1156_v16  ;;  %v1284_v16 = vld [vmem:[%s5184_s11 + $0x2080] sm:$0xff] }
 0x1e5   : > { %1159 = vst [vmem:[%s5189_s12 + $0x488] sm:$0xff] %v1158_v17  ;;  %v1286_v17 = vld [vmem:[%s5184_s11 + $0x2088] sm:$0xff] }
 0x1e6   : > { %1161 = vst [vmem:[%s5189_s12 + $0x490] sm:$0xff] %v1160_v18  ;;  %v1288_v18 = vld [vmem:[%s5184_s11 + $0x2090] sm:$0xff] }
 0x1e7   : > { %1163 = vst [vmem:[%s5189_s12 + $0x498] sm:$0xff] %v1162_v19  ;;  %v1290_v19 = vld [vmem:[%s5184_s11 + $0x2098] sm:$0xff] }
 0x1e8   : > { %1165 = vst [vmem:[%s5189_s12 + $0x4a0] sm:$0xff] %v1164_v20  ;;  %v1292_v20 = vld [vmem:[%s5184_s11 + $0x2120] sm:$0xff] }
 0x1e9   : > { %1167 = vst [vmem:[%s5189_s12 + $0x4a8] sm:$0xff] %v1166_v21  ;;  %v1294_v21 = vld [vmem:[%s5184_s11 + $0x2128] sm:$0xff] }
 0x1ea   : > { %1169 = vst [vmem:[%s5189_s12 + $0x4b0] sm:$0xff] %v1168_v22  ;;  %v1296_v22 = vld [vmem:[%s5184_s11 + $0x2130] sm:$0xff] }
 0x1eb   : > { %1171 = vst [vmem:[%s5189_s12 + $0x4b8] sm:$0xff] %v1170_v23  ;;  %v1298_v23 = vld [vmem:[%s5184_s11 + $0x2138] sm:$0xff] }
 0x1ec   : > { %1173 = vst [vmem:[%s5189_s12 + $0x4c0] sm:$0xff] %v1172_v24  ;;  %v1300_v24 = vld [vmem:[%s5184_s11 + $0x21c0] sm:$0xff] }
 0x1ed   : > { %1175 = vst [vmem:[%s5189_s12 + $0x4c8] sm:$0xff] %v1174_v25  ;;  %v1302_v25 = vld [vmem:[%s5184_s11 + $0x21c8] sm:$0xff] }
 0x1ee   : > { %1177 = vst [vmem:[%s5189_s12 + $0x4d0] sm:$0xff] %v1176_v26  ;;  %v1304_v26 = vld [vmem:[%s5184_s11 + $0x21d0] sm:$0xff] }
 0x1ef   : > { %1179 = vst [vmem:[%s5189_s12 + $0x4d8] sm:$0xff] %v1178_v27  ;;  %v1306_v27 = vld [vmem:[%s5184_s11 + $0x21d8] sm:$0xff] }
 0x1f0   : > { %1181 = vst [vmem:[%s5189_s12 + $0x4e0] sm:$0xff] %v1180_v28  ;;  %v1308_v28 = vld [vmem:[%s5184_s11 + $0x2260] sm:$0xff] }
 0x1f1   : > { %1183 = vst [vmem:[%s5189_s12 + $0x4e8] sm:$0xff] %v1182_v29  ;;  %v1310_v29 = vld [vmem:[%s5184_s11 + $0x2268] sm:$0xff] }
 0x1f2   : > { %1185 = vst [vmem:[%s5189_s12 + $0x4f0] sm:$0xff] %v1184_v30  ;;  %v1312_v30 = vld [vmem:[%s5184_s11 + $0x2270] sm:$0xff] }
 0x1f3   : > { %1187 = vst [vmem:[%s5189_s12 + $0x4f8] sm:$0xff] %v1186_v31  ;;  %v1314_v31 = vld [vmem:[%s5184_s11 + $0x2278] sm:$0xff] }
 0x1f4   : > { %1189 = vst [vmem:[%s5189_s12 + $0x500] sm:$0xff] %v1188_v32  ;;  %v1316_v32 = vld [vmem:[%s5184_s11 + $0x2300] sm:$0xff] }
 0x1f5   : > { %1191 = vst [vmem:[%s5189_s12 + $0x508] sm:$0xff] %v1190_v33  ;;  %v1318_v33 = vld [vmem:[%s5184_s11 + $0x2308] sm:$0xff] }
 0x1f6   : > { %1193 = vst [vmem:[%s5189_s12 + $0x510] sm:$0xff] %v1192_v34  ;;  %v1320_v34 = vld [vmem:[%s5184_s11 + $0x2310] sm:$0xff] }
 0x1f7   : > { %1195 = vst [vmem:[%s5189_s12 + $0x518] sm:$0xff] %v1194_v35  ;;  %v1322_v35 = vld [vmem:[%s5184_s11 + $0x2318] sm:$0xff] }
 0x1f8   : > { %1197 = vst [vmem:[%s5189_s12 + $0x520] sm:$0xff] %v1196_v36  ;;  %v1324_v36 = vld [vmem:[%s5184_s11 + $0x23a0] sm:$0xff] }
 0x1f9   : > { %1199 = vst [vmem:[%s5189_s12 + $0x528] sm:$0xff] %v1198_v37  ;;  %v1326_v37 = vld [vmem:[%s5184_s11 + $0x23a8] sm:$0xff] }
 0x1fa   : > { %1201 = vst [vmem:[%s5189_s12 + $0x530] sm:$0xff] %v1200_v38  ;;  %v1328_v38 = vld [vmem:[%s5184_s11 + $0x23b0] sm:$0xff] }
 0x1fb   : > { %1203 = vst [vmem:[%s5189_s12 + $0x538] sm:$0xff] %v1202_v39  ;;  %v1330_v39 = vld [vmem:[%s5184_s11 + $0x23b8] sm:$0xff] }
 0x1fc   : > { %1205 = vst [vmem:[%s5189_s12 + $0x540] sm:$0xff] %v1204_v40  ;;  %v1332_v40 = vld [vmem:[%s5184_s11 + $0x2440] sm:$0xff] }
 0x1fd   : > { %1207 = vst [vmem:[%s5189_s12 + $0x548] sm:$0xff] %v1206_v41  ;;  %v1334_v41 = vld [vmem:[%s5184_s11 + $0x2448] sm:$0xff] }
 0x1fe   : > { %1209 = vst [vmem:[%s5189_s12 + $0x550] sm:$0xff] %v1208_v42  ;;  %v1336_v42 = vld [vmem:[%s5184_s11 + $0x2450] sm:$0xff] }
 0x1ff   : > { %1211 = vst [vmem:[%s5189_s12 + $0x558] sm:$0xff] %v1210_v43  ;;  %v1338_v43 = vld [vmem:[%s5184_s11 + $0x2458] sm:$0xff] }
 0x200   : > { %1213 = vst [vmem:[%s5189_s12 + $0x560] sm:$0xff] %v1212_v44  ;;  %v1340_v44 = vld [vmem:[%s5184_s11 + $0x24e0] sm:$0xff] }
 0x201   : > { %1215 = vst [vmem:[%s5189_s12 + $0x568] sm:$0xff] %v1214_v45  ;;  %v1342_v45 = vld [vmem:[%s5184_s11 + $0x24e8] sm:$0xff] }
 0x202   : > { %1217 = vst [vmem:[%s5189_s12 + $0x570] sm:$0xff] %v1216_v46  ;;  %v1344_v46 = vld [vmem:[%s5184_s11 + $0x24f0] sm:$0xff] }
 0x203   : > { %1219 = vst [vmem:[%s5189_s12 + $0x578] sm:$0xff] %v1218_v47  ;;  %v1346_v47 = vld [vmem:[%s5184_s11 + $0x24f8] sm:$0xff] }
 0x204   : > { %1221 = vst [vmem:[%s5189_s12 + $0x580] sm:$0xff] %v1220_v48  ;;  %v1348_v48 = vld [vmem:[%s5184_s11 + $0x2580] sm:$0xff] }
 0x205   : > { %1223 = vst [vmem:[%s5189_s12 + $0x588] sm:$0xff] %v1222_v49  ;;  %v1350_v49 = vld [vmem:[%s5184_s11 + $0x2588] sm:$0xff] }
 0x206   : > { %1225 = vst [vmem:[%s5189_s12 + $0x590] sm:$0xff] %v1224_v50  ;;  %v1352_v50 = vld [vmem:[%s5184_s11 + $0x2590] sm:$0xff] }
 0x207   : > { %1227 = vst [vmem:[%s5189_s12 + $0x598] sm:$0xff] %v1226_v51  ;;  %v1354_v51 = vld [vmem:[%s5184_s11 + $0x2598] sm:$0xff] }
 0x208   : > { %1229 = vst [vmem:[%s5189_s12 + $0x5a0] sm:$0xff] %v1228_v52  ;;  %v1356_v52 = vld [vmem:[%s5184_s11 + $0x2620] sm:$0xff] }
 0x209   : > { %1231 = vst [vmem:[%s5189_s12 + $0x5a8] sm:$0xff] %v1230_v53  ;;  %v1358_v53 = vld [vmem:[%s5184_s11 + $0x2628] sm:$0xff] }
 0x20a   : > { %1233 = vst [vmem:[%s5189_s12 + $0x5b0] sm:$0xff] %v1232_v54  ;;  %v1360_v54 = vld [vmem:[%s5184_s11 + $0x2630] sm:$0xff] }
 0x20b   : > { %1235 = vst [vmem:[%s5189_s12 + $0x5b8] sm:$0xff] %v1234_v55  ;;  %v1362_v55 = vld [vmem:[%s5184_s11 + $0x2638] sm:$0xff] }
 0x20c   : > { %1237 = vst [vmem:[%s5189_s12 + $0x5c0] sm:$0xff] %v1236_v56  ;;  %v1364_v56 = vld [vmem:[%s5184_s11 + $0x26c0] sm:$0xff] }
 0x20d   : > { %1239 = vst [vmem:[%s5189_s12 + $0x5c8] sm:$0xff] %v1238_v57  ;;  %v1366_v57 = vld [vmem:[%s5184_s11 + $0x26c8] sm:$0xff] }
 0x20e   : > { %1241 = vst [vmem:[%s5189_s12 + $0x5d0] sm:$0xff] %v1240_v58  ;;  %v1368_v58 = vld [vmem:[%s5184_s11 + $0x26d0] sm:$0xff] }
 0x20f   : > { %1243 = vst [vmem:[%s5189_s12 + $0x5d8] sm:$0xff] %v1242_v59  ;;  %v1370_v59 = vld [vmem:[%s5184_s11 + $0x26d8] sm:$0xff] }
 0x210   : > { %1245 = vst [vmem:[%s5189_s12 + $0x5e0] sm:$0xff] %v1244_v60  ;;  %v1372_v60 = vld [vmem:[%s5184_s11 + $0x2760] sm:$0xff] }
 0x211   : > { %1247 = vst [vmem:[%s5189_s12 + $0x5e8] sm:$0xff] %v1246_v61  ;;  %v1374_v61 = vld [vmem:[%s5184_s11 + $0x2768] sm:$0xff] }
 0x212   : > { %1249 = vst [vmem:[%s5189_s12 + $0x5f0] sm:$0xff] %v1248_v62  ;;  %v1376_v62 = vld [vmem:[%s5184_s11 + $0x2770] sm:$0xff] }
 0x213   : > { %1251 = vst [vmem:[%s5189_s12 + $0x5f8] sm:$0xff] %v1250_v63  ;;  %v1378_v63 = vld [vmem:[%s5184_s11 + $0x2778] sm:$0xff] }
 0x214   : > { %1253 = vst [vmem:[%s5189_s12 + $0x600] sm:$0xff] %v1252_v0  ;;  %v1380_v0 = vld [vmem:[%s5184_s11 + $0x2800] sm:$0xff] }
 0x215   : > { %1255 = vst [vmem:[%s5189_s12 + $0x608] sm:$0xff] %v1254_v1  ;;  %v1382_v1 = vld [vmem:[%s5184_s11 + $0x2808] sm:$0xff] }
 0x216   : > { %1257 = vst [vmem:[%s5189_s12 + $0x610] sm:$0xff] %v1256_v2  ;;  %v1384_v2 = vld [vmem:[%s5184_s11 + $0x2810] sm:$0xff] }
 0x217   : > { %1259 = vst [vmem:[%s5189_s12 + $0x618] sm:$0xff] %v1258_v3  ;;  %v1386_v3 = vld [vmem:[%s5184_s11 + $0x2818] sm:$0xff] }
 0x218   : > { %1261 = vst [vmem:[%s5189_s12 + $0x620] sm:$0xff] %v1260_v4  ;;  %v1388_v4 = vld [vmem:[%s5184_s11 + $0x28a0] sm:$0xff] }
 0x219   : > { %1263 = vst [vmem:[%s5189_s12 + $0x628] sm:$0xff] %v1262_v5  ;;  %v1390_v5 = vld [vmem:[%s5184_s11 + $0x28a8] sm:$0xff] }
 0x21a   : > { %1265 = vst [vmem:[%s5189_s12 + $0x630] sm:$0xff] %v1264_v6  ;;  %v1392_v6 = vld [vmem:[%s5184_s11 + $0x28b0] sm:$0xff] }
 0x21b   : > { %1267 = vst [vmem:[%s5189_s12 + $0x638] sm:$0xff] %v1266_v7  ;;  %v1394_v7 = vld [vmem:[%s5184_s11 + $0x28b8] sm:$0xff] }
 0x21c   : > { %1269 = vst [vmem:[%s5189_s12 + $0x640] sm:$0xff] %v1268_v8  ;;  %v1396_v8 = vld [vmem:[%s5184_s11 + $0x2940] sm:$0xff] }
 0x21d   : > { %1271 = vst [vmem:[%s5189_s12 + $0x648] sm:$0xff] %v1270_v9  ;;  %v1398_v9 = vld [vmem:[%s5184_s11 + $0x2948] sm:$0xff] }
 0x21e   : > { %1273 = vst [vmem:[%s5189_s12 + $0x650] sm:$0xff] %v1272_v10  ;;  %v1400_v10 = vld [vmem:[%s5184_s11 + $0x2950] sm:$0xff] }
 0x21f   : > { %1275 = vst [vmem:[%s5189_s12 + $0x658] sm:$0xff] %v1274_v11  ;;  %v1402_v11 = vld [vmem:[%s5184_s11 + $0x2958] sm:$0xff] }
 0x220   : > { %1277 = vst [vmem:[%s5189_s12 + $0x660] sm:$0xff] %v1276_v12  ;;  %v1404_v12 = vld [vmem:[%s5184_s11 + $0x29e0] sm:$0xff] }
 0x221   : > { %1279 = vst [vmem:[%s5189_s12 + $0x668] sm:$0xff] %v1278_v13  ;;  %v1406_v13 = vld [vmem:[%s5184_s11 + $0x29e8] sm:$0xff] }
 0x222   : > { %1281 = vst [vmem:[%s5189_s12 + $0x670] sm:$0xff] %v1280_v14  ;;  %v1408_v14 = vld [vmem:[%s5184_s11 + $0x29f0] sm:$0xff] }
 0x223   : > { %1283 = vst [vmem:[%s5189_s12 + $0x678] sm:$0xff] %v1282_v15  ;;  %v1410_v15 = vld [vmem:[%s5184_s11 + $0x29f8] sm:$0xff] }
 0x224   : > { %1285 = vst [vmem:[%s5189_s12 + $0x680] sm:$0xff] %v1284_v16  ;;  %v1412_v16 = vld [vmem:[%s5184_s11 + $0x2a80] sm:$0xff] }
 0x225   : > { %1287 = vst [vmem:[%s5189_s12 + $0x688] sm:$0xff] %v1286_v17  ;;  %v1414_v17 = vld [vmem:[%s5184_s11 + $0x2a88] sm:$0xff] }
 0x226   : > { %1289 = vst [vmem:[%s5189_s12 + $0x690] sm:$0xff] %v1288_v18  ;;  %v1416_v18 = vld [vmem:[%s5184_s11 + $0x2a90] sm:$0xff] }
 0x227   : > { %1291 = vst [vmem:[%s5189_s12 + $0x698] sm:$0xff] %v1290_v19  ;;  %v1418_v19 = vld [vmem:[%s5184_s11 + $0x2a98] sm:$0xff] }
 0x228   : > { %1293 = vst [vmem:[%s5189_s12 + $0x6a0] sm:$0xff] %v1292_v20  ;;  %v1420_v20 = vld [vmem:[%s5184_s11 + $0x2b20] sm:$0xff] }
 0x229   : > { %1295 = vst [vmem:[%s5189_s12 + $0x6a8] sm:$0xff] %v1294_v21  ;;  %v1422_v21 = vld [vmem:[%s5184_s11 + $0x2b28] sm:$0xff] }
 0x22a   : > { %1297 = vst [vmem:[%s5189_s12 + $0x6b0] sm:$0xff] %v1296_v22  ;;  %v1424_v22 = vld [vmem:[%s5184_s11 + $0x2b30] sm:$0xff] }
 0x22b   : > { %1299 = vst [vmem:[%s5189_s12 + $0x6b8] sm:$0xff] %v1298_v23  ;;  %v1426_v23 = vld [vmem:[%s5184_s11 + $0x2b38] sm:$0xff] }
 0x22c   : > { %1301 = vst [vmem:[%s5189_s12 + $0x6c0] sm:$0xff] %v1300_v24  ;;  %v1428_v24 = vld [vmem:[%s5184_s11 + $0x2bc0] sm:$0xff] }
 0x22d   : > { %1303 = vst [vmem:[%s5189_s12 + $0x6c8] sm:$0xff] %v1302_v25  ;;  %v1430_v25 = vld [vmem:[%s5184_s11 + $0x2bc8] sm:$0xff] }
 0x22e   : > { %1305 = vst [vmem:[%s5189_s12 + $0x6d0] sm:$0xff] %v1304_v26  ;;  %v1432_v26 = vld [vmem:[%s5184_s11 + $0x2bd0] sm:$0xff] }
 0x22f   : > { %1307 = vst [vmem:[%s5189_s12 + $0x6d8] sm:$0xff] %v1306_v27  ;;  %v1434_v27 = vld [vmem:[%s5184_s11 + $0x2bd8] sm:$0xff] }
 0x230   : > { %1309 = vst [vmem:[%s5189_s12 + $0x6e0] sm:$0xff] %v1308_v28  ;;  %v1436_v28 = vld [vmem:[%s5184_s11 + $0x2c60] sm:$0xff] }
 0x231   : > { %1311 = vst [vmem:[%s5189_s12 + $0x6e8] sm:$0xff] %v1310_v29  ;;  %v1438_v29 = vld [vmem:[%s5184_s11 + $0x2c68] sm:$0xff] }
 0x232   : > { %1313 = vst [vmem:[%s5189_s12 + $0x6f0] sm:$0xff] %v1312_v30  ;;  %v1440_v30 = vld [vmem:[%s5184_s11 + $0x2c70] sm:$0xff] }
 0x233   : > { %1315 = vst [vmem:[%s5189_s12 + $0x6f8] sm:$0xff] %v1314_v31  ;;  %v1442_v31 = vld [vmem:[%s5184_s11 + $0x2c78] sm:$0xff] }
 0x234   : > { %1317 = vst [vmem:[%s5189_s12 + $0x700] sm:$0xff] %v1316_v32  ;;  %v1444_v32 = vld [vmem:[%s5184_s11 + $0x2d00] sm:$0xff] }
 0x235   : > { %1319 = vst [vmem:[%s5189_s12 + $0x708] sm:$0xff] %v1318_v33  ;;  %v1446_v33 = vld [vmem:[%s5184_s11 + $0x2d08] sm:$0xff] }
 0x236   : > { %1321 = vst [vmem:[%s5189_s12 + $0x710] sm:$0xff] %v1320_v34  ;;  %v1448_v34 = vld [vmem:[%s5184_s11 + $0x2d10] sm:$0xff] }
 0x237   : > { %1323 = vst [vmem:[%s5189_s12 + $0x718] sm:$0xff] %v1322_v35  ;;  %v1450_v35 = vld [vmem:[%s5184_s11 + $0x2d18] sm:$0xff] }
 0x238   : > { %1325 = vst [vmem:[%s5189_s12 + $0x720] sm:$0xff] %v1324_v36  ;;  %v1452_v36 = vld [vmem:[%s5184_s11 + $0x2da0] sm:$0xff] }
 0x239   : > { %1327 = vst [vmem:[%s5189_s12 + $0x728] sm:$0xff] %v1326_v37  ;;  %v1454_v37 = vld [vmem:[%s5184_s11 + $0x2da8] sm:$0xff] }
 0x23a   : > { %1329 = vst [vmem:[%s5189_s12 + $0x730] sm:$0xff] %v1328_v38  ;;  %v1456_v38 = vld [vmem:[%s5184_s11 + $0x2db0] sm:$0xff] }
 0x23b   : > { %1331 = vst [vmem:[%s5189_s12 + $0x738] sm:$0xff] %v1330_v39  ;;  %v1458_v39 = vld [vmem:[%s5184_s11 + $0x2db8] sm:$0xff] }
 0x23c   : > { %1333 = vst [vmem:[%s5189_s12 + $0x740] sm:$0xff] %v1332_v40  ;;  %v1460_v40 = vld [vmem:[%s5184_s11 + $0x2e40] sm:$0xff] }
 0x23d   : > { %1335 = vst [vmem:[%s5189_s12 + $0x748] sm:$0xff] %v1334_v41  ;;  %v1462_v41 = vld [vmem:[%s5184_s11 + $0x2e48] sm:$0xff] }
 0x23e   : > { %1337 = vst [vmem:[%s5189_s12 + $0x750] sm:$0xff] %v1336_v42  ;;  %v1464_v42 = vld [vmem:[%s5184_s11 + $0x2e50] sm:$0xff] }
 0x23f   : > { %1339 = vst [vmem:[%s5189_s12 + $0x758] sm:$0xff] %v1338_v43  ;;  %v1466_v43 = vld [vmem:[%s5184_s11 + $0x2e58] sm:$0xff] }
 0x240   : > { %1341 = vst [vmem:[%s5189_s12 + $0x760] sm:$0xff] %v1340_v44  ;;  %v1468_v44 = vld [vmem:[%s5184_s11 + $0x2ee0] sm:$0xff] }
 0x241   : > { %1343 = vst [vmem:[%s5189_s12 + $0x768] sm:$0xff] %v1342_v45  ;;  %v1470_v45 = vld [vmem:[%s5184_s11 + $0x2ee8] sm:$0xff] }
 0x242   : > { %1345 = vst [vmem:[%s5189_s12 + $0x770] sm:$0xff] %v1344_v46  ;;  %v1472_v46 = vld [vmem:[%s5184_s11 + $0x2ef0] sm:$0xff] }
 0x243   : > { %1347 = vst [vmem:[%s5189_s12 + $0x778] sm:$0xff] %v1346_v47  ;;  %v1474_v47 = vld [vmem:[%s5184_s11 + $0x2ef8] sm:$0xff] }
 0x244   : > { %1349 = vst [vmem:[%s5189_s12 + $0x780] sm:$0xff] %v1348_v48  ;;  %v1476_v48 = vld [vmem:[%s5184_s11 + $0x2f80] sm:$0xff] }
 0x245   : > { %1351 = vst [vmem:[%s5189_s12 + $0x788] sm:$0xff] %v1350_v49  ;;  %v1478_v49 = vld [vmem:[%s5184_s11 + $0x2f88] sm:$0xff] }
 0x246   : > { %1353 = vst [vmem:[%s5189_s12 + $0x790] sm:$0xff] %v1352_v50  ;;  %v1480_v50 = vld [vmem:[%s5184_s11 + $0x2f90] sm:$0xff] }
 0x247   : > { %1355 = vst [vmem:[%s5189_s12 + $0x798] sm:$0xff] %v1354_v51  ;;  %v1482_v51 = vld [vmem:[%s5184_s11 + $0x2f98] sm:$0xff] }
 0x248   : > { %1357 = vst [vmem:[%s5189_s12 + $0x7a0] sm:$0xff] %v1356_v52  ;;  %v1484_v52 = vld [vmem:[%s5184_s11 + $0x3020] sm:$0xff] }
 0x249   : > { %1359 = vst [vmem:[%s5189_s12 + $0x7a8] sm:$0xff] %v1358_v53  ;;  %v1486_v53 = vld [vmem:[%s5184_s11 + $0x3028] sm:$0xff] }
 0x24a   : > { %1361 = vst [vmem:[%s5189_s12 + $0x7b0] sm:$0xff] %v1360_v54  ;;  %v1488_v54 = vld [vmem:[%s5184_s11 + $0x3030] sm:$0xff] }
 0x24b   : > { %1363 = vst [vmem:[%s5189_s12 + $0x7b8] sm:$0xff] %v1362_v55  ;;  %v1490_v55 = vld [vmem:[%s5184_s11 + $0x3038] sm:$0xff] }
 0x24c   : > { %1365 = vst [vmem:[%s5189_s12 + $0x7c0] sm:$0xff] %v1364_v56  ;;  %v1492_v56 = vld [vmem:[%s5184_s11 + $0x30c0] sm:$0xff] }
 0x24d   : > { %1367 = vst [vmem:[%s5189_s12 + $0x7c8] sm:$0xff] %v1366_v57  ;;  %v1494_v57 = vld [vmem:[%s5184_s11 + $0x30c8] sm:$0xff] }
 0x24e   : > { %1369 = vst [vmem:[%s5189_s12 + $0x7d0] sm:$0xff] %v1368_v58  ;;  %v1496_v58 = vld [vmem:[%s5184_s11 + $0x30d0] sm:$0xff] }
 0x24f   : > { %1371 = vst [vmem:[%s5189_s12 + $0x7d8] sm:$0xff] %v1370_v59  ;;  %v1498_v59 = vld [vmem:[%s5184_s11 + $0x30d8] sm:$0xff] }
 0x250   : > { %1373 = vst [vmem:[%s5189_s12 + $0x7e0] sm:$0xff] %v1372_v60  ;;  %v1500_v60 = vld [vmem:[%s5184_s11 + $0x3160] sm:$0xff] }
 0x251   : > { %1375 = vst [vmem:[%s5189_s12 + $0x7e8] sm:$0xff] %v1374_v61  ;;  %v1502_v61 = vld [vmem:[%s5184_s11 + $0x3168] sm:$0xff] }
 0x252   : > { %1377 = vst [vmem:[%s5189_s12 + $0x7f0] sm:$0xff] %v1376_v62  ;;  %v1504_v62 = vld [vmem:[%s5184_s11 + $0x3170] sm:$0xff] }
 0x253   : > { %1379 = vst [vmem:[%s5189_s12 + $0x7f8] sm:$0xff] %v1378_v63  ;;  %v1506_v63 = vld [vmem:[%s5184_s11 + $0x3178] sm:$0xff] }
 0x254   : > { %1381 = vst [vmem:[%s5189_s12 + $0x800] sm:$0xff] %v1380_v0 }
 0x255   : > { %1383 = vst [vmem:[%s5189_s12 + $0x808] sm:$0xff] %v1382_v1 }
 0x256   : > { %1385 = vst [vmem:[%s5189_s12 + $0x810] sm:$0xff] %v1384_v2 }
 0x257   : > { %1387 = vst [vmem:[%s5189_s12 + $0x818] sm:$0xff] %v1386_v3 }
 0x258   : > { %1389 = vst [vmem:[%s5189_s12 + $0x820] sm:$0xff] %v1388_v4 }
 0x259   : > { %1391 = vst [vmem:[%s5189_s12 + $0x828] sm:$0xff] %v1390_v5 }
 0x25a   : > { %1393 = vst [vmem:[%s5189_s12 + $0x830] sm:$0xff] %v1392_v6 }
 0x25b   : > { %1395 = vst [vmem:[%s5189_s12 + $0x838] sm:$0xff] %v1394_v7 }
 0x25c   : > { %1397 = vst [vmem:[%s5189_s12 + $0x840] sm:$0xff] %v1396_v8 }
 0x25d   : > { %1399 = vst [vmem:[%s5189_s12 + $0x848] sm:$0xff] %v1398_v9 }
 0x25e   : > { %1401 = vst [vmem:[%s5189_s12 + $0x850] sm:$0xff] %v1400_v10 }
 0x25f   : > { %1403 = vst [vmem:[%s5189_s12 + $0x858] sm:$0xff] %v1402_v11 }
 0x260   : > { %1405 = vst [vmem:[%s5189_s12 + $0x860] sm:$0xff] %v1404_v12 }
 0x261   : > { %1407 = vst [vmem:[%s5189_s12 + $0x868] sm:$0xff] %v1406_v13 }
 0x262   : > { %1409 = vst [vmem:[%s5189_s12 + $0x870] sm:$0xff] %v1408_v14 }
 0x263   : > { %1411 = vst [vmem:[%s5189_s12 + $0x878] sm:$0xff] %v1410_v15 }
 0x264   : > { %1413 = vst [vmem:[%s5189_s12 + $0x880] sm:$0xff] %v1412_v16 }
 0x265   : > { %1415 = vst [vmem:[%s5189_s12 + $0x888] sm:$0xff] %v1414_v17 }
 0x266   : > { %1417 = vst [vmem:[%s5189_s12 + $0x890] sm:$0xff] %v1416_v18 }
 0x267   : > { %1419 = vst [vmem:[%s5189_s12 + $0x898] sm:$0xff] %v1418_v19 }
 0x268   : > { %1421 = vst [vmem:[%s5189_s12 + $0x8a0] sm:$0xff] %v1420_v20 }
 0x269   : > { %1423 = vst [vmem:[%s5189_s12 + $0x8a8] sm:$0xff] %v1422_v21 }
 0x26a   : > { %1425 = vst [vmem:[%s5189_s12 + $0x8b0] sm:$0xff] %v1424_v22 }
 0x26b   : > { %1427 = vst [vmem:[%s5189_s12 + $0x8b8] sm:$0xff] %v1426_v23 }
 0x26c   : > { %1429 = vst [vmem:[%s5189_s12 + $0x8c0] sm:$0xff] %v1428_v24 }
 0x26d   : > { %1431 = vst [vmem:[%s5189_s12 + $0x8c8] sm:$0xff] %v1430_v25 }
 0x26e   : > { %1433 = vst [vmem:[%s5189_s12 + $0x8d0] sm:$0xff] %v1432_v26 }
 0x26f   : > { %1435 = vst [vmem:[%s5189_s12 + $0x8d8] sm:$0xff] %v1434_v27 }
 0x270   : > { %1437 = vst [vmem:[%s5189_s12 + $0x8e0] sm:$0xff] %v1436_v28 }
 0x271   : > { %1439 = vst [vmem:[%s5189_s12 + $0x8e8] sm:$0xff] %v1438_v29 }
 0x272   : > { %1441 = vst [vmem:[%s5189_s12 + $0x8f0] sm:$0xff] %v1440_v30 }
 0x273   : > { %1443 = vst [vmem:[%s5189_s12 + $0x8f8] sm:$0xff] %v1442_v31 }
 0x274   : > { %1445 = vst [vmem:[%s5189_s12 + $0x900] sm:$0xff] %v1444_v32 }
 0x275   : > { %1447 = vst [vmem:[%s5189_s12 + $0x908] sm:$0xff] %v1446_v33 }
 0x276   : > { %1449 = vst [vmem:[%s5189_s12 + $0x910] sm:$0xff] %v1448_v34 }
 0x277   : > { %1451 = vst [vmem:[%s5189_s12 + $0x918] sm:$0xff] %v1450_v35 }
 0x278   : > { %1453 = vst [vmem:[%s5189_s12 + $0x920] sm:$0xff] %v1452_v36 }
 0x279   : > { %1455 = vst [vmem:[%s5189_s12 + $0x928] sm:$0xff] %v1454_v37 }
 0x27a   : > { %1457 = vst [vmem:[%s5189_s12 + $0x930] sm:$0xff] %v1456_v38 }
 0x27b   : > { %1459 = vst [vmem:[%s5189_s12 + $0x938] sm:$0xff] %v1458_v39 }
 0x27c   : > { %1461 = vst [vmem:[%s5189_s12 + $0x940] sm:$0xff] %v1460_v40 }
 0x27d   : > { %1463 = vst [vmem:[%s5189_s12 + $0x948] sm:$0xff] %v1462_v41 }
 0x27e   : > { %1465 = vst [vmem:[%s5189_s12 + $0x950] sm:$0xff] %v1464_v42 }
 0x27f   : > { %1467 = vst [vmem:[%s5189_s12 + $0x958] sm:$0xff] %v1466_v43 }
 0x280   : > { %1469 = vst [vmem:[%s5189_s12 + $0x960] sm:$0xff] %v1468_v44 }
 0x281   : > { %1471 = vst [vmem:[%s5189_s12 + $0x968] sm:$0xff] %v1470_v45 }
 0x282   : > { %1473 = vst [vmem:[%s5189_s12 + $0x970] sm:$0xff] %v1472_v46 }
 0x283   : > { %1475 = vst [vmem:[%s5189_s12 + $0x978] sm:$0xff] %v1474_v47 }
 0x284   : > { %1477 = vst [vmem:[%s5189_s12 + $0x980] sm:$0xff] %v1476_v48 }
 0x285   : > { %1479 = vst [vmem:[%s5189_s12 + $0x988] sm:$0xff] %v1478_v49 }
 0x286   : > { %1481 = vst [vmem:[%s5189_s12 + $0x990] sm:$0xff] %v1480_v50 }
 0x287   : > { %1483 = vst [vmem:[%s5189_s12 + $0x998] sm:$0xff] %v1482_v51 }
 0x288   : > { %1485 = vst [vmem:[%s5189_s12 + $0x9a0] sm:$0xff] %v1484_v52 }
 0x289   : > { %1487 = vst [vmem:[%s5189_s12 + $0x9a8] sm:$0xff] %v1486_v53 }
 0x28a   : > { %1489 = vst [vmem:[%s5189_s12 + $0x9b0] sm:$0xff] %v1488_v54 }
 0x28b   : > { %1491 = vst [vmem:[%s5189_s12 + $0x9b8] sm:$0xff] %v1490_v55 }
 0x28c   : > { %1493 = vst [vmem:[%s5189_s12 + $0x9c0] sm:$0xff] %v1492_v56 }
 0x28d   : > { %1495 = vst [vmem:[%s5189_s12 + $0x9c8] sm:$0xff] %v1494_v57 }
 0x28e   : > { %1497 = vst [vmem:[%s5189_s12 + $0x9d0] sm:$0xff] %v1496_v58 }
 0x28f   : > { %1499 = vst [vmem:[%s5189_s12 + $0x9d8] sm:$0xff] %v1498_v59 }
 0x290   : > { %1501 = vst [vmem:[%s5189_s12 + $0x9e0] sm:$0xff] %v1500_v60 }
 0x291   : > { %1503 = vst [vmem:[%s5189_s12 + $0x9e8] sm:$0xff] %v1502_v61 }
 0x292   : > { %1505 = vst [vmem:[%s5189_s12 + $0x9f0] sm:$0xff] %v1504_v62 }
 0x293   : > { %1507 = vst [vmem:[%s5189_s12 + $0x9f8] sm:$0xff] %v1506_v63 }
 0x294 PF: > { %p4310_p6 = scmp.ge.s32.totalorder %s4456_s19, 1  ;;  %p1522_p7 = scmp.lt.s32.totalorder %s4456_s19, 6 }
 0x296   : > { %p1523_p8 = pnand %p4310_p6, %p1522_p7 }
 0x297   : > { %s1529_s13 = sand.u32 (!%p1523_p8), 1, %s4440_s15   ;;  %s4311_s14 = sshll.u32 (!%p1523_p8), %s4448_s17, 6 }
 0x298   : > { %1526 = sbr.rel (%p1523_p8) target bundleno = 1478 (0x5c6), region = 74  ;;  %p1588_p9 = scmp.lt.s32.totalorder (!%p1523_p8), %s4311_s14, 319 }
 0x299   : > { %s4331_s21 = smul.u32 (!%p1523_p8), 2560, %s1529_s13  ;;  %p4313_p10 = scmp.ne.s32.totalorder (!%p1523_p8), %s4448_s17, 0 }
 0x29b   : > { %s5837_s27 = scalar_lea.vmem (!%p1523_p8), [#allocation3], %s4331_s21  ;;  %s5839_s28 = scalar_lea.vmem (!%p1523_p8), [#allocation4], %s4331_s21 }
 0x29d   : > { %s7407_s14 = smov (!%p1588_p9, %s4311_s14), 319  ;;  %1604 = sbr.rel (%p4313_p10) target bundleno = 685 (0x2ad), region = 86 }
 0x29e   : > { %s4332_s22 = smul.u32 40, %s7407_s14 }
 0x2a0   : > { %s5835_s26 = scalar_lea.vmem %s7381_s3, %s4332_s22 }
 0x2a2   : > { %v4458_v0 = vmov 0.0  }
 0x2a3   : > { %1605 = vst [vmem:[#allocation2 + $0x30] sm:$0xff] %v4458_v0 }
 0x2a4   : > { %1606 = vst [vmem:[#allocation2] sm:$0xff] %v4458_v0 }
 0x2a5   : > { %1607 = vst [vmem:[#allocation2 + $0x18] sm:$0xff] %v4458_v0 }
 0x2a6   : > { %1608 = vst [vmem:[#allocation2 + $0x10] sm:$0xff] %v4458_v0 }
 0x2a7   : > { %1609 = vst [vmem:[#allocation2 + $0x48] sm:$0xff] %v4458_v0 }
 0x2a8   : > { %1610 = vst [vmem:[#allocation2 + $0x28] sm:$0xff] %v4458_v0 }
 0x2a9   : > { %1611 = vst [vmem:[#allocation2 + $0x8] sm:$0xff] %v4458_v0 }
 0x2aa   : > { %1612 = vst [vmem:[#allocation2 + $0x20] sm:$0xff] %v4458_v0 }
 0x2ab   : > { %1613 = vst [vmem:[#allocation2 + $0x40] sm:$0xff] %v4458_v0 }
 0x2ac   : > { %1614 = vst [vmem:[#allocation2 + $0x38] sm:$0xff] %v4458_v0 }
 0x2ad PF: > { %v1685_v1 = vld [vmem:[%s5837_s27 + $0x1e0] sm:$0xff]  ;;  %v1750_v0 = vld [vmem:[%s5837_s27 + $0x3e8] sm:$0xff]  ;;  %p4322_p11 = scmp.ne.s32.totalorder %s4448_s17, 4 }
 0x2ae   : > { %v1813_v2 = vld [vmem:[%s5837_s27 + $0x5e0] sm:$0xff]  ;;  %1945 = vmatpush.msra.mxu0 %v1685_v1 }
 0x2af   : > { %v1681_v3 = vld [vmem:[%s5837_s27 + $0x1c0] sm:$0xff]  ;;  %1991 = vmatpush.msra.mxu2 %v1813_v2 }
 0x2b0   : > { %v1749_v4 = vld [vmem:[%s5837_s27 + $0x3e0] sm:$0xff]  ;;  %1946 = vmatpush.msra.mxu0 %v1681_v3 }
 0x2b1   : > { %v1809_v5 = vld [vmem:[%s5837_s27 + $0x5c0] sm:$0xff]  ;;  %1968 = vmatpush.msra.mxu1 %v1749_v4  ;;  %v1686_v4 = vld [vmem:[%s5837_s27 + $0x1e8] sm:$0xff] }
 0x2b2   : > { %v1877_v6 = vld [vmem:[%s5837_s27 + $0x7e0] sm:$0xff]  ;;  %1992 = vmatpush.msra.mxu2 %v1809_v5  ;;  %v1746_v5 = vld [vmem:[%s5837_s27 + $0x3c8] sm:$0xff] }
 0x2b3   : > { %2014 = vmatpush.msra.mxu3 %v1877_v6  ;;  %v1677_v7 = vld [vmem:[%s5837_s27 + $0x1a0] sm:$0xff]  ;;  %v1814_v6 = vld [vmem:[%s5837_s27 + $0x5e8] sm:$0xff] }
 0x2b4   : > { %v1745_v8 = vld [vmem:[%s5837_s27 + $0x3c0] sm:$0xff]  ;;  %1947 = vmatpush.msra.mxu0 %v1677_v7 }
 0x2b5   : > { %v1805_v9 = vld [vmem:[%s5837_s27 + $0x5a0] sm:$0xff]  ;;  %1969 = vmatpush.msra.mxu1 %v1745_v8  ;;  %v1682_v8 = vld [vmem:[%s5837_s27 + $0x1c8] sm:$0xff] }
 0x2b6   : > { %v1873_v10 = vld [vmem:[%s5837_s27 + $0x7c0] sm:$0xff]  ;;  %1993 = vmatpush.msra.mxu2 %v1805_v9  ;;  %v1742_v9 = vld [vmem:[%s5837_s27 + $0x3a8] sm:$0xff] }
 0x2b7   : > { %v1741_v11 = vld [vmem:[%s5837_s27 + $0x3a0] sm:$0xff]  ;;  %2015 = vmatpush.msra.mxu3 %v1873_v10  ;;  %v1810_v10 = vld [vmem:[%s5837_s27 + $0x5c8] sm:$0xff] }
 0x2b8   : > { %v1673_v12 = vld [vmem:[%s5837_s27 + $0x180] sm:$0xff]  ;;  %1970 = vmatpush.msra.mxu1 %v1741_v11 }
 0x2b9   : > { %v1801_v13 = vld [vmem:[%s5837_s27 + $0x580] sm:$0xff]  ;;  %1948 = vmatpush.msra.mxu0 %v1673_v12  ;;  %v1678_v12 = vld [vmem:[%s5837_s27 + $0x1a8] sm:$0xff] }
 0x2ba   : > { %v1869_v14 = vld [vmem:[%s5837_s27 + $0x7a0] sm:$0xff]  ;;  %1994 = vmatpush.msra.mxu2 %v1801_v13  ;;  %v1738_v13 = vld [vmem:[%s5837_s27 + $0x388] sm:$0xff] }
 0x2bb   : > { %v1737_v15 = vld [vmem:[%s5837_s27 + $0x380] sm:$0xff]  ;;  %2016 = vmatpush.msra.mxu3 %v1869_v14  ;;  %v1806_v14 = vld [vmem:[%s5837_s27 + $0x5a8] sm:$0xff] }
 0x2bc   : > { %v1865_v16 = vld [vmem:[%s5837_s27 + $0x780] sm:$0xff]  ;;  %1971 = vmatpush.msra.mxu1 %v1737_v15 }
 0x2bd   : > { %v1669_v17 = vld [vmem:[%s5837_s27 + $0x160] sm:$0xff]  ;;  %2017 = vmatpush.msra.mxu3 %v1865_v16  ;;  %v1674_v16 = vld [vmem:[%s5837_s27 + $0x188] sm:$0xff] }
 0x2be   : > { %v1797_v18 = vld [vmem:[%s5837_s27 + $0x560] sm:$0xff]  ;;  %1949 = vmatpush.msra.mxu0 %v1669_v17  ;;  %v1734_v17 = vld [vmem:[%s5837_s27 + $0x368] sm:$0xff] }
 0x2bf   : > { %v1733_v19 = vld [vmem:[%s5837_s27 + $0x360] sm:$0xff]  ;;  %1995 = vmatpush.msra.mxu2 %v1797_v18  ;;  %v1802_v18 = vld [vmem:[%s5837_s27 + $0x588] sm:$0xff] }
 0x2c0   : > { %v1861_v20 = vld [vmem:[%s5837_s27 + $0x760] sm:$0xff]  ;;  %1972 = vmatpush.msra.mxu1 %v1733_v19 }
 0x2c1   : > { %v1665_v21 = vld [vmem:[%s5837_s27 + $0x140] sm:$0xff]  ;;  %2018 = vmatpush.msra.mxu3 %v1861_v20  ;;  %v1670_v20 = vld [vmem:[%s5837_s27 + $0x168] sm:$0xff] }
 0x2c2   : > { %v1793_v22 = vld [vmem:[%s5837_s27 + $0x540] sm:$0xff]  ;;  %1950 = vmatpush.msra.mxu0 %v1665_v21  ;;  %v1730_v21 = vld [vmem:[%s5837_s27 + $0x348] sm:$0xff] }
 0x2c3   : > { %v1729_v23 = vld [vmem:[%s5837_s27 + $0x340] sm:$0xff]  ;;  %1996 = vmatpush.msra.mxu2 %v1793_v22  ;;  %v1798_v22 = vld [vmem:[%s5837_s27 + $0x568] sm:$0xff] }
 0x2c4   : > { %v1857_v24 = vld [vmem:[%s5837_s27 + $0x740] sm:$0xff]  ;;  %1973 = vmatpush.msra.mxu1 %v1729_v23 }
 0x2c5   : > { %v1661_v25 = vld [vmem:[%s5837_s27 + $0x120] sm:$0xff]  ;;  %2019 = vmatpush.msra.mxu3 %v1857_v24  ;;  %v1666_v24 = vld [vmem:[%s5837_s27 + $0x148] sm:$0xff] }
 0x2c6   : > { %v1789_v26 = vld [vmem:[%s5837_s27 + $0x520] sm:$0xff]  ;;  %1951 = vmatpush.msra.mxu0 %v1661_v25  ;;  %v1726_v25 = vld [vmem:[%s5837_s27 + $0x328] sm:$0xff] }
 0x2c7   : > { %v1725_v27 = vld [vmem:[%s5837_s27 + $0x320] sm:$0xff]  ;;  %1997 = vmatpush.msra.mxu2 %v1789_v26  ;;  %v1794_v26 = vld [vmem:[%s5837_s27 + $0x548] sm:$0xff] }
 0x2c8   : > { %v1853_v28 = vld [vmem:[%s5837_s27 + $0x720] sm:$0xff]  ;;  %1974 = vmatpush.msra.mxu1 %v1725_v27 }
 0x2c9   : > { %v1657_v29 = vld [vmem:[%s5837_s27 + $0x100] sm:$0xff]  ;;  %2020 = vmatpush.msra.mxu3 %v1853_v28  ;;  %v1662_v28 = vld [vmem:[%s5837_s27 + $0x128] sm:$0xff] }
 0x2ca   : > { %v1785_v30 = vld [vmem:[%s5837_s27 + $0x500] sm:$0xff]  ;;  %1952 = vmatpush.msra.mxu0 %v1657_v29  ;;  %v1722_v29 = vld [vmem:[%s5837_s27 + $0x308] sm:$0xff] }
 0x2cb   : > { %v1721_v31 = vld [vmem:[%s5837_s27 + $0x300] sm:$0xff]  ;;  %1998 = vmatpush.msra.mxu2 %v1785_v30  ;;  %v1790_v30 = vld [vmem:[%s5837_s27 + $0x528] sm:$0xff] }
 0x2cc   : > { %v1849_v32 = vld [vmem:[%s5837_s27 + $0x700] sm:$0xff]  ;;  %1975 = vmatpush.msra.mxu1 %v1721_v31  ;;  %v5939_v31 = vld [vmem:[%s7378_s0] sm:$0xff] }
 0x2cd   : > { %v1653_v33 = vld [vmem:[%s5837_s27 + $0xe0] sm:$0xff]  ;;  %2021 = vmatpush.msra.mxu3 %v1849_v32  ;;  %v1658_v32 = vld [vmem:[%s5837_s27 + $0x108] sm:$0xff] }
 0x2ce   : > { %v1781_v34 = vld [vmem:[%s5837_s27 + $0x4e0] sm:$0xff]  ;;  %1953 = vmatpush.msra.mxu0 %v1653_v33 }
 0x2cf   : > { %v1717_v35 = vld [vmem:[%s5837_s27 + $0x2e0] sm:$0xff]  ;;  %1999 = vmatpush.msra.mxu2 %v1781_v34  ;;  %v1718_v34 = vld [vmem:[%s5837_s27 + $0x2e8] sm:$0xff] }
 0x2d0   : > { %v1845_v36 = vld [vmem:[%s5837_s27 + $0x6e0] sm:$0xff]  ;;  %1976 = vmatpush.msra.mxu1 %v1717_v35  ;;  %v1786_v35 = vld [vmem:[%s5837_s27 + $0x508] sm:$0xff] }
 0x2d1   : > { %v1649_v37 = vld [vmem:[%s5837_s27 + $0xc0] sm:$0xff]  ;;  %2022 = vmatpush.msra.mxu3 %v1845_v36  ;;  %v1654_v36 = vld [vmem:[%s5837_s27 + $0xe8] sm:$0xff] }
 0x2d2   : > { %v1777_v38 = vld [vmem:[%s5837_s27 + $0x4c0] sm:$0xff]  ;;  %1954 = vmatpush.msra.mxu0 %v1649_v37 }
 0x2d3   : > { %v1713_v39 = vld [vmem:[%s5837_s27 + $0x2c0] sm:$0xff]  ;;  %2000 = vmatpush.msra.mxu2 %v1777_v38  ;;  %v1714_v38 = vld [vmem:[%s5837_s27 + $0x2c8] sm:$0xff] }
 0x2d4   : > { %v1841_v40 = vld [vmem:[%s5837_s27 + $0x6c0] sm:$0xff]  ;;  %1977 = vmatpush.msra.mxu1 %v1713_v39  ;;  %v1782_v39 = vld [vmem:[%s5837_s27 + $0x4e8] sm:$0xff] }
 0x2d5   : > { %v1645_v41 = vld [vmem:[%s5837_s27 + $0xa0] sm:$0xff]  ;;  %2023 = vmatpush.msra.mxu3 %v1841_v40  ;;  %v1650_v40 = vld [vmem:[%s5837_s27 + $0xc8] sm:$0xff] }
 0x2d6   : > { %v1773_v42 = vld [vmem:[%s5837_s27 + $0x4a0] sm:$0xff]  ;;  %1955 = vmatpush.msra.mxu0 %v1645_v41 }
 0x2d7   : > { %v1709_v43 = vld [vmem:[%s5837_s27 + $0x2a0] sm:$0xff]  ;;  %2001 = vmatpush.msra.mxu2 %v1773_v42  ;;  %v1710_v42 = vld [vmem:[%s5837_s27 + $0x2a8] sm:$0xff] }
 0x2d8   : > { %v1837_v44 = vld [vmem:[%s5837_s27 + $0x6a0] sm:$0xff]  ;;  %1978 = vmatpush.msra.mxu1 %v1709_v43  ;;  %v1778_v43 = vld [vmem:[%s5837_s27 + $0x4c8] sm:$0xff] }
 0x2d9   : > { %v1641_v45 = vld [vmem:[%s5837_s27 + $0x80] sm:$0xff]  ;;  %2024 = vmatpush.msra.mxu3 %v1837_v44 }
 0x2da   : > { %v1769_v46 = vld [vmem:[%s5837_s27 + $0x480] sm:$0xff]  ;;  %1956 = vmatpush.msra.mxu0 %v1641_v45 }
 0x2db   : > { %v1705_v47 = vld [vmem:[%s5837_s27 + $0x280] sm:$0xff]  ;;  %2002 = vmatpush.msra.mxu2 %v1769_v46  ;;  %v1646_v46 = vld [vmem:[%s5837_s27 + $0xa8] sm:$0xff] }
 0x2dc   : > { %v1833_v48 = vld [vmem:[%s5837_s27 + $0x680] sm:$0xff]  ;;  %1979 = vmatpush.msra.mxu1 %v1705_v47  ;;  %v1706_v47 = vld [vmem:[%s5837_s27 + $0x288] sm:$0xff] }
 0x2dd   : > { %v1637_v49 = vld [vmem:[%s5837_s27 + $0x60] sm:$0xff]  ;;  %2025 = vmatpush.msra.mxu3 %v1833_v48  ;;  %v1774_v48 = vld [vmem:[%s5837_s27 + $0x4a8] sm:$0xff] }
 0x2de   : > { %v1765_v50 = vld [vmem:[%s5837_s27 + $0x460] sm:$0xff]  ;;  %1957 = vmatpush.msra.mxu0 %v1637_v49  ;;  %v5967_v49 = vld [vmem:[%s7378_s0 + $0x28] sm:$0xff] }
 0x2df   : > { %v1701_v51 = vld [vmem:[%s5837_s27 + $0x260] sm:$0xff]  ;;  %2003 = vmatpush.msra.mxu2 %v1765_v50  ;;  %v5972_v50 = vld [vmem:[%s7378_s0 + $0x18] sm:$0xff] }
 0x2e0   : > { %v1829_v52 = vld [vmem:[%s5837_s27 + $0x660] sm:$0xff]  ;;  %1980 = vmatpush.msra.mxu1 %v1701_v51 }
 0x2e1   : > { %v1633_v53 = vld [vmem:[%s5837_s27 + $0x40] sm:$0xff]  ;;  %2026 = vmatpush.msra.mxu3 %v1829_v52  ;;  %v1642_v52 = vld [vmem:[%s5837_s27 + $0x88] sm:$0xff] }
 0x2e2   : > { %v1761_v54 = vld [vmem:[%s5837_s27 + $0x440] sm:$0xff]  ;;  %1958 = vmatpush.msra.mxu0 %v1633_v53  ;;  %v1702_v53 = vld [vmem:[%s5837_s27 + $0x268] sm:$0xff] }
 0x2e3   : > { %v1697_v55 = vld [vmem:[%s5837_s27 + $0x240] sm:$0xff]  ;;  %2004 = vmatpush.msra.mxu2 %v1761_v54  ;;  %v1770_v54 = vld [vmem:[%s5837_s27 + $0x488] sm:$0xff] }
 0x2e4   : > { %v1825_v56 = vld [vmem:[%s5837_s27 + $0x640] sm:$0xff]  ;;  %1981 = vmatpush.msra.mxu1 %v1697_v55  ;;  %v5983_v55 = vld [vmem:[%s7378_s0 + $0x8] sm:$0xff] }
 0x2e5   : > { %v1629_v57 = vld [vmem:[%s5837_s27 + $0x20] sm:$0xff]  ;;  %2027 = vmatpush.msra.mxu3 %v1825_v56 }
 0x2e6   : > { %v1757_v58 = vld [vmem:[%s5837_s27 + $0x420] sm:$0xff]  ;;  %1959 = vmatpush.msra.mxu0 %v1629_v57  ;;  %v1638_v57 = vld [vmem:[%s5837_s27 + $0x68] sm:$0xff] }
 0x2e7   : > { %v1693_v59 = vld [vmem:[%s5837_s27 + $0x220] sm:$0xff]  ;;  %2005 = vmatpush.msra.mxu2 %v1757_v58  ;;  %v1698_v58 = vld [vmem:[%s5837_s27 + $0x248] sm:$0xff] }
 0x2e8   : > { %v1821_v60 = vld [vmem:[%s5837_s27 + $0x620] sm:$0xff]  ;;  %1982 = vmatpush.msra.mxu1 %v1693_v59  ;;  %v1766_v59 = vld [vmem:[%s5837_s27 + $0x468] sm:$0xff] }
 0x2e9   : > { %v1625_v61 = vld [vmem:[%s5837_s27] sm:$0xff]  ;;  %2028 = vmatpush.msra.mxu3 %v1821_v60 }
 0x2ea   : > { %v1753_v62 = vld [vmem:[%s5837_s27 + $0x400] sm:$0xff]  ;;  %1960 = vmatpush.msra.mxu0 %v1625_v61  ;;  %v1634_v61 = vld [vmem:[%s5837_s27 + $0x48] sm:$0xff] }
 0x2eb   : > { %v1941_v63 = vld [vmem:[%s5837_s27 + $0x9e0] sm:$0xff]  ;;  %2006 = vmatpush.msra.mxu2 %v1753_v62  ;;  %1961 = vmatmul.f32.vlgmr.msra.gmra.mxu0 %v5939_v31  ;;  %v1694_v62 = vld [vmem:[%s5837_s27 + $0x228] sm:$0xff] }
 0x2ec   : > { %v1689_v1 = vld [vmem:[%s5837_s27 + $0x200] sm:$0xff]  ;;  %2037 = vmatpush.msrb.mxu0 %v1941_v63  ;;  %v1762_v63 = vld [vmem:[%s5837_s27 + $0x448] sm:$0xff] }
 0x2ed   : > { %v1817_v2 = vld [vmem:[%s5837_s27 + $0x600] sm:$0xff]  ;;  %2083 = vmatpush.msrb.mxu2 %v1750_v0  ;;  %1983 = vmatpush.msra.mxu1 %v1689_v1  ;;  %v5997_v0 = vld [vmem:[%s7378_s0 + $0x38] sm:$0xff] }
 0x2ee   : > { %v1937_v3 = vld [vmem:[%s5837_s27 + $0x9c0] sm:$0xff]  ;;  %2029 = vmatpush.msra.mxu3 %v1817_v2  ;;  %1984 = vmatmul.f32.vlgmr.msra.gmra.mxu1 %v5983_v55  ;;  %v1630_v2 = vld [vmem:[%s5837_s27 + $0x28] sm:$0xff] }
 0x2ef   : > { %v1933_v7 = vld [vmem:[%s5837_s27 + $0x9a0] sm:$0xff]  ;;  %2038 = vmatpush.msrb.mxu0 %v1937_v3  ;;  %2060 = vmatpush.msrb.mxu1 %v1686_v4  ;;  %v1690_v3 = vld [vmem:[%s5837_s27 + $0x208] sm:$0xff] }
 0x2f0   : > { %2084 = vmatpush.msrb.mxu2 %v1746_v5  ;;  %2106 = vmatpush.msrb.mxu3 %v1814_v6  ;;  %v1929_v11 = vld [vmem:[%s5837_s27 + $0x980] sm:$0xff]  ;;  %v1758_v4 = vld [vmem:[%s5837_s27 + $0x428] sm:$0xff]  ;;  %v6007_v5 = vld [vmem:[%s7378_s0 + $0x40] sm:$0xff] }
 0x2f1   : > { %2039 = vmatpush.msrb.mxu0 %v1933_v7  ;;  %2061 = vmatpush.msrb.mxu1 %v1682_v8  ;;  %v1925_v15 = vld [vmem:[%s5837_s27 + $0x960] sm:$0xff]  ;;  %v6012_v6 = vld [vmem:[%s7378_s0 + $0x20] sm:$0xff]  ;;  %v1878_v7 = vld [vmem:[%s5837_s27 + $0x7e8] sm:$0xff] }
 0x2f2   : > { %2085 = vmatpush.msrb.mxu2 %v1742_v9  ;;  %2107 = vmatpush.msrb.mxu3 %v1810_v10  ;;  %v1921_v19 = vld [vmem:[%s5837_s27 + $0x940] sm:$0xff]  ;;  %v1687_v8 = vld [vmem:[%s5837_s27 + $0x1f0] sm:$0xff]  ;;  %v1626_v9 = vld [vmem:[%s5837_s27 + $0x8] sm:$0xff] }
 0x2f3   : > { %2040 = vmatpush.msrb.mxu0 %v1929_v11  ;;  %2062 = vmatpush.msrb.mxu1 %v1678_v12  ;;  %v1917_v23 = vld [vmem:[%s5837_s27 + $0x920] sm:$0xff]  ;;  %v1754_v10 = vld [vmem:[%s5837_s27 + $0x408] sm:$0xff] }
 0x2f4   : > { %2086 = vmatpush.msrb.mxu2 %v1738_v13  ;;  %2108 = vmatpush.msrb.mxu3 %v1806_v14  ;;  %v1913_v27 = vld [vmem:[%s5837_s27 + $0x900] sm:$0xff]  ;;  %v1874_v12 = vld [vmem:[%s5837_s27 + $0x7c8] sm:$0xff]  ;;  %v1683_v14 = vld [vmem:[%s5837_s27 + $0x1d0] sm:$0xff] }
 0x2f5   : > { %2041 = vmatpush.msrb.mxu0 %v1925_v15  ;;  %2063 = vmatpush.msrb.mxu1 %v1674_v16  ;;  %v1909_v33 = vld [vmem:[%s5837_s27 + $0x8e0] sm:$0xff]  ;;  %v1942_v13 = vld [vmem:[%s5837_s27 + $0x9e8] sm:$0xff]  ;;  %v1751_v15 = vld [vmem:[%s5837_s27 + $0x3f0] sm:$0xff] }
 0x2f6   : > { %2087 = vmatpush.msrb.mxu2 %v1734_v17  ;;  %2109 = vmatpush.msrb.mxu3 %v1802_v18  ;;  %v1905_v37 = vld [vmem:[%s5837_s27 + $0x8c0] sm:$0xff]  ;;  %v1870_v16 = vld [vmem:[%s5837_s27 + $0x7a8] sm:$0xff]  ;;  %v1679_v18 = vld [vmem:[%s5837_s27 + $0x1b0] sm:$0xff] }
 0x2f7   : > { %2042 = vmatpush.msrb.mxu0 %v1921_v19  ;;  %2064 = vmatpush.msrb.mxu1 %v1670_v20  ;;  %v1901_v41 = vld [vmem:[%s5837_s27 + $0x8a0] sm:$0xff]  ;;  %v1938_v17 = vld [vmem:[%s5837_s27 + $0x9c8] sm:$0xff]  ;;  %v1747_v19 = vld [vmem:[%s5837_s27 + $0x3d0] sm:$0xff] }
 0x2f8   : > { %2088 = vmatpush.msrb.mxu2 %v1730_v21  ;;  %2110 = vmatpush.msrb.mxu3 %v1798_v22  ;;  %v5957_v44 = vld [vmem:[%s7378_s0 + $0x10] sm:$0xff]  ;;  %v1866_v20 = vld [vmem:[%s5837_s27 + $0x788] sm:$0xff]  ;;  %v1675_v22 = vld [vmem:[%s5837_s27 + $0x190] sm:$0xff] }
 0x2f9   : > { %2043 = vmatpush.msrb.mxu0 %v1917_v23  ;;  %2065 = vmatpush.msrb.mxu1 %v1666_v24  ;;  %v1897_v45 = vld [vmem:[%s5837_s27 + $0x880] sm:$0xff]  ;;  %v1934_v21 = vld [vmem:[%s5837_s27 + $0x9a8] sm:$0xff]  ;;  %v1743_v23 = vld [vmem:[%s5837_s27 + $0x3b0] sm:$0xff] }
 0x2fa   : > { %2089 = vmatpush.msrb.mxu2 %v1726_v25  ;;  %2111 = vmatpush.msrb.mxu3 %v1794_v26  ;;  %v1893_v51 = vld [vmem:[%s5837_s27 + $0x860] sm:$0xff]  ;;  %v6041_v24 = vld [vmem:[%s7378_s0 + $0x48] sm:$0xff]  ;;  %v1862_v25 = vld [vmem:[%s5837_s27 + $0x768] sm:$0xff] }
 0x2fb   : > { %2044 = vmatpush.msrb.mxu0 %v1913_v27  ;;  %2066 = vmatpush.msrb.mxu1 %v1662_v28  ;;  %v1889_v56 = vld [vmem:[%s5837_s27 + $0x840] sm:$0xff]  ;;  %v1930_v26 = vld [vmem:[%s5837_s27 + $0x988] sm:$0xff]  ;;  %v1671_v27 = vld [vmem:[%s5837_s27 + $0x170] sm:$0xff] }
 0x2fc   : > { %2090 = vmatpush.msrb.mxu2 %v1722_v29  ;;  %2112 = vmatpush.msrb.mxu3 %v1790_v30  ;;  %v1885_v60 = vld [vmem:[%s5837_s27 + $0x820] sm:$0xff]  ;;  %v1739_v28 = vld [vmem:[%s5837_s27 + $0x390] sm:$0xff]  ;;  %v1858_v29 = vld [vmem:[%s5837_s27 + $0x748] sm:$0xff] }
 0x2fd   : > { %2067 = vmatpush.msrb.mxu1 %v1658_v32  ;;  %2045 = vmatpush.msrb.mxu0 %v1909_v33  ;;  %v1881_v1 = vld [vmem:[%s5837_s27 + $0x800] sm:$0xff]  ;;  %v1926_v30 = vld [vmem:[%s5837_s27 + $0x968] sm:$0xff]  ;;  %v1667_v32 = vld [vmem:[%s5837_s27 + $0x150] sm:$0xff] }
 0x2fe   : > { %2091 = vmatpush.msrb.mxu2 %v1718_v34  ;;  %2113 = vmatpush.msrb.mxu3 %v1786_v35  ;;  %v6023_v11 = vld [vmem:[%s7378_s0 + $0x30] sm:$0xff]  ;;  %v1735_v33 = vld [vmem:[%s5837_s27 + $0x370] sm:$0xff]  ;;  %v1854_v34 = vld [vmem:[%s5837_s27 + $0x728] sm:$0xff] }
 0x2ff   : > { %2068 = vmatpush.msrb.mxu1 %v1654_v36  ;;  %2046 = vmatpush.msrb.mxu0 %v1905_v37  ;;  %v1922_v35 = vld [vmem:[%s5837_s27 + $0x948] sm:$0xff]  ;;  %v1663_v36 = vld [vmem:[%s5837_s27 + $0x130] sm:$0xff] }
 0x300   : > { %2092 = vmatpush.msrb.mxu2 %v1714_v38  ;;  %2114 = vmatpush.msrb.mxu3 %v1782_v39  ;;  %v1731_v37 = vld [vmem:[%s5837_s27 + $0x350] sm:$0xff]  ;;  %v1850_v38 = vld [vmem:[%s5837_s27 + $0x708] sm:$0xff] }
 0x301   : > { %2069 = vmatpush.msrb.mxu1 %v1650_v40  ;;  %2047 = vmatpush.msrb.mxu0 %v1901_v41  ;;  %v1918_v39 = vld [vmem:[%s5837_s27 + $0x928] sm:$0xff]  ;;  %v1659_v40 = vld [vmem:[%s5837_s27 + $0x110] sm:$0xff] }
 0x302   : > { %2093 = vmatpush.msrb.mxu2 %v1710_v42  ;;  %2115 = vmatpush.msrb.mxu3 %v1778_v43  ;;  %v1727_v41 = vld [vmem:[%s5837_s27 + $0x330] sm:$0xff]  ;;  %v1846_v42 = vld [vmem:[%s5837_s27 + $0x6e8] sm:$0xff] }
 0x303   : > { %2007 = vmatmul.f32.vlgmr.msra.gmra.mxu2 %v5957_v44  ;;  %2048 = vmatpush.msrb.mxu0 %v1897_v45  ;;  %v1914_v43 = vld [vmem:[%s5837_s27 + $0x908] sm:$0xff]  ;;  %v1655_v45 = vld [vmem:[%s5837_s27 + $0xf0] sm:$0xff] }
 0x304   : > { %2070 = vmatpush.msrb.mxu1 %v1646_v46  ;;  %2094 = vmatpush.msrb.mxu2 %v1706_v47  ;;  %v1723_v46 = vld [vmem:[%s5837_s27 + $0x310] sm:$0xff]  ;;  %v1842_v47 = vld [vmem:[%s5837_s27 + $0x6c8] sm:$0xff] }
 0x305   : > { %2116 = vmatpush.msrb.mxu3 %v1774_v48  ;;  %1964 = vmatmul.f32.gmra.mxu0 %v5967_v49  ;;  %v1910_v48 = vld [vmem:[%s5837_s27 + $0x8e8] sm:$0xff] }
 0x306   : > { %2030 = vmatmul.f32.vlgmr.msra.gmra.mxu3 %v5972_v50  ;;  %2049 = vmatpush.msrb.mxu0 %v1893_v51  ;;  %v1651_v51 = vld [vmem:[%s5837_s27 + $0xd0] sm:$0xff] }
 0x307   : > { %2071 = vmatpush.msrb.mxu1 %v1642_v52  ;;  %2095 = vmatpush.msrb.mxu2 %v1702_v53  ;;  %v1719_v52 = vld [vmem:[%s5837_s27 + $0x2f0] sm:$0xff]  ;;  %v1838_v53 = vld [vmem:[%s5837_s27 + $0x6a8] sm:$0xff] }
 0x308   : > { %2117 = vmatpush.msrb.mxu3 %v1770_v54  ;;  %2050 = vmatpush.msrb.mxu0 %v1889_v56  ;;  %v1906_v54 = vld [vmem:[%s5837_s27 + $0x8c8] sm:$0xff]  ;;  %v1647_v56 = vld [vmem:[%s5837_s27 + $0xb0] sm:$0xff] }
 0x309   : > { %2072 = vmatpush.msrb.mxu1 %v1638_v57  ;;  %2096 = vmatpush.msrb.mxu2 %v1698_v58  ;;  %v1715_v57 = vld [vmem:[%s5837_s27 + $0x2d0] sm:$0xff]  ;;  %v1834_v58 = vld [vmem:[%s5837_s27 + $0x688] sm:$0xff] }
 0x30a   : > { %2118 = vmatpush.msrb.mxu3 %v1766_v59  ;;  %2051 = vmatpush.msrb.mxu0 %v1885_v60  ;;  %v1902_v59 = vld [vmem:[%s5837_s27 + $0x8a8] sm:$0xff]  ;;  %v1643_v60 = vld [vmem:[%s5837_s27 + $0x90] sm:$0xff] }
 0x30b   : > { %2073 = vmatpush.msrb.mxu1 %v1634_v61  ;;  %2097 = vmatpush.msrb.mxu2 %v1694_v62  ;;  %v1711_v61 = vld [vmem:[%s5837_s27 + $0x2b0] sm:$0xff]  ;;  %v1830_v62 = vld [vmem:[%s5837_s27 + $0x668] sm:$0xff] }
 0x30c   : > { %2119 = vmatpush.msrb.mxu3 %v1762_v63  ;;  %2010 = vmatmul.f32.gmra.mxu2 %v5997_v0  ;;  %v1898_v63 = vld [vmem:[%s5837_s27 + $0x888] sm:$0xff] }
 0x30d   : > { %2052 = vmatpush.msrb.mxu0 %v1881_v1  ;;  %2074 = vmatpush.msrb.mxu1 %v1630_v2  ;;  %v1639_v1 = vld [vmem:[%s5837_s27 + $0x70] sm:$0xff] }
 0x30e   : > { %2098 = vmatpush.msrb.mxu2 %v1690_v3  ;;  %2120 = vmatpush.msrb.mxu3 %v1758_v4  ;;  %v1707_v2 = vld [vmem:[%s5837_s27 + $0x290] sm:$0xff]  ;;  %v1826_v3 = vld [vmem:[%s5837_s27 + $0x648] sm:$0xff] }
 0x30f   : > { %2033 = vmatmul.f32.gmra.mxu3 %v6007_v5  ;;  %2053 = vmatmul.f32.vlgmr.msrb.gmra.mxu0 %v6012_v6  ;;  %v1894_v4 = vld [vmem:[%s5837_s27 + $0x868] sm:$0xff] }
 0x310   : > { %2129 = vmatpush.msra.mxu0 %v1878_v7  ;;  %2175 = vmatpush.msra.mxu2 %v1687_v8  ;;  %v1635_v7 = vld [vmem:[%s5837_s27 + $0x50] sm:$0xff] }
 0x311   : > { %2075 = vmatpush.msrb.mxu1 %v1626_v9  ;;  %2121 = vmatpush.msrb.mxu3 %v1754_v10  ;;  %v1703_v8 = vld [vmem:[%s5837_s27 + $0x270] sm:$0xff]  ;;  %v1822_v9 = vld [vmem:[%s5837_s27 + $0x628] sm:$0xff] }
 0x312   : > { %1987 = vmatmul.f32.gmra.mxu1 %v6023_v11  ;;  %2130 = vmatpush.msra.mxu0 %v1874_v12  ;;  %v1890_v10 = vld [vmem:[%s5837_s27 + $0x848] sm:$0xff]  ;;  %v1631_v12 = vld [vmem:[%s5837_s27 + $0x30] sm:$0xff] }
 0x313   : > { %2152 = vmatpush.msra.mxu1 %v1942_v13  ;;  %2176 = vmatpush.msra.mxu2 %v1683_v14  ;;  %v1699_v13 = vld [vmem:[%s5837_s27 + $0x250] sm:$0xff]  ;;  %v1818_v14 = vld [vmem:[%s5837_s27 + $0x608] sm:$0xff] }
 0x314   : > { %2198 = vmatpush.msra.mxu3 %v1751_v15  ;;  %2131 = vmatpush.msra.mxu0 %v1870_v16  ;;  %v1886_v15 = vld [vmem:[%s5837_s27 + $0x828] sm:$0xff]  ;;  %v1627_v16 = vld [vmem:[%s5837_s27 + $0x10] sm:$0xff] }
 0x315   : > { %2153 = vmatpush.msra.mxu1 %v1938_v17  ;;  %2177 = vmatpush.msra.mxu2 %v1679_v18  ;;  %v1695_v17 = vld [vmem:[%s5837_s27 + $0x230] sm:$0xff] }
 0x316   : > { %2199 = vmatpush.msra.mxu3 %v1747_v19  ;;  %2132 = vmatpush.msra.mxu0 %v1866_v20  ;;  %v1815_v18 = vld [vmem:[%s5837_s27 + $0x5f0] sm:$0xff]  ;;  %v1882_v20 = vld [vmem:[%s5837_s27 + $0x808] sm:$0xff] }
 0x317   : > { %2154 = vmatpush.msra.mxu1 %v1934_v21  ;;  %2178 = vmatpush.msra.mxu2 %v1675_v22  ;;  %v1943_v19 = vld [vmem:[%s5837_s27 + $0x9f0] sm:$0xff] }
 0x318   : > { %2200 = vmatpush.msra.mxu3 %v1743_v23  ;;  %2056 = vmatmul.f32.gmra.mxu0 %v6041_v24  ;;  %v1691_v21 = vld [vmem:[%s5837_s27 + $0x210] sm:$0xff] }
 0x319   : > { %2133 = vmatpush.msra.mxu0 %v1862_v25  ;;  %2155 = vmatpush.msra.mxu1 %v1930_v26  ;;  %v1811_v22 = vld [vmem:[%s5837_s27 + $0x5d0] sm:$0xff]  ;;  %v1688_v26 = vld [vmem:[%s5837_s27 + $0x1f8] sm:$0xff] }
 0x31a   : > { %2179 = vmatpush.msra.mxu2 %v1671_v27  ;;  %2201 = vmatpush.msra.mxu3 %v1739_v28  ;;  %v1879_v23 = vld [vmem:[%s5837_s27 + $0x7f0] sm:$0xff] }
 0x31b   : > { %2134 = vmatpush.msra.mxu0 %v1858_v29  ;;  %2156 = vmatpush.msra.mxu1 %v1926_v30  ;;  %v1939_v25 = vld [vmem:[%s5837_s27 + $0x9d0] sm:$0xff]  ;;  %v1684_v30 = vld [vmem:[%s5837_s27 + $0x1d8] sm:$0xff] }
 0x31c   : > { %2180 = vmatpush.msra.mxu2 %v1667_v32  ;;  %2202 = vmatpush.msra.mxu3 %v1735_v33  ;;  %v1807_v27 = vld [vmem:[%s5837_s27 + $0x5b0] sm:$0xff] }
 0x31d   : > { %2135 = vmatpush.msra.mxu0 %v1854_v34  ;;  %2157 = vmatpush.msra.mxu1 %v1922_v35  ;;  %v1875_v28 = vld [vmem:[%s5837_s27 + $0x7d0] sm:$0xff]  ;;  %v1680_v35 = vld [vmem:[%s5837_s27 + $0x1b8] sm:$0xff] }
 0x31e   : > { %2181 = vmatpush.msra.mxu2 %v1663_v36  ;;  %2203 = vmatpush.msra.mxu3 %v1731_v37  ;;  %v1935_v29 = vld [vmem:[%s5837_s27 + $0x9b0] sm:$0xff] }
 0x31f   : > { %2136 = vmatpush.msra.mxu0 %v1850_v38  ;;  %2158 = vmatpush.msra.mxu1 %v1918_v39  ;;  %v1803_v32 = vld [vmem:[%s5837_s27 + $0x590] sm:$0xff]  ;;  %v1676_v39 = vld [vmem:[%s5837_s27 + $0x198] sm:$0xff] }
 0x320   : > { %2182 = vmatpush.msra.mxu2 %v1659_v40  ;;  %2204 = vmatpush.msra.mxu3 %v1727_v41  ;;  %v1871_v33 = vld [vmem:[%s5837_s27 + $0x7b0] sm:$0xff] }
 0x321   : > { %2137 = vmatpush.msra.mxu0 %v1846_v42  ;;  %2159 = vmatpush.msra.mxu1 %v1914_v43  ;;  %v1931_v34 = vld [vmem:[%s5837_s27 + $0x990] sm:$0xff]  ;;  %v1672_v43 = vld [vmem:[%s5837_s27 + $0x178] sm:$0xff] }
 0x322   : > { %2183 = vmatpush.msra.mxu2 %v1655_v45  ;;  %2205 = vmatpush.msra.mxu3 %v1723_v46  ;;  %v1867_v36 = vld [vmem:[%s5837_s27 + $0x790] sm:$0xff] }
 0x323   : > { %2076 = vmatmul.f32.vlgmr.msrb.gmra.mxu1 %v5939_v31  ;;  %2138 = vmatpush.msra.mxu0 %v1842_v47  ;;  %v1799_v37 = vld [vmem:[%s5837_s27 + $0x570] sm:$0xff] }
 0x324   : > { %2160 = vmatpush.msra.mxu1 %v1910_v48  ;;  %2184 = vmatpush.msra.mxu2 %v1651_v51  ;;  %v1927_v38 = vld [vmem:[%s5837_s27 + $0x970] sm:$0xff]  ;;  %v1668_v48 = vld [vmem:[%s5837_s27 + $0x158] sm:$0xff] }
 0x325   : > { %2206 = vmatpush.msra.mxu3 %v1719_v52  ;;  %2139 = vmatpush.msra.mxu0 %v1838_v53  ;;  %v1795_v40 = vld [vmem:[%s5837_s27 + $0x550] sm:$0xff] }
 0x326   : > { %2161 = vmatpush.msra.mxu1 %v1906_v54  ;;  %2185 = vmatpush.msra.mxu2 %v1647_v56  ;;  %v1863_v41 = vld [vmem:[%s5837_s27 + $0x770] sm:$0xff]  ;;  %v1664_v54 = vld [vmem:[%s5837_s27 + $0x138] sm:$0xff] }
 0x327   : > { %2207 = vmatpush.msra.mxu3 %v1715_v57  ;;  %2099 = vmatmul.f32.vlgmr.msrb.gmra.mxu2 %v5983_v55  ;;  %v1923_v42 = vld [vmem:[%s5837_s27 + $0x950] sm:$0xff] }
 0x328   : > { %2140 = vmatpush.msra.mxu0 %v1834_v58  ;;  %2162 = vmatpush.msra.mxu1 %v1902_v59  ;;  %v1791_v45 = vld [vmem:[%s5837_s27 + $0x530] sm:$0xff]  ;;  %v1660_v59 = vld [vmem:[%s5837_s27 + $0x118] sm:$0xff] }
 0x329   : > { %2186 = vmatpush.msra.mxu2 %v1643_v60  ;;  %2208 = vmatpush.msra.mxu3 %v1711_v61  ;;  %v1859_v46 = vld [vmem:[%s5837_s27 + $0x750] sm:$0xff] }
 0x32a   : > { %2122 = vmatmul.f32.vlgmr.msrb.gmra.mxu3 %v5957_v44  ;;  %2141 = vmatpush.msra.mxu0 %v1830_v62  ;;  %v1919_v47 = vld [vmem:[%s5837_s27 + $0x930] sm:$0xff] }
 0x32b   : > { %2163 = vmatpush.msra.mxu1 %v1898_v63  ;;  %2187 = vmatpush.msra.mxu2 %v1639_v1  ;;  %v1787_v51 = vld [vmem:[%s5837_s27 + $0x510] sm:$0xff]  ;;  %v1656_v63 = vld [vmem:[%s5837_s27 + $0xf8] sm:$0xff] }
 0x32c   : > { %2209 = vmatpush.msra.mxu3 %v1707_v2  ;;  %2079 = vmatmul.f32.gmra.mxu1 %v5967_v49  ;;  %v1855_v52 = vld [vmem:[%s5837_s27 + $0x730] sm:$0xff] }
 0x32d   : > { %2142 = vmatpush.msra.mxu0 %v1826_v3  ;;  %2164 = vmatpush.msra.mxu1 %v1894_v4  ;;  %v1915_v53 = vld [vmem:[%s5837_s27 + $0x910] sm:$0xff]  ;;  %v1652_v4 = vld [vmem:[%s5837_s27 + $0xd8] sm:$0xff] }
 0x32e   : > { %2188 = vmatpush.msra.mxu2 %v1635_v7  ;;  %2210 = vmatpush.msra.mxu3 %v1703_v8  ;;  %v1783_v56 = vld [vmem:[%s5837_s27 + $0x4f0] sm:$0xff] }
 0x32f   : > { %2143 = vmatpush.msra.mxu0 %v1822_v9  ;;  %2165 = vmatpush.msra.mxu1 %v1890_v10  ;;  %v1851_v57 = vld [vmem:[%s5837_s27 + $0x710] sm:$0xff]  ;;  %v1648_v10 = vld [vmem:[%s5837_s27 + $0xb8] sm:$0xff] }
 0x330   : > { %2189 = vmatpush.msra.mxu2 %v1631_v12  ;;  %2211 = vmatpush.msra.mxu3 %v1699_v13  ;;  %v1911_v58 = vld [vmem:[%s5837_s27 + $0x8f0] sm:$0xff] }
 0x331   : > { %2102 = vmatmul.f32.gmra.mxu2 %v6023_v11  ;;  %2144 = vmatpush.msra.mxu0 %v1818_v14  ;;  %v1779_v60 = vld [vmem:[%s5837_s27 + $0x4d0] sm:$0xff] }
 0x332   : > { %2166 = vmatpush.msra.mxu1 %v1886_v15  ;;  %2190 = vmatpush.msra.mxu2 %v1627_v16  ;;  %v1847_v61 = vld [vmem:[%s5837_s27 + $0x6f0] sm:$0xff]  ;;  %v1644_v15 = vld [vmem:[%s5837_s27 + $0x98] sm:$0xff] }
 0x333   : > { %2212 = vmatpush.msra.mxu3 %v1695_v17  ;;  %2145 = vmatmul.f32.vlgmr.msra.gmra.mxu0 %v5972_v50  ;;  %v1907_v62 = vld [vmem:[%s5837_s27 + $0x8d0] sm:$0xff] }
 0x334   : > { %2125 = vmatmul.f32.gmra.mxu3 %v5997_v0  ;;  %2221 = vmatpush.msrb.mxu0 %v1815_v18  ;;  %v1775_v1 = vld [vmem:[%s5837_s27 + $0x4b0] sm:$0xff] }
 0x335   : > { %2267 = vmatpush.msrb.mxu2 %v1943_v19  ;;  %2167 = vmatpush.msra.mxu1 %v1882_v20  ;;  %v1843_v2 = vld [vmem:[%s5837_s27 + $0x6d0] sm:$0xff]  ;;  %v1640_v19 = vld [vmem:[%s5837_s27 + $0x78] sm:$0xff] }
 0x336   : > { %2213 = vmatpush.msra.mxu3 %v1691_v21  ;;  %2168 = vmatmul.f32.vlgmr.msra.gmra.mxu1 %v6012_v6  ;;  %v1903_v3 = vld [vmem:[%s5837_s27 + $0x8b0] sm:$0xff] }
 0x337   : > { %2222 = vmatpush.msrb.mxu0 %v1811_v22  ;;  %2244 = vmatpush.msrb.mxu1 %v1879_v23  ;;  %v1771_v7 = vld [vmem:[%s5837_s27 + $0x490] sm:$0xff]  ;;  %v1636_v23 = vld [vmem:[%s5837_s27 + $0x58] sm:$0xff] }
 0x338   : > { %2268 = vmatpush.msrb.mxu2 %v1939_v25  ;;  %2290 = vmatpush.msrb.mxu3 %v1688_v26  ;;  %v1839_v8 = vld [vmem:[%s5837_s27 + $0x6b0] sm:$0xff] }
 0x339   : > { %2223 = vmatpush.msrb.mxu0 %v1807_v27  ;;  %2245 = vmatpush.msrb.mxu1 %v1875_v28  ;;  %v1899_v9 = vld [vmem:[%s5837_s27 + $0x890] sm:$0xff]  ;;  %v1632_v28 = vld [vmem:[%s5837_s27 + $0x38] sm:$0xff] }
 0x33a   : > { %2269 = vmatpush.msrb.mxu2 %v1935_v29  ;;  %2291 = vmatpush.msrb.mxu3 %v1684_v30  ;;  %v1767_v12 = vld [vmem:[%s5837_s27 + $0x470] sm:$0xff]  ;;  %v1752_v29 = vld [vmem:[%s5837_s27 + $0x3f8] sm:$0xff] }
 0x33b   : > { %2224 = vmatpush.msrb.mxu0 %v1803_v32  ;;  %2246 = vmatpush.msrb.mxu1 %v1871_v33  ;;  %v1835_v13 = vld [vmem:[%s5837_s27 + $0x690] sm:$0xff]  ;;  %v1880_v30 = vld [vmem:[%s5837_s27 + $0x7f8] sm:$0xff] }
 0x33c   : > { %2270 = vmatpush.msrb.mxu2 %v1931_v34  ;;  %2292 = vmatpush.msrb.mxu3 %v1680_v35  ;;  %v1895_v14 = vld [vmem:[%s5837_s27 + $0x870] sm:$0xff]  ;;  %v1628_v33 = vld [vmem:[%s5837_s27 + $0x18] sm:$0xff] }
 0x33d   : > { %2148 = vmatmul.f32.gmra.mxu0 %v6007_v5  ;;  %2247 = vmatpush.msrb.mxu1 %v1867_v36  ;;  %v1763_v16 = vld [vmem:[%s5837_s27 + $0x450] sm:$0xff]  ;;  %v1748_v34 = vld [vmem:[%s5837_s27 + $0x3d8] sm:$0xff] }
 0x33e   : > { %2225 = vmatpush.msrb.mxu0 %v1799_v37  ;;  %2271 = vmatpush.msrb.mxu2 %v1927_v38  ;;  %v1831_v17 = vld [vmem:[%s5837_s27 + $0x670] sm:$0xff]  ;;  %v1816_v35 = vld [vmem:[%s5837_s27 + $0x5f8] sm:$0xff] }
 0x33f   : > { %2293 = vmatpush.msrb.mxu3 %v1676_v39  ;;  %2171 = vmatmul.f32.gmra.mxu1 %v6041_v24  ;;  %v1891_v18 = vld [vmem:[%s5837_s27 + $0x850] sm:$0xff]  ;;  %v1876_v36 = vld [vmem:[%s5837_s27 + $0x7d8] sm:$0xff] }
 0x340   : > { %2226 = vmatpush.msrb.mxu0 %v1795_v40  ;;  %2248 = vmatpush.msrb.mxu1 %v1863_v41  ;;  %v1759_v20 = vld [vmem:[%s5837_s27 + $0x430] sm:$0xff]  ;;  %v1944_v37 = vld [vmem:[%s5837_s27 + $0x9f8] sm:$0xff] }
 0x341   : > { %2272 = vmatpush.msrb.mxu2 %v1923_v42  ;;  %2294 = vmatpush.msrb.mxu3 %v1672_v43  ;;  %v1827_v21 = vld [vmem:[%s5837_s27 + $0x650] sm:$0xff]  ;;  %v1744_v38 = vld [vmem:[%s5837_s27 + $0x3b8] sm:$0xff] }
 0x342   : > { %2227 = vmatpush.msrb.mxu0 %v1791_v45  ;;  %2249 = vmatpush.msrb.mxu1 %v1859_v46  ;;  %v1887_v22 = vld [vmem:[%s5837_s27 + $0x830] sm:$0xff]  ;;  %v1812_v39 = vld [vmem:[%s5837_s27 + $0x5d8] sm:$0xff] }
 0x343   : > { %2273 = vmatpush.msrb.mxu2 %v1919_v47  ;;  %2295 = vmatpush.msrb.mxu3 %v1668_v48  ;;  %v1755_v25 = vld [vmem:[%s5837_s27 + $0x410] sm:$0xff]  ;;  %v1872_v40 = vld [vmem:[%s5837_s27 + $0x7b8] sm:$0xff] }
 0x344   : > { %2228 = vmatpush.msrb.mxu0 %v1787_v51  ;;  %2250 = vmatpush.msrb.mxu1 %v1855_v52  ;;  %v1823_v26 = vld [vmem:[%s5837_s27 + $0x630] sm:$0xff]  ;;  %v1940_v41 = vld [vmem:[%s5837_s27 + $0x9d8] sm:$0xff] }
 0x345   : > { %2274 = vmatpush.msrb.mxu2 %v1915_v53  ;;  %2296 = vmatpush.msrb.mxu3 %v1664_v54  ;;  %v1883_v27 = vld [vmem:[%s5837_s27 + $0x810] sm:$0xff]  ;;  %v1740_v42 = vld [vmem:[%s5837_s27 + $0x398] sm:$0xff] }
 0x346   : > { %2191 = vmatmul.f32.vlgmr.msra.gmra.mxu2 %v5939_v31  ;;  %2229 = vmatpush.msrb.mxu0 %v1783_v56  ;;  %v1819_v32 = vld [vmem:[%s5837_s27 + $0x610] sm:$0xff]  ;;  %v1808_v43 = vld [vmem:[%s5837_s27 + $0x5b8] sm:$0xff] }
 0x347   : > { %2251 = vmatpush.msrb.mxu1 %v1851_v57  ;;  %2275 = vmatpush.msrb.mxu2 %v1911_v58  ;;  %v1868_v45 = vld [vmem:[%s5837_s27 + $0x798] sm:$0xff] }
 0x348   : > { %2297 = vmatpush.msrb.mxu3 %v1660_v59  ;;  %2230 = vmatpush.msrb.mxu0 %v1779_v60  ;;  %v1936_v46 = vld [vmem:[%s5837_s27 + $0x9b8] sm:$0xff] }
 0x349   : > { %2252 = vmatpush.msrb.mxu1 %v1847_v61  ;;  %2276 = vmatpush.msrb.mxu2 %v1907_v62  ;;  %v1736_v47 = vld [vmem:[%s5837_s27 + $0x378] sm:$0xff] }
 0x34a   : > { %2298 = vmatpush.msrb.mxu3 %v1656_v63  ;;  %2231 = vmatpush.msrb.mxu0 %v1775_v1  ;;  %v1804_v48 = vld [vmem:[%s5837_s27 + $0x598] sm:$0xff] }
 0x34b   : > { %2253 = vmatpush.msrb.mxu1 %v1843_v2  ;;  %2277 = vmatpush.msrb.mxu2 %v1903_v3  ;;  %v1864_v51 = vld [vmem:[%s5837_s27 + $0x778] sm:$0xff] }
 0x34c   : > { %2299 = vmatpush.msrb.mxu3 %v1652_v4  ;;  %2232 = vmatpush.msrb.mxu0 %v1771_v7  ;;  %v1932_v52 = vld [vmem:[%s5837_s27 + $0x998] sm:$0xff] }
 0x34d   : > { %2254 = vmatpush.msrb.mxu1 %v1839_v8  ;;  %2278 = vmatpush.msrb.mxu2 %v1899_v9  ;;  %v1800_v53 = vld [vmem:[%s5837_s27 + $0x578] sm:$0xff] }
 0x34e   : > { %2300 = vmatpush.msrb.mxu3 %v1648_v10  ;;  %2194 = vmatmul.f32.gmra.mxu2 %v5967_v49  ;;  %v1732_v54 = vld [vmem:[%s5837_s27 + $0x358] sm:$0xff] }
 0x34f   : > { %2233 = vmatpush.msrb.mxu0 %v1767_v12  ;;  %2255 = vmatpush.msrb.mxu1 %v1835_v13  ;;  %v1860_v56 = vld [vmem:[%s5837_s27 + $0x758] sm:$0xff] }
 0x350   : > { %2279 = vmatpush.msrb.mxu2 %v1895_v14  ;;  %2301 = vmatpush.msrb.mxu3 %v1644_v15  ;;  %v1928_v57 = vld [vmem:[%s5837_s27 + $0x978] sm:$0xff] }
 0x351   : > { %2214 = vmatmul.f32.vlgmr.msra.gmra.mxu3 %v5983_v55  ;;  %2234 = vmatpush.msrb.mxu0 %v1763_v16  ;;  %v1728_v58 = vld [vmem:[%s5837_s27 + $0x338] sm:$0xff] }
 0x352   : > { %2256 = vmatpush.msrb.mxu1 %v1831_v17  ;;  %2280 = vmatpush.msrb.mxu2 %v1891_v18  ;;  %v1796_v59 = vld [vmem:[%s5837_s27 + $0x558] sm:$0xff] }
 0x353   : > { %2302 = vmatpush.msrb.mxu3 %v1640_v19  ;;  %2235 = vmatpush.msrb.mxu0 %v1759_v20  ;;  %v1856_v60 = vld [vmem:[%s5837_s27 + $0x738] sm:$0xff] }
 0x354   : > { %2257 = vmatpush.msrb.mxu1 %v1827_v21  ;;  %2281 = vmatpush.msrb.mxu2 %v1887_v22  ;;  %v1924_v61 = vld [vmem:[%s5837_s27 + $0x958] sm:$0xff] }
 0x355   : > { %2303 = vmatpush.msrb.mxu3 %v1636_v23  ;;  %2236 = vmatpush.msrb.mxu0 %v1755_v25  ;;  %v1724_v62 = vld [vmem:[%s5837_s27 + $0x318] sm:$0xff] }
 0x356   : > { %2258 = vmatpush.msrb.mxu1 %v1823_v26  ;;  %2282 = vmatpush.msrb.mxu2 %v1883_v27  ;;  %v1792_v63 = vld [vmem:[%s5837_s27 + $0x538] sm:$0xff] }
 0x357   : > { %2304 = vmatpush.msrb.mxu3 %v1632_v28  ;;  %2283 = vmatmul.f32.vlgmr.msrb.gmra.mxu2 %v6012_v6  ;;  %v1852_v1 = vld [vmem:[%s5837_s27 + $0x718] sm:$0xff] }
 0x358   : > { %2313 = vmatpush.msra.mxu0 %v1752_v29  ;;  %2359 = vmatpush.msra.mxu2 %v1880_v30  ;;  %v1920_v2 = vld [vmem:[%s5837_s27 + $0x938] sm:$0xff] }
 0x359   : > { %2259 = vmatpush.msrb.mxu1 %v1819_v32  ;;  %2305 = vmatpush.msrb.mxu3 %v1628_v33  ;;  %v1720_v3 = vld [vmem:[%s5837_s27 + $0x2f8] sm:$0xff] }
 0x35a   : > { %2217 = vmatmul.f32.gmra.mxu3 %v6023_v11  ;;  %2237 = vmatmul.f32.vlgmr.msrb.gmra.mxu0 %v5957_v44  ;;  %v1788_v4 = vld [vmem:[%s5837_s27 + $0x518] sm:$0xff] }
 0x35b   : > { %2314 = vmatpush.msra.mxu0 %v1748_v34  ;;  %2336 = vmatpush.msra.mxu1 %v1816_v35  ;;  %v1848_v7 = vld [vmem:[%s5837_s27 + $0x6f8] sm:$0xff] }
 0x35c   : > { %2360 = vmatpush.msra.mxu2 %v1876_v36  ;;  %2382 = vmatpush.msra.mxu3 %v1944_v37  ;;  %v1916_v8 = vld [vmem:[%s5837_s27 + $0x918] sm:$0xff] }
 0x35d   : > { %2260 = vmatmul.f32.vlgmr.msrb.gmra.mxu1 %v5972_v50  ;;  %2315 = vmatpush.msra.mxu0 %v1744_v38  ;;  %v1716_v9 = vld [vmem:[%s5837_s27 + $0x2d8] sm:$0xff] }
 0x35e   : > { %2337 = vmatpush.msra.mxu1 %v1812_v39  ;;  %2361 = vmatpush.msra.mxu2 %v1872_v40  ;;  %v1784_v10 = vld [vmem:[%s5837_s27 + $0x4f8] sm:$0xff]  ;;  %v2593_v39 = vld [vmem:[%s5839_s28 + $0x5e0] sm:$0xff] }
 0x35f   : > { %2383 = vmatpush.msra.mxu3 %v1940_v41  ;;  %2316 = vmatpush.msra.mxu0 %v1740_v42  ;;  %v1844_v12 = vld [vmem:[%s5837_s27 + $0x6d8] sm:$0xff]  ;;  %v2461_v42 = vld [vmem:[%s5839_s28 + $0x1c0] sm:$0xff] }
 0x360   : > { %2338 = vmatpush.msra.mxu1 %v1808_v43  ;;  %2362 = vmatpush.msra.mxu2 %v1868_v45  ;;  %v1912_v13 = vld [vmem:[%s5837_s27 + $0x8f8] sm:$0xff]  ;;  %v2529_v43 = vld [vmem:[%s5839_s28 + $0x3e0] sm:$0xff] }
 0x361   : > { %2384 = vmatpush.msra.mxu3 %v1936_v46  ;;  %2286 = vmatmul.f32.gmra.mxu2 %v6041_v24  ;;  %v1712_v14 = vld [vmem:[%s5837_s27 + $0x2b8] sm:$0xff]  ;;  %v2589_v45 = vld [vmem:[%s5839_s28 + $0x5c0] sm:$0xff] }
 0x362   : > { %2317 = vmatpush.msra.mxu0 %v1736_v47  ;;  %2339 = vmatpush.msra.mxu1 %v1804_v48  ;;  %v1780_v15 = vld [vmem:[%s5837_s27 + $0x4d8] sm:$0xff]  ;;  %v2657_v46 = vld [vmem:[%s5839_s28 + $0x7e0] sm:$0xff] }
 0x363   : > { %2363 = vmatpush.msra.mxu2 %v1864_v51  ;;  %2385 = vmatpush.msra.mxu3 %v1932_v52  ;;  %v1840_v16 = vld [vmem:[%s5837_s27 + $0x6b8] sm:$0xff]  ;;  %v2525_v47 = vld [vmem:[%s5839_s28 + $0x3c0] sm:$0xff] }
 0x364   : > { %2240 = vmatmul.f32.gmra.mxu0 %v5997_v0  ;;  %2340 = vmatpush.msra.mxu1 %v1800_v53  ;;  %v1908_v17 = vld [vmem:[%s5837_s27 + $0x8d8] sm:$0xff]  ;;  %v2585_v48 = vld [vmem:[%s5839_s28 + $0x5a0] sm:$0xff] }
 0x365   : > { %2318 = vmatpush.msra.mxu0 %v1732_v54  ;;  %2364 = vmatpush.msra.mxu2 %v1860_v56  ;;  %v1708_v18 = vld [vmem:[%s5837_s27 + $0x298] sm:$0xff]  ;;  %v2653_v51 = vld [vmem:[%s5839_s28 + $0x7c0] sm:$0xff] }
 0x366   : > { %2386 = vmatpush.msra.mxu3 %v1928_v57  ;;  %2263 = vmatmul.f32.gmra.mxu1 %v6007_v5  ;;  %v1776_v19 = vld [vmem:[%s5837_s27 + $0x4b8] sm:$0xff]  ;;  %v2521_v52 = vld [vmem:[%s5839_s28 + $0x3a0] sm:$0xff] }
 0x367   : > { %2319 = vmatpush.msra.mxu0 %v1728_v58  ;;  %2341 = vmatpush.msra.mxu1 %v1796_v59  ;;  %v1836_v20 = vld [vmem:[%s5837_s27 + $0x698] sm:$0xff]  ;;  %v2649_v53 = vld [vmem:[%s5839_s28 + $0x7a0] sm:$0xff] }
 0x368   : > { %2365 = vmatpush.msra.mxu2 %v1856_v60  ;;  %2387 = vmatpush.msra.mxu3 %v1924_v61  ;;  %v1704_v21 = vld [vmem:[%s5837_s27 + $0x278] sm:$0xff]  ;;  %v2449_v54 = vld [vmem:[%s5839_s28 + $0x160] sm:$0xff] }
 0x369   : > { %2320 = vmatpush.msra.mxu0 %v1724_v62  ;;  %2342 = vmatpush.msra.mxu1 %v1792_v63  ;;  %v1772_v22 = vld [vmem:[%s5837_s27 + $0x498] sm:$0xff]  ;;  %v2517_v56 = vld [vmem:[%s5839_s28 + $0x380] sm:$0xff] }
 0x36a   : > { %2366 = vmatpush.msra.mxu2 %v1852_v1  ;;  %2388 = vmatpush.msra.mxu3 %v1920_v2  ;;  %v1832_v23 = vld [vmem:[%s5837_s27 + $0x678] sm:$0xff]  ;;  %v2577_v57 = vld [vmem:[%s5839_s28 + $0x560] sm:$0xff] }
 0x36b   : > { %2321 = vmatpush.msra.mxu0 %v1720_v3  ;;  %2343 = vmatpush.msra.mxu1 %v1788_v4  ;;  %v1900_v25 = vld [vmem:[%s5837_s27 + $0x898] sm:$0xff]  ;;  %v2445_v58 = vld [vmem:[%s5839_s28 + $0x140] sm:$0xff] }
 0x36c   : > { %2367 = vmatpush.msra.mxu2 %v1848_v7  ;;  %2389 = vmatpush.msra.mxu3 %v1916_v8  ;;  %v1700_v26 = vld [vmem:[%s5837_s27 + $0x258] sm:$0xff]  ;;  %v2513_v59 = vld [vmem:[%s5839_s28 + $0x360] sm:$0xff] }
 0x36d   : > { %2306 = vmatmul.f32.vlgmr.msrb.gmra.mxu3 %v5939_v31  ;;  %2322 = vmatpush.msra.mxu0 %v1716_v9  ;;  %v1904_v31 = vld [vmem:[%s5837_s27 + $0x8b8] sm:$0xff]  ;;  %v2573_v60 = vld [vmem:[%s5839_s28 + $0x540] sm:$0xff] }
 0x36e   : > { %2344 = vmatpush.msra.mxu1 %v1784_v10  ;;  %2368 = vmatpush.msra.mxu2 %v1844_v12  ;;  %v1768_v27 = vld [vmem:[%s5837_s27 + $0x478] sm:$0xff]  ;;  %v2641_v61 = vld [vmem:[%s5839_s28 + $0x760] sm:$0xff] }
 0x36f   : > { %2390 = vmatpush.msra.mxu3 %v1912_v13  ;;  %2323 = vmatpush.msra.mxu0 %v1712_v14  ;;  %v1828_v28 = vld [vmem:[%s5837_s27 + $0x658] sm:$0xff]  ;;  %v2509_v62 = vld [vmem:[%s5839_s28 + $0x340] sm:$0xff] }
 0x370   : > { %2345 = vmatpush.msra.mxu1 %v1780_v15  ;;  %2369 = vmatpush.msra.mxu2 %v1840_v16  ;;  %v1896_v29 = vld [vmem:[%s5837_s27 + $0x878] sm:$0xff]  ;;  %v2569_v63 = vld [vmem:[%s5839_s28 + $0x520] sm:$0xff] }
 0x371   : > { %2391 = vmatpush.msra.mxu3 %v1908_v17  ;;  %2324 = vmatpush.msra.mxu0 %v1708_v18  ;;  %v1696_v30 = vld [vmem:[%s5837_s27 + $0x238] sm:$0xff]  ;;  %v2637_v1 = vld [vmem:[%s5839_s28 + $0x740] sm:$0xff] }
 0x372   : > { %2346 = vmatpush.msra.mxu1 %v1776_v19  ;;  %2370 = vmatpush.msra.mxu2 %v1836_v20  ;;  %v1764_v32 = vld [vmem:[%s5837_s27 + $0x458] sm:$0xff]  ;;  %v2505_v2 = vld [vmem:[%s5839_s28 + $0x320] sm:$0xff] }
 0x373   : > { %2392 = vmatpush.msra.mxu3 %v1904_v31  ;;  %2325 = vmatpush.msra.mxu0 %v1704_v21  ;;  %v1824_v33 = vld [vmem:[%s5837_s27 + $0x638] sm:$0xff]  ;;  %v2633_v3 = vld [vmem:[%s5839_s28 + $0x720] sm:$0xff] }
 0x374   : > { %2347 = vmatpush.msra.mxu1 %v1772_v22  ;;  %2371 = vmatpush.msra.mxu2 %v1832_v23  ;;  %v1892_v34 = vld [vmem:[%s5837_s27 + $0x858] sm:$0xff]  ;;  %v2433_v4 = vld [vmem:[%s5839_s28 + $0xe0] sm:$0xff] }
 0x375   : > { %2393 = vmatpush.msra.mxu3 %v1900_v25  ;;  %2326 = vmatpush.msra.mxu0 %v1700_v26  ;;  %v1692_v35 = vld [vmem:[%s5837_s27 + $0x218] sm:$0xff]  ;;  %v2501_v7 = vld [vmem:[%s5839_s28 + $0x300] sm:$0xff] }
 0x376   : > { %2309 = vmatmul.f32.gmra.mxu3 %v5967_v49  ;;  %2348 = vmatpush.msra.mxu1 %v1768_v27  ;;  %v1760_v36 = vld [vmem:[%s5837_s27 + $0x438] sm:$0xff]  ;;  %v2465_v49 = vld [vmem:[%s5839_s28 + $0x1e0] sm:$0xff] }
 0x377   : > { %2372 = vmatpush.msra.mxu2 %v1828_v28  ;;  %2394 = vmatpush.msra.mxu3 %v1896_v29  ;;  %v1820_v37 = vld [vmem:[%s5837_s27 + $0x618] sm:$0xff]  ;;  %v2561_v8 = vld [vmem:[%s5839_s28 + $0x4e0] sm:$0xff] }
 0x378   : > { %2327 = vmatpush.msra.mxu0 %v1696_v30  ;;  %2349 = vmatpush.msra.mxu1 %v1764_v32  ;;  %v1888_v38 = vld [vmem:[%s5837_s27 + $0x838] sm:$0xff]  ;;  %v2429_v9 = vld [vmem:[%s5839_s28 + $0xc0] sm:$0xff] }
 0x379   : > { %2373 = vmatpush.msra.mxu2 %v1824_v33  ;;  %2395 = vmatpush.msra.mxu3 %v1892_v34  ;;  %v1756_v40 = vld [vmem:[%s5837_s27 + $0x418] sm:$0xff]  ;;  %v2497_v10 = vld [vmem:[%s5839_s28 + $0x2e0] sm:$0xff] }
 0x37a   : > { %2328 = vmatpush.msra.mxu0 %v1692_v35  ;;  %2350 = vmatpush.msra.mxu1 %v1760_v36  ;;  %v1884_v41 = vld [vmem:[%s5837_s27 + $0x818] sm:$0xff]  ;;  %v2557_v12 = vld [vmem:[%s5839_s28 + $0x4c0] sm:$0xff] }
 0x37b   : > { %2374 = vmatpush.msra.mxu2 %v1820_v37  ;;  %2396 = vmatpush.msra.mxu3 %v1888_v38  ;;  %v2625_v13 = vld [vmem:[%s5839_s28 + $0x6e0] sm:$0xff] }
 0x37c   : > { %2375 = vmatmul.f32.vlgmr.msra.gmra.mxu2 %v5972_v50  ;;  %2725 = vmatpush.msrb.mxu0 %v2465_v49  ;;  %v2457_v50 = vld [vmem:[%s5839_s28 + $0x1a0] sm:$0xff] }
 0x37d   : > { %2771 = vmatpush.msrb.mxu2 %v2593_v39  ;;  %2351 = vmatpush.msra.mxu1 %v1756_v40  ;;  %v2425_v14 = vld [vmem:[%s5839_s28 + $0xa0] sm:$0xff]  ;;  %v2530_v39 = vld [vmem:[%s5839_s28 + $0x3e8] sm:$0xff] }
 0x37e   : > { %2397 = vmatpush.msra.mxu3 %v1884_v41  ;;  %2329 = vmatmul.f32.vlgmr.msra.gmra.mxu0 %v5983_v55  ;;  %v2453_v55 = vld [vmem:[%s5839_s28 + $0x180] sm:$0xff] }
 0x37f   : > { %2398 = vmatmul.f32.vlgmr.msra.gmra.mxu3 %v6012_v6  ;;  %2726 = vmatpush.msrb.mxu0 %v2461_v42  ;;  %v2581_v6 = vld [vmem:[%s5839_s28 + $0x580] sm:$0xff]  ;;  %v6318_v42 = vpop.f32.mrf.mxu0 }
 0x380   : > { %2748 = vmatpush.msrb.mxu1 %v2529_v43  ;;  %2772 = vmatpush.msrb.mxu2 %v2589_v45  ;;  %v2493_v15 = vld [vmem:[%s5839_s28 + $0x2c0] sm:$0xff]  ;;  %v2466_v45 = vld [vmem:[%s5839_s28 + $0x1e8] sm:$0xff] }
 0x381   : > { %2794 = vmatpush.msrb.mxu3 %v2657_v46  ;;  %2352 = vmatmul.f32.vlgmr.msra.gmra.mxu1 %v5957_v44  ;;  %v2645_v44 = vld [vmem:[%s5839_s28 + $0x780] sm:$0xff]  ;;  %v2526_v46 = vld [vmem:[%s5839_s28 + $0x3c8] sm:$0xff] }
 0x382   : > { %2727 = vmatpush.msrb.mxu0 %v2457_v50  ;;  %2749 = vmatpush.msrb.mxu1 %v2525_v47  ;;  %v2553_v16 = vld [vmem:[%s5839_s28 + $0x4a0] sm:$0xff]  ;;  %v2594_v50 = vld [vmem:[%s5839_s28 + $0x5e8] sm:$0xff] }
 0x383   : > { %2773 = vmatpush.msrb.mxu2 %v2585_v48  ;;  %2795 = vmatpush.msrb.mxu3 %v2653_v51  ;;  %v2621_v17 = vld [vmem:[%s5839_s28 + $0x6c0] sm:$0xff]  ;;  %v2462_v48 = vld [vmem:[%s5839_s28 + $0x1c8] sm:$0xff]  ;;  %v6326_v51 = vpop.f32.mrf.mxu1 }
 0x384   : > { %2728 = vmatpush.msrb.mxu0 %v2453_v55  ;;  %2750 = vmatpush.msrb.mxu1 %v2521_v52  ;;  %v2421_v18 = vld [vmem:[%s5839_s28 + $0x80] sm:$0xff]  ;;  %v2522_v55 = vld [vmem:[%s5839_s28 + $0x3a8] sm:$0xff] }
 0x385   : > { %2774 = vmatpush.msrb.mxu2 %v2581_v6  ;;  %2796 = vmatpush.msrb.mxu3 %v2649_v53  ;;  %v2489_v19 = vld [vmem:[%s5839_s28 + $0x2a0] sm:$0xff]  ;;  %v2590_v52 = vld [vmem:[%s5839_s28 + $0x5c8] sm:$0xff] }
 0x386   : > { %2378 = vmatmul.f32.gmra.mxu2 %v6007_v5  ;;  %2729 = vmatpush.msrb.mxu0 %v2449_v54  ;;  %v2441_v5 = vld [vmem:[%s5839_s28 + $0x120] sm:$0xff]  ;;  %v2458_v53 = vld [vmem:[%s5839_s28 + $0x1a8] sm:$0xff] }
 0x387   : > { %2751 = vmatpush.msrb.mxu1 %v2517_v56  ;;  %2775 = vmatpush.msrb.mxu2 %v2577_v57  ;;  %v2549_v20 = vld [vmem:[%s5839_s28 + $0x480] sm:$0xff]  ;;  %v2518_v54 = vld [vmem:[%s5839_s28 + $0x388] sm:$0xff]  ;;  %v6334_v57 = vpop.f32.mrf.mxu2 }
 0x388   : > { %2797 = vmatpush.msrb.mxu3 %v2645_v44  ;;  %2332 = vmatmul.f32.gmra.mxu0 %v6023_v11  ;;  %v2437_v11 = vld [vmem:[%s5839_s28 + $0x100] sm:$0xff]  ;;  %v2586_v56 = vld [vmem:[%s5839_s28 + $0x5a8] sm:$0xff] }
 0x389   : > { %2401 = vmatmul.f32.gmra.mxu3 %v6041_v24  ;;  %2730 = vmatpush.msrb.mxu0 %v2445_v58  ;;  %v2565_v24 = vld [vmem:[%s5839_s28 + $0x500] sm:$0xff]  ;;  %v2454_v58 = vld [vmem:[%s5839_s28 + $0x188] sm:$0xff] }
 0x38a   : > { %2752 = vmatpush.msrb.mxu1 %v2513_v59  ;;  %2776 = vmatpush.msrb.mxu2 %v2573_v60  ;;  %v2617_v31 = vld [vmem:[%s5839_s28 + $0x6a0] sm:$0xff]  ;;  %v2514_v59 = vld [vmem:[%s5839_s28 + $0x368] sm:$0xff] }
 0x38b   : > { %2798 = vmatpush.msrb.mxu3 %v2641_v61  ;;  %2355 = vmatmul.f32.gmra.mxu1 %v5997_v0  ;;  %v2629_v0 = vld [vmem:[%s5839_s28 + $0x700] sm:$0xff]  ;;  %v2582_v60 = vld [vmem:[%s5839_s28 + $0x588] sm:$0xff] }
 0x38c   : > { %2731 = vmatpush.msrb.mxu0 %v2441_v5  ;;  %2753 = vmatpush.msrb.mxu1 %v2509_v62  ;;  %v2417_v21 = vld [vmem:[%s5839_s28 + $0x60] sm:$0xff]  ;;  %v2450_v5 = vld [vmem:[%s5839_s28 + $0x168] sm:$0xff] }
 0x38d   : > { %2777 = vmatpush.msrb.mxu2 %v2569_v63  ;;  %2799 = vmatpush.msrb.mxu3 %v2637_v1  ;;  %v2485_v22 = vld [vmem:[%s5839_s28 + $0x280] sm:$0xff]  ;;  %v2510_v62 = vld [vmem:[%s5839_s28 + $0x348] sm:$0xff]  ;;  %v6344_v1 = vpop.f32.mrf.mxu0 }
 0x38e   : > { %2732 = vmatpush.msrb.mxu0 %v2437_v11  ;;  %2754 = vmatpush.msrb.mxu1 %v2505_v2  ;;  %v2545_v23 = vld [vmem:[%s5839_s28 + $0x460] sm:$0xff]  ;;  %v2578_v63 = vld [vmem:[%s5839_s28 + $0x568] sm:$0xff] }
 0x38f   : > { %2778 = vmatpush.msrb.mxu2 %v2565_v24  ;;  %2800 = vmatpush.msrb.mxu3 %v2633_v3  ;;  %v2613_v25 = vld [vmem:[%s5839_s28 + $0x680] sm:$0xff]  ;;  %v2446_v2 = vld [vmem:[%s5839_s28 + $0x148] sm:$0xff] }
 0x390   : > { %2733 = vmatpush.msrb.mxu0 %v2433_v4  ;;  %2755 = vmatpush.msrb.mxu1 %v2501_v7  ;;  %v2413_v26 = vld [vmem:[%s5839_s28 + $0x40] sm:$0xff]  ;;  %v2506_v24 = vld [vmem:[%s5839_s28 + $0x328] sm:$0xff] }
 0x391   : > { %2779 = vmatpush.msrb.mxu2 %v2561_v8  ;;  %2801 = vmatpush.msrb.mxu3 %v2629_v0  ;;  %v2481_v27 = vld [vmem:[%s5839_s28 + $0x260] sm:$0xff]  ;;  %v2574_v3 = vld [vmem:[%s5839_s28 + $0x548] sm:$0xff]  ;;  %v6352_v8 = vpop.f32.mrf.mxu1 }
 0x392   : > { %2734 = vmatpush.msrb.mxu0 %v2429_v9  ;;  %2756 = vmatpush.msrb.mxu1 %v2497_v10  ;;  %v2541_v28 = vld [vmem:[%s5839_s28 + $0x440] sm:$0xff]  ;;  %v2442_v7 = vld [vmem:[%s5839_s28 + $0x128] sm:$0xff] }
 0x393   : > { %2780 = vmatpush.msrb.mxu2 %v2557_v12  ;;  %2802 = vmatpush.msrb.mxu3 %v2625_v13  ;;  %v2609_v29 = vld [vmem:[%s5839_s28 + $0x660] sm:$0xff]  ;;  %v2502_v0 = vld [vmem:[%s5839_s28 + $0x308] sm:$0xff] }
 0x394   : > { %2735 = vmatpush.msrb.mxu0 %v2425_v14  ;;  %2757 = vmatpush.msrb.mxu1 %v2493_v15  ;;  %v2409_v30 = vld [vmem:[%s5839_s28 + $0x20] sm:$0xff]  ;;  %v2570_v9 = vld [vmem:[%s5839_s28 + $0x528] sm:$0xff]  ;;  %v6359_v14 = vpop.f32.mrf.mxu2 }
 0x395   : > { %2781 = vmatpush.msrb.mxu2 %v2553_v16  ;;  %2803 = vmatpush.msrb.mxu3 %v2621_v17  ;;  %v2477_v32 = vld [vmem:[%s5839_s28 + $0x240] sm:$0xff]  ;;  %v2438_v10 = vld [vmem:[%s5839_s28 + $0x108] sm:$0xff]  ;;  %v6363_v17 = vpop.f32.mrf.mxu3 }
 0x396   : > { %2736 = vmatpush.msrb.mxu0 %v2421_v18  ;;  %2758 = vmatpush.msrb.mxu1 %v2489_v19  ;;  %v2537_v33 = vld [vmem:[%s5839_s28 + $0x420] sm:$0xff]  ;;  %v2498_v13 = vld [vmem:[%s5839_s28 + $0x2e8] sm:$0xff]  ;;  %v6368_v18 = vld [vmem:[%s7378_s0] sm:$0xff] }
 0x397   : > { %2782 = vmatpush.msrb.mxu2 %v2549_v20  ;;  %2804 = vmatpush.msrb.mxu3 %v2617_v31  ;;  %v2605_v34 = vld [vmem:[%s5839_s28 + $0x640] sm:$0xff]  ;;  %v2566_v15 = vld [vmem:[%s5839_s28 + $0x508] sm:$0xff] }
 0x398   : > { %2737 = vmatpush.msrb.mxu0 %v2417_v21  ;;  %2759 = vmatpush.msrb.mxu1 %v2485_v22  ;;  %v2405_v35 = vld [vmem:[%s5839_s28] sm:$0xff]  ;;  %v2434_v16 = vld [vmem:[%s5839_s28 + $0xe8] sm:$0xff] }
 0x399   : > { %2783 = vmatpush.msrb.mxu2 %v2545_v23  ;;  %2805 = vmatpush.msrb.mxu3 %v2613_v25  ;;  %v2473_v36 = vld [vmem:[%s5839_s28 + $0x220] sm:$0xff]  ;;  %v2494_v20 = vld [vmem:[%s5839_s28 + $0x2c8] sm:$0xff]  ;;  %v6377_v25 = vpop.f32.mrf.mxu0 }
 0x39a   : > { %2738 = vmatpush.msrb.mxu0 %v2413_v26  ;;  %2760 = vmatpush.msrb.mxu1 %v2481_v27  ;;  %v2533_v37 = vld [vmem:[%s5839_s28 + $0x400] sm:$0xff]  ;;  %v2562_v31 = vld [vmem:[%s5839_s28 + $0x4e8] sm:$0xff] }
 0x39b   : > { %2784 = vmatpush.msrb.mxu2 %v2541_v28  ;;  %2806 = vmatpush.msrb.mxu3 %v2609_v29  ;;  %v2601_v38 = vld [vmem:[%s5839_s28 + $0x620] sm:$0xff]  ;;  %v2430_v21 = vld [vmem:[%s5839_s28 + $0xc8] sm:$0xff] }
 0x39c   : > { %2739 = vmatpush.msrb.mxu0 %v2409_v30  ;;  %2761 = vmatpush.msrb.mxu1 %v2477_v32  ;;  %v2721_v49 = vld [vmem:[%s5839_s28 + $0x9e0] sm:$0xff]  ;;  %v2490_v23 = vld [vmem:[%s5839_s28 + $0x2a8] sm:$0xff] }
 0x39d   : > { %2785 = vmatpush.msrb.mxu2 %v2537_v33  ;;  %2807 = vmatpush.msrb.mxu3 %v2605_v34  ;;  %v2469_v40 = vld [vmem:[%s5839_s28 + $0x200] sm:$0xff]  ;;  %v2558_v26 = vld [vmem:[%s5839_s28 + $0x4c8] sm:$0xff] }
 0x39e   : > { %2740 = vmatpush.msrb.mxu0 %v2405_v35  ;;  %2762 = vmatpush.msrb.mxu1 %v2473_v36  ;;  %v2597_v41 = vld [vmem:[%s5839_s28 + $0x600] sm:$0xff]  ;;  %v2426_v29 = vld [vmem:[%s5839_s28 + $0xa8] sm:$0xff] }
 0x39f   : > { %2786 = vmatpush.msrb.mxu2 %v2533_v37  ;;  %2808 = vmatpush.msrb.mxu3 %v2601_v38  ;;  %v2717_v43 = vld [vmem:[%s5839_s28 + $0x9c0] sm:$0xff]  ;;  %v2486_v30 = vld [vmem:[%s5839_s28 + $0x288] sm:$0xff] }
 0x3a0   : > { %2817 = vmatpush.msra.mxu0 %v2721_v49  ;;  %2763 = vmatpush.msrb.mxu1 %v2469_v40  ;;  %v2713_v47 = vld [vmem:[%s5839_s28 + $0x9a0] sm:$0xff]  ;;  %v6380_v27 = vpop.f32.mrf.mxu1  ;;  %v2554_v32 = vld [vmem:[%s5839_s28 + $0x4a8] sm:$0xff]  ;;  %v6401_v49 = vld [vmem:[%s7378_s0 + $0x28] sm:$0xff] }
 0x3a1   : > { %2863 = vmatpush.msra.mxu2 %v2530_v39  ;;  %2809 = vmatpush.msrb.mxu3 %v2597_v41  ;;  %v2709_v6 = vld [vmem:[%s5839_s28 + $0x980] sm:$0xff]  ;;  %v2422_v35 = vld [vmem:[%s5839_s28 + $0x88] sm:$0xff]  ;;  %v6411_v41 = vpop.f32.mrf.mxu3 }
 0x3a2   : > { %2818 = vmatpush.msra.mxu0 %v2717_v43  ;;  %2840 = vmatpush.msra.mxu1 %v2466_v45  ;;  %v2705_v44 = vld [vmem:[%s5839_s28 + $0x960] sm:$0xff]  ;;  %v2482_v37 = vld [vmem:[%s5839_s28 + $0x268] sm:$0xff] }
 0x3a3   : > { %2864 = vmatpush.msra.mxu2 %v2526_v46  ;;  %2886 = vmatpush.msra.mxu3 %v2594_v50  ;;  %v2701_v61 = vld [vmem:[%s5839_s28 + $0x940] sm:$0xff]  ;;  %v2550_v38 = vld [vmem:[%s5839_s28 + $0x488] sm:$0xff] }
 0x3a4   : > { %2819 = vmatpush.msra.mxu0 %v2713_v47  ;;  %2841 = vmatpush.msra.mxu1 %v2462_v48  ;;  %v2697_v11 = vld [vmem:[%s5839_s28 + $0x920] sm:$0xff]  ;;  %v6407_v39 = vld [vmem:[%s7378_s0 + $0x18] sm:$0xff]  ;;  %v6420_v47 = vld [vmem:[%s7378_s0 + $0x8] sm:$0xff] }
 0x3a5   : > { %2865 = vmatpush.msra.mxu2 %v2522_v55  ;;  %2887 = vmatpush.msra.mxu3 %v2590_v52  ;;  %v2693_v4 = vld [vmem:[%s5839_s28 + $0x900] sm:$0xff]  ;;  %v2418_v43 = vld [vmem:[%s5839_s28 + $0x68] sm:$0xff]  ;;  %v6425_v52 = vpop.f32.mrf.mxu0 }
 0x3a6   : > { %2820 = vmatpush.msra.mxu0 %v2709_v6  ;;  %2842 = vmatpush.msra.mxu1 %v2458_v53  ;;  %v2689_v12 = vld [vmem:[%s5839_s28 + $0x8e0] sm:$0xff]  ;;  %v2478_v45 = vld [vmem:[%s5839_s28 + $0x248] sm:$0xff] }
 0x3a7   : > { %2866 = vmatpush.msra.mxu2 %v2518_v54  ;;  %2888 = vmatpush.msra.mxu3 %v2586_v56  ;;  %v2685_v19 = vld [vmem:[%s5839_s28 + $0x8c0] sm:$0xff]  ;;  %v2546_v46 = vld [vmem:[%s5839_s28 + $0x468] sm:$0xff] }
 0x3a8   : > { %2821 = vmatpush.msra.mxu0 %v2705_v44  ;;  %2843 = vmatpush.msra.mxu1 %v2454_v58  ;;  %v2681_v22 = vld [vmem:[%s5839_s28 + $0x8a0] sm:$0xff]  ;;  %v2414_v48 = vld [vmem:[%s5839_s28 + $0x48] sm:$0xff] }
 0x3a9   : > { %2867 = vmatpush.msra.mxu2 %v2514_v59  ;;  %2889 = vmatpush.msra.mxu3 %v2582_v60  ;;  %v2677_v28 = vld [vmem:[%s5839_s28 + $0x880] sm:$0xff]  ;;  %v2474_v55 = vld [vmem:[%s5839_s28 + $0x228] sm:$0xff]  ;;  %v6428_v53 = vpop.f32.mrf.mxu1 }
 0x3aa   : > { %2822 = vmatpush.msra.mxu0 %v2701_v61  ;;  %2844 = vmatpush.msra.mxu1 %v2450_v5  ;;  %v6389_v33 = vld [vmem:[%s7378_s0 + $0x10] sm:$0xff]  ;;  %v6394_v36 = vpop.f32.mrf.mxu2  ;;  %v2542_v6 = vld [vmem:[%s5839_s28 + $0x448] sm:$0xff]  ;;  %v2467_v61 = vld [vmem:[%s5839_s28 + $0x1f0] sm:$0xff] }
 0x3ab   : > { %2868 = vmatpush.msra.mxu2 %v2510_v62  ;;  %2890 = vmatpush.msra.mxu3 %v2578_v63  ;;  %v2673_v34 = vld [vmem:[%s5839_s28 + $0x860] sm:$0xff]  ;;  %v2410_v56 = vld [vmem:[%s5839_s28 + $0x28] sm:$0xff] }
 0x3ac   : > { %2823 = vmatpush.msra.mxu0 %v2697_v11  ;;  %2845 = vmatpush.msra.mxu1 %v2446_v2  ;;  %v2669_v40 = vld [vmem:[%s5839_s28 + $0x840] sm:$0xff]  ;;  %v2470_v44 = vld [vmem:[%s5839_s28 + $0x208] sm:$0xff]  ;;  %v6451_v2 = vld [vmem:[%s7378_s0 + $0x40] sm:$0xff] }
 0x3ad   : > { %2869 = vmatpush.msra.mxu2 %v2506_v24  ;;  %2891 = vmatpush.msra.mxu3 %v2574_v3  ;;  %v2665_v50 = vld [vmem:[%s5839_s28 + $0x820] sm:$0xff]  ;;  %v2538_v58 = vld [vmem:[%s5839_s28 + $0x428] sm:$0xff]  ;;  %v6444_v62 = vpop.f32.mrf.mxu3  ;;  %v6457_v24 = vld [vmem:[%s7378_s0 + $0x20] sm:$0xff] }
 0x3ae   : > { %2824 = vmatpush.msra.mxu0 %v2693_v4  ;;  %2846 = vmatpush.msra.mxu1 %v2442_v7  ;;  %v2661_v54 = vld [vmem:[%s5839_s28 + $0x800] sm:$0xff]  ;;  %v6437_v59 = vld [vmem:[%s7378_s0 + $0x38] sm:$0xff]  ;;  %v2463_v7 = vld [vmem:[%s5839_s28 + $0x1d0] sm:$0xff] }
 0x3af   : > { %2870 = vmatpush.msra.mxu2 %v2502_v0  ;;  %2892 = vmatpush.msra.mxu3 %v2570_v9  ;;  %v2658_v60 = vld [vmem:[%s5839_s28 + $0x7e8] sm:$0xff]  ;;  %v2531_v9 = vld [vmem:[%s5839_s28 + $0x3f0] sm:$0xff] }
 0x3b0   : > { %2741 = vmatmul.f32.vlgmr.msrb.gmra.mxu0 %v6368_v18  ;;  %2847 = vmatpush.msra.mxu1 %v2438_v10  ;;  %v2406_v63 = vld [vmem:[%s5839_s28 + $0x8] sm:$0xff]  ;;  %v6463_v0 = vpop.f32.mrf.mxu0 }
 0x3b1   : > { %2825 = vmatpush.msra.mxu0 %v2689_v12  ;;  %2871 = vmatpush.msra.mxu2 %v2498_v13  ;;  %v2534_v11 = vld [vmem:[%s5839_s28 + $0x408] sm:$0xff]  ;;  %v6470_v12 = vld [vmem:[%s7378_s0 + $0x30] sm:$0xff] }
 0x3b2   : > { %2893 = vmatpush.msra.mxu3 %v2566_v15  ;;  %2848 = vmatpush.msra.mxu1 %v2434_v16  ;;  %v2654_v3 = vld [vmem:[%s5839_s28 + $0x7c8] sm:$0xff]  ;;  %v2459_v15 = vld [vmem:[%s5839_s28 + $0x1b0] sm:$0xff] }
 0x3b3   : > { %2826 = vmatpush.msra.mxu0 %v2685_v19  ;;  %2872 = vmatpush.msra.mxu2 %v2494_v20  ;;  %v2722_v4 = vld [vmem:[%s5839_s28 + $0x9e8] sm:$0xff]  ;;  %v2527_v16 = vld [vmem:[%s5839_s28 + $0x3d0] sm:$0xff]  ;;  %v6477_v20 = vpop.f32.mrf.mxu1 }
 0x3b4   : > { %2894 = vmatpush.msra.mxu3 %v2562_v31  ;;  %2849 = vmatpush.msra.mxu1 %v2430_v21  ;;  %v6442_v5 = vpop.f32.mrf.mxu2  ;;  %v2650_v10 = vld [vmem:[%s5839_s28 + $0x7a8] sm:$0xff]  ;;  %v2455_v21 = vld [vmem:[%s5839_s28 + $0x190] sm:$0xff] }
 0x3b5   : > { %2827 = vmatpush.msra.mxu0 %v2681_v22  ;;  %2873 = vmatpush.msra.mxu2 %v2490_v23  ;;  %v2718_v13 = vld [vmem:[%s5839_s28 + $0x9c8] sm:$0xff]  ;;  %v2523_v22 = vld [vmem:[%s5839_s28 + $0x3b0] sm:$0xff] }
 0x3b6   : > { %2895 = vmatpush.msra.mxu3 %v2558_v26  ;;  %2787 = vmatmul.f32.vlgmr.msrb.gmra.mxu2 %v6389_v33  ;;  %v2646_v19 = vld [vmem:[%s5839_s28 + $0x788] sm:$0xff] }
 0x3b7   : > { %2828 = vmatpush.msra.mxu0 %v2677_v28  ;;  %2850 = vmatpush.msra.mxu1 %v2426_v29  ;;  %v2714_v31 = vld [vmem:[%s5839_s28 + $0x9a8] sm:$0xff]  ;;  %v2451_v29 = vld [vmem:[%s5839_s28 + $0x170] sm:$0xff] }
 0x3b8   : > { %2874 = vmatpush.msra.mxu2 %v2486_v30  ;;  %2896 = vmatpush.msra.mxu3 %v2554_v32  ;;  %v2642_v26 = vld [vmem:[%s5839_s28 + $0x768] sm:$0xff]  ;;  %v2519_v30 = vld [vmem:[%s5839_s28 + $0x390] sm:$0xff]  ;;  %v6486_v32 = vpop.f32.mrf.mxu3 }
 0x3b9   : > { %2744 = vmatmul.f32.gmra.mxu0 %v6401_v49  ;;  %2810 = vmatmul.f32.vlgmr.msrb.gmra.mxu3 %v6407_v39  ;;  %v2710_v28 = vld [vmem:[%s5839_s28 + $0x988] sm:$0xff] }
 0x3ba   : > { %2829 = vmatpush.msra.mxu0 %v2673_v34  ;;  %2851 = vmatpush.msra.mxu1 %v2422_v35  ;;  %v6491_v34 = vld [vmem:[%s7378_s0 + $0x48] sm:$0xff]  ;;  %v2638_v35 = vld [vmem:[%s5839_s28 + $0x748] sm:$0xff] }
 0x3bb   : > { %2875 = vmatpush.msra.mxu2 %v2482_v37  ;;  %2897 = vmatpush.msra.mxu3 %v2550_v38  ;;  %v2706_v37 = vld [vmem:[%s5839_s28 + $0x968] sm:$0xff]  ;;  %v2447_v38 = vld [vmem:[%s5839_s28 + $0x150] sm:$0xff] }
 0x3bc   : > { %2764 = vmatmul.f32.vlgmr.msrb.gmra.mxu1 %v6420_v47  ;;  %2830 = vmatpush.msra.mxu0 %v2669_v40  ;;  %v2515_v40 = vld [vmem:[%s5839_s28 + $0x370] sm:$0xff] }
 0x3bd   : > { %2852 = vmatpush.msra.mxu1 %v2418_v43  ;;  %2876 = vmatpush.msra.mxu2 %v2478_v45  ;;  %v2634_v43 = vld [vmem:[%s5839_s28 + $0x728] sm:$0xff] }
 0x3be   : > { %2898 = vmatpush.msra.mxu3 %v2546_v46  ;;  %2831 = vmatpush.msra.mxu0 %v2665_v50  ;;  %v2702_v45 = vld [vmem:[%s5839_s28 + $0x948] sm:$0xff]  ;;  %v6500_v46 = vpop.f32.mrf.mxu0  ;;  %v2443_v50 = vld [vmem:[%s5839_s28 + $0x130] sm:$0xff] }
 0x3bf   : > { %2853 = vmatpush.msra.mxu1 %v2414_v48  ;;  %2877 = vmatpush.msra.mxu2 %v2474_v55  ;;  %v2511_v48 = vld [vmem:[%s5839_s28 + $0x350] sm:$0xff]  ;;  %v2630_v55 = vld [vmem:[%s5839_s28 + $0x708] sm:$0xff] }
 0x3c0   : > { %2899 = vmatpush.msra.mxu3 %v2542_v6  ;;  %2790 = vmatmul.f32.gmra.mxu2 %v6437_v59  ;;  %v2698_v6 = vld [vmem:[%s5839_s28 + $0x928] sm:$0xff] }
 0x3c1   : > { %2832 = vmatpush.msra.mxu0 %v2661_v54  ;;  %2854 = vmatpush.msra.mxu1 %v2410_v56  ;;  %v2439_v54 = vld [vmem:[%s5839_s28 + $0x110] sm:$0xff] }
 0x3c2   : > { %2878 = vmatpush.msra.mxu2 %v2470_v44  ;;  %2900 = vmatpush.msra.mxu3 %v2538_v58  ;;  %v2507_v56 = vld [vmem:[%s5839_s28 + $0x330] sm:$0xff]  ;;  %v6508_v58 = vpop.f32.mrf.mxu1 }
 0x3c3   : > { %2813 = vmatmul.f32.gmra.mxu3 %v6451_v2  ;;  %2833 = vmatmul.f32.vlgmr.msra.gmra.mxu0 %v6457_v24 }
 0x3c4   : > { %2909 = vmatpush.msrb.mxu0 %v2658_v60  ;;  %2955 = vmatpush.msrb.mxu2 %v2467_v61  ;;  %v2626_v60 = vld [vmem:[%s5839_s28 + $0x6e8] sm:$0xff] }
 0x3c5   : > { %2855 = vmatpush.msra.mxu1 %v2406_v63  ;;  %2901 = vmatpush.msra.mxu3 %v2534_v11  ;;  %v2694_v61 = vld [vmem:[%s5839_s28 + $0x908] sm:$0xff]  ;;  %v2435_v63 = vld [vmem:[%s5839_s28 + $0xf0] sm:$0xff] }
 0x3c6   : > { %2767 = vmatmul.f32.gmra.mxu1 %v6470_v12  ;;  %2910 = vmatpush.msrb.mxu0 %v2654_v3  ;;  %v2503_v11 = vld [vmem:[%s5839_s28 + $0x310] sm:$0xff]  ;;  %v2622_v3 = vld [vmem:[%s5839_s28 + $0x6c8] sm:$0xff] }
 0x3c7   : > { %2932 = vmatpush.msrb.mxu1 %v2722_v4  ;;  %2956 = vmatpush.msrb.mxu2 %v2463_v7  ;;  %v2690_v7 = vld [vmem:[%s5839_s28 + $0x8e8] sm:$0xff] }
 0x3c8   : > { %2978 = vmatpush.msrb.mxu3 %v2531_v9  ;;  %2911 = vmatpush.msrb.mxu0 %v2650_v10  ;;  %v2431_v9 = vld [vmem:[%s5839_s28 + $0xd0] sm:$0xff] }
 0x3c9   : > { %2933 = vmatpush.msrb.mxu1 %v2718_v13  ;;  %2957 = vmatpush.msrb.mxu2 %v2459_v15  ;;  %v2192_v23 = vpop.f32.mrf.mxu2  ;;  %v2499_v13 = vld [vmem:[%s5839_s28 + $0x2f0] sm:$0xff]  ;;  %v2618_v15 = vld [vmem:[%s5839_s28 + $0x6a8] sm:$0xff] }
 0x3ca   : > { %2979 = vmatpush.msrb.mxu3 %v2527_v16  ;;  %2912 = vmatpush.msrb.mxu0 %v2646_v19  ;;  %v2686_v16 = vld [vmem:[%s5839_s28 + $0x8c8] sm:$0xff]  ;;  %v2427_v19 = vld [vmem:[%s5839_s28 + $0xb0] sm:$0xff] }
 0x3cb   : > { %2934 = vmatpush.msrb.mxu1 %v2714_v31  ;;  %2958 = vmatpush.msrb.mxu2 %v2455_v21  ;;  %v2495_v21 = vld [vmem:[%s5839_s28 + $0x2d0] sm:$0xff] }
 0x3cc   : > { %2980 = vmatpush.msrb.mxu3 %v2523_v22  ;;  %2836 = vmatmul.f32.gmra.mxu0 %v6491_v34 }
 0x3cd   : > { %2913 = vmatpush.msrb.mxu0 %v2642_v26  ;;  %2935 = vmatpush.msrb.mxu1 %v2710_v28  ;;  %v2682_v26 = vld [vmem:[%s5839_s28 + $0x8a8] sm:$0xff]  ;;  %v2423_v28 = vld [vmem:[%s5839_s28 + $0x90] sm:$0xff] }
 0x3ce   : > { %2959 = vmatpush.msrb.mxu2 %v2451_v29  ;;  %2981 = vmatpush.msrb.mxu3 %v2519_v30  ;;  %v2491_v29 = vld [vmem:[%s5839_s28 + $0x2b0] sm:$0xff] }
 0x3cf   : > { %2914 = vmatpush.msrb.mxu0 %v2638_v35  ;;  %2936 = vmatpush.msrb.mxu1 %v2706_v37  ;;  %v2610_v37 = vld [vmem:[%s5839_s28 + $0x668] sm:$0xff] }
 0x3d0   : > { %2960 = vmatpush.msrb.mxu2 %v2447_v38  ;;  %2982 = vmatpush.msrb.mxu3 %v2515_v40  ;;  %v2678_v40 = vld [vmem:[%s5839_s28 + $0x888] sm:$0xff] }
 0x3d1   : > { %2915 = vmatpush.msrb.mxu0 %v2634_v43  ;;  %2937 = vmatpush.msrb.mxu1 %v2702_v45  ;;  %v2195_v44 = vpop.f32.mrf.mxu2  ;;  %v2419_v43 = vld [vmem:[%s5839_s28 + $0x70] sm:$0xff] }
 0x3d2   : > { %2961 = vmatpush.msrb.mxu2 %v2443_v50  ;;  %2983 = vmatpush.msrb.mxu3 %v2511_v48  ;;  %v2487_v45 = vld [vmem:[%s5839_s28 + $0x290] sm:$0xff] }
 0x3d3   : > { %2916 = vmatpush.msrb.mxu0 %v2630_v55  ;;  %2938 = vmatpush.msrb.mxu1 %v2698_v6  ;;  %v2606_v55 = vld [vmem:[%s5839_s28 + $0x648] sm:$0xff] }
 0x3d4   : > { %2962 = vmatpush.msrb.mxu2 %v2439_v54  ;;  %2984 = vmatpush.msrb.mxu3 %v2507_v56  ;;  %v2215_v4 = vpop.f32.mrf.mxu3  ;;  %v2674_v6 = vld [vmem:[%s5839_s28 + $0x868] sm:$0xff]  ;;  %v2415_v56 = vld [vmem:[%s5839_s28 + $0x50] sm:$0xff] }
 0x3d5   : > { %2917 = vmatpush.msrb.mxu0 %v2626_v60  ;;  %2939 = vmatpush.msrb.mxu1 %v2694_v61  ;;  %v2216_v10 = vadd.f32 %v2215_v4, %v2192_v23  ;;  %v2614_v23 = vld [vmem:[%s5839_s28 + $0x688] sm:$0xff]  ;;  %v2483_v60 = vld [vmem:[%s5839_s28 + $0x270] sm:$0xff] }
 0x3d6   : > { %2963 = vmatpush.msrb.mxu2 %v2435_v63  ;;  %2985 = vmatpush.msrb.mxu3 %v2503_v11  ;;  %v2602_v61 = vld [vmem:[%s5839_s28 + $0x628] sm:$0xff]  ;;  %v2411_v11 = vld [vmem:[%s5839_s28 + $0x30] sm:$0xff] }
 0x3d7   : > { %2856 = vmatmul.f32.vlgmr.msra.gmra.mxu1 %v6368_v18  ;;  %2918 = vmatpush.msrb.mxu0 %v2622_v3  ;;  %v2238_v31 = vpop.f32.mrf.mxu0  ;;  %v2670_v63 = vld [vmem:[%s5839_s28 + $0x848] sm:$0xff]  ;;  %v2479_v3 = vld [vmem:[%s5839_s28 + $0x250] sm:$0xff] }
 0x3d8   : > { %2940 = vmatpush.msrb.mxu1 %v2690_v7  ;;  %2964 = vmatpush.msrb.mxu2 %v2431_v9  ;;  %v2239_v22 = vadd.f32 %v2238_v31, %v2216_v10  ;;  %v2666_v9 = vld [vmem:[%s5839_s28 + $0x828] sm:$0xff]  ;;  %v2407_v10 = vld [vmem:[%s5839_s28 + $0x10] sm:$0xff] }
 0x3d9   : > { %2986 = vmatpush.msrb.mxu3 %v2499_v13  ;;  %2919 = vmatpush.msrb.mxu0 %v2618_v15  ;;  %v2475_v15 = vld [vmem:[%s5839_s28 + $0x230] sm:$0xff] }
 0x3da   : > { %2941 = vmatpush.msrb.mxu1 %v2686_v16  ;;  %2965 = vmatpush.msrb.mxu2 %v2427_v19  ;;  %v2261_v30 = vpop.f32.mrf.mxu1  ;;  %v2284_v35 = vpop.f32.mrf.mxu2  ;;  %v2595_v31 = vld [vmem:[%s5839_s28 + $0x5f0] sm:$0xff] }
 0x3db   : > { %2987 = vmatpush.msrb.mxu3 %v2495_v21  ;;  %2879 = vmatmul.f32.vlgmr.msra.gmra.mxu2 %v6420_v47  ;;  %v2262_v38 = vadd.f32 %v2261_v30, %v2239_v22  ;;  %v2723_v21 = vld [vmem:[%s5839_s28 + $0x9f0] sm:$0xff]  ;;  %v2662_v22 = vld [vmem:[%s5839_s28 + $0x808] sm:$0xff] }
 0x3dc   : > { %2920 = vmatpush.msrb.mxu0 %v2614_v23  ;;  %2942 = vmatpush.msrb.mxu1 %v2682_v26  ;;  %v2471_v26 = vld [vmem:[%s5839_s28 + $0x210] sm:$0xff] }
 0x3dd   : > { %2966 = vmatpush.msrb.mxu2 %v2423_v28  ;;  %2988 = vmatpush.msrb.mxu3 %v2491_v29  ;;  %v6532_v50 = vadd.f32 %v2284_v35, %v2262_v38  ;;  %v2218_v48 = vpop.f32.mrf.mxu3  ;;  %v2591_v28 = vld [vmem:[%s5839_s28 + $0x5d0] sm:$0xff]  ;;  %v2468_v35 = vld [vmem:[%s5839_s28 + $0x1f8] sm:$0xff] }
 0x3de   : > { %2902 = vmatmul.f32.vlgmr.msra.gmra.mxu3 %v6389_v33  ;;  %2921 = vmatpush.msrb.mxu0 %v2610_v37  ;;  %v2219_v54 = vadd.f32 %v2218_v48, %v2195_v44  ;;  %v2598_v44 = vld [vmem:[%s5839_s28 + $0x608] sm:$0xff]  ;;  %v2659_v29 = vld [vmem:[%s5839_s28 + $0x7f0] sm:$0xff] }
 0x3df   : > { %2943 = vmatpush.msrb.mxu1 %v2678_v40  ;;  %2967 = vmatpush.msrb.mxu2 %v2419_v43  ;;  %v2719_v30 = vld [vmem:[%s5839_s28 + $0x9d0] sm:$0xff]  ;;  %v2464_v43 = vld [vmem:[%s5839_s28 + $0x1d8] sm:$0xff] }
 0x3e0   : > { %2989 = vmatpush.msrb.mxu3 %v2487_v45  ;;  %2859 = vmatmul.f32.gmra.mxu1 %v6401_v49  ;;  %v2587_v37 = vld [vmem:[%s5839_s28 + $0x5b0] sm:$0xff] }
 0x3e1   : > { %2922 = vmatpush.msrb.mxu0 %v2606_v55  ;;  %2944 = vmatpush.msrb.mxu1 %v2674_v6  ;;  %v2241_v4 = vpop.f32.mrf.mxu0  ;;  %v2655_v38 = vld [vmem:[%s5839_s28 + $0x7d0] sm:$0xff]  ;;  %v2460_v6 = vld [vmem:[%s5839_s28 + $0x1b8] sm:$0xff] }
 0x3e2   : > { %2968 = vmatpush.msrb.mxu2 %v2415_v56  ;;  %2990 = vmatpush.msrb.mxu3 %v2483_v60  ;;  %v2242_v7 = vadd.f32 %v2241_v4, %v2219_v54  ;;  %v2715_v40 = vld [vmem:[%s5839_s28 + $0x9b0] sm:$0xff] }
 0x3e3   : > { %2923 = vmatpush.msrb.mxu0 %v2602_v61  ;;  %2945 = vmatpush.msrb.mxu1 %v2670_v63  ;;  %v2264_v13 = vpop.f32.mrf.mxu1  ;;  %v2583_v45 = vld [vmem:[%s5839_s28 + $0x590] sm:$0xff]  ;;  %v2456_v61 = vld [vmem:[%s5839_s28 + $0x198] sm:$0xff] }
 0x3e4   : > { %2969 = vmatpush.msrb.mxu2 %v2411_v11  ;;  %2991 = vmatpush.msrb.mxu3 %v2479_v3  ;;  %v2265_v16 = vadd.f32 %v2264_v13, %v2242_v7  ;;  %v2287_v19 = vpop.f32.mrf.mxu2  ;;  %v2651_v48 = vld [vmem:[%s5839_s28 + $0x7b0] sm:$0xff]  ;;  %v2448_v13 = vld [vmem:[%s5839_s28 + $0x158] sm:$0xff] }
 0x3e5   : > { %2882 = vmatmul.f32.gmra.mxu2 %v6470_v12  ;;  %2924 = vmatpush.msrb.mxu0 %v2598_v44  ;;  %v2711_v55 = vld [vmem:[%s5839_s28 + $0x990] sm:$0xff]  ;;  %v2452_v44 = vld [vmem:[%s5839_s28 + $0x178] sm:$0xff] }
 0x3e6   : > { %2946 = vmatpush.msrb.mxu1 %v2666_v9  ;;  %2970 = vmatpush.msrb.mxu2 %v2407_v10  ;;  %v6552_v23 = vadd.f32 %v2287_v19, %v2265_v16  ;;  %v2647_v54 = vld [vmem:[%s5839_s28 + $0x790] sm:$0xff] }
 0x3e7   : > { %2992 = vmatpush.msrb.mxu3 %v2475_v15  ;;  %2925 = vmatmul.f32.vlgmr.msrb.gmra.mxu0 %v6407_v39  ;;  %v2579_v56 = vld [vmem:[%s5839_s28 + $0x570] sm:$0xff] }
 0x3e8   : > { %2905 = vmatmul.f32.gmra.mxu3 %v6437_v59  ;;  %3001 = vmatpush.msra.mxu0 %v2595_v31  ;;  %v2707_v60 = vld [vmem:[%s5839_s28 + $0x970] sm:$0xff]  ;;  %v2444_v31 = vld [vmem:[%s5839_s28 + $0x138] sm:$0xff] }
 0x3e9   : > { %3047 = vmatpush.msra.mxu2 %v2723_v21  ;;  %2947 = vmatpush.msrb.mxu1 %v2662_v22  ;;  %v2575_v11 = vld [vmem:[%s5839_s28 + $0x550] sm:$0xff] }
 0x3ea   : > { %2993 = vmatpush.msrb.mxu3 %v2471_v26  ;;  %2948 = vmatmul.f32.vlgmr.msrb.gmra.mxu1 %v6457_v24  ;;  %v2643_v3 = vld [vmem:[%s5839_s28 + $0x770] sm:$0xff] }
 0x3eb   : > { %3002 = vmatpush.msra.mxu0 %v2591_v28  ;;  %3024 = vmatpush.msra.mxu1 %v2659_v29  ;;  %v2703_v4 = vld [vmem:[%s5839_s28 + $0x950] sm:$0xff]  ;;  %v2440_v28 = vld [vmem:[%s5839_s28 + $0x118] sm:$0xff] }
 0x3ec   : > { %3048 = vmatpush.msra.mxu2 %v2719_v30  ;;  %3070 = vmatpush.msra.mxu3 %v2468_v35  ;;  %v2571_v7 = vld [vmem:[%s5839_s28 + $0x530] sm:$0xff] }
 0x3ed   : > { %3003 = vmatpush.msra.mxu0 %v2587_v37  ;;  %3025 = vmatpush.msra.mxu1 %v2655_v38  ;;  %v2639_v9 = vld [vmem:[%s5839_s28 + $0x750] sm:$0xff]  ;;  %v2436_v38 = vld [vmem:[%s5839_s28 + $0xf8] sm:$0xff] }
 0x3ee   : > { %3049 = vmatpush.msra.mxu2 %v2715_v40  ;;  %3071 = vmatpush.msra.mxu3 %v2464_v43  ;;  %v2699_v10 = vld [vmem:[%s5839_s28 + $0x930] sm:$0xff] }
 0x3ef   : > { %3004 = vmatpush.msra.mxu0 %v2583_v45  ;;  %3026 = vmatpush.msra.mxu1 %v2651_v48  ;;  %v2567_v15 = vld [vmem:[%s5839_s28 + $0x510] sm:$0xff] }
 0x3f0   : > { %3050 = vmatpush.msra.mxu2 %v2711_v55  ;;  %3072 = vmatpush.msra.mxu3 %v2460_v6  ;;  %v2307_v63 = vpop.f32.mrf.mxu3  ;;  %v2635_v16 = vld [vmem:[%s5839_s28 + $0x730] sm:$0xff]  ;;  %v2432_v6 = vld [vmem:[%s5839_s28 + $0xd8] sm:$0xff] }
 0x3f1   : > { %2928 = vmatmul.f32.gmra.mxu0 %v6451_v2  ;;  %3027 = vmatpush.msra.mxu1 %v2647_v54  ;;  %v2695_v19 = vld [vmem:[%s5839_s28 + $0x910] sm:$0xff] }
 0x3f2   : > { %3005 = vmatpush.msra.mxu0 %v2579_v56  ;;  %3051 = vmatpush.msra.mxu2 %v2707_v60  ;;  %v2563_v21 = vld [vmem:[%s5839_s28 + $0x4f0] sm:$0xff] }
 0x3f3   : > { %3073 = vmatpush.msra.mxu3 %v2456_v61  ;;  %2951 = vmatmul.f32.gmra.mxu1 %v6491_v34  ;;  %v2631_v22 = vld [vmem:[%s5839_s28 + $0x710] sm:$0xff] }
 0x3f4   : > { %3006 = vmatpush.msra.mxu0 %v2575_v11  ;;  %3028 = vmatpush.msra.mxu1 %v2643_v3  ;;  %v2691_v26 = vld [vmem:[%s5839_s28 + $0x8f0] sm:$0xff]  ;;  %v2428_v11 = vld [vmem:[%s5839_s28 + $0xb8] sm:$0xff] }
 0x3f5   : > { %3052 = vmatpush.msra.mxu2 %v2703_v4  ;;  %3074 = vmatpush.msra.mxu3 %v2452_v44  ;;  %v2559_v29 = vld [vmem:[%s5839_s28 + $0x4d0] sm:$0xff] }
 0x3f6   : > { %3007 = vmatpush.msra.mxu0 %v2571_v7  ;;  %3029 = vmatpush.msra.mxu1 %v2639_v9  ;;  %v2627_v35 = vld [vmem:[%s5839_s28 + $0x6f0] sm:$0xff]  ;;  %v2424_v9 = vld [vmem:[%s5839_s28 + $0x98] sm:$0xff] }
 0x3f7   : > { %3053 = vmatpush.msra.mxu2 %v2699_v10  ;;  %3075 = vmatpush.msra.mxu3 %v2448_v13  ;;  %v2687_v37 = vld [vmem:[%s5839_s28 + $0x8d0] sm:$0xff] }
 0x3f8   : > { %3008 = vmatpush.msra.mxu0 %v2567_v15  ;;  %3030 = vmatpush.msra.mxu1 %v2635_v16  ;;  %v2555_v40 = vld [vmem:[%s5839_s28 + $0x4b0] sm:$0xff] }
 0x3f9   : > { %3054 = vmatpush.msra.mxu2 %v2695_v19  ;;  %3076 = vmatpush.msra.mxu3 %v2444_v31  ;;  %v2310_v30 = vpop.f32.mrf.mxu3  ;;  %v2623_v45 = vld [vmem:[%s5839_s28 + $0x6d0] sm:$0xff] }
 0x3fa   : > { %2971 = vmatmul.f32.vlgmr.msrb.gmra.mxu2 %v6368_v18  ;;  %3009 = vmatpush.msra.mxu0 %v2563_v21  ;;  %v2683_v48 = vld [vmem:[%s5839_s28 + $0x8b0] sm:$0xff]  ;;  %v2420_v21 = vld [vmem:[%s5839_s28 + $0x78] sm:$0xff] }
 0x3fb   : > { %3031 = vmatpush.msra.mxu1 %v2631_v22  ;;  %3055 = vmatpush.msra.mxu2 %v2691_v26  ;;  %v2330_v43 = vpop.f32.mrf.mxu0  ;;  %v2551_v54 = vld [vmem:[%s5839_s28 + $0x490] sm:$0xff] }
 0x3fc   : > { %3077 = vmatpush.msra.mxu3 %v2440_v28  ;;  %3010 = vmatpush.msra.mxu0 %v2559_v29  ;;  %v2331_v55 = vadd.f32 %v2330_v43, %v2307_v63  ;;  %v2619_v56 = vld [vmem:[%s5839_s28 + $0x6b0] sm:$0xff] }
 0x3fd   : > { %3032 = vmatpush.msra.mxu1 %v2627_v35  ;;  %3056 = vmatpush.msra.mxu2 %v2687_v37  ;;  %v2679_v60 = vld [vmem:[%s5839_s28 + $0x890] sm:$0xff]  ;;  %v2416_v35 = vld [vmem:[%s5839_s28 + $0x58] sm:$0xff] }
 0x3fe   : > { %3078 = vmatpush.msra.mxu3 %v2436_v38  ;;  %3011 = vmatpush.msra.mxu0 %v2555_v40  ;;  %v2353_v61 = vpop.f32.mrf.mxu1  ;;  %v2547_v63 = vld [vmem:[%s5839_s28 + $0x470] sm:$0xff] }
 0x3ff   : > { %3033 = vmatpush.msra.mxu1 %v2623_v45  ;;  %3057 = vmatpush.msra.mxu2 %v2683_v48  ;;  %v2354_v3 = vadd.f32 %v2353_v61, %v2331_v55  ;;  %v2376_v4 = vpop.f32.mrf.mxu2  ;;  %v2615_v44 = vld [vmem:[%s5839_s28 + $0x690] sm:$0xff]  ;;  %v2412_v45 = vld [vmem:[%s5839_s28 + $0x38] sm:$0xff] }
 0x400   : > { %3079 = vmatpush.msra.mxu3 %v2432_v6  ;;  %3012 = vmatpush.msra.mxu0 %v2551_v54  ;;  %v2675_v7 = vld [vmem:[%s5839_s28 + $0x870] sm:$0xff]  ;;  %v2532_v55 = vld [vmem:[%s5839_s28 + $0x3f8] sm:$0xff] }
 0x401   : > { %3034 = vmatpush.msra.mxu1 %v2619_v56  ;;  %3058 = vmatpush.msra.mxu2 %v2679_v60  ;;  %v2377_v10 = vadd.f32 %v2376_v4, %v2354_v3  ;;  %v2543_v13 = vld [vmem:[%s5839_s28 + $0x450] sm:$0xff]  ;;  %v2660_v6 = vld [vmem:[%s5839_s28 + $0x7f8] sm:$0xff] }
 0x402   : > { %3080 = vmatpush.msra.mxu3 %v2428_v11  ;;  %2974 = vmatmul.f32.gmra.mxu2 %v6401_v49  ;;  %v2399_v15 = vpop.f32.mrf.mxu3  ;;  %v2611_v16 = vld [vmem:[%s5839_s28 + $0x670] sm:$0xff]  ;;  %v2408_v61 = vld [vmem:[%s5839_s28 + $0x18] sm:$0xff] }
 0x403   : > { %3013 = vmatpush.msra.mxu0 %v2547_v63  ;;  %3035 = vmatpush.msra.mxu1 %v2615_v44  ;;  %v2671_v19 = vld [vmem:[%s5839_s28 + $0x850] sm:$0xff]  ;;  %v6613_v31 = vadd.f32 %v2399_v15, %v2377_v10  ;;  %v2528_v3 = vld [vmem:[%s5839_s28 + $0x3d8] sm:$0xff] }
 0x404   : > { %3059 = vmatpush.msra.mxu2 %v2675_v7  ;;  %3081 = vmatpush.msra.mxu3 %v2424_v9  ;;  %v2539_v22 = vld [vmem:[%s5839_s28 + $0x430] sm:$0xff]  ;;  %v2596_v4 = vld [vmem:[%s5839_s28 + $0x5f8] sm:$0xff] }
 0x405   : > { %2994 = vmatmul.f32.vlgmr.msrb.gmra.mxu3 %v6420_v47  ;;  %3014 = vmatpush.msra.mxu0 %v2543_v13  ;;  %v2607_v26 = vld [vmem:[%s5839_s28 + $0x650] sm:$0xff]  ;;  %v2333_v29 = vpop.f32.mrf.mxu0  ;;  %v2524_v9 = vld [vmem:[%s5839_s28 + $0x3b8] sm:$0xff] }
 0x406   : > { %v2667_v28 = vld [vmem:[%s5839_s28 + $0x830] sm:$0xff]  ;;  %3036 = vmatpush.msra.mxu1 %v2611_v16  ;;  %3060 = vmatpush.msra.mxu2 %v2671_v19  ;;  %v2334_v38 = vadd.f32 %v2333_v29, %v2310_v30  ;;  %v1986_v30 = vadd.f32 %v6326_v51, %v6318_v42  ;;  %v2656_v42 = vld [vmem:[%s5839_s28 + $0x7d8] sm:$0xff] }
 0x407   : > { %v2535_v37 = vld [vmem:[%s5839_s28 + $0x410] sm:$0xff]  ;;  %3082 = vmatpush.msra.mxu3 %v2420_v21  ;;  %3015 = vmatpush.msra.mxu0 %v2539_v22  ;;  %v2724_v51 = vld [vmem:[%s5839_s28 + $0x9f8] sm:$0xff]  ;;  %v1989_v21 = vadd.f32 %v6352_v8, %v6344_v1 }
 0x408   : > { %v2603_v40 = vld [vmem:[%s5839_s28 + $0x630] sm:$0xff]  ;;  %3037 = vmatpush.msra.mxu1 %v2607_v26  ;;  %3061 = vmatpush.msra.mxu2 %v2667_v28  ;;  %v2356_v48 = vpop.f32.mrf.mxu1  ;;  %v2009_v7 = vadd.f32 %v6334_v57, %v1986_v30  ;;  %v2592_v10 = vld [vmem:[%s5839_s28 + $0x5d8] sm:$0xff] }
 0x409   : > { %v2663_v43 = vld [vmem:[%s5839_s28 + $0x810] sm:$0xff]  ;;  %3083 = vmatpush.msra.mxu3 %v2416_v35  ;;  %3016 = vmatpush.msra.mxu0 %v2535_v37  ;;  %v2357_v54 = vadd.f32 %v2356_v48, %v2334_v38  ;;  %v2379_v56 = vpop.f32.mrf.mxu2  ;;  %v2652_v13 = vld [vmem:[%s5839_s28 + $0x7b8] sm:$0xff] }
 0x40a   : > { %3038 = vmatpush.msra.mxu1 %v2603_v40  ;;  %3062 = vmatpush.msra.mxu2 %v2663_v43  ;;  %v2599_v60 = vld [vmem:[%s5839_s28 + $0x610] sm:$0xff]  ;;  %v2720_v15 = vld [vmem:[%s5839_s28 + $0x9d8] sm:$0xff] }
 0x40b   : > { %3084 = vmatpush.msra.mxu3 %v2412_v45  ;;  %3063 = vmatmul.f32.vlgmr.msra.gmra.mxu2 %v6457_v24  ;;  %v2380_v11 = vadd.f32 %v2379_v56, %v2357_v54  ;;  %v2520_v16 = vld [vmem:[%s5839_s28 + $0x398] sm:$0xff] }
 0x40c   : > { %3093 = vmatpush.msrb.mxu0 %v2532_v55  ;;  %3139 = vmatpush.msrb.mxu2 %v2660_v6  ;;  %v2402_v63 = vpop.f32.mrf.mxu3  ;;  %v2588_v57 = vld [vmem:[%s5839_s28 + $0x5b8] sm:$0xff] }
 0x40d   : > { %3039 = vmatpush.msra.mxu1 %v2599_v60  ;;  %3085 = vmatpush.msra.mxu3 %v2408_v61  ;;  %v6636_v44 = vadd.f32 %v2402_v63, %v2380_v11  ;;  %v2648_v19 = vld [vmem:[%s5839_s28 + $0x798] sm:$0xff] }
 0x40e   : > { %2997 = vmatmul.f32.gmra.mxu3 %v6470_v12  ;;  %3017 = vmatmul.f32.vlgmr.msra.gmra.mxu0 %v6389_v33  ;;  %v2032_v33 = vadd.f32 %v6363_v17, %v2009_v7  ;;  %v2716_v22 = vld [vmem:[%s5839_s28 + $0x9b8] sm:$0xff]  ;;  %v2012_v17 = vadd.f32 %v6359_v14, %v1989_v21 }
 0x40f   : > { %3094 = vmatpush.msrb.mxu0 %v2528_v3  ;;  %3116 = vmatpush.msrb.mxu1 %v2596_v4  ;;  %v2516_v26 = vld [vmem:[%s5839_s28 + $0x378] sm:$0xff] }
 0x410   : > { %3140 = vmatpush.msrb.mxu2 %v2656_v42  ;;  %3162 = vmatpush.msrb.mxu3 %v2724_v51  ;;  %v2584_v28 = vld [vmem:[%s5839_s28 + $0x598] sm:$0xff]  ;;  %v6660_v8 = vadd.f32 %v6377_v25, %v2032_v33  ;;  %v2035_v55 = vadd.f32 %v6411_v41, %v2012_v17 }
 0x411   : > { %3040 = vmatmul.f32.vlgmr.msra.gmra.mxu1 %v6407_v39  ;;  %3095 = vmatpush.msrb.mxu0 %v2524_v9  ;;  %v2644_v29 = vld [vmem:[%s5839_s28 + $0x778] sm:$0xff] }
 0x412   : > { %3117 = vmatpush.msrb.mxu1 %v2592_v10  ;;  %3141 = vmatpush.msrb.mxu2 %v2652_v13  ;;  %v2712_v35 = vld [vmem:[%s5839_s28 + $0x998] sm:$0xff]  ;;  %v4314_v48 = vmul.f32 -1.442695, %v6660_v8  ;;  %v6683_v11 = vadd.f32 %v6425_v52, %v2035_v55 }
 0x413   : > { %3163 = vmatpush.msrb.mxu3 %v2720_v15  ;;  %3096 = vmatpush.msrb.mxu0 %v2520_v16  ;;  %v2580_v1 = vld [vmem:[%s5839_s28 + $0x578] sm:$0xff] }
 0x414   : > { %3118 = vmatpush.msrb.mxu1 %v2588_v57  ;;  %3142 = vmatpush.msrb.mxu2 %v2648_v19  ;;  %v2512_v37 = vld [vmem:[%s5839_s28 + $0x358] sm:$0xff]  ;;  %4374 = vpow2.f32 %v4314_v48  ;;  %v4318_v9 = vmul.f32 -1.442695, %v6683_v11  ;;  %v3438_v48 = vld [vmem:[%s5835_s26 + $0x258] sm:$0xff] }
 0x415   : > { %3164 = vmatpush.msrb.mxu3 %v2716_v22  ;;  %3066 = vmatmul.f32.gmra.mxu2 %v6491_v34  ;;  %v2640_v38 = vld [vmem:[%s5839_s28 + $0x758] sm:$0xff] }
 0x416   : > { %3097 = vmatpush.msrb.mxu0 %v2516_v26  ;;  %3119 = vmatpush.msrb.mxu1 %v2584_v28  ;;  %v2708_v40 = vld [vmem:[%s5839_s28 + $0x978] sm:$0xff]  ;;  %4376 = vpow2.f32 %v4318_v9  ;;  %v4417_v9 = vld [vmem:[%s7378_s0 + $0x38] sm:$0xff] }
 0x417   : > { %3143 = vmatpush.msrb.mxu2 %v2644_v29  ;;  %3165 = vmatpush.msrb.mxu3 %v2712_v35  ;;  %v2508_v43 = vld [vmem:[%s5839_s28 + $0x338] sm:$0xff]  ;;  %v2101_v35 = vadd.f32 %v6394_v36, %v6380_v27 }
 0x418   : > { %3020 = vmatmul.f32.gmra.mxu0 %v6437_v59  ;;  %3120 = vmatpush.msrb.mxu1 %v2580_v1  ;;  %v2576_v25 = vld [vmem:[%s5839_s28 + $0x558] sm:$0xff] }
 0x419   : > { %3098 = vmatpush.msrb.mxu0 %v2512_v37  ;;  %3144 = vmatpush.msrb.mxu2 %v2640_v38  ;;  %v2636_v14 = vld [vmem:[%s5839_s28 + $0x738] sm:$0xff] }
 0x41a   : > { %v2704_v45 = vld [vmem:[%s5839_s28 + $0x958] sm:$0xff]  ;;  %3166 = vmatpush.msrb.mxu3 %v2708_v40  ;;  %3043 = vmatmul.f32.gmra.mxu1 %v6451_v2 }
 0x41b   : > { %v2504_v59 = vld [vmem:[%s5839_s28 + $0x318] sm:$0xff]  ;;  %3099 = vmatpush.msrb.mxu0 %v2508_v43  ;;  %3121 = vmatpush.msrb.mxu1 %v2576_v25 }
 0x41c   : > { %v2572_v6 = vld [vmem:[%s5839_s28 + $0x538] sm:$0xff]  ;;  %3145 = vmatpush.msrb.mxu2 %v2636_v14  ;;  %3167 = vmatpush.msrb.mxu3 %v2704_v45  ;;  %v2124_v14 = vadd.f32 %v6444_v62, %v2101_v35  ;;  %v3393_v35 = vld [vmem:[%s5835_s26 + $0xf0] sm:$0xff] }
 0x41d   : > { %v2632_v54 = vld [vmem:[%s5839_s28 + $0x718] sm:$0xff]  ;;  %3100 = vmatpush.msrb.mxu0 %v2504_v59  ;;  %3122 = vmatpush.msrb.mxu1 %v2572_v6 }
 0x41e   : > { %v2700_v56 = vld [vmem:[%s5839_s28 + $0x938] sm:$0xff]  ;;  %3146 = vmatpush.msrb.mxu2 %v2632_v54  ;;  %3086 = vmatmul.f32.vlgmr.msra.gmra.mxu3 %v6368_v18  ;;  %v4375_v18 = vpop.eup %4374  ;;  %v2147_v62 = vadd.f32 %v6463_v0, %v2124_v14  ;;  %v3433_v54 = vld [vmem:[%s5835_s26 + $0x230] sm:$0xff]  ;;  %v3514_v14 = vld [vmem:[%s5835_s26 + $0x4b8] sm:$0xff] }
 0x41f   : > { %v2500_v30 = vld [vmem:[%s5839_s28 + $0x2f8] sm:$0xff]  ;;  %3168 = vmatpush.msrb.mxu3 %v2700_v56  ;;  %v6704_v28 = vadd.f32 1.0, %v4375_v18  ;;  %v4377_v25 = vpop.eup %4376  ;;  %v3513_v0 = vld [vmem:[%s5835_s26 + $0x4b0] sm:$0xff] }
 0x420   : > { %v2568_v60 = vld [vmem:[%s5839_s28 + $0x518] sm:$0xff]  ;;  %3101 = vmatpush.msrb.mxu0 %v2500_v30  ;;  %v6724_v59 = vadd.f32 1.0, %v4377_v25  ;;  %v3578_v25 = vld [vmem:[%s5835_s26 + $0x6b8] sm:$0xff] }
 0x421   : > { %v2628_v41 = vld [vmem:[%s5839_s28 + $0x6f8] sm:$0xff]  ;;  %3123 = vmatpush.msrb.mxu1 %v2568_v60  ;;  %4378 = vrcp.f32 %v6704_v28  ;;  %v2104_v60 = vadd.f32 %v6442_v5, %v6428_v53  ;;  %v6746_v5 = vadd.f32 %v6477_v20, %v2147_v62  ;;  %v3413_v20 = vld [vmem:[%s5835_s26 + $0x190] sm:$0xff]  ;;  %vm3222_vm0 = vweird.f32 %v6704_v28  ;;  %v3383_v62 = vld [vmem:[%s5835_s26 + $0xa0] sm:$0xff] }
 0x422   : > { %v2696_v61 = vld [vmem:[%s5839_s28 + $0x918] sm:$0xff]  ;;  %3147 = vmatpush.msrb.mxu2 %v2628_v41  ;;  %v3518_v41 = vld [vmem:[%s5835_s26 + $0x4d8] sm:$0xff]  ;;  %4380 = vrcp.f32 %v6724_v59  ;;  %vm3282_vm4 = vweird.f32 %v6724_v59 }
 0x423   : > { %v2496_v3 = vld [vmem:[%s5839_s28 + $0x2d8] sm:$0xff]  ;;  %3169 = vmatpush.msrb.mxu3 %v2696_v61  ;;  %v3423_v61 = vld [vmem:[%s5835_s26 + $0x1e0] sm:$0xff] }
 0x424   : > { %v2564_v4 = vld [vmem:[%s5839_s28 + $0x4f8] sm:$0xff]  ;;  %3102 = vmatpush.msrb.mxu0 %v2496_v3  ;;  %v2127_v3 = vadd.f32 %v6486_v32, %v2104_v60 }
 0x425   : > { %v2624_v63 = vld [vmem:[%s5839_s28 + $0x6d8] sm:$0xff]  ;;  %3124 = vmatpush.msrb.mxu1 %v2564_v4  ;;  %v3418_v4 = vld [vmem:[%s5835_s26 + $0x1b8] sm:$0xff] }
 0x426   : > { %v2692_v42 = vld [vmem:[%s5839_s28 + $0x8f8] sm:$0xff]  ;;  %3148 = vmatpush.msrb.mxu2 %v2624_v63  ;;  %3089 = vmatmul.f32.gmra.mxu3 %v6401_v49  ;;  %v2150_v32 = vadd.f32 %v6500_v46, %v2127_v3  ;;  %v3498_v46 = vld [vmem:[%s5835_s26 + $0x438] sm:$0xff] }
 0x427   : > { %v2492_v51 = vld [vmem:[%s5839_s28 + $0x2b8] sm:$0xff]  ;;  %3170 = vmatpush.msrb.mxu3 %v2692_v42  ;;  %v6731_v30 = vpop.eup %4378  ;;  %v4315_v42 = vmul.f32 -1.442695, %v6746_v5 }
 0x428   : > { %v2560_v52 = vld [vmem:[%s5839_s28 + $0x4d8] sm:$0xff]  ;;  %3103 = vmatpush.msrb.mxu0 %v2492_v51  ;;  %v3218_v53 = vmul.f32 %v6731_v30, %v6704_v28  ;;  %v6756_v51 = vpop.eup %4380  ;;  %vm3223_vm1 = vweird.f32 %v6731_v30 }
 0x429   : > { %v2620_v7 = vld [vmem:[%s5839_s28 + $0x6b8] sm:$0xff]  ;;  %3125 = vmatpush.msrb.mxu1 %v2560_v52  ;;  %v3503_v52 = vld [vmem:[%s5835_s26 + $0x460] sm:$0xff]  ;;  %4382 = vpow2.f32 %v4315_v42  ;;  %vm6793_vm2 = vmor %vm3222_vm0, %vm3223_vm1  ;;  %vm3283_vm5 = vweird.f32 %v6756_v51 }
 0x42a   : > { %v2688_v10 = vld [vmem:[%s5839_s28 + $0x8d8] sm:$0xff]  ;;  %3149 = vmatpush.msrb.mxu2 %v2620_v7  ;;  %v3563_v42 = vld [vmem:[%s5835_s26 + $0x640] sm:$0xff]  ;;  %vm6824_vm6 = vmor %vm3282_vm4, %vm3283_vm5 }
 0x42b   : > { %v2488_v13 = vld [vmem:[%s5839_s28 + $0x298] sm:$0xff]  ;;  %3171 = vmatpush.msrb.mxu3 %v2688_v10 }
 0x42c   : > { %v2556_v15 = vld [vmem:[%s5839_s28 + $0x4b8] sm:$0xff]  ;;  %3104 = vmatpush.msrb.mxu0 %v2488_v13 }
 0x42d   : > { %v2616_v16 = vld [vmem:[%s5839_s28 + $0x698] sm:$0xff]  ;;  %3126 = vmatpush.msrb.mxu1 %v2556_v15  ;;  %v2742_v56 = vpop.f32.mrf.mxu0  ;;  %v3278_v15 = vmul.f32 %v6756_v51, %v6724_v59 }
 0x42e   : > { %v2684_v57 = vld [vmem:[%s5839_s28 + $0x8b8] sm:$0xff]  ;;  %3150 = vmatpush.msrb.mxu2 %v2616_v16  ;;  %v3403_v16 = vld [vmem:[%s5835_s26 + $0x140] sm:$0xff] }
 0x42f   : > { %v2484_v19 = vld [vmem:[%s5839_s28 + $0x278] sm:$0xff]  ;;  %3172 = vmatpush.msrb.mxu3 %v2684_v57  ;;  %v3593_v57 = vld [vmem:[%s5835_s26 + $0x730] sm:$0xff] }
 0x430   : > { %v2552_v33 = vld [vmem:[%s5839_s28 + $0x498] sm:$0xff]  ;;  %3105 = vmatpush.msrb.mxu0 %v2484_v19  ;;  %v6773_v19 = vadd.f32 %v6508_v58, %v2150_v32  ;;  %v3279_v58 = vsub.f32 1.0, %v3278_v15  ;;  %v3463_v32 = vld [vmem:[%s5835_s26 + $0x320] sm:$0xff]  ;;  %v3458_v15 = vld [vmem:[%s5835_s26 + $0x2f8] sm:$0xff] }
 0x431   : > { %v2612_v21 = vld [vmem:[%s5839_s28 + $0x678] sm:$0xff]  ;;  %3127 = vmatpush.msrb.mxu1 %v2552_v33 }
 0x432   : > { %v2680_v22 = vld [vmem:[%s5839_s28 + $0x898] sm:$0xff]  ;;  %3151 = vmatpush.msrb.mxu2 %v2612_v21  ;;  %v3398_v21 = vld [vmem:[%s5835_s26 + $0x118] sm:$0xff] }
 0x433   : > { %v2480_v26 = vld [vmem:[%s5839_s28 + $0x258] sm:$0xff]  ;;  %3173 = vmatpush.msrb.mxu3 %v2680_v22 }
 0x434   : > { %v2548_v29 = vld [vmem:[%s5839_s28 + $0x478] sm:$0xff]  ;;  %3106 = vmatpush.msrb.mxu0 %v2480_v26 }
 0x435   : > { %v2608_v1 = vld [vmem:[%s5839_s28 + $0x658] sm:$0xff]  ;;  %3128 = vmatpush.msrb.mxu1 %v2548_v29 }
 0x436   : > { %v2676_v17 = vld [vmem:[%s5839_s28 + $0x878] sm:$0xff]  ;;  %3152 = vmatpush.msrb.mxu2 %v2608_v1  ;;  %v2745_v10 = vpop.f32.mrf.mxu0 }
 0x437   : > { %v2476_v37 = vld [vmem:[%s5839_s28 + $0x238] sm:$0xff]  ;;  %3174 = vmatpush.msrb.mxu3 %v2676_v17  ;;  %v3583_v17 = vld [vmem:[%s5835_s26 + $0x6e0] sm:$0xff] }
 0x438   : > { %v2544_v38 = vld [vmem:[%s5839_s28 + $0x458] sm:$0xff]  ;;  %3107 = vmatpush.msrb.mxu0 %v2476_v37  ;;  %v4319_v37 = vmul.f32 -1.442695, %v6773_v19 }
 0x439   : > { %v2604_v40 = vld [vmem:[%s5839_s28 + $0x638] sm:$0xff]  ;;  %3129 = vmatpush.msrb.mxu1 %v2544_v38  ;;  %v2765_v7 = vpop.f32.mrf.mxu1  ;;  %v2788_v18 = vpop.f32.mrf.mxu2  ;;  %v3483_v38 = vld [vmem:[%s5835_s26 + $0x3c0] sm:$0xff] }
 0x43a   : > { %v2672_v43 = vld [vmem:[%s5839_s28 + $0x858] sm:$0xff]  ;;  %3153 = vmatpush.msrb.mxu2 %v2604_v40  ;;  %v2766_v33 = vadd.f32 %v2765_v7, %v2742_v56  ;;  %v3573_v56 = vld [vmem:[%s5835_s26 + $0x690] sm:$0xff]  ;;  %4384 = vpow2.f32 %v4319_v37  ;;  %v3443_v37 = vld [vmem:[%s5835_s26 + $0x280] sm:$0xff] }
 0x43b   : > { %v2472_v27 = vld [vmem:[%s5839_s28 + $0x218] sm:$0xff]  ;;  %3175 = vmatpush.msrb.mxu3 %v2672_v43  ;;  %v4383_v43 = vpop.eup %4382 }
 0x43c   : > { %v2540_v36 = vld [vmem:[%s5839_s28 + $0x438] sm:$0xff]  ;;  %3108 = vmatpush.msrb.mxu0 %v2472_v27  ;;  %v2811_v1 = vpop.f32.mrf.mxu3  ;;  %v2789_v40 = vadd.f32 %v2788_v18, %v2766_v33  ;;  %v3228_v27 = vand.u32 2147483648, %v6704_v28  ;;  %v6805_v60 = vadd.f32 1.0, %v4383_v43  ;;  %v3363_v18 = vld [vmem:[%s5835_s26] sm:$0xff] }
 0x43d   : > { %v2600_v45 = vld [vmem:[%s5839_s28 + $0x618] sm:$0xff]  ;;  %3130 = vmatpush.msrb.mxu1 %v2540_v36  ;;  %3109 = vmatmul.f32.vlgmr.msrb.gmra.mxu0 %v6420_v47  ;;  %v4416_v47 = vld [vmem:[%s7378_s0 + $0x10] sm:$0xff]  ;;  %v3519_v43 = vld [vmem:[%s5835_s26 + $0x4e0] sm:$0xff] }
 0x43e   : > { %v2668_v49 = vld [vmem:[%s5839_s28 + $0x838] sm:$0xff]  ;;  %3154 = vmatpush.msrb.mxu2 %v2600_v45  ;;  %3683 = vmatpush.msra.mxu0 %v3438_v48  ;;  %v3226_v45 = vand.u32 2147483647, %v6704_v28  ;;  %v3473_v28 = vld [vmem:[%s5835_s26 + $0x370] sm:$0xff]  ;;  %4386 = vrcp.f32 %v6805_v60  ;;  %vm3237_vm8 = vweird.f32 %v6805_v60 }
 0x43f   : > { %v2536_v55 = vld [vmem:[%s5839_s28 + $0x418] sm:$0xff]  ;;  %3176 = vmatpush.msrb.mxu3 %v2668_v49  ;;  %3155 = vmatmul.f32.vlgmr.msrb.gmra.mxu2 %v6407_v39  ;;  %v3478_v49 = vld [vmem:[%s5835_s26 + $0x398] sm:$0xff] }
 0x440   : > { %v2664_v6 = vld [vmem:[%s5839_s28 + $0x818] sm:$0xff]  ;;  %3131 = vmatpush.msrb.mxu1 %v2536_v55  ;;  %3684 = vmatpush.msra.mxu0 %v3433_v54  ;;  %v2834_v54 = vpop.f32.mrf.mxu0  ;;  %vm3227_vm3 = vcmp.eq.f32.partialorder %v3226_v45, 8.507059e+37 }
 0x441   : > { %3177 = vmatpush.msrb.mxu3 %v2664_v6  ;;  %3132 = vmatmul.f32.vlgmr.msrb.gmra.mxu1 %v4416_v47  ;;  %v3428_v39 = vld [vmem:[%s5835_s26 + $0x208] sm:$0xff]  ;;  %v3280_v6 = vmul.f32 %v6756_v51, %v3279_v58 }
 0x442   : > { %3178 = vmatmul.f32.vlgmr.msrb.gmra.mxu3 %v6457_v24  ;;  %3706 = vmatpush.msra.mxu1 %v3518_v41  ;;  %v3508_v63 = vld [vmem:[%s5835_s26 + $0x488] sm:$0xff]  ;;  %v3219_v24 = vsub.f32 1.0, %v3218_v53  ;;  %v2812_v41 = vadd.f32 %v2811_v1, %v2789_v40 }
 0x443   : > { %3685 = vmatpush.msra.mxu0 %v3428_v39  ;;  %v3588_v22 = vld [vmem:[%s5835_s26 + $0x708] sm:$0xff]  ;;  %v2768_v48 = vpop.f32.mrf.mxu1  ;;  %v3229_v39 = vor.u32 1.1754944e-38, %v3228_v27  ;;  %v3543_v27 = vld [vmem:[%s5835_s26 + $0x5a0] sm:$0xff] }
 0x444   : > { %3707 = vmatpush.msra.mxu1 %v3513_v0  ;;  %v3220_v13 = vmul.f32 %v6731_v30, %v3219_v24  ;;  %v3488_v26 = vld [vmem:[%s5835_s26 + $0x3e8] sm:$0xff]  ;;  %v2769_v47 = vadd.f32 %v2768_v48, %v2745_v10  ;;  %v3378_v0 = vld [vmem:[%s5835_s26 + $0x78] sm:$0xff]  ;;  %v3373_v24 = vld [vmem:[%s5835_s26 + $0x50] sm:$0xff] }
 0x445   : > { %3686 = vmatpush.msra.mxu0 %v3423_v61  ;;  %v3388_v36 = vld [vmem:[%s5835_s26 + $0xc8] sm:$0xff]  ;;  %v3419_v48 = vld [vmem:[%s5835_s26 + $0x1c0] sm:$0xff] }
 0x446   : > { %3112 = vmatmul.f32.gmra.mxu0 %v6470_v12  ;;  %3708 = vmatpush.msra.mxu1 %v3508_v63  ;;  %v3408_v12 = vld [vmem:[%s5835_s26 + $0x168] sm:$0xff]  ;;  %v3221_v29 = vadd.f32 %v6731_v30, %v3220_v13  ;;  %v3288_v63 = vand.u32 2147483648, %v6724_v59  ;;  %v2814_v10 = vpop.f32.mrf.mxu3 }
 0x447   : > { %3158 = vmatmul.f32.gmra.mxu2 %v6451_v2  ;;  %3687 = vmatpush.msra.mxu0 %v3418_v4  ;;  %v3598_v2 = vld [vmem:[%s5835_s26 + $0x758] sm:$0xff]  ;;  %v3568_v53 = vld [vmem:[%s5835_s26 + $0x668] sm:$0xff]  ;;  %v3286_v4 = vand.u32 2147483647, %v6724_v59  ;;  %v3553_v59 = vld [vmem:[%s5835_s26 + $0x5f0] sm:$0xff] }
 0x448   : > { %3709 = vmatpush.msra.mxu1 %v3503_v52  ;;  %3729 = vmatpush.msra.mxu2 %v3598_v2  ;;  %v3225_v55 = vsel %vm6793_vm2, %v6731_v30, %v3221_v29  ;;  %v2791_v30 = vpop.f32.mrf.mxu2  ;;  %v3468_v61 = vld [vmem:[%s5835_s26 + $0x348] sm:$0xff]  ;;  %v2835_v52 = vadd.f32 %v2834_v54, %v2812_v41  ;;  %v3558_v2 = vld [vmem:[%s5835_s26 + $0x618] sm:$0xff] }
 0x449   : > { %3135 = vmatmul.f32.gmra.mxu1 %v4417_v9  ;;  %3688 = vmatpush.msra.mxu0 %v3413_v20  ;;  %v3230_v3 = vsel %vm3227_vm3, %v3229_v39, %v3225_v55  ;;  %v3281_v20 = vadd.f32 %v6756_v51, %v3280_v6  ;;  %v2792_v7 = vadd.f32 %v2791_v30, %v2769_v47  ;;  %vm3287_vm7 = vcmp.eq.f32.partialorder %v3286_v4, 8.507059e+37  ;;  %v3448_v58 = vld [vmem:[%s5835_s26 + $0x2a8] sm:$0xff]  ;;  %v3414_v54 = vld [vmem:[%s5835_s26 + $0x198] sm:$0xff]  ;;  %v3409_v47 = vld [vmem:[%s5835_s26 + $0x170] sm:$0xff] }
 0x44a   : > { %3181 = vmatmul.f32.gmra.mxu3 %v6491_v34  ;;  %v3493_v34 = vld [vmem:[%s5835_s26 + $0x410] sm:$0xff]  ;;  %3710 = vmatpush.msra.mxu1 %v3498_v46  ;;  %v4385_v46 = vpop.eup %4384  ;;  %v3337_v13 = vmul.f32 %v3230_v3, %v6660_v8  ;;  %v3548_v1 = vld [vmem:[%s5835_s26 + $0x5c8] sm:$0xff]  ;;  %v3523_v30 = vld [vmem:[%s5835_s26 + $0x500] sm:$0xff] }
 0x44b   : > { %3689 = vmatpush.msra.mxu0 %v3408_v12  ;;  %3730 = vmatpush.msra.mxu2 %v3593_v57  ;;  %v3368_v12 = vld [vmem:[%s5835_s26 + $0x28] sm:$0xff]  ;;  %v3285_v57 = vsel %vm6824_vm6, %v6756_v51, %v3281_v20  ;;  %v3453_v8 = vld [vmem:[%s5835_s26 + $0x2d0] sm:$0xff]  ;;  %v6843_v29 = vpop.eup %4386  ;;  %v3434_v51 = vld [vmem:[%s5835_s26 + $0x238] sm:$0xff] }
 0x44c   : > { %3711 = vmatpush.msra.mxu1 %v3493_v34  ;;  %v3439_v34 = vld [vmem:[%s5835_s26 + $0x260] sm:$0xff]  ;;  %v6838_v33 = vmul.f32 %v3337_v13, %v2835_v52  ;;  %v3233_v40 = vmul.f32 %v6843_v29, %v6805_v60  ;;  %v3528_v41 = vld [vmem:[%s5835_s26 + $0x528] sm:$0xff]  ;;  %v3494_v4 = vld [vmem:[%s5835_s26 + $0x418] sm:$0xff]  ;;  %vm3238_vm9 = vweird.f32 %v6843_v29 }
 0x44d   : > { %3690 = vmatpush.msra.mxu0 %v3403_v16  ;;  %3731 = vmatpush.msra.mxu2 %v3588_v22  ;;  %v3289_v16 = vor.u32 1.1754944e-38, %v3288_v63  ;;  %v6841_v22 = vadd.f32 1.0, %v4385_v46  ;;  %v3404_v3 = vld [vmem:[%s5835_s26 + $0x148] sm:$0xff]  ;;  %v3678_v63 = vld [vmem:[%s5835_s26 + $0x9d8] sm:$0xff]  ;;  %v3489_v52 = vld [vmem:[%s5835_s26 + $0x3f0] sm:$0xff] }
 0x44e   : > { %3712 = vmatpush.msra.mxu1 %v3488_v26  ;;  %v2837_v26 = vpop.f32.mrf.mxu0  ;;  %v3234_v6 = vsub.f32 1.0, %v3233_v40  ;;  %3752 = vmatpush.msra.mxu3 %v3678_v63  ;;  %v3673_v9 = vld [vmem:[%s5835_s26 + $0x9b0] sm:$0xff]  ;;  %v3394_v46 = vld [vmem:[%s5835_s26 + $0xf8] sm:$0xff]  ;;  %vm6901_vm10 = vmor %vm3237_vm8, %vm3238_vm9 }
 0x44f   : > { %3691 = vmatpush.msra.mxu0 %v3398_v21  ;;  %3732 = vmatpush.msra.mxu2 %v3583_v17  ;;  %v2815_v21 = vadd.f32 %v2814_v10, %v2792_v7  ;;  %v3429_v17 = vld [vmem:[%s5835_s26 + $0x210] sm:$0xff]  ;;  %4388 = vrcp.f32 %v6841_v22  ;;  %v3243_v10 = vand.u32 2147483648, %v6805_v60  ;;  %vm3297_vm12 = vweird.f32 %v6841_v22  ;;  %v3658_v40 = vld [vmem:[%s5835_s26 + $0x938] sm:$0xff] }
 0x450   : > { %3713 = vmatpush.msra.mxu1 %v3483_v38  ;;  %v3235_v39 = vmul.f32 %v6843_v29, %v3234_v6  ;;  %3753 = vmatpush.msra.mxu3 %v3673_v9  ;;  %v3454_v9 = vld [vmem:[%s5835_s26 + $0x2d8] sm:$0xff] }
 0x451   : > { %3692 = vmatpush.msra.mxu0 %v3393_v35  ;;  %3733 = vmatpush.msra.mxu2 %v3578_v25  ;;  %v3290_v35 = vsel %vm3287_vm7, %v3289_v16, %v3285_v57  ;;  %v2838_v38 = vadd.f32 %v2837_v26, %v2815_v21  ;;  %v3424_v25 = vld [vmem:[%s5835_s26 + $0x1e8] sm:$0xff] }
 0x452   : > { %3714 = vmatpush.msra.mxu1 %v3478_v49  ;;  %v3538_v49 = vld [vmem:[%s5835_s26 + $0x578] sm:$0xff]  ;;  %v3484_v16 = vld [vmem:[%s5835_s26 + $0x3c8] sm:$0xff] }
 0x453   : > { %3693 = vmatpush.msra.mxu0 %v3388_v36  ;;  %3734 = vmatpush.msra.mxu2 %v3573_v56  ;;  %v3341_v36 = vmul.f32 %v3290_v35, %v6683_v11  ;;  %v3509_v11 = vld [vmem:[%s5835_s26 + $0x490] sm:$0xff]  ;;  %v3579_v35 = vld [vmem:[%s5835_s26 + $0x6c0] sm:$0xff]  ;;  %v3444_v57 = vld [vmem:[%s5835_s26 + $0x288] sm:$0xff] }
 0x454   : > { %3715 = vmatpush.msra.mxu1 %v3473_v28  ;;  %v2857_v45 = vpop.f32.mrf.mxu1  ;;  %v3504_v28 = vld [vmem:[%s5835_s26 + $0x468] sm:$0xff] }
 0x455   : > { %3694 = vmatpush.msra.mxu0 %v3383_v62  ;;  %3735 = vmatpush.msra.mxu2 %v3568_v53  ;;  %v6861_v55 = vmul.f32 %v3341_v36, %v2838_v38  ;;  %v3533_v62 = vld [vmem:[%s5835_s26 + $0x550] sm:$0xff]  ;;  %v6866_v56 = vpop.eup %4388  ;;  %v3599_v53 = vld [vmem:[%s5835_s26 + $0x760] sm:$0xff] }
 0x456   : > { %3716 = vmatpush.msra.mxu1 %v3468_v61  ;;  %v3293_v61 = vmul.f32 %v6866_v56, %v6841_v22  ;;  %vm3298_vm13 = vweird.f32 %v6866_v56  ;;  %v3379_v36 = vld [vmem:[%s5835_s26 + $0x80] sm:$0xff] }
 0x457   : > { %3695 = vmatpush.msra.mxu0 %v3378_v0  ;;  %3736 = vmatpush.msra.mxu2 %v3563_v42  ;;  %v3499_v0 = vld [vmem:[%s5835_s26 + $0x440] sm:$0xff]  ;;  %vm6930_vm14 = vmor %vm3297_vm12, %vm3298_vm13 }
 0x458   : > { %3717 = vmatpush.msra.mxu1 %v3463_v32  ;;  %v3399_v42 = vld [vmem:[%s5835_s26 + $0x120] sm:$0xff]  ;;  %v3236_v32 = vadd.f32 %v6843_v29, %v3235_v39 }
 0x459   : > { %3696 = vmatpush.msra.mxu0 %v3373_v24  ;;  %3737 = vmatpush.msra.mxu2 %v3558_v2  ;;  %v3594_v24 = vld [vmem:[%s5835_s26 + $0x738] sm:$0xff]  ;;  %v3294_v2 = vsub.f32 1.0, %v3293_v61  ;;  %v3369_v61 = vld [vmem:[%s5835_s26 + $0x30] sm:$0xff] }
 0x45a   : > { %3718 = vmatpush.msra.mxu1 %v3458_v15  ;;  %v3241_v15 = vand.u32 2147483647, %v6805_v60  ;;  %v3240_v26 = vsel %vm6901_vm10, %v6843_v29, %v3236_v32  ;;  %v3663_v60 = vld [vmem:[%s5835_s26 + $0x960] sm:$0xff]  ;;  %v3474_v29 = vld [vmem:[%s5835_s26 + $0x378] sm:$0xff] }
 0x45b   : > { %3697 = vmatpush.msra.mxu0 %v3368_v12  ;;  %3738 = vmatpush.msra.mxu2 %v3553_v59  ;;  %v3589_v12 = vld [vmem:[%s5835_s26 + $0x710] sm:$0xff]  ;;  %v3584_v59 = vld [vmem:[%s5835_s26 + $0x6e8] sm:$0xff] }
 0x45c   : > { %3719 = vmatpush.msra.mxu1 %v3453_v8  ;;  %v3389_v8 = vld [vmem:[%s5835_s26 + $0xd0] sm:$0xff]  ;;  %vm3242_vm11 = vcmp.eq.f32.partialorder %v3241_v15, 8.507059e+37 }
 0x45d   : > { %3698 = vmatpush.msra.mxu0 %v3363_v18  ;;  %3739 = vmatpush.msra.mxu2 %v3548_v1  ;;  %v6883_v20 = vpop.f32.mrf.mxu1  ;;  %v3668_v18 = vld [vmem:[%s5835_s26 + $0x988] sm:$0xff]  ;;  %v3244_v1 = vor.u32 1.1754944e-38, %v3243_v10 }
 0x45e   : > { %3699 = vmatmul.f32.vlgmr.msra.gmra.mxu0 %v6838_v33  ;;  %3720 = vmatpush.msra.mxu1 %v3448_v58  ;;  %v2880_v7 = vpop.f32.mrf.mxu2  ;;  %v3440_v10 = vld [vmem:[%s5835_s26 + $0x268] sm:$0xff] }
 0x45f   : > { %3775 = vmatpush.msrb.mxu0 %v3439_v34  ;;  %3740 = vmatpush.msra.mxu2 %v3543_v27  ;;  %v2881_v13 = vadd.f32 %v2880_v7, %v2857_v45  ;;  %v4316_v34 = vmul.f32 -1.442695, %v6532_v50  ;;  %v3245_v27 = vsel %vm3242_vm11, %v3244_v1, %v3240_v26  ;;  %v3469_v45 = vld [vmem:[%s5835_s26 + $0x350] sm:$0xff]  ;;  %v3559_v7 = vld [vmem:[%s5835_s26 + $0x620] sm:$0xff] }
 0x460   : > { %3721 = vmatpush.msra.mxu1 %v3443_v37  ;;  %3754 = vmatpush.msra.mxu3 %v3668_v18  ;;  %v3384_v37 = vld [vmem:[%s5835_s26 + $0xa8] sm:$0xff]  ;;  %v3435_v18 = vld [vmem:[%s5835_s26 + $0x240] sm:$0xff]  ;;  %v3425_v1 = vld [vmem:[%s5835_s26 + $0x1f0] sm:$0xff] }
 0x461   : > { %3776 = vmatpush.msrb.mxu0 %v3434_v51  ;;  %3741 = vmatpush.msra.mxu2 %v3538_v49  ;;  %v2903_v21 = vpop.f32.mrf.mxu3  ;;  %v3479_v51 = vld [vmem:[%s5835_s26 + $0x3a0] sm:$0xff]  ;;  %4390 = vpow2.f32 %v4316_v34  ;;  %v3653_v49 = vld [vmem:[%s5835_s26 + $0x910] sm:$0xff] }
 0x462   : > { %3798 = vmatpush.msrb.mxu1 %v3519_v43  ;;  %v2904_v58 = vadd.f32 %v2903_v21, %v2881_v13  ;;  %3755 = vmatpush.msra.mxu3 %v3663_v60  ;;  %v3574_v43 = vld [vmem:[%s5835_s26 + $0x698] sm:$0xff]  ;;  %v3449_v13 = vld [vmem:[%s5835_s26 + $0x2b0] sm:$0xff] }
 0x463   : > { %3777 = vmatpush.msrb.mxu0 %v3429_v17  ;;  %3742 = vmatpush.msra.mxu2 %v3533_v62  ;;  %v3295_v17 = vmul.f32 %v6866_v56, %v3294_v2  ;;  %v3301_v62 = vand.u32 2147483647, %v6841_v22  ;;  %v3638_v2 = vld [vmem:[%s5835_s26 + $0x898] sm:$0xff]  ;;  %v3549_v21 = vld [vmem:[%s5835_s26 + $0x5d0] sm:$0xff] }
 0x464   : > { %3799 = vmatpush.msrb.mxu1 %v3514_v14  ;;  %v2926_v38 = vpop.f32.mrf.mxu0  ;;  %v3303_v14 = vand.u32 2147483648, %v6841_v22  ;;  %3756 = vmatpush.msra.mxu3 %v3658_v40  ;;  %v3510_v40 = vld [vmem:[%s5835_s26 + $0x498] sm:$0xff] }
 0x465   : > { %3778 = vmatpush.msrb.mxu0 %v3424_v25  ;;  %3743 = vmatpush.msra.mxu2 %v3528_v41  ;;  %v2927_v25 = vadd.f32 %v2926_v38, %v2904_v58  ;;  %v3296_v6 = vadd.f32 %v6866_v56, %v3295_v17  ;;  %v3338_v41 = vmul.f32 %v3245_v27, %v6746_v5  ;;  %v3459_v5 = vld [vmem:[%s5835_s26 + $0x300] sm:$0xff]  ;;  %vm3302_vm15 = vcmp.eq.f32.partialorder %v3301_v62, 8.507059e+37  ;;  %v3520_v58 = vld [vmem:[%s5835_s26 + $0x4e8] sm:$0xff]  ;;  %v3613_v62 = vld [vmem:[%s5835_s26 + $0x7d0] sm:$0xff] }
 0x466   : > { %3800 = vmatpush.msrb.mxu1 %v3509_v11  ;;  %3702 = vmatmul.f32.gmra.mxu0 %v6861_v55  ;;  %v3515_v17 = vld [vmem:[%s5835_s26 + $0x4c0] sm:$0xff]  ;;  %v3420_v38 = vld [vmem:[%s5835_s26 + $0x1c8] sm:$0xff] }
 0x467   : > { %3779 = vmatpush.msrb.mxu0 %v3419_v48  ;;  %3744 = vmatpush.msra.mxu2 %v3523_v30  ;;  %v3569_v48 = vld [vmem:[%s5835_s26 + $0x670] sm:$0xff]  ;;  %v3648_v30 = vld [vmem:[%s5835_s26 + $0x8e8] sm:$0xff]  ;;  %v3300_v32 = vsel %vm6930_vm14, %v6866_v56, %v3296_v6  ;;  %v3539_v27 = vld [vmem:[%s5835_s26 + $0x580] sm:$0xff] }
 0x468   : > { %3801 = vmatpush.msrb.mxu1 %v3504_v28  ;;  %v2949_v28 = vpop.f32.mrf.mxu1  ;;  %3757 = vmatpush.msra.mxu3 %v3653_v49  ;;  %v3618_v49 = vld [vmem:[%s5835_s26 + $0x7f8] sm:$0xff]  ;;  %v3500_v11 = vld [vmem:[%s5835_s26 + $0x448] sm:$0xff] }
 0x469   : > { %3780 = vmatpush.msrb.mxu0 %v3414_v54  ;;  %3821 = vmatpush.msrb.mxu2 %v3599_v53  ;;  %v3374_v54 = vld [vmem:[%s5835_s26 + $0x58] sm:$0xff]  ;;  %v2950_v39 = vadd.f32 %v2949_v28, %v2927_v25  ;;  %v3564_v53 = vld [vmem:[%s5835_s26 + $0x648] sm:$0xff]  ;;  %v3415_v25 = vld [vmem:[%s5835_s26 + $0x1a0] sm:$0xff] }
 0x46a   : > { %3802 = vmatpush.msrb.mxu1 %v3499_v0  ;;  %v2883_v0 = vpop.f32.mrf.mxu2  ;;  %3758 = vmatpush.msra.mxu3 %v3648_v30  ;;  %v3410_v6 = vld [vmem:[%s5835_s26 + $0x178] sm:$0xff]  ;;  %v3405_v28 = vld [vmem:[%s5835_s26 + $0x150] sm:$0xff] }
 0x46b   : > { %3781 = vmatpush.msrb.mxu0 %v3409_v47  ;;  %3822 = vmatpush.msrb.mxu2 %v3594_v24  ;;  %v3464_v47 = vld [vmem:[%s5835_s26 + $0x328] sm:$0xff]  ;;  %v2884_v22 = vadd.f32 %v2883_v0, %v6883_v20  ;;  %v6944_v63 = vmul.f32 %v3338_v41, %v2950_v39  ;;  %v3643_v24 = vld [vmem:[%s5835_s26 + $0x8c0] sm:$0xff]  ;;  %v3490_v30 = vld [vmem:[%s5835_s26 + $0x3f8] sm:$0xff] }
 0x46c   : > { %3803 = vmatpush.msrb.mxu1 %v3494_v4  ;;  %v4320_v4 = vmul.f32 -1.442695, %v6552_v23  ;;  %v3364_v20 = vld [vmem:[%s5835_s26 + $0x8] sm:$0xff]  ;;  %3759 = vmatpush.msra.mxu3 %v3643_v24  ;;  %v3495_v41 = vld [vmem:[%s5835_s26 + $0x420] sm:$0xff] }
 0x46d   : > { %3782 = vmatpush.msrb.mxu0 %v3404_v3  ;;  %3823 = vmatpush.msrb.mxu2 %v3589_v12  ;;  %v3304_v3 = vor.u32 1.1754944e-38, %v3303_v14  ;;  %v3505_v14 = vld [vmem:[%s5835_s26 + $0x470] sm:$0xff]  ;;  %v3608_v39 = vld [vmem:[%s5835_s26 + $0x7a8] sm:$0xff]  ;;  %v3679_v24 = vld [vmem:[%s5835_s26 + $0x9e0] sm:$0xff] }
 0x46e   : > { %3804 = vmatpush.msrb.mxu1 %v3489_v52  ;;  %v2906_v52 = vpop.f32.mrf.mxu3  ;;  %4392 = vpow2.f32 %v4320_v4  ;;  %v2929_v15 = vpop.f32.mrf.mxu0  ;;  %3760 = vmatpush.msra.mxu3 %v3638_v2  ;;  %v3400_v0 = vld [vmem:[%s5835_s26 + $0x128] sm:$0xff]  ;;  %v3395_v4 = vld [vmem:[%s5835_s26 + $0x100] sm:$0xff]  ;;  %v3669_v2 = vld [vmem:[%s5835_s26 + $0x990] sm:$0xff] }
 0x46f   : > { %3783 = vmatpush.msrb.mxu0 %v3399_v42  ;;  %3824 = vmatpush.msrb.mxu2 %v3584_v59  ;;  %v4391_v42 = vpop.eup %4390  ;;  %v2907_v12 = vadd.f32 %v2906_v52, %v2884_v22  ;;  %v3305_v56 = vsel %vm3302_vm15, %v3304_v3, %v3300_v32  ;;  %v3603_v22 = vld [vmem:[%s5835_s26 + $0x780] sm:$0xff]  ;;  %v3390_v32 = vld [vmem:[%s5835_s26 + $0xd8] sm:$0xff] }
 0x470   : > { %3805 = vmatpush.msrb.mxu1 %v3484_v16  ;;  %v3554_v16 = vld [vmem:[%s5835_s26 + $0x5f8] sm:$0xff]  ;;  %v2952_v34 = vpop.f32.mrf.mxu1  ;;  %v3342_v26 = vmul.f32 %v3305_v56, %v6773_v19  ;;  %v3380_v56 = vld [vmem:[%s5835_s26 + $0x88] sm:$0xff] }
 0x471   : > { %3784 = vmatpush.msrb.mxu0 %v3394_v46  ;;  %3825 = vmatpush.msrb.mxu2 %v3579_v35  ;;  %v6956_v46 = vadd.f32 1.0, %v4391_v42  ;;  %v2930_v59 = vadd.f32 %v2929_v15, %v2907_v12  ;;  %v3628_v35 = vld [vmem:[%s5835_s26 + $0x848] sm:$0xff]  ;;  %v3674_v52 = vld [vmem:[%s5835_s26 + $0x9b8] sm:$0xff]  ;;  %v3475_v12 = vld [vmem:[%s5835_s26 + $0x380] sm:$0xff] }
 0x472   : > { %3806 = vmatpush.msrb.mxu1 %v3479_v51  ;;  %v3430_v51 = vld [vmem:[%s5835_s26 + $0x218] sm:$0xff] }
 0x473   : > { %3785 = vmatpush.msrb.mxu0 %v3389_v8  ;;  %3826 = vmatpush.msrb.mxu2 %v3574_v43  ;;  %v3633_v8 = vld [vmem:[%s5835_s26 + $0x870] sm:$0xff]  ;;  %v2953_v60 = vadd.f32 %v2952_v34, %v2930_v59  ;;  %4394 = vrcp.f32 %v6956_v46  ;;  %v3623_v43 = vld [vmem:[%s5835_s26 + $0x820] sm:$0xff]  ;;  %vm3252_vm0 = vweird.f32 %v6956_v46  ;;  %v4317_v59 = vmul.f32 -1.442695, %v6613_v31 }
 0x474   : > { %3807 = vmatpush.msrb.mxu1 %v3474_v29  ;;  %3761 = vmatpush.msra.mxu3 %v3633_v8  ;;  %v4393_v19 = vpop.eup %4392  ;;  %v3544_v29 = vld [vmem:[%s5835_s26 + $0x5a8] sm:$0xff]  ;;  %v3465_v34 = vld [vmem:[%s5835_s26 + $0x330] sm:$0xff]  ;;  %v3258_v8 = vand.u32 2147483648, %v6956_v46 }
 0x475   : > { %3786 = vmatpush.msrb.mxu0 %v3384_v37  ;;  %3827 = vmatpush.msrb.mxu2 %v3569_v48  ;;  %v6972_v37 = vmul.f32 %v3342_v26, %v2953_v60  ;;  %v3534_v48 = vld [vmem:[%s5835_s26 + $0x558] sm:$0xff] }
 0x476   : > { %3808 = vmatpush.msrb.mxu1 %v3469_v45  ;;  %3762 = vmatpush.msra.mxu3 %v3628_v35  ;;  %v3370_v60 = vld [vmem:[%s5835_s26 + $0x38] sm:$0xff] }
 0x477   : > { %3787 = vmatpush.msrb.mxu0 %v3379_v36  ;;  %3828 = vmatpush.msrb.mxu2 %v3564_v53  ;;  %v6980_v36 = vadd.f32 1.0, %v4393_v19  ;;  %v3654_v19 = vld [vmem:[%s5835_s26 + $0x918] sm:$0xff] }
 0x478   : > { %3809 = vmatpush.msrb.mxu1 %v3464_v47  ;;  %3763 = vmatpush.msra.mxu3 %v3623_v43  ;;  %v3529_v47 = vld [vmem:[%s5835_s26 + $0x530] sm:$0xff]  ;;  %v3455_v43 = vld [vmem:[%s5835_s26 + $0x2e0] sm:$0xff] }
 0x479   : > { %3788 = vmatpush.msrb.mxu0 %v3374_v54  ;;  %3722 = vmatmul.f32.vlgmr.msra.gmra.mxu1 %v6944_v63  ;;  %v6985_v45 = vpop.eup %4394  ;;  %4396 = vrcp.f32 %v6980_v36  ;;  %vm3312_vm4 = vweird.f32 %v6980_v36 }
 0x47a   : > { %3810 = vmatpush.msrb.mxu1 %v3459_v5  ;;  %3829 = vmatpush.msrb.mxu2 %v3559_v7  ;;  %v3248_v54 = vmul.f32 %v6985_v45, %v6956_v46  ;;  %v3485_v5 = vld [vmem:[%s5835_s26 + $0x3d0] sm:$0xff]  ;;  %vm3253_vm1 = vweird.f32 %v6985_v45  ;;  %4398 = vpow2.f32 %v4317_v59 }
 0x47b   : > { %3789 = vmatpush.msrb.mxu0 %v3369_v61  ;;  %3764 = vmatpush.msra.mxu3 %v3618_v49  ;;  %v3524_v61 = vld [vmem:[%s5835_s26 + $0x508] sm:$0xff]  ;;  %vm7039_vm2 = vmor %vm3252_vm0, %vm3253_vm1  ;;  %v3441_v49 = vld [vmem:[%s5835_s26 + $0x270] sm:$0xff] }
 0x47c   : > { %3811 = vmatpush.msrb.mxu1 %v3454_v9  ;;  %3830 = vmatpush.msrb.mxu2 %v3554_v16  ;;  %v3249_v3 = vsub.f32 1.0, %v3248_v54  ;;  %v3385_v9 = vld [vmem:[%s5835_s26 + $0xb0] sm:$0xff]  ;;  %v3664_v16 = vld [vmem:[%s5835_s26 + $0x968] sm:$0xff]  ;;  %v3318_v54 = vand.u32 2147483648, %v6980_v36 }
 0x47d   : > { %3790 = vmatpush.msrb.mxu0 %v3364_v20  ;;  %v2972_v53 = vpop.f32.mrf.mxu2  ;;  %3765 = vmatpush.msra.mxu3 %v3613_v62  ;;  %v3480_v20 = vld [vmem:[%s5835_s26 + $0x3a8] sm:$0xff] }
 0x47e   : > { %3791 = vmatmul.f32.vlgmr.msrb.gmra.mxu0 %v6838_v33  ;;  %3812 = vmatpush.msrb.mxu1 %v3449_v13  ;;  %v3250_v7 = vmul.f32 %v6985_v45, %v3249_v3  ;;  %v3470_v13 = vld [vmem:[%s5835_s26 + $0x358] sm:$0xff]  ;;  %v3644_v62 = vld [vmem:[%s5835_s26 + $0x8c8] sm:$0xff] }
 0x47f   : > { %3867 = vmatpush.msra.mxu0 %v3440_v10  ;;  %3831 = vmatpush.msrb.mxu2 %v3549_v21  ;;  %v7007_v42 = vpop.eup %4396 }
 0x480   : > { %3813 = vmatpush.msrb.mxu1 %v3444_v57  ;;  %3766 = vmatpush.msra.mxu3 %v3608_v39  ;;  %v3308_v10 = vmul.f32 %v7007_v42, %v6980_v36  ;;  %v3375_v57 = vld [vmem:[%s5835_s26 + $0x60] sm:$0xff]  ;;  %vm3313_vm5 = vweird.f32 %v7007_v42  ;;  %v3445_v39 = vld [vmem:[%s5835_s26 + $0x290] sm:$0xff] }
 0x481   : > { %3868 = vmatpush.msra.mxu0 %v3435_v18  ;;  %3725 = vmatmul.f32.gmra.mxu1 %v6972_v37  ;;  %v3251_v18 = vadd.f32 %v6985_v45, %v3250_v7  ;;  %vm7070_vm6 = vmor %vm3312_vm4, %vm3313_vm5  ;;  %v3426_v7 = vld [vmem:[%s5835_s26 + $0x1f8] sm:$0xff] }
 0x482   : > { %3890 = vmatpush.msra.mxu1 %v3520_v58  ;;  %3832 = vmatpush.msrb.mxu2 %v3544_v29  ;;  %v3309_v21 = vsub.f32 1.0, %v3308_v10  ;;  %v3256_v58 = vand.u32 2147483647, %v6956_v46  ;;  %v3259_v46 = vor.u32 1.1754944e-38, %v3258_v8  ;;  %v3590_v8 = vld [vmem:[%s5835_s26 + $0x718] sm:$0xff] }
 0x483   : > { %3869 = vmatpush.msra.mxu0 %v3430_v51  ;;  %3767 = vmatpush.msra.mxu3 %v3603_v22  ;;  %v3659_v51 = vld [vmem:[%s5835_s26 + $0x940] sm:$0xff]  ;;  %v3255_v29 = vsel %vm7039_vm2, %v6985_v45, %v3251_v18  ;;  %v4399_v22 = vpop.eup %4398  ;;  %v3634_v18 = vld [vmem:[%s5835_s26 + $0x878] sm:$0xff] }
 0x484   : > { %3891 = vmatpush.msra.mxu1 %v3515_v17  ;;  %3833 = vmatpush.msrb.mxu2 %v3539_v27  ;;  %v3310_v27 = vmul.f32 %v7007_v42, %v3309_v21  ;;  %vm3257_vm3 = vcmp.eq.f32.partialorder %v3256_v58, 8.507059e+37  ;;  %v7084_v10 = vadd.f32 1.0, %v4399_v22  ;;  %v3629_v58 = vld [vmem:[%s5835_s26 + $0x850] sm:$0xff] }
 0x485   : > { %3870 = vmatpush.msra.mxu0 %v3425_v1  ;;  %3844 = vmatpush.msrb.mxu3 %v3679_v24  ;;  %v7020_v15 = vpop.f32.mrf.mxu2  ;;  %v3460_v1 = vld [vmem:[%s5835_s26 + $0x308] sm:$0xff]  ;;  %v3260_v45 = vsel %vm3257_vm3, %v3259_v46, %v3255_v29  ;;  %v3491_v46 = vld [vmem:[%s5835_s26 + $0x400] sm:$0xff] }
 0x486   : > { %3794 = vmatmul.f32.gmra.mxu0 %v6861_v55  ;;  %3892 = vmatpush.msra.mxu1 %v3510_v40  ;;  %v3339_v3 = vmul.f32 %v3260_v45, %v6532_v50  ;;  %v3319_v50 = vor.u32 1.1754944e-38, %v3318_v54  ;;  %v3496_v29 = vld [vmem:[%s5835_s26 + $0x428] sm:$0xff]  ;;  %vm3267_vm8 = vweird.f32 %v7084_v10 }
 0x487   : > { %3871 = vmatpush.msra.mxu0 %v3420_v38  ;;  %3834 = vmatpush.msrb.mxu2 %v3534_v48  ;;  %v3365_v38 = vld [vmem:[%s5835_s26 + $0x10] sm:$0xff]  ;;  %v3450_v48 = vld [vmem:[%s5835_s26 + $0x2b8] sm:$0xff]  ;;  %v3396_v45 = vld [vmem:[%s5835_s26 + $0x108] sm:$0xff] }
 0x488   : > { %3893 = vmatpush.msra.mxu1 %v3505_v14  ;;  %3845 = vmatpush.msrb.mxu3 %v3674_v52  ;;  %v2995_v26 = vpop.f32.mrf.mxu3  ;;  %v3649_v14 = vld [vmem:[%s5835_s26 + $0x8f0] sm:$0xff]  ;;  %v3516_v52 = vld [vmem:[%s5835_s26 + $0x4c8] sm:$0xff] }
 0x489   : > { %3872 = vmatpush.msra.mxu0 %v3415_v25  ;;  %3814 = vmatmul.f32.vlgmr.msrb.gmra.mxu1 %v6944_v63  ;;  %v2996_v35 = vadd.f32 %v2995_v26, %v2972_v53  ;;  %v3521_v53 = vld [vmem:[%s5835_s26 + $0x4f0] sm:$0xff] }
 0x48a   : > { %3894 = vmatpush.msra.mxu1 %v3500_v11  ;;  %3835 = vmatpush.msrb.mxu2 %v3529_v47 }
 0x48b   : > { %3873 = vmatpush.msra.mxu0 %v3410_v6  ;;  %3846 = vmatpush.msrb.mxu3 %v3669_v2  ;;  %v3018_v40 = vpop.f32.mrf.mxu0  ;;  %v3511_v2 = vld [vmem:[%s5835_s26 + $0x4a0] sm:$0xff] }
 0x48c   : > { %3895 = vmatpush.msra.mxu1 %v3495_v41  ;;  %3836 = vmatpush.msrb.mxu2 %v3524_v61  ;;  %v3019_v25 = vadd.f32 %v3018_v40, %v2996_v35  ;;  %v3436_v41 = vld [vmem:[%s5835_s26 + $0x248] sm:$0xff]  ;;  %v3639_v61 = vld [vmem:[%s5835_s26 + $0x8a0] sm:$0xff] }
 0x48d   : > { %3874 = vmatpush.msra.mxu0 %v3405_v28  ;;  %3847 = vmatpush.msrb.mxu3 %v3664_v16  ;;  %v4321_v28 = vmul.f32 -1.442695, %v6636_v44  ;;  %v3411_v35 = vld [vmem:[%s5835_s26 + $0x180] sm:$0xff] }
 0x48e   : > { %3896 = vmatpush.msra.mxu1 %v3490_v30  ;;  %v3041_v6 = vpop.f32.mrf.mxu1  ;;  %v3064_v11 = vpop.f32.mrf.mxu2  ;;  %v3316_v30 = vand.u32 2147483647, %v6980_v36 }
 0x48f   : > { %3875 = vmatpush.msra.mxu0 %v3400_v0  ;;  %3848 = vmatpush.msrb.mxu3 %v3659_v51  ;;  %v3042_v47 = vadd.f32 %v3041_v6, %v3019_v25  ;;  %v3311_v0 = vadd.f32 %v7007_v42, %v3310_v27  ;;  %4400 = vpow2.f32 %v4321_v28  ;;  %v3501_v51 = vld [vmem:[%s5835_s26 + $0x450] sm:$0xff]  ;;  %v3624_v25 = vld [vmem:[%s5835_s26 + $0x828] sm:$0xff]  ;;  %v3619_v6 = vld [vmem:[%s5835_s26 + $0x800] sm:$0xff] }
 0x490   : > { %3897 = vmatpush.msra.mxu1 %v3485_v5  ;;  %v3431_v5 = vld [vmem:[%s5835_s26 + $0x220] sm:$0xff]  ;;  %vm3317_vm7 = vcmp.eq.f32.partialorder %v3316_v30, 8.507059e+37  ;;  %4402 = vrcp.f32 %v7084_v10  ;;  %v3401_v27 = vld [vmem:[%s5835_s26 + $0x130] sm:$0xff] }
 0x491   : > { %3876 = vmatpush.msra.mxu0 %v3395_v4  ;;  %3817 = vmatmul.f32.gmra.mxu1 %v6972_v37  ;;  %v3065_v24 = vadd.f32 %v3064_v11, %v3042_v47  ;;  %v3570_v11 = vld [vmem:[%s5835_s26 + $0x678] sm:$0xff]  ;;  %v3391_v28 = vld [vmem:[%s5835_s26 + $0xe0] sm:$0xff]  ;;  %v3565_v47 = vld [vmem:[%s5835_s26 + $0x650] sm:$0xff] }
 0x492   : > { %3898 = vmatpush.msra.mxu1 %v3480_v20  ;;  %3849 = vmatpush.msrb.mxu3 %v3654_v19  ;;  %v3585_v19 = vld [vmem:[%s5835_s26 + $0x6f0] sm:$0xff] }
 0x493   : > { %3877 = vmatpush.msra.mxu0 %v3390_v32  ;;  %v2998_v32 = vpop.f32.mrf.mxu3  ;;  %v7078_v36 = vmul.f32 %v3339_v3, %v3065_v24  ;;  %v3381_v3 = vld [vmem:[%s5835_s26 + $0x90] sm:$0xff]  ;;  %v3555_v24 = vld [vmem:[%s5835_s26 + $0x600] sm:$0xff] }
 0x494   : > { %3899 = vmatpush.msra.mxu1 %v3475_v12  ;;  %3850 = vmatpush.msrb.mxu3 %v3649_v14  ;;  %v2999_v20 = vadd.f32 %v2998_v32, %v7020_v15  ;;  %v3315_v12 = vsel %vm7070_vm6, %v7007_v42, %v3311_v0  ;;  %v3595_v15 = vld [vmem:[%s5835_s26 + $0x740] sm:$0xff]  ;;  %v3506_v42 = vld [vmem:[%s5835_s26 + $0x478] sm:$0xff]  ;;  %v3609_v4 = vld [vmem:[%s5835_s26 + $0x7b0] sm:$0xff] }
 0x495   : > { %3878 = vmatpush.msra.mxu0 %v3385_v9  ;;  %v3600_v9 = vld [vmem:[%s5835_s26 + $0x768] sm:$0xff]  ;;  %3745 = vmatmul.f32.vlgmr.msra.gmra.mxu2 %v7078_v36  ;;  %v3320_v59 = vsel %vm3317_vm7, %v3319_v50, %v3315_v12  ;;  %v3386_v0 = vld [vmem:[%s5835_s26 + $0xb8] sm:$0xff] }
 0x496   : > { %3900 = vmatpush.msra.mxu1 %v3470_v13  ;;  %3851 = vmatpush.msrb.mxu3 %v3644_v62  ;;  %v3021_v13 = vpop.f32.mrf.mxu0  ;;  %v3481_v62 = vld [vmem:[%s5835_s26 + $0x3b0] sm:$0xff]  ;;  %v3466_v32 = vld [vmem:[%s5835_s26 + $0x338] sm:$0xff] }
 0x497   : > { %3879 = vmatpush.msra.mxu0 %v3380_v56  ;;  %v3421_v56 = vld [vmem:[%s5835_s26 + $0x1d0] sm:$0xff]  ;;  %v3022_v16 = vadd.f32 %v3021_v13, %v2999_v20  ;;  %3913 = vmatpush.msra.mxu2 %v3600_v9  ;;  %v3376_v20 = vld [vmem:[%s5835_s26 + $0x68] sm:$0xff]  ;;  %v3550_v50 = vld [vmem:[%s5835_s26 + $0x5d8] sm:$0xff] }
 0x498   : > { %3901 = vmatpush.msra.mxu1 %v3465_v34  ;;  %3852 = vmatpush.msrb.mxu3 %v3639_v61  ;;  %v3044_v34 = vpop.f32.mrf.mxu1  ;;  %v3067_v26 = vpop.f32.mrf.mxu2  ;;  %v3471_v61 = vld [vmem:[%s5835_s26 + $0x360] sm:$0xff]  ;;  %v3456_v13 = vld [vmem:[%s5835_s26 + $0x2e8] sm:$0xff] }
 0x499   : > { %3880 = vmatpush.msra.mxu0 %v3375_v57  ;;  %v3416_v57 = vld [vmem:[%s5835_s26 + $0x1a8] sm:$0xff]  ;;  %v3045_v21 = vadd.f32 %v3044_v34, %v3022_v16  ;;  %3914 = vmatpush.msra.mxu2 %v3595_v15  ;;  %v3366_v15 = vld [vmem:[%s5835_s26 + $0x18] sm:$0xff] }
 0x49a   : > { %3902 = vmatpush.msra.mxu1 %v3460_v1  ;;  %3853 = vmatpush.msrb.mxu3 %v3634_v18  ;;  %v3343_v1 = vmul.f32 %v3320_v59, %v6552_v23  ;;  %v3580_v23 = vld [vmem:[%s5835_s26 + $0x6c8] sm:$0xff]  ;;  %v3442_v59 = vld [vmem:[%s5835_s26 + $0x278] sm:$0xff] }
 0x49b   : > { %3881 = vmatpush.msra.mxu0 %v3370_v60  ;;  %v4401_v60 = vpop.eup %4400  ;;  %v3068_v17 = vadd.f32 %v3067_v26, %v3045_v21  ;;  %3915 = vmatpush.msra.mxu2 %v3590_v8  ;;  %v3540_v16 = vld [vmem:[%s5835_s26 + $0x588] sm:$0xff]  ;;  %v3451_v8 = vld [vmem:[%s5835_s26 + $0x2c0] sm:$0xff]  ;;  %v3273_v21 = vand.u32 2147483648, %v7084_v10 }
 0x49c   : > { %3903 = vmatpush.msra.mxu1 %v3455_v43  ;;  %3854 = vmatpush.msrb.mxu3 %v3629_v58  ;;  %v7104_v40 = vadd.f32 1.0, %v4401_v60  ;;  %v7113_v14 = vpop.eup %4402  ;;  %v3271_v58 = vand.u32 2147483647, %v7084_v10  ;;  %v3437_v60 = vld [vmem:[%s5835_s26 + $0x250] sm:$0xff] }
 0x49d   : > { %3882 = vmatpush.msra.mxu0 %v3365_v38  ;;  %v3406_v38 = vld [vmem:[%s5835_s26 + $0x158] sm:$0xff]  ;;  %v7106_v43 = vmul.f32 %v3343_v1, %v3068_v17  ;;  %3916 = vmatpush.msra.mxu2 %v3585_v19  ;;  %v3263_v54 = vmul.f32 %v7113_v14, %v7084_v10  ;;  %vm3268_vm9 = vweird.f32 %v7113_v14  ;;  %v3387_v17 = vld [vmem:[%s5835_s26 + $0xc0] sm:$0xff] }
 0x49e   : > { %3883 = vmatmul.f32.vlgmr.msra.gmra.mxu0 %v6838_v33  ;;  %3904 = vmatpush.msra.mxu1 %v3450_v48  ;;  %v3486_v48 = vld [vmem:[%s5835_s26 + $0x3d8] sm:$0xff]  ;;  %4404 = vrcp.f32 %v7104_v40  ;;  %vm7167_vm10 = vmor %vm3267_vm8, %vm3268_vm9  ;;  %vm3272_vm11 = vcmp.eq.f32.partialorder %v3271_v58, 8.507059e+37  ;;  %vm3327_vm12 = vweird.f32 %v7104_v40  ;;  %v3492_v58 = vld [vmem:[%s5835_s26 + $0x408] sm:$0xff] }
 0x49f   : > { %3959 = vmatpush.msrb.mxu0 %v3441_v49  ;;  %3748 = vmatmul.f32.gmra.mxu2 %v7106_v43  ;;  %v3575_v49 = vld [vmem:[%s5835_s26 + $0x6a0] sm:$0xff]  ;;  %v3264_v22 = vsub.f32 1.0, %v3263_v54  ;;  %v3446_v1 = vld [vmem:[%s5835_s26 + $0x298] sm:$0xff] }
 0x4a0   : > { %3905 = vmatpush.msra.mxu1 %v3445_v39  ;;  %3917 = vmatpush.msra.mxu2 %v3580_v23  ;;  %v3476_v39 = vld [vmem:[%s5835_s26 + $0x388] sm:$0xff]  ;;  %v3530_v19 = vld [vmem:[%s5835_s26 + $0x538] sm:$0xff] }
 0x4a1   : > { %3960 = vmatpush.msrb.mxu0 %v3436_v41  ;;  %3906 = vmatmul.f32.vlgmr.msra.gmra.mxu1 %v6944_v63  ;;  %v3614_v41 = vld [vmem:[%s5835_s26 + $0x7d8] sm:$0xff]  ;;  %v3087_v30 = vpop.f32.mrf.mxu3  ;;  %v3265_v9 = vmul.f32 %v7113_v14, %v3264_v22  ;;  %v3432_v23 = vld [vmem:[%s5835_s26 + $0x228] sm:$0xff] }
 0x4a2   : > { %3982 = vmatpush.msrb.mxu1 %v3521_v53  ;;  %3855 = vmatpush.msrb.mxu3 %v3624_v25  ;;  %v3560_v53 = vld [vmem:[%s5835_s26 + $0x628] sm:$0xff]  ;;  %v3525_v25 = vld [vmem:[%s5835_s26 + $0x510] sm:$0xff] }
 0x4a3   : > { %3961 = vmatpush.msrb.mxu0 %v3431_v5  ;;  %3918 = vmatpush.msra.mxu2 %v3575_v49  ;;  %v3427_v49 = vld [vmem:[%s5835_s26 + $0x200] sm:$0xff] }
 0x4a4   : > { %3983 = vmatpush.msrb.mxu1 %v3516_v52  ;;  %3856 = vmatpush.msrb.mxu3 %v3619_v6  ;;  %v7134_v5 = vpop.eup %4404  ;;  %v3604_v52 = vld [vmem:[%s5835_s26 + $0x788] sm:$0xff]  ;;  %v3333_v6 = vand.u32 2147483648, %v7104_v40 }
 0x4a5   : > { %3962 = vmatpush.msrb.mxu0 %v3426_v7  ;;  %3919 = vmatpush.msra.mxu2 %v3570_v11  ;;  %v3461_v7 = vld [vmem:[%s5835_s26 + $0x310] sm:$0xff]  ;;  %v3323_v12 = vmul.f32 %v7134_v5, %v7104_v40  ;;  %vm3328_vm13 = vweird.f32 %v7134_v5 }
 0x4a6   : > { %3886 = vmatmul.f32.gmra.mxu0 %v6861_v55  ;;  %3984 = vmatpush.msrb.mxu1 %v3511_v2  ;;  %v3371_v2 = vld [vmem:[%s5835_s26 + $0x40] sm:$0xff]  ;;  %vm7194_vm14 = vmor %vm3327_vm12, %vm3328_vm13 }
 0x4a7   : > { %3963 = vmatpush.msrb.mxu0 %v3421_v56  ;;  %3857 = vmatpush.msrb.mxu3 %v3614_v41  ;;  %v3545_v56 = vld [vmem:[%s5835_s26 + $0x5b0] sm:$0xff]  ;;  %v3324_v18 = vsub.f32 1.0, %v3323_v12  ;;  %v3422_v41 = vld [vmem:[%s5835_s26 + $0x1d8] sm:$0xff]  ;;  %v3407_v12 = vld [vmem:[%s5835_s26 + $0x160] sm:$0xff] }
 0x4a8   : > { %3985 = vmatpush.msrb.mxu1 %v3506_v42  ;;  %3920 = vmatpush.msra.mxu2 %v3565_v47  ;;  %v3266_v42 = vadd.f32 %v7113_v14, %v3265_v9  ;;  %v3591_v9 = vld [vmem:[%s5835_s26 + $0x720] sm:$0xff] }
 0x4a9   : > { %3964 = vmatpush.msrb.mxu0 %v3416_v57  ;;  %3909 = vmatmul.f32.gmra.mxu1 %v6972_v37  ;;  %v3090_v57 = vpop.f32.mrf.mxu3 }
 0x4aa   : > { %3986 = vmatpush.msrb.mxu1 %v3501_v51  ;;  %3837 = vmatmul.f32.vlgmr.msrb.gmra.mxu2 %v7078_v36  ;;  %v3535_v51 = vld [vmem:[%s5835_s26 + $0x560] sm:$0xff] }
 0x4ab   : > { %3965 = vmatpush.msrb.mxu0 %v3411_v35  ;;  %3921 = vmatpush.msra.mxu2 %v3560_v53 }
 0x4ac   : > { %3987 = vmatpush.msrb.mxu1 %v3496_v29  ;;  %3858 = vmatpush.msrb.mxu3 %v3609_v4  ;;  %v3270_v29 = vsel %vm7167_vm10, %v7113_v14, %v3266_v42  ;;  %v3402_v42 = vld [vmem:[%s5835_s26 + $0x138] sm:$0xff] }
 0x4ad   : > { %3966 = vmatpush.msrb.mxu0 %v3406_v38  ;;  %3922 = vmatpush.msra.mxu2 %v3555_v24  ;;  %v3325_v38 = vmul.f32 %v7134_v5, %v3324_v18  ;;  %v3334_v24 = vor.u32 1.1754944e-38, %v3333_v6  ;;  %v3670_v18 = vld [vmem:[%s5835_s26 + $0x998] sm:$0xff]  ;;  %v3472_v6 = vld [vmem:[%s5835_s26 + $0x368] sm:$0xff] }
 0x4ae   : > { %3988 = vmatpush.msrb.mxu1 %v3491_v46  ;;  %3859 = vmatpush.msrb.mxu3 %v3604_v52  ;;  %v3522_v46 = vld [vmem:[%s5835_s26 + $0x4f8] sm:$0xff]  ;;  %v3412_v52 = vld [vmem:[%s5835_s26 + $0x188] sm:$0xff] }
 0x4af   : > { %3967 = vmatpush.msrb.mxu0 %v3401_v27  ;;  %3923 = vmatpush.msra.mxu2 %v3550_v50  ;;  %v3274_v27 = vor.u32 1.1754944e-38, %v3273_v21  ;;  %v3326_v54 = vadd.f32 %v7134_v5, %v3325_v38  ;;  %v3680_v50 = vld [vmem:[%s5835_s26 + $0x9e8] sm:$0xff]  ;;  %v3571_v38 = vld [vmem:[%s5835_s26 + $0x680] sm:$0xff] }
 0x4b0   : > { %3989 = vmatpush.msrb.mxu1 %v3486_v48  ;;  %v3517_v48 = vld [vmem:[%s5835_s26 + $0x4d0] sm:$0xff] }
 0x4b1   : > { %3968 = vmatpush.msrb.mxu0 %v3396_v45  ;;  %3924 = vmatpush.msra.mxu2 %v3545_v56  ;;  %v3275_v45 = vsel %vm3272_vm11, %v3274_v27, %v3270_v29  ;;  %v3655_v29 = vld [vmem:[%s5835_s26 + $0x920] sm:$0xff]  ;;  %v3650_v27 = vld [vmem:[%s5835_s26 + $0x8f8] sm:$0xff] }
 0x4b2   : > { %3990 = vmatpush.msrb.mxu1 %v3481_v62  ;;  %3840 = vmatmul.f32.gmra.mxu2 %v7106_v43  ;;  %v3601_v62 = vld [vmem:[%s5835_s26 + $0x770] sm:$0xff] }
 0x4b3   : > { %3969 = vmatpush.msrb.mxu0 %v3391_v28  ;;  %3925 = vmatpush.msra.mxu2 %v3540_v16  ;;  %v3331_v28 = vand.u32 2147483647, %v7104_v40  ;;  %v3596_v40 = vld [vmem:[%s5835_s26 + $0x748] sm:$0xff]  ;;  %v3586_v16 = vld [vmem:[%s5835_s26 + $0x6f8] sm:$0xff] }
 0x4b4   : > { %3991 = vmatpush.msrb.mxu1 %v3476_v39  ;;  %v3512_v39 = vld [vmem:[%s5835_s26 + $0x4a8] sm:$0xff] }
 0x4b5   : > { %3970 = vmatpush.msrb.mxu0 %v3386_v0  ;;  %3926 = vmatpush.msra.mxu2 %v3535_v51  ;;  %vm3332_vm15 = vcmp.eq.f32.partialorder %v3331_v28, 8.507059e+37  ;;  %v3665_v51 = vld [vmem:[%s5835_s26 + $0x970] sm:$0xff]  ;;  %v3467_v28 = vld [vmem:[%s5835_s26 + $0x340] sm:$0xff]  ;;  %v3630_v0 = vld [vmem:[%s5835_s26 + $0x858] sm:$0xff] }
 0x4b6   : > { %3992 = vmatpush.msrb.mxu1 %v3471_v61  ;;  %v3340_v61 = vmul.f32 %v3275_v45, %v6613_v31  ;;  %v3372_v45 = vld [vmem:[%s5835_s26 + $0x48] sm:$0xff] }
 0x4b7   : > { %3971 = vmatpush.msrb.mxu0 %v3381_v3  ;;  %3927 = vmatpush.msra.mxu2 %v3530_v19  ;;  %v3417_v3 = vld [vmem:[%s5835_s26 + $0x1b0] sm:$0xff]  ;;  %v3487_v19 = vld [vmem:[%s5835_s26 + $0x3e0] sm:$0xff] }
 0x4b8   : > { %3993 = vmatpush.msrb.mxu1 %v3466_v32  ;;  %v3507_v32 = vld [vmem:[%s5835_s26 + $0x480] sm:$0xff] }
 0x4b9   : > { %3972 = vmatpush.msrb.mxu0 %v3376_v20  ;;  %3928 = vmatpush.msra.mxu2 %v3525_v25  ;;  %v3330_v20 = vsel %vm7194_vm14, %v7134_v5, %v3326_v54  ;;  %v3377_v25 = vld [vmem:[%s5835_s26 + $0x70] sm:$0xff]  ;;  %v3367_v54 = vld [vmem:[%s5835_s26 + $0x20] sm:$0xff] }
 0x4ba   : > { %3994 = vmatpush.msrb.mxu1 %v3461_v7  ;;  %v3110_v34 = vpop.f32.mrf.mxu0  ;;  %3929 = vmatmul.f32.vlgmr.msra.gmra.mxu2 %v7078_v36  ;;  %v3335_v56 = vsel %vm3332_vm15, %v3334_v24, %v3330_v20  ;;  %v3615_v24 = vld [vmem:[%s5835_s26 + $0x7e0] sm:$0xff]  ;;  %v3610_v20 = vld [vmem:[%s5835_s26 + $0x7b8] sm:$0xff] }
 0x4bb   : > { %3973 = vmatpush.msrb.mxu0 %v3371_v2  ;;  %v3111_v26 = vadd.f32 %v3110_v34, %v3087_v30  ;;  %4005 = vmatpush.msrb.mxu2 %v3601_v62  ;;  %v3675_v2 = vld [vmem:[%s5835_s26 + $0x9c0] sm:$0xff]  ;;  %v3581_v34 = vld [vmem:[%s5835_s26 + $0x6d0] sm:$0xff]  ;;  %v3640_v62 = vld [vmem:[%s5835_s26 + $0x8a8] sm:$0xff] }
 0x4bc   : > { %3995 = vmatpush.msrb.mxu1 %v3456_v13 }
 0x4bd   : > { %3974 = vmatpush.msrb.mxu0 %v3366_v15  ;;  %4006 = vmatpush.msrb.mxu2 %v3596_v40  ;;  %v3502_v15 = vld [vmem:[%s5835_s26 + $0x458] sm:$0xff]  ;;  %v3536_v40 = vld [vmem:[%s5835_s26 + $0x568] sm:$0xff] }
 0x4be   : > { %3975 = vmatmul.f32.vlgmr.msrb.gmra.mxu0 %v6838_v33  ;;  %v3133_v35 = vpop.f32.mrf.mxu1  ;;  %3996 = vmatpush.msrb.mxu1 %v3451_v8  ;;  %v3344_v8 = vmul.f32 %v3335_v56, %v6636_v44  ;;  %v3660_v44 = vld [vmem:[%s5835_s26 + $0x948] sm:$0xff]  ;;  %v3666_v56 = vld [vmem:[%s5835_s26 + $0x978] sm:$0xff] }
 0x4bf   : > { %4051 = vmatpush.msra.mxu0 %v3442_v59  ;;  %v3134_v10 = vadd.f32 %v3133_v35, %v3111_v26  ;;  %4007 = vmatpush.msrb.mxu2 %v3591_v9  ;;  %v3397_v26 = vld [vmem:[%s5835_s26 + $0x110] sm:$0xff]  ;;  %v3392_v35 = vld [vmem:[%s5835_s26 + $0xe8] sm:$0xff] }
 0x4c0   : > { %3997 = vmatpush.msrb.mxu1 %v3446_v1  ;;  %v3576_v1 = vld [vmem:[%s5835_s26 + $0x6a8] sm:$0xff]  ;;  %v3681_v9 = vld [vmem:[%s5835_s26 + $0x9f0] sm:$0xff] }
 0x4c1   : > { %4052 = vmatpush.msra.mxu0 %v3437_v60  ;;  %3998 = vmatmul.f32.vlgmr.msrb.gmra.mxu1 %v6944_v63 }
 0x4c2   : > { %v3156_v14 = vpop.f32.mrf.mxu2  ;;  %4074 = vmatpush.msra.mxu1 %v3522_v46  ;;  %4008 = vmatpush.msrb.mxu2 %v3586_v16  ;;  %v3482_v46 = vld [vmem:[%s5835_s26 + $0x3b8] sm:$0xff]  ;;  %v3577_v16 = vld [vmem:[%s5835_s26 + $0x6b0] sm:$0xff] }
 0x4c3   : > { %4053 = vmatpush.msra.mxu0 %v3432_v23  ;;  %v3157_v11 = vadd.f32 %v3156_v14, %v3134_v10  ;;  %v3113_v47 = vpop.f32.mrf.mxu0  ;;  %3932 = vmatmul.f32.gmra.mxu2 %v7106_v43  ;;  %v3382_v23 = vld [vmem:[%s5835_s26 + $0x98] sm:$0xff]  ;;  %v3645_v14 = vld [vmem:[%s5835_s26 + $0x8d0] sm:$0xff] }
 0x4c4   : > { %v3114_v30 = vadd.f32 %v3113_v47, %v3090_v57  ;;  %4075 = vmatpush.msra.mxu1 %v3517_v48  ;;  %v3497_v57 = vld [vmem:[%s5835_s26 + $0x430] sm:$0xff]  ;;  %4009 = vmatpush.msrb.mxu2 %v3581_v34  ;;  %v3566_v10 = vld [vmem:[%s5835_s26 + $0x658] sm:$0xff]  ;;  %v3551_v47 = vld [vmem:[%s5835_s26 + $0x5e0] sm:$0xff] }
 0x4c5   : > { %4054 = vmatpush.msra.mxu0 %v3427_v49  ;;  %v3179_v53 = vpop.f32.mrf.mxu3  ;;  %v3477_v49 = vld [vmem:[%s5835_s26 + $0x390] sm:$0xff]  ;;  %v3562_v34 = vld [vmem:[%s5835_s26 + $0x638] sm:$0xff] }
 0x4c6   : > { %3978 = vmatmul.f32.gmra.mxu0 %v6861_v55  ;;  %v3180_v22 = vadd.f32 %v3179_v53, %v3157_v11  ;;  %v3136_v4 = vpop.f32.mrf.mxu1  ;;  %4076 = vmatpush.msra.mxu1 %v3512_v39  ;;  %v3561_v48 = vld [vmem:[%s5835_s26 + $0x630] sm:$0xff]  ;;  %v3556_v11 = vld [vmem:[%s5835_s26 + $0x608] sm:$0xff]  ;;  %v3462_v39 = vld [vmem:[%s5835_s26 + $0x318] sm:$0xff] }
 0x4c7   : > { %4055 = vmatpush.msra.mxu0 %v3422_v41  ;;  %v3137_v7 = vadd.f32 %v3136_v4, %v3114_v30  ;;  %4010 = vmatpush.msrb.mxu2 %v3576_v1  ;;  %v3635_v41 = vld [vmem:[%s5835_s26 + $0x880] sm:$0xff]  ;;  %v3546_v30 = vld [vmem:[%s5835_s26 + $0x5b8] sm:$0xff]  ;;  %v3457_v53 = vld [vmem:[%s5835_s26 + $0x2f0] sm:$0xff] }
 0x4c8   : > { %v7206_v31 = vmul.f32 %v3340_v61, %v3180_v22  ;;  %4077 = vmatpush.msra.mxu1 %v3507_v32  ;;  %v3625_v61 = vld [vmem:[%s5835_s26 + $0x830] sm:$0xff]  ;;  %v3620_v4 = vld [vmem:[%s5835_s26 + $0x808] sm:$0xff]  ;;  %v3531_v32 = vld [vmem:[%s5835_s26 + $0x540] sm:$0xff] }
 0x4c9   : > { %4056 = vmatpush.msra.mxu0 %v3417_v3  ;;  %4001 = vmatmul.f32.gmra.mxu1 %v6972_v37  ;;  %v3541_v22 = vld [vmem:[%s5835_s26 + $0x590] sm:$0xff]  ;;  %v3452_v3 = vld [vmem:[%s5835_s26 + $0x2c8] sm:$0xff]  ;;  %v3542_v1 = vld [vmem:[%s5835_s26 + $0x598] sm:$0xff] }
 0x4ca   : > { %3768 = vmatmul.f32.vlgmr.msra.gmra.mxu3 %v7206_v31  ;;  %v3159_v5 = vpop.f32.mrf.mxu2  ;;  %4078 = vmatpush.msra.mxu1 %v3502_v15  ;;  %v3661_v15 = vld [vmem:[%s5835_s26 + $0x950] sm:$0xff] }
 0x4cb   : > { %4057 = vmatpush.msra.mxu0 %v3412_v52  ;;  %3936 = vmatpush.msra.mxu3 %v3680_v50  ;;  %v3160_v13 = vadd.f32 %v3159_v5, %v3137_v7  ;;  %v3526_v52 = vld [vmem:[%s5835_s26 + $0x518] sm:$0xff]  ;;  %v3605_v50 = vld [vmem:[%s5835_s26 + $0x790] sm:$0xff]  ;;  %v3671_v5 = vld [vmem:[%s5835_s26 + $0x9a0] sm:$0xff] }
 0x4cc   : > { %4079 = vmatpush.msra.mxu1 %v3497_v57  ;;  %4011 = vmatpush.msrb.mxu2 %v3571_v38  ;;  %v3602_v7 = vld [vmem:[%s5835_s26 + $0x778] sm:$0xff]  ;;  %v3532_v38 = vld [vmem:[%s5835_s26 + $0x548] sm:$0xff] }
 0x4cd   : > { %4058 = vmatpush.msra.mxu0 %v3407_v12  ;;  %3937 = vmatpush.msra.mxu3 %v3675_v2  ;;  %v3182_v59 = vpop.f32.mrf.mxu3  ;;  %v3676_v12 = vld [vmem:[%s5835_s26 + $0x9c8] sm:$0xff]  ;;  %v3587_v2 = vld [vmem:[%s5835_s26 + $0x700] sm:$0xff]  ;;  %v3646_v57 = vld [vmem:[%s5835_s26 + $0x8d8] sm:$0xff] }
 0x4ce   : > { %v3183_v21 = vadd.f32 %v3182_v59, %v3160_v13  ;;  %4080 = vmatpush.msra.mxu1 %v3492_v58  ;;  %4012 = vmatpush.msrb.mxu2 %v3566_v10  ;;  %v3582_v13 = vld [vmem:[%s5835_s26 + $0x6d8] sm:$0xff]  ;;  %v3567_v59 = vld [vmem:[%s5835_s26 + $0x660] sm:$0xff] }
 0x4cf   : > { %4059 = vmatpush.msra.mxu0 %v3402_v42  ;;  %3938 = vmatpush.msra.mxu3 %v3670_v18  ;;  %v3656_v42 = vld [vmem:[%s5835_s26 + $0x928] sm:$0xff]  ;;  %v3651_v18 = vld [vmem:[%s5835_s26 + $0x900] sm:$0xff]  ;;  %v3682_v10 = vld [vmem:[%s5835_s26 + $0x9f8] sm:$0xff] }
 0x4d0   : > { %v7226_v60 = vmul.f32 %v3344_v8, %v3183_v21  ;;  %4081 = vmatpush.msra.mxu1 %v3487_v19  ;;  %4013 = vmatpush.msrb.mxu2 %v3561_v48  ;;  %v3641_v8 = vld [vmem:[%s5835_s26 + $0x8b0] sm:$0xff]  ;;  %v3631_v58 = vld [vmem:[%s5835_s26 + $0x860] sm:$0xff]  ;;  %v3662_v48 = vld [vmem:[%s5835_s26 + $0x958] sm:$0xff] }
 0x4d1   : > { %4060 = vmatpush.msra.mxu0 %v3397_v26  ;;  %3939 = vmatpush.msra.mxu3 %v3665_v51  ;;  %v3557_v21 = vld [vmem:[%s5835_s26 + $0x610] sm:$0xff]  ;;  %v3636_v26 = vld [vmem:[%s5835_s26 + $0x888] sm:$0xff] }
 0x4d2   : > { %3771 = vmatmul.f32.gmra.mxu3 %v7226_v60  ;;  %4082 = vmatpush.msra.mxu1 %v3482_v46  ;;  %v3552_v51 = vld [vmem:[%s5835_s26 + $0x5e8] sm:$0xff]  ;;  %v3537_v19 = vld [vmem:[%s5835_s26 + $0x570] sm:$0xff]  ;;  %v3527_v46 = vld [vmem:[%s5835_s26 + $0x520] sm:$0xff] }
 0x4d3   : > { %4061 = vmatpush.msra.mxu0 %v3392_v35  ;;  %3940 = vmatpush.msra.mxu3 %v3660_v44  ;;  %v3547_v35 = vld [vmem:[%s5835_s26 + $0x5c0] sm:$0xff]  ;;  %v3626_v44 = vld [vmem:[%s5835_s26 + $0x838] sm:$0xff] }
 0x4d4   : > { %4083 = vmatpush.msra.mxu1 %v3477_v49  ;;  %4014 = vmatpush.msrb.mxu2 %v3556_v11  ;;  %v3672_v49 = vld [vmem:[%s5835_s26 + $0x9a8] sm:$0xff]  ;;  %v3642_v11 = vld [vmem:[%s5835_s26 + $0x8b8] sm:$0xff] }
 0x4d5   : > { %4062 = vmatpush.msra.mxu0 %v3387_v17  ;;  %3941 = vmatpush.msra.mxu3 %v3655_v29  ;;  %v3621_v17 = vld [vmem:[%s5835_s26 + $0x810] sm:$0xff]  ;;  %v3616_v29 = vld [vmem:[%s5835_s26 + $0x7e8] sm:$0xff] }
 0x4d6   : > { %4084 = vmatpush.msra.mxu1 %v3472_v6  ;;  %4015 = vmatpush.msrb.mxu2 %v3551_v47  ;;  %v3647_v6 = vld [vmem:[%s5835_s26 + $0x8e0] sm:$0xff]  ;;  %v3612_v47 = vld [vmem:[%s5835_s26 + $0x7c8] sm:$0xff] }
 0x4d7   : > { %4063 = vmatpush.msra.mxu0 %v3382_v23  ;;  %3942 = vmatpush.msra.mxu3 %v3650_v27  ;;  %v3611_v23 = vld [vmem:[%s5835_s26 + $0x7c0] sm:$0xff]  ;;  %v3606_v27 = vld [vmem:[%s5835_s26 + $0x798] sm:$0xff] }
 0x4d8   : > { %4085 = vmatpush.msra.mxu1 %v3467_v28  ;;  %4016 = vmatpush.msrb.mxu2 %v3546_v30  ;;  %v3627_v28 = vld [vmem:[%s5835_s26 + $0x840] sm:$0xff] }
 0x4d9   : > { %4064 = vmatpush.msra.mxu0 %v3377_v25  ;;  %3943 = vmatpush.msra.mxu3 %v3645_v14  ;;  %v3677_v25 = vld [vmem:[%s5835_s26 + $0x9d0] sm:$0xff]  ;;  %v3667_v14 = vld [vmem:[%s5835_s26 + $0x980] sm:$0xff] }
 0x4da   : > { %3860 = vmatmul.f32.vlgmr.msrb.gmra.mxu3 %v7206_v31  ;;  %4086 = vmatpush.msra.mxu1 %v3462_v39  ;;  %v3607_v39 = vld [vmem:[%s5835_s26 + $0x7a0] sm:$0xff] }
 0x4db   : > { %4065 = vmatpush.msra.mxu0 %v3372_v45  ;;  %3944 = vmatpush.msra.mxu3 %v3640_v62  ;;  %v3652_v45 = vld [vmem:[%s5835_s26 + $0x908] sm:$0xff]  ;;  %v3637_v62 = vld [vmem:[%s5835_s26 + $0x890] sm:$0xff] }
 0x4dc   : > { %4087 = vmatpush.msra.mxu1 %v3457_v53  ;;  %4017 = vmatpush.msrb.mxu2 %v3541_v22  ;;  %v3700_v53 = vpop.f32.mrf.mxu0 }
 0x4dd   : > { %4066 = vmatpush.msra.mxu0 %v3367_v54  ;;  %3945 = vmatpush.msra.mxu3 %v3635_v41  ;;  %v3632_v54 = vld [vmem:[%s5835_s26 + $0x868] sm:$0xff]  ;;  %v3617_v41 = vld [vmem:[%s5835_s26 + $0x7f0] sm:$0xff] }
 0x4de   : > { %4067 = vmatmul.f32.vlgmr.msra.gmra.mxu0 %v6838_v33  ;;  %v3447_v33 = vld [vmem:[%s5835_s26 + $0x2a0] sm:$0xff]  ;;  %4088 = vmatpush.msra.mxu1 %v3452_v3 }
 0x4df   : > { %3946 = vmatpush.msra.mxu3 %v3630_v0  ;;  %4018 = vmatpush.msrb.mxu2 %v3536_v40  ;;  %v3353_v40 = vld [vmem:[#allocation2 + $0x30] sm:$0xff] }
 0x4e0   : > { %4089 = vmatpush.msra.mxu1 %v3447_v33 }
 0x4e1   : > { %3947 = vmatpush.msra.mxu3 %v3625_v61  ;;  %4090 = vmatmul.f32.vlgmr.msra.gmra.mxu1 %v6944_v63  ;;  %v3592_v63 = vld [vmem:[%s5835_s26 + $0x728] sm:$0xff] }
 0x4e2   : > { %3863 = vmatmul.f32.gmra.mxu3 %v7226_v60  ;;  %4019 = vmatpush.msrb.mxu2 %v3531_v32 }
 0x4e3   : > { %3948 = vmatpush.msra.mxu3 %v3620_v4 }
 0x4e4   : > { %4020 = vmatpush.msrb.mxu2 %v3526_v52  ;;  %v3703_v32 = vpop.f32.mrf.mxu0 }
 0x4e5   : > { %3949 = vmatpush.msra.mxu3 %v3615_v24  ;;  %4021 = vmatmul.f32.vlgmr.msrb.gmra.mxu2 %v7078_v36 }
 0x4e6   : > { %4070 = vmatmul.f32.gmra.mxu0 %v6861_v55  ;;  %v3597_v55 = vld [vmem:[%s5835_s26 + $0x750] sm:$0xff]  ;;  %4097 = vmatpush.msra.mxu2 %v3602_v7 }
 0x4e7   : > { %3950 = vmatpush.msra.mxu3 %v3610_v20 }
 0x4e8   : > { %4098 = vmatpush.msra.mxu2 %v3597_v55 }
 0x4e9   : > { %3951 = vmatpush.msra.mxu3 %v3605_v50  ;;  %4093 = vmatmul.f32.gmra.mxu1 %v6972_v37  ;;  %v3572_v37 = vld [vmem:[%s5835_s26 + $0x688] sm:$0xff] }
 0x4ea   : > { %3952 = vmatmul.f32.vlgmr.msra.gmra.mxu3 %v7206_v31  ;;  %4099 = vmatpush.msra.mxu2 %v3592_v63 }
 0x4eb   : > { %4028 = vmatpush.msrb.mxu3 %v3681_v9 }
 0x4ec   : > { %4100 = vmatpush.msra.mxu2 %v3587_v2 }
 0x4ed   : > { %4029 = vmatpush.msrb.mxu3 %v3676_v12  ;;  %4024 = vmatmul.f32.gmra.mxu2 %v7106_v43 }
 0x4ee   : > { %4101 = vmatpush.msra.mxu2 %v3582_v13  ;;  %v3354_v13 = vld [vmem:[#allocation2] sm:$0xff] }
 0x4ef   : > { %4030 = vmatpush.msrb.mxu3 %v3671_v5 }
 0x4f0   : > { %4102 = vmatpush.msra.mxu2 %v3577_v16 }
 0x4f1   : > { %4031 = vmatpush.msrb.mxu3 %v3666_v56 }
 0x4f2   : > { %3955 = vmatmul.f32.gmra.mxu3 %v7226_v60  ;;  %4103 = vmatpush.msra.mxu2 %v3572_v37 }
 0x4f3   : > { %4032 = vmatpush.msrb.mxu3 %v3661_v15 }
 0x4f4   : > { %4104 = vmatpush.msra.mxu2 %v3567_v59 }
 0x4f5   : > { %4033 = vmatpush.msrb.mxu3 %v3656_v42 }
 0x4f6   : > { %4105 = vmatpush.msra.mxu2 %v3562_v34  ;;  %v3723_v0 = vpop.f32.mrf.mxu1  ;;  %v3359_v34 = vld [vmem:[#allocation2 + $0x8] sm:$0xff] }
 0x4f7   : > { %4034 = vmatpush.msrb.mxu3 %v3651_v18  ;;  %v3724_v61 = vadd.f32 %v3723_v0, %v3700_v53 }
 0x4f8   : > { %4106 = vmatpush.msra.mxu2 %v3557_v21 }
 0x4f9   : > { %4035 = vmatpush.msrb.mxu3 %v3646_v57 }
 0x4fa   : > { %4107 = vmatpush.msra.mxu2 %v3552_v51 }
 0x4fb   : > { %4036 = vmatpush.msrb.mxu3 %v3641_v8  ;;  %v3792_v12 = vpop.f32.mrf.mxu0 }
 0x4fc   : > { %4108 = vmatpush.msra.mxu2 %v3547_v35 }
 0x4fd   : > { %4037 = vmatpush.msrb.mxu3 %v3636_v26 }
 0x4fe   : > { %4109 = vmatpush.msra.mxu2 %v3542_v1  ;;  %v3726_v22 = vpop.f32.mrf.mxu1 }
 0x4ff   : > { %4038 = vmatpush.msrb.mxu3 %v3631_v58  ;;  %v3727_v52 = vadd.f32 %v3726_v22, %v3703_v32  ;;  %v3361_v22 = vld [vmem:[#allocation2 + $0x40] sm:$0xff] }
 0x500   : > { %4110 = vmatpush.msra.mxu2 %v3537_v19 }
 0x501   : > { %4039 = vmatpush.msrb.mxu3 %v3626_v44 }
 0x502   : > { %4111 = vmatpush.msra.mxu2 %v3532_v38 }
 0x503   : > { %4040 = vmatpush.msrb.mxu3 %v3621_v17  ;;  %v3795_v37 = vpop.f32.mrf.mxu0  ;;  %v3355_v17 = vld [vmem:[#allocation2 + $0x18] sm:$0xff] }
 0x504   : > { %4112 = vmatpush.msra.mxu2 %v3527_v46 }
 0x505   : > { %4041 = vmatpush.msrb.mxu3 %v3616_v29  ;;  %4113 = vmatmul.f32.vlgmr.msra.gmra.mxu2 %v7078_v36  ;;  %v3657_v36 = vld [vmem:[%s5835_s26 + $0x930] sm:$0xff] }
 0x506   : > { %v3815_v50 = vpop.f32.mrf.mxu1 }
 0x507   : > { %4042 = vmatpush.msrb.mxu3 %v3611_v23  ;;  %v3816_v5 = vadd.f32 %v3815_v50, %v3792_v12  ;;  %v3357_v50 = vld [vmem:[#allocation2 + $0x48] sm:$0xff] }
 0x509   : > { %4043 = vmatpush.msrb.mxu3 %v3606_v27 }
 0x50a   : > { %4044 = vmatmul.f32.vlgmr.msrb.gmra.mxu3 %v7206_v31 }
 0x50b   : > { %4120 = vmatpush.msra.mxu3 %v3682_v10 }
 0x50d   : > { %4121 = vmatpush.msra.mxu3 %v3677_v25  ;;  %4116 = vmatmul.f32.gmra.mxu2 %v7106_v43  ;;  %v3622_v43 = vld [vmem:[%s5835_s26 + $0x818] sm:$0xff] }
 0x50e   : > { %v3818_v2 = vpop.f32.mrf.mxu1 }
 0x50f   : > { %4122 = vmatpush.msra.mxu3 %v3672_v49  ;;  %v3819_v59 = vadd.f32 %v3818_v2, %v3795_v37  ;;  %v3360_v49 = vld [vmem:[#allocation2 + $0x20] sm:$0xff]  ;;  %v3362_v2 = vld [vmem:[#allocation2 + $0x38] sm:$0xff] }
 0x511   : > { %4123 = vmatpush.msra.mxu3 %v3667_v14 }
 0x512   : > { %4047 = vmatmul.f32.gmra.mxu3 %v7226_v60 }
 0x513   : > { %4124 = vmatpush.msra.mxu3 %v3662_v48 }
 0x515   : > { %4125 = vmatpush.msra.mxu3 %v3657_v36 }
 0x517   : > { %4126 = vmatpush.msra.mxu3 %v3652_v45 }
 0x518   : > { %v3746_v30 = vpop.f32.mrf.mxu2 }
 0x519   : > { %4127 = vmatpush.msra.mxu3 %v3647_v6  ;;  %v3747_v3 = vadd.f32 %v3746_v30, %v3724_v61 }
 0x51b   : > { %4128 = vmatpush.msra.mxu3 %v3642_v11  ;;  %v3884_v51 = vpop.f32.mrf.mxu0 }
 0x51d   : > { %4129 = vmatpush.msra.mxu3 %v3637_v62 }
 0x51e   : > { %v3907_v21 = vpop.f32.mrf.mxu1 }
 0x51f   : > { %4130 = vmatpush.msra.mxu3 %v3632_v54  ;;  %v3908_v44 = vadd.f32 %v3907_v21, %v3884_v51 }
 0x521   : > { %4131 = vmatpush.msra.mxu3 %v3627_v28  ;;  %v3356_v28 = vld [vmem:[#allocation2 + $0x10] sm:$0xff] }
 0x522   : > { %v3749_v4 = vpop.f32.mrf.mxu2 }
 0x523   : > { %4132 = vmatpush.msra.mxu3 %v3622_v43  ;;  %v3750_v7 = vadd.f32 %v3749_v4, %v3727_v52  ;;  %v3887_v46 = vpop.f32.mrf.mxu0 }
 0x525   : > { %4133 = vmatpush.msra.mxu3 %v3617_v41 }
 0x526   : > { %v3910_v38 = vpop.f32.mrf.mxu1 }
 0x527   : > { %4134 = vmatpush.msra.mxu3 %v3612_v47  ;;  %v3911_v10 = vadd.f32 %v3910_v38, %v3887_v46 }
 0x529   : > { %4135 = vmatpush.msra.mxu3 %v3607_v39 }
 0x52a   : > { %4136 = vmatmul.f32.vlgmr.msra.gmra.mxu3 %v7206_v31  ;;  %v3358_v31 = vld [vmem:[#allocation2 + $0x28] sm:$0xff] }
 0x52d   : > { %v3838_v9 = vpop.f32.mrf.mxu2 }
 0x52e   : > { %v3839_v56 = vadd.f32 %v3838_v9, %v3816_v5 }
 0x532   : > { %4139 = vmatmul.f32.gmra.mxu3 %v7226_v60 }
 0x535   : > { %v3841_v16 = vpop.f32.mrf.mxu2 }
 0x536   : > { %v3842_v57 = vadd.f32 %v3841_v16, %v3819_v59 }
 0x53b   : > { %v3976_v6 = vpop.f32.mrf.mxu0 }
 0x53d   : > { %v3930_v58 = vpop.f32.mrf.mxu2 }
 0x53e   : > { %v3931_v1 = vadd.f32 %v3930_v58, %v3908_v44  ;;  %v3999_v45 = vpop.f32.mrf.mxu1 }
 0x53f   : > { %v4000_v62 = vadd.f32 %v3999_v45, %v3976_v6 }
 0x543   : > { %v3979_v0 = vpop.f32.mrf.mxu0 }
 0x546   : > { %v3933_v27 = vpop.f32.mrf.mxu2  ;;  %v4002_v47 = vpop.f32.mrf.mxu1 }
 0x547   : > { %v3934_v25 = vadd.f32 %v3933_v27, %v3911_v10  ;;  %v4003_v53 = vadd.f32 %v4002_v47, %v3979_v0 }
 0x54d   : > { %v3769_v33 = vpop.f32.mrf.mxu3 }
 0x54e   : > { %v3770_v24 = vadd.f32 %v3769_v33, %v3747_v3 }
 0x550   : > { %v4143_v20 = vadd.f32 %v3770_v24, %v3353_v40 }
 0x552   : > { %4153 = vst [vmem:[#allocation2 + $0x30] sm:$0xff] %v4143_v20 }
 0x555   : > { %v3772_v55 = vpop.f32.mrf.mxu3 }
 0x556   : > { %v3773_v60 = vadd.f32 %v3772_v55, %v3750_v7 }
 0x558   : > { %v4148_v63 = vadd.f32 %v3773_v60, %v3358_v31 }
 0x55a   : > { %4158 = vst [vmem:[#allocation2 + $0x28] sm:$0xff] %v4148_v63 }
 0x55b   : > { %v4068_v24 = vpop.f32.mrf.mxu0 }
 0x55d   : > { %v3861_v15 = vpop.f32.mrf.mxu3 }
 0x55e   : > { %v3862_v42 = vadd.f32 %v3861_v15, %v3839_v56  ;;  %v4091_v33 = vpop.f32.mrf.mxu1 }
 0x55f   : > { %v4092_v20 = vadd.f32 %v4091_v33, %v4068_v24 }
 0x560   : > { %v4144_v18 = vadd.f32 %v3862_v42, %v3354_v13 }
 0x562   : > { %4154 = vst [vmem:[#allocation2] sm:$0xff] %v4144_v18 }
 0x563   : > { %v4071_v60 = vpop.f32.mrf.mxu0 }
 0x565   : > { %v3864_v8 = vpop.f32.mrf.mxu3 }
 0x566   : > { %v3865_v26 = vadd.f32 %v3864_v8, %v3842_v57  ;;  %v4094_v31 = vpop.f32.mrf.mxu1 }
 0x567   : > { %v4095_v63 = vadd.f32 %v4094_v31, %v4071_v60 }
 0x568   : > { %v4149_v35 = vadd.f32 %v3865_v26, %v3359_v34  ;;  %v4022_v11 = vpop.f32.mrf.mxu2 }
 0x569   : > { %v4023_v54 = vadd.f32 %v4022_v11, %v4000_v62 }
 0x56a   : > { %4159 = vst [vmem:[#allocation2 + $0x8] sm:$0xff] %v4149_v35 }
 0x56d   : > { %v3953_v19 = vpop.f32.mrf.mxu3 }
 0x56e   : > { %v3954_v29 = vadd.f32 %v3953_v19, %v3931_v1 }
 0x570   : > { %v4145_v23 = vadd.f32 %v3954_v29, %v3355_v17  ;;  %v4025_v30 = vpop.f32.mrf.mxu2 }
 0x571   : > { %v4026_v61 = vadd.f32 %v4025_v30, %v4003_v53 }
 0x572   : > { %4155 = vst [vmem:[#allocation2 + $0x18] sm:$0xff] %v4145_v23 }
 0x575   : > { %v3956_v14 = vpop.f32.mrf.mxu3 }
 0x576   : > { %v3957_v48 = vadd.f32 %v3956_v14, %v3934_v25 }
 0x578   : > { %v4150_v36 = vadd.f32 %v3957_v48, %v3360_v49 }
 0x57a   : > { %4160 = vst [vmem:[#allocation2 + $0x20] sm:$0xff] %v4150_v36 }
 0x588   : > { %v4114_v32 = vpop.f32.mrf.mxu2 }
 0x589   : > { %v4115_v52 = vadd.f32 %v4114_v32, %v4092_v20 }
 0x58d   : > { %v4045_v43 = vpop.f32.mrf.mxu3 }
 0x58e   : > { %v4046_v41 = vadd.f32 %v4045_v43, %v4023_v54 }
 0x590   : > { %v4146_v39 = vadd.f32 %v4046_v41, %v3356_v28  ;;  %v4117_v12 = vpop.f32.mrf.mxu2 }
 0x591   : > { %v4118_v5 = vadd.f32 %v4117_v12, %v4095_v63 }
 0x592   : > { %4156 = vst [vmem:[#allocation2 + $0x10] sm:$0xff] %v4146_v39 }
 0x595   : > { %v4048_v3 = vpop.f32.mrf.mxu3 }
 0x596   : > { %v4049_v4 = vadd.f32 %v4048_v3, %v4026_v61 }
 0x598   : > { %v4151_v40 = vadd.f32 %v4049_v4, %v3361_v22 }
 0x59a   : > { %4161 = vst [vmem:[#allocation2 + $0x40] sm:$0xff] %v4151_v40 }
 0x5ad   : > { %v4137_v7 = vpop.f32.mrf.mxu3 }
 0x5ae   : > { %v4138_v9 = vadd.f32 %v4137_v7, %v4115_v52 }
 0x5b0   : > { %v4147_v55 = vadd.f32 %v4138_v9, %v3357_v50 }
 0x5b2   : > { %4157 = vst [vmem:[#allocation2 + $0x48] sm:$0xff] %v4147_v55 }
 0x5b5   : > { %v4140_v56 = vpop.f32.mrf.mxu3 }
 0x5b6   : > { %v4141_v13 = vadd.f32 %v4140_v56, %v4118_v5  ;;  %4166 = sbr.rel (%p4322_p11) target bundleno = 1478 (0x5c6), region = 90 }
 0x5b8   : > { %v4152_v15 = vadd.f32 %v4141_v13, %v3362_v2 }
 0x5ba   : > { %4162 = vst [vmem:[#allocation2 + $0x38] sm:$0xff] %v4152_v15 }
 0x5bb   : > { %v4167_v16 = vld [vmem:[#allocation2 + $0x30] sm:$0xff]  ;;  %v4168_v42 = vld [vmem:[#allocation2] sm:$0xff]  ;;  %v4169_v37 = vld [vmem:[#allocation2 + $0x18] sm:$0xff] }
 0x5bc   : > { %4177 = vst [vmem:[%s7382_s4] sm:$0xff] %v4167_v16  ;;  %v4170_v18 = vld [vmem:[#allocation2 + $0x10] sm:$0xff]  ;;  %v4171_v59 = vld [vmem:[#allocation2 + $0x48] sm:$0xff]  ;;  %v4174_v8 = vld [vmem:[#allocation2 + $0x20] sm:$0xff] }
 0x5bd   : > { %4178 = vst [vmem:[%s7382_s4 + $0x8] sm:$0xff] %v4168_v42  ;;  %v4172_v57 = vld [vmem:[#allocation2 + $0x28] sm:$0xff]  ;;  %v4175_v21 = vld [vmem:[#allocation2 + $0x40] sm:$0xff] }
 0x5be   : > { %4179 = vst [vmem:[%s7382_s4 + $0x10] sm:$0xff] %v4169_v37  ;;  %v4173_v34 = vld [vmem:[#allocation2 + $0x8] sm:$0xff] }
 0x5bf   : > { %4180 = vst [vmem:[%s7382_s4 + $0x18] sm:$0xff] %v4170_v18 }
 0x5c0   : > { %4181 = vst [vmem:[%s7382_s4 + $0x20] sm:$0xff] %v4171_v59 }
 0x5c1   : > { %4182 = vst [vmem:[%s7382_s4 + $0x28] sm:$0xff] %v4172_v57  ;;  %v4176_v26 = vld [vmem:[#allocation2 + $0x38] sm:$0xff] }
 0x5c2   : > { %4183 = vst [vmem:[%s7382_s4 + $0x30] sm:$0xff] %v4173_v34 }
 0x5c3   : > { %4184 = vst [vmem:[%s7382_s4 + $0x38] sm:$0xff] %v4174_v8 }
 0x5c4   : > { %4185 = vst [vmem:[%s7382_s4 + $0x40] sm:$0xff] %v4175_v21 }
 0x5c5   : > { %4186 = vst [vmem:[%s7382_s4 + $0x48] sm:$0xff] %v4176_v26 }
 0x5c6 PF: > { %s14_s19 = sadd.s32 1, %s4456_s19   ;;  %s7400_s15 = smov %s4444_s16 }
 0x5c7   : > { %p11_p12 = scmp.ge.s32.totalorder %s14_s19, 7   ;;  %s7401_s16 = smov %s4523_s24 }
 0x5c8   : > { %s7402_s17 = smov %s4452_s18  ;;  %s7403_s18 = smov %s7405_s20 }
 0x5c9   :  { %13 = sbr.rel (!%p11_p12) target bundleno = 3 (0x3), region = 139 }

</bundles_post_ra>
